<compile_context>
chip_gen: v7x
topology: tpu7x:2x2x1
jax: 0.10.0
libtpu: 0.0.40
codegen_flags: <defaults>
</compile_context>

<pallas_src>
import jax
import jax.numpy as jnp
from jax.experimental import pallas as pl
from jax.experimental.pallas import tpu as pltpu


# Column gather order used to build the width-unfolded conv1 input on the
# host: output columns are enumerated [even cols (12) | pad (4) | odd cols
# (12) | pad (4)] so that (a) the pool1 column-max is two contiguous slices
# and (b) every in-kernel reshape keeps the second-minor dim a multiple of 8.
_COL_ORDER = [2 * j for j in range(12)] + [0] * 4 \
           + [2 * j + 1 for j in range(12)] + [0] * 4          # length 32
_COL_IDX = jnp.array([[c + dj for dj in range(5)] for c in _COL_ORDER],
                     dtype=jnp.int32)                           # [32, 5]


# ---------------------------------------------------------------------------
# The fused Pallas kernel
# ---------------------------------------------------------------------------
def _convnet_kernel(xw_ref, w1_ref, b1_ref, w2_ref, b2_ref,
                    fc1w_ref, fc1b_ref, fc2w_ref, fc2b_ref,
                    out_ref, h1_ref, y2_ref):
    f32 = jnp.float32
    B = xw_ref.shape[0]

    # ---- conv1: 5 accumulated MXU matmuls over the kernel row offset ------
    # xw rows enumerate (b, input_row, out_col'), last dim = 5 width taps.
    m1 = B * 24 * 32
    y1 = jnp.zeros((m1, 128), f32)
    for di in range(5):
        slab = xw_ref[:, pl.ds(di, 24), :, :]                 # [B,24,32,5]
        y1 = y1 + jnp.dot(slab.reshape(m1, 5), w1_ref[di],
                          preferred_element_type=f32)
    y1 = y1 + b1_ref[...]                                     # [1,128] bcast

    # ---- pool1: 2x2 max + ReLU (channels on lanes stay untouched) ---------
    y1 = y1.reshape(B, 12, 2, 32, 128)                        # split H rows
    hmax = jnp.maximum(y1[:, :, 0, :, :], y1[:, :, 1, :, :])  # [B,12,32,128]
    # columns were emitted [even | pad | odd | pad] -> contiguous halves
    h1 = jnp.maximum(hmax[:, :, 0:12, :], hmax[:, :, 16:28, :])
    h1_ref[...] = jnp.maximum(h1, 0.0)                        # [B,12,12,128]

    # ---- conv2: 25 accumulated channel matmuls ----------------------------
    # TODO(synk): Dropout2d is identity here (eval mode); training-mode
    # channel masks are not implemented.
    m2 = B * 8 * 8
    acc2 = jnp.zeros((m2, 128), f32)
    for di in range(5):
        for dj in range(5):
            win = h1_ref[:, pl.ds(di, 8), pl.ds(dj, 8), :]    # [B,8,8,128]
            acc2 = acc2 + jnp.dot(win.reshape(m2, 128),
                                  w2_ref[di * 5 + dj],
                                  preferred_element_type=f32)
    y2_ref[...] = (acc2 + b2_ref[...]).reshape(B, 8, 8, 128)

    # ---- pool2 + ReLU fused with fc1 (flatten permutation is folded into
    #      the packed fc1 weights, so no NHWC->NCHW transpose is needed) ----
    acc_fc1 = jnp.zeros((B, 128), f32)
    for ho in range(4):
        for wo in range(4):
            v = jnp.maximum(
                jnp.maximum(y2_ref[:, 2 * ho,     2 * wo,     :],
                            y2_ref[:, 2 * ho,     2 * wo + 1, :]),
                jnp.maximum(y2_ref[:, 2 * ho + 1, 2 * wo,     :],
                            y2_ref[:, 2 * ho + 1, 2 * wo + 1, :]))
            v = jnp.maximum(v, 0.0)                           # [B,128]
            acc_fc1 = acc_fc1 + jnp.dot(v, fc1w_ref[ho * 4 + wo],
                                        preferred_element_type=f32)
    # TODO(synk): F.dropout after fc1 is identity (eval mode).
    hfc1 = jnp.maximum(acc_fc1 + fc1b_ref[...], 0.0)          # [B,128]

    # ---- fc2 + log_softmax epilogue ---------------------------------------
    logits = jnp.dot(hfc1, fc2w_ref[...],
                     preferred_element_type=f32) + fc2b_ref[...]
    lane = jax.lax.broadcasted_iota(jnp.int32, (B, 128), 1)
    logits = jnp.where(lane < 10, logits, -1e30)              # mask pad lanes
    m = jnp.max(logits, axis=-1, keepdims=True)
    s = logits - m
    lse = jnp.log(jnp.sum(jnp.exp(s), axis=-1, keepdims=True))
    out_ref[...] = s - lse


# ---------------------------------------------------------------------------
# Host-side wrapper (one pallas_call per forward)
# ---------------------------------------------------------------------------
def convnet_forward(packed, x):
    """x: [B, 1, 28, 28] float32 -> log-probs [B, 10]."""
    B = x.shape[0]
    x2 = x.reshape(B, 28, 28)
    # Width-unfold (5 taps) with the pooling-friendly column order; tiny
    # gather of the 6 KB input, built on the host, consumed once in VMEM.
    xw = x2[:, :, _COL_IDX]                                   # [B,28,32,5]

    out = pl.pallas_call(
        _convnet_kernel,
        out_shape=jax.ShapeDtypeStruct((B, 128), jnp.float32),
        grid=(1,),
        in_specs=[
            pl.BlockSpec((B, 28, 32, 5), lambda i: (0, 0, 0, 0)),   # xw
            pl.BlockSpec((5, 5, 128),    lambda i: (0, 0, 0)),      # conv1 w
            pl.BlockSpec((1, 128),       lambda i: (0, 0)),         # conv1 b
            pl.BlockSpec((25, 128, 128), lambda i: (0, 0, 0)),      # conv2 w
            pl.BlockSpec((1, 128),       lambda i: (0, 0)),         # conv2 b
            pl.BlockSpec((16, 128, 128), lambda i: (0, 0, 0)),      # fc1 w
            pl.BlockSpec((1, 128),       lambda i: (0, 0)),         # fc1 b
            pl.BlockSpec((128, 128),     lambda i: (0, 0)),         # fc2 w
            pl.BlockSpec((1, 128),       lambda i: (0, 0)),         # fc2 b
        ],
        out_specs=pl.BlockSpec((B, 128), lambda i: (0, 0)),
        scratch_shapes=[pltpu.VMEM((B, 12, 12, 128), jnp.float32),  # pool1 out
                        pltpu.VMEM((B, 8, 8, 128), jnp.float32)],   # conv2 out
        compiler_params=pltpu.CompilerParams(
            dimension_semantics=("arbitrary",),
            vmem_limit_bytes=32 * 1024 * 1024),
    )(xw, packed["w1"], packed["b1"], packed["w2"], packed["b2"],
      packed["fc1w"], packed["fc1b"], packed["fc2w"], packed["fc2b"])
    return out[:, :10]


# ---------------------------------------------------------------------------
# Parameters: PyTorch-shaped init + one-time packing into MXU-friendly,
# lane-dense (128-padded) layouts.
# ---------------------------------------------------------------------------
def init_params(key):
    ks = jax.random.split(key, 8)

    def u(k, shape, fan_in):
        bound = 1.0 / float(fan_in) ** 0.5
        return jax.random.uniform(k, shape, jnp.float32, -bound, bound)

    return {
        "conv1_w": u(ks[0], (10, 1, 5, 5), 1 * 5 * 5),
        "conv1_b": u(ks[1], (10,), 1 * 5 * 5),
        "conv2_w": u(ks[2], (20, 10, 5, 5), 10 * 5 * 5),
        "conv2_b": u(ks[3], (20,), 10 * 5 * 5),
        "fc1_w":   u(ks[4], (50, 320), 320),
        "fc1_b":   u(ks[5], (50,), 320),
        "fc2_w":   u(ks[6], (10, 50), 50),
        "fc2_b":   u(ks[7], (10,), 50),
    }


def pack_params(params):
    """One-time transpose/reshape/zero-pad of weights (done at init, not per
    forward): channels padded to 128 lanes, fc1 flatten permutation folded in."""
    f32 = jnp.float32

    def pad_to(a, shape):
        out = jnp.zeros(shape, f32)
        return out.at[tuple(slice(0, s) for s in a.shape)].set(a.astype(f32))

    # conv1: w1[di, dj, o] = conv1_w[o, 0, di, dj]
    w1 = jnp.transpose(params["conv1_w"][:, 0], (1, 2, 0))            # [5,5,10]
    # conv2: w2[di*5+dj, c, o] = conv2_w[o, c, di, dj]
    w2 = jnp.transpose(params["conv2_w"], (2, 3, 1, 0)).reshape(25, 10, 20)
    # fc1: fold the NCHW flatten (feature = c*16 + h*4 + w) into the weights:
    #      fc1w[r, c, n] = fc1_w[n, c*16 + r],  r = h*4 + w
    fc1 = jnp.transpose(params["fc1_w"].reshape(50, 20, 16), (2, 1, 0))  # [16,20,50]
    fc2 = params["fc2_w"].T                                            # [50,10]

    return {
        "w1":   pad_to(w1, (5, 5, 128)),
        "b1":   pad_to(params["conv1_b"].reshape(1, 10), (1, 128)),
        "w2":   pad_to(w2, (25, 128, 128)),
        "b2":   pad_to(params["conv2_b"].reshape(1, 20), (1, 128)),
        "fc1w": pad_to(fc1, (16, 128, 128)),
        "fc1b": pad_to(params["fc1_b"].reshape(1, 50), (1, 128)),
        "fc2w": pad_to(fc2, (128, 128)),
        "fc2b": pad_to(params["fc2_b"].reshape(1, 10), (1, 128)),
    }


# ---------------------------------------------------------------------------
# Plain-JAX reference (for a self-check against the Pallas kernel)
# ---------------------------------------------------------------------------
def convnet_reference(params, x):
    def conv(x, w, b):
        y = jax.lax.conv_general_dilated(
            x, w, window_strides=(1, 1), padding="VALID",
            dimension_numbers=("NCHW", "OIHW", "NCHW"))
        return y + b[None, :, None, None]

    def pool2_relu(x):
        y = jax.lax.reduce_window(x, -jnp.inf, jax.lax.max,
                                  (1, 1, 2, 2), (1, 1, 2, 2), "VALID")
        return jnp.maximum(y, 0.0)

    x = pool2_relu(conv(x, params["conv1_w"], params["conv1_b"]))
    x = pool2_relu(conv(x, params["conv2_w"], params["conv2_b"]))
    x = x.reshape(x.shape[0], -1)                             # [B, 320]
    x = jnp.maximum(x @ params["fc1_w"].T + params["fc1_b"], 0.0)
    x = x @ params["fc2_w"].T + params["fc2_b"]
    return jax.nn.log_softmax(x, axis=-1)


if __name__ == "__main__":
    key = jax.random.PRNGKey(0)
    pkey, xkey = jax.random.split(key)
    params = init_params(pkey)
    packed = pack_params(params)
    # fc1 in_features=320 = 20*4*4 forces a 1x28x28 input (MNIST geometry).
    x = jax.random.normal(xkey, (2, 1, 28, 28), dtype=jnp.float32)

    out = jax.jit(convnet_forward)(packed, x)
    out = jax.block_until_ready(out)
    assert out.shape == (2, 10)

    ref = convnet_reference(params, x)
    err = jnp.max(jnp.abs(out - ref))
    assert jnp.allclose(out, ref, atol=5e-2, rtol=5e-2), f"max abs err {err}"
    print("KERNEL_OK")
</pallas_src>

<mosaic_0001>
module attributes {stable_mosaic.version = 11 : i64} {
  func.func @_convnet_kernel(%arg0: i32, %arg1: memref<2x28x32x5xf32, #tpu.memory_space<vmem>>, %arg2: memref<5x5x128xf32, #tpu.memory_space<vmem>>, %arg3: memref<1x128xf32, #tpu.memory_space<vmem>>, %arg4: memref<25x128x128xf32, #tpu.memory_space<vmem>>, %arg5: memref<1x128xf32, #tpu.memory_space<vmem>>, %arg6: memref<16x128x128xf32, #tpu.memory_space<vmem>>, %arg7: memref<1x128xf32, #tpu.memory_space<vmem>>, %arg8: memref<128x128xf32, #tpu.memory_space<vmem>>, %arg9: memref<1x128xf32, #tpu.memory_space<vmem>>, %arg10: memref<2x128xf32, #tpu.memory_space<vmem>>, %arg11: memref<2x12x12x128xf32, #tpu.memory_space<vmem>>, %arg12: memref<2x8x8x128xf32, #tpu.memory_space<vmem>>) attributes {dimension_semantics = [#tpu.dimension_semantics<arbitrary>], iteration_bounds = array<i64: 1>, scalar_prefetch = 0 : i64, scratch_operands = 2 : i64, tpu.core_type = #tpu.core_type<tc>, window_params = [{pipeline_mode = #tpu.pipeline_mode<synchronous>, transform_indices = @transform_0, window_bounds = array<i64: 2, 28, 32, 5>}, {pipeline_mode = #tpu.pipeline_mode<synchronous>, transform_indices = @transform_1, window_bounds = array<i64: 5, 5, 128>}, {pipeline_mode = #tpu.pipeline_mode<synchronous>, transform_indices = @transform_2, window_bounds = array<i64: 1, 128>}, {pipeline_mode = #tpu.pipeline_mode<synchronous>, transform_indices = @transform_3, window_bounds = array<i64: 25, 128, 128>}, {pipeline_mode = #tpu.pipeline_mode<synchronous>, transform_indices = @transform_4, window_bounds = array<i64: 1, 128>}, {pipeline_mode = #tpu.pipeline_mode<synchronous>, transform_indices = @transform_5, window_bounds = array<i64: 16, 128, 128>}, {pipeline_mode = #tpu.pipeline_mode<synchronous>, transform_indices = @transform_6, window_bounds = array<i64: 1, 128>}, {pipeline_mode = #tpu.pipeline_mode<synchronous>, transform_indices = @transform_7, window_bounds = array<i64: 128, 128>}, {pipeline_mode = #tpu.pipeline_mode<synchronous>, transform_indices = @transform_8, window_bounds = array<i64: 1, 128>}, {pipeline_mode = #tpu.pipeline_mode<synchronous>, transform_indices = @transform_9, window_bounds = array<i64: 2, 128>}]} {
    %cst = arith.constant 0.000000e+00 : f32
    %0 = vector.broadcast %cst : f32 to vector<1536x128xf32>
    %c0 = arith.constant 0 : index
    %c0_0 = arith.constant 0 : index
    %c0_1 = arith.constant 0 : index
    %c0_2 = arith.constant 0 : index
    %1 = vector.load %arg1[%c0, %c0_0, %c0_1, %c0_2] : memref<2x28x32x5xf32, #tpu.memory_space<vmem>>, vector<2x24x32x5xf32>
    %2 = vector.shape_cast %1 : vector<2x24x32x5xf32> to vector<1536x5xf32>
    %c0_3 = arith.constant 0 : index
    %c0_4 = arith.constant 0 : index
    %c0_5 = arith.constant 0 : index
    %3 = vector.load %arg2[%c0_3, %c0_4, %c0_5] : memref<5x5x128xf32, #tpu.memory_space<vmem>>, vector<1x5x128xf32>
    %4 = vector.shape_cast %3 : vector<1x5x128xf32> to vector<5x128xf32>
    %cst_6 = arith.constant dense<0.000000e+00> : vector<1536x128xf32>
    %5 = tpu.matmul %2, %4, %cst_6 {dimension_numbers = #tpu.dot_dimension_numbers<[1], [0], [0], [1], [0, 0, 1, 1], [], []>} : vector<1536x5xf32>, vector<5x128xf32>, vector<1536x128xf32> -> vector<1536x128xf32>
    %6 = arith.addf %0, %5 : vector<1536x128xf32>
    %c0_7 = arith.constant 0 : index
    %c1 = arith.constant 1 : index
    %c0_8 = arith.constant 0 : index
    %c0_9 = arith.constant 0 : index
    %7 = vector.load %arg1[%c0_7, %c1, %c0_8, %c0_9] : memref<2x28x32x5xf32, #tpu.memory_space<vmem>>, vector<2x24x32x5xf32>
    %8 = vector.shape_cast %7 : vector<2x24x32x5xf32> to vector<1536x5xf32>
    %c1_10 = arith.constant 1 : index
    %c0_11 = arith.constant 0 : index
    %c0_12 = arith.constant 0 : index
    %9 = vector.load %arg2[%c1_10, %c0_11, %c0_12] : memref<5x5x128xf32, #tpu.memory_space<vmem>>, vector<1x5x128xf32>
    %10 = vector.shape_cast %9 : vector<1x5x128xf32> to vector<5x128xf32>
    %cst_13 = arith.constant dense<0.000000e+00> : vector<1536x128xf32>
    %11 = tpu.matmul %8, %10, %cst_13 {dimension_numbers = #tpu.dot_dimension_numbers<[1], [0], [0], [1], [0, 0, 1, 1], [], []>} : vector<1536x5xf32>, vector<5x128xf32>, vector<1536x128xf32> -> vector<1536x128xf32>
    %12 = arith.addf %6, %11 : vector<1536x128xf32>
    %c0_14 = arith.constant 0 : index
    %c2 = arith.constant 2 : index
    %c0_15 = arith.constant 0 : index
    %c0_16 = arith.constant 0 : index
    %13 = vector.load %arg1[%c0_14, %c2, %c0_15, %c0_16] : memref<2x28x32x5xf32, #tpu.memory_space<vmem>>, vector<2x24x32x5xf32>
    %14 = vector.shape_cast %13 : vector<2x24x32x5xf32> to vector<1536x5xf32>
    %c2_17 = arith.constant 2 : index
    %c0_18 = arith.constant 0 : index
    %c0_19 = arith.constant 0 : index
    %15 = vector.load %arg2[%c2_17, %c0_18, %c0_19] : memref<5x5x128xf32, #tpu.memory_space<vmem>>, vector<1x5x128xf32>
    %16 = vector.shape_cast %15 : vector<1x5x128xf32> to vector<5x128xf32>
    %cst_20 = arith.constant dense<0.000000e+00> : vector<1536x128xf32>
    %17 = tpu.matmul %14, %16, %cst_20 {dimension_numbers = #tpu.dot_dimension_numbers<[1], [0], [0], [1], [0, 0, 1, 1], [], []>} : vector<1536x5xf32>, vector<5x128xf32>, vector<1536x128xf32> -> vector<1536x128xf32>
    %18 = arith.addf %12, %17 : vector<1536x128xf32>
    %c0_21 = arith.constant 0 : index
    %c3 = arith.constant 3 : index
    %c0_22 = arith.constant 0 : index
    %c0_23 = arith.constant 0 : index
    %19 = vector.load %arg1[%c0_21, %c3, %c0_22, %c0_23] : memref<2x28x32x5xf32, #tpu.memory_space<vmem>>, vector<2x24x32x5xf32>
    %20 = vector.shape_cast %19 : vector<2x24x32x5xf32> to vector<1536x5xf32>
    %c3_24 = arith.constant 3 : index
    %c0_25 = arith.constant 0 : index
    %c0_26 = arith.constant 0 : index
    %21 = vector.load %arg2[%c3_24, %c0_25, %c0_26] : memref<5x5x128xf32, #tpu.memory_space<vmem>>, vector<1x5x128xf32>
    %22 = vector.shape_cast %21 : vector<1x5x128xf32> to vector<5x128xf32>
    %cst_27 = arith.constant dense<0.000000e+00> : vector<1536x128xf32>
    %23 = tpu.matmul %20, %22, %cst_27 {dimension_numbers = #tpu.dot_dimension_numbers<[1], [0], [0], [1], [0, 0, 1, 1], [], []>} : vector<1536x5xf32>, vector<5x128xf32>, vector<1536x128xf32> -> vector<1536x128xf32>
    %24 = arith.addf %18, %23 : vector<1536x128xf32>
    %c0_28 = arith.constant 0 : index
    %c4 = arith.constant 4 : index
    %c0_29 = arith.constant 0 : index
    %c0_30 = arith.constant 0 : index
    %25 = vector.load %arg1[%c0_28, %c4, %c0_29, %c0_30] : memref<2x28x32x5xf32, #tpu.memory_space<vmem>>, vector<2x24x32x5xf32>
    %26 = vector.shape_cast %25 : vector<2x24x32x5xf32> to vector<1536x5xf32>
    %c4_31 = arith.constant 4 : index
    %c0_32 = arith.constant 0 : index
    %c0_33 = arith.constant 0 : index
    %27 = vector.load %arg2[%c4_31, %c0_32, %c0_33] : memref<5x5x128xf32, #tpu.memory_space<vmem>>, vector<1x5x128xf32>
    %28 = vector.shape_cast %27 : vector<1x5x128xf32> to vector<5x128xf32>
    %cst_34 = arith.constant dense<0.000000e+00> : vector<1536x128xf32>
    %29 = tpu.matmul %26, %28, %cst_34 {dimension_numbers = #tpu.dot_dimension_numbers<[1], [0], [0], [1], [0, 0, 1, 1], [], []>} : vector<1536x5xf32>, vector<5x128xf32>, vector<1536x128xf32> -> vector<1536x128xf32>
    %30 = arith.addf %24, %29 : vector<1536x128xf32>
    %c0_35 = arith.constant 0 : index
    %c0_36 = arith.constant 0 : index
    %31 = vector.load %arg3[%c0_35, %c0_36] : memref<1x128xf32, #tpu.memory_space<vmem>>, vector<1x128xf32>
    %32 = vector.broadcast %31 : vector<1x128xf32> to vector<1536x128xf32>
    %33 = arith.addf %30, %32 : vector<1536x128xf32>
    %34 = vector.shape_cast %33 : vector<1536x128xf32> to vector<2x12x2x32x128xf32>
    %35 = vector.extract_strided_slice %34 {offsets = [0, 0, 0, 0, 0], sizes = [2, 12, 1, 32, 128], strides = [1, 1, 1, 1, 1]} : vector<2x12x2x32x128xf32> to vector<2x12x1x32x128xf32>
    %36 = vector.shape_cast %35 : vector<2x12x1x32x128xf32> to vector<2x12x32x128xf32>
    %37 = vector.extract_strided_slice %34 {offsets = [0, 0, 1, 0, 0], sizes = [2, 12, 1, 32, 128], strides = [1, 1, 1, 1, 1]} : vector<2x12x2x32x128xf32> to vector<2x12x1x32x128xf32>
    %38 = vector.shape_cast %37 : vector<2x12x1x32x128xf32> to vector<2x12x32x128xf32>
    %39 = arith.maximumf %36, %38 : vector<2x12x32x128xf32>
    %40 = vector.extract_strided_slice %39 {offsets = [0, 0, 0, 0], sizes = [2, 12, 12, 128], strides = [1, 1, 1, 1]} : vector<2x12x32x128xf32> to vector<2x12x12x128xf32>
    %41 = vector.extract_strided_slice %39 {offsets = [0, 0, 16, 0], sizes = [2, 12, 12, 128], strides = [1, 1, 1, 1]} : vector<2x12x32x128xf32> to vector<2x12x12x128xf32>
    %42 = arith.maximumf %40, %41 : vector<2x12x12x128xf32>
    %cst_37 = arith.constant 0.000000e+00 : f32
    %43 = vector.broadcast %cst_37 : f32 to vector<2x12x12x128xf32>
    %44 = arith.maximumf %42, %43 : vector<2x12x12x128xf32>
    %c0_38 = arith.constant 0 : index
    %c0_39 = arith.constant 0 : index
    %c0_40 = arith.constant 0 : index
    %c0_41 = arith.constant 0 : index
    %45 = vector.load %arg11[%c0_38, %c0_39, %c0_40, %c0_41] : memref<2x12x12x128xf32, #tpu.memory_space<vmem>>, vector<2x12x12x128xf32>
    tpu.vector_store %arg11[%c0_38, %c0_39, %c0_40, %c0_41], %44 {strides = array<i32>} : memref<2x12x12x128xf32, #tpu.memory_space<vmem>>, vector<2x12x12x128xf32>,
    %cst_42 = arith.constant 0.000000e+00 : f32
    %46 = vector.broadcast %cst_42 : f32 to vector<128x128xf32>
    %c0_43 = arith.constant 0 : index
    %c0_44 = arith.constant 0 : index
    %c0_45 = arith.constant 0 : index
    %c0_46 = arith.constant 0 : index
    %47 = vector.load %arg11[%c0_43, %c0_44, %c0_45, %c0_46] : memref<2x12x12x128xf32, #tpu.memory_space<vmem>>, vector<2x8x8x128xf32>
    %48 = vector.shape_cast %47 : vector<2x8x8x128xf32> to vector<128x128xf32>
    %c0_47 = arith.constant 0 : index
    %c0_48 = arith.constant 0 : index
    %c0_49 = arith.constant 0 : index
    %49 = vector.load %arg4[%c0_47, %c0_48, %c0_49] : memref<25x128x128xf32, #tpu.memory_space<vmem>>, vector<1x128x128xf32>
    %50 = vector.shape_cast %49 : vector<1x128x128xf32> to vector<128x128xf32>
    %cst_50 = arith.constant dense<0.000000e+00> : vector<128x128xf32>
    %51 = tpu.matmul %48, %50, %cst_50 {dimension_numbers = #tpu.dot_dimension_numbers<[1], [0], [0], [1], [0, 0, 1, 1], [], []>} : vector<128x128xf32>, vector<128x128xf32>, vector<128x128xf32> -> vector<128x128xf32>
    %52 = arith.addf %46, %51 : vector<128x128xf32>
    %c0_51 = arith.constant 0 : index
    %c0_52 = arith.constant 0 : index
    %c1_53 = arith.constant 1 : index
    %c0_54 = arith.constant 0 : index
    %53 = vector.load %arg11[%c0_51, %c0_52, %c1_53, %c0_54] : memref<2x12x12x128xf32, #tpu.memory_space<vmem>>, vector<2x8x8x128xf32>
    %54 = vector.shape_cast %53 : vector<2x8x8x128xf32> to vector<128x128xf32>
    %c1_55 = arith.constant 1 : index
    %c0_56 = arith.constant 0 : index
    %c0_57 = arith.constant 0 : index
    %55 = vector.load %arg4[%c1_55, %c0_56, %c0_57] : memref<25x128x128xf32, #tpu.memory_space<vmem>>, vector<1x128x128xf32>
    %56 = vector.shape_cast %55 : vector<1x128x128xf32> to vector<128x128xf32>
    %cst_58 = arith.constant dense<0.000000e+00> : vector<128x128xf32>
    %57 = tpu.matmul %54, %56, %cst_58 {dimension_numbers = #tpu.dot_dimension_numbers<[1], [0], [0], [1], [0, 0, 1, 1], [], []>} : vector<128x128xf32>, vector<128x128xf32>, vector<128x128xf32> -> vector<128x128xf32>
    %58 = arith.addf %52, %57 : vector<128x128xf32>
    %c0_59 = arith.constant 0 : index
    %c0_60 = arith.constant 0 : index
    %c2_61 = arith.constant 2 : index
    %c0_62 = arith.constant 0 : index
    %59 = vector.load %arg11[%c0_59, %c0_60, %c2_61, %c0_62] : memref<2x12x12x128xf32, #tpu.memory_space<vmem>>, vector<2x8x8x128xf32>
    %60 = vector.shape_cast %59 : vector<2x8x8x128xf32> to vector<128x128xf32>
    %c2_63 = arith.constant 2 : index
    %c0_64 = arith.constant 0 : index
    %c0_65 = arith.constant 0 : index
    %61 = vector.load %arg4[%c2_63, %c0_64, %c0_65] : memref<25x128x128xf32, #tpu.memory_space<vmem>>, vector<1x128x128xf32>
    %62 = vector.shape_cast %61 : vector<1x128x128xf32> to vector<128x128xf32>
    %cst_66 = arith.constant dense<0.000000e+00> : vector<128x128xf32>
    %63 = tpu.matmul %60, %62, %cst_66 {dimension_numbers = #tpu.dot_dimension_numbers<[1], [0], [0], [1], [0, 0, 1, 1], [], []>} : vector<128x128xf32>, vector<128x128xf32>, vector<128x128xf32> -> vector<128x128xf32>
    %64 = arith.addf %58, %63 : vector<128x128xf32>
    %c0_67 = arith.constant 0 : index
    %c0_68 = arith.constant 0 : index
    %c3_69 = arith.constant 3 : index
    %c0_70 = arith.constant 0 : index
    %65 = vector.load %arg11[%c0_67, %c0_68, %c3_69, %c0_70] : memref<2x12x12x128xf32, #tpu.memory_space<vmem>>, vector<2x8x8x128xf32>
    %66 = vector.shape_cast %65 : vector<2x8x8x128xf32> to vector<128x128xf32>
    %c3_71 = arith.constant 3 : index
    %c0_72 = arith.constant 0 : index
    %c0_73 = arith.constant 0 : index
    %67 = vector.load %arg4[%c3_71, %c0_72, %c0_73] : memref<25x128x128xf32, #tpu.memory_space<vmem>>, vector<1x128x128xf32>
    %68 = vector.shape_cast %67 : vector<1x128x128xf32> to vector<128x128xf32>
    %cst_74 = arith.constant dense<0.000000e+00> : vector<128x128xf32>
    %69 = tpu.matmul %66, %68, %cst_74 {dimension_numbers = #tpu.dot_dimension_numbers<[1], [0], [0], [1], [0, 0, 1, 1], [], []>} : vector<128x128xf32>, vector<128x128xf32>, vector<128x128xf32> -> vector<128x128xf32>
    %70 = arith.addf %64, %69 : vector<128x128xf32>
    %c0_75 = arith.constant 0 : index
    %c0_76 = arith.constant 0 : index
    %c4_77 = arith.constant 4 : index
    %c0_78 = arith.constant 0 : index
    %71 = vector.load %arg11[%c0_75, %c0_76, %c4_77, %c0_78] : memref<2x12x12x128xf32, #tpu.memory_space<vmem>>, vector<2x8x8x128xf32>
    %72 = vector.shape_cast %71 : vector<2x8x8x128xf32> to vector<128x128xf32>
    %c4_79 = arith.constant 4 : index
    %c0_80 = arith.constant 0 : index
    %c0_81 = arith.constant 0 : index
    %73 = vector.load %arg4[%c4_79, %c0_80, %c0_81] : memref<25x128x128xf32, #tpu.memory_space<vmem>>, vector<1x128x128xf32>
    %74 = vector.shape_cast %73 : vector<1x128x128xf32> to vector<128x128xf32>
    %cst_82 = arith.constant dense<0.000000e+00> : vector<128x128xf32>
    %75 = tpu.matmul %72, %74, %cst_82 {dimension_numbers = #tpu.dot_dimension_numbers<[1], [0], [0], [1], [0, 0, 1, 1], [], []>} : vector<128x128xf32>, vector<128x128xf32>, vector<128x128xf32> -> vector<128x128xf32>
    %76 = arith.addf %70, %75 : vector<128x128xf32>
    %c0_83 = arith.constant 0 : index
    %c1_84 = arith.constant 1 : index
    %c0_85 = arith.constant 0 : index
    %c0_86 = arith.constant 0 : index
    %77 = vector.load %arg11[%c0_83, %c1_84, %c0_85, %c0_86] : memref<2x12x12x128xf32, #tpu.memory_space<vmem>>, vector<2x8x8x128xf32>
    %78 = vector.shape_cast %77 : vector<2x8x8x128xf32> to vector<128x128xf32>
    %c5 = arith.constant 5 : index
    %c0_87 = arith.constant 0 : index
    %c0_88 = arith.constant 0 : index
    %79 = vector.load %arg4[%c5, %c0_87, %c0_88] : memref<25x128x128xf32, #tpu.memory_space<vmem>>, vector<1x128x128xf32>
    %80 = vector.shape_cast %79 : vector<1x128x128xf32> to vector<128x128xf32>
    %cst_89 = arith.constant dense<0.000000e+00> : vector<128x128xf32>
    %81 = tpu.matmul %78, %80, %cst_89 {dimension_numbers = #tpu.dot_dimension_numbers<[1], [0], [0], [1], [0, 0, 1, 1], [], []>} : vector<128x128xf32>, vector<128x128xf32>, vector<128x128xf32> -> vector<128x128xf32>
    %82 = arith.addf %76, %81 : vector<128x128xf32>
    %c0_90 = arith.constant 0 : index
    %c1_91 = arith.constant 1 : index
    %c1_92 = arith.constant 1 : index
    %c0_93 = arith.constant 0 : index
    %83 = vector.load %arg11[%c0_90, %c1_91, %c1_92, %c0_93] : memref<2x12x12x128xf32, #tpu.memory_space<vmem>>, vector<2x8x8x128xf32>
    %84 = vector.shape_cast %83 : vector<2x8x8x128xf32> to vector<128x128xf32>
    %c6 = arith.constant 6 : index
    %c0_94 = arith.constant 0 : index
    %c0_95 = arith.constant 0 : index
    %85 = vector.load %arg4[%c6, %c0_94, %c0_95] : memref<25x128x128xf32, #tpu.memory_space<vmem>>, vector<1x128x128xf32>
    %86 = vector.shape_cast %85 : vector<1x128x128xf32> to vector<128x128xf32>
    %cst_96 = arith.constant dense<0.000000e+00> : vector<128x128xf32>
    %87 = tpu.matmul %84, %86, %cst_96 {dimension_numbers = #tpu.dot_dimension_numbers<[1], [0], [0], [1], [0, 0, 1, 1], [], []>} : vector<128x128xf32>, vector<128x128xf32>, vector<128x128xf32> -> vector<128x128xf32>
    %88 = arith.addf %82, %87 : vector<128x128xf32>
    %c0_97 = arith.constant 0 : index
    %c1_98 = arith.constant 1 : index
    %c2_99 = arith.constant 2 : index
    %c0_100 = arith.constant 0 : index
    %89 = vector.load %arg11[%c0_97, %c1_98, %c2_99, %c0_100] : memref<2x12x12x128xf32, #tpu.memory_space<vmem>>, vector<2x8x8x128xf32>
    %90 = vector.shape_cast %89 : vector<2x8x8x128xf32> to vector<128x128xf32>
    %c7 = arith.constant 7 : index
    %c0_101 = arith.constant 0 : index
    %c0_102 = arith.constant 0 : index
    %91 = vector.load %arg4[%c7, %c0_101, %c0_102] : memref<25x128x128xf32, #tpu.memory_space<vmem>>, vector<1x128x128xf32>
    %92 = vector.shape_cast %91 : vector<1x128x128xf32> to vector<128x128xf32>
    %cst_103 = arith.constant dense<0.000000e+00> : vector<128x128xf32>
    %93 = tpu.matmul %90, %92, %cst_103 {dimension_numbers = #tpu.dot_dimension_numbers<[1], [0], [0], [1], [0, 0, 1, 1], [], []>} : vector<128x128xf32>, vector<128x128xf32>, vector<128x128xf32> -> vector<128x128xf32>
    %94 = arith.addf %88, %93 : vector<128x128xf32>
    %c0_104 = arith.constant 0 : index
    %c1_105 = arith.constant 1 : index
    %c3_106 = arith.constant 3 : index
    %c0_107 = arith.constant 0 : index
    %95 = vector.load %arg11[%c0_104, %c1_105, %c3_106, %c0_107] : memref<2x12x12x128xf32, #tpu.memory_space<vmem>>, vector<2x8x8x128xf32>
    %96 = vector.shape_cast %95 : vector<2x8x8x128xf32> to vector<128x128xf32>
    %c8 = arith.constant 8 : index
    %c0_108 = arith.constant 0 : index
    %c0_109 = arith.constant 0 : index
    %97 = vector.load %arg4[%c8, %c0_108, %c0_109] : memref<25x128x128xf32, #tpu.memory_space<vmem>>, vector<1x128x128xf32>
    %98 = vector.shape_cast %97 : vector<1x128x128xf32> to vector<128x128xf32>
    %cst_110 = arith.constant dense<0.000000e+00> : vector<128x128xf32>
    %99 = tpu.matmul %96, %98, %cst_110 {dimension_numbers = #tpu.dot_dimension_numbers<[1], [0], [0], [1], [0, 0, 1, 1], [], []>} : vector<128x128xf32>, vector<128x128xf32>, vector<128x128xf32> -> vector<128x128xf32>
    %100 = arith.addf %94, %99 : vector<128x128xf32>
    %c0_111 = arith.constant 0 : index
    %c1_112 = arith.constant 1 : index
    %c4_113 = arith.constant 4 : index
    %c0_114 = arith.constant 0 : index
    %101 = vector.load %arg11[%c0_111, %c1_112, %c4_113, %c0_114] : memref<2x12x12x128xf32, #tpu.memory_space<vmem>>, vector<2x8x8x128xf32>
    %102 = vector.shape_cast %101 : vector<2x8x8x128xf32> to vector<128x128xf32>
    %c9 = arith.constant 9 : index
    %c0_115 = arith.constant 0 : index
    %c0_116 = arith.constant 0 : index
    %103 = vector.load %arg4[%c9, %c0_115, %c0_116] : memref<25x128x128xf32, #tpu.memory_space<vmem>>, vector<1x128x128xf32>
    %104 = vector.shape_cast %103 : vector<1x128x128xf32> to vector<128x128xf32>
    %cst_117 = arith.constant dense<0.000000e+00> : vector<128x128xf32>
    %105 = tpu.matmul %102, %104, %cst_117 {dimension_numbers = #tpu.dot_dimension_numbers<[1], [0], [0], [1], [0, 0, 1, 1], [], []>} : vector<128x128xf32>, vector<128x128xf32>, vector<128x128xf32> -> vector<128x128xf32>
    %106 = arith.addf %100, %105 : vector<128x128xf32>
    %c0_118 = arith.constant 0 : index
    %c2_119 = arith.constant 2 : index
    %c0_120 = arith.constant 0 : index
    %c0_121 = arith.constant 0 : index
    %107 = vector.load %arg11[%c0_118, %c2_119, %c0_120, %c0_121] : memref<2x12x12x128xf32, #tpu.memory_space<vmem>>, vector<2x8x8x128xf32>
    %108 = vector.shape_cast %107 : vector<2x8x8x128xf32> to vector<128x128xf32>
    %c10 = arith.constant 10 : index
    %c0_122 = arith.constant 0 : index
    %c0_123 = arith.constant 0 : index
    %109 = vector.load %arg4[%c10, %c0_122, %c0_123] : memref<25x128x128xf32, #tpu.memory_space<vmem>>, vector<1x128x128xf32>
    %110 = vector.shape_cast %109 : vector<1x128x128xf32> to vector<128x128xf32>
    %cst_124 = arith.constant dense<0.000000e+00> : vector<128x128xf32>
    %111 = tpu.matmul %108, %110, %cst_124 {dimension_numbers = #tpu.dot_dimension_numbers<[1], [0], [0], [1], [0, 0, 1, 1], [], []>} : vector<128x128xf32>, vector<128x128xf32>, vector<128x128xf32> -> vector<128x128xf32>
    %112 = arith.addf %106, %111 : vector<128x128xf32>
    %c0_125 = arith.constant 0 : index
    %c2_126 = arith.constant 2 : index
    %c1_127 = arith.constant 1 : index
    %c0_128 = arith.constant 0 : index
    %113 = vector.load %arg11[%c0_125, %c2_126, %c1_127, %c0_128] : memref<2x12x12x128xf32, #tpu.memory_space<vmem>>, vector<2x8x8x128xf32>
    %114 = vector.shape_cast %113 : vector<2x8x8x128xf32> to vector<128x128xf32>
    %c11 = arith.constant 11 : index
    %c0_129 = arith.constant 0 : index
    %c0_130 = arith.constant 0 : index
    %115 = vector.load %arg4[%c11, %c0_129, %c0_130] : memref<25x128x128xf32, #tpu.memory_space<vmem>>, vector<1x128x128xf32>
    %116 = vector.shape_cast %115 : vector<1x128x128xf32> to vector<128x128xf32>
    %cst_131 = arith.constant dense<0.000000e+00> : vector<128x128xf32>
    %117 = tpu.matmul %114, %116, %cst_131 {dimension_numbers = #tpu.dot_dimension_numbers<[1], [0], [0], [1], [0, 0, 1, 1], [], []>} : vector<128x128xf32>, vector<128x128xf32>, vector<128x128xf32> -> vector<128x128xf32>
    %118 = arith.addf %112, %117 : vector<128x128xf32>
    %c0_132 = arith.constant 0 : index
    %c2_133 = arith.constant 2 : index
    %c2_134 = arith.constant 2 : index
    %c0_135 = arith.constant 0 : index
    %119 = vector.load %arg11[%c0_132, %c2_133, %c2_134, %c0_135] : memref<2x12x12x128xf32, #tpu.memory_space<vmem>>, vector<2x8x8x128xf32>
    %120 = vector.shape_cast %119 : vector<2x8x8x128xf32> to vector<128x128xf32>
    %c12 = arith.constant 12 : index
    %c0_136 = arith.constant 0 : index
    %c0_137 = arith.constant 0 : index
    %121 = vector.load %arg4[%c12, %c0_136, %c0_137] : memref<25x128x128xf32, #tpu.memory_space<vmem>>, vector<1x128x128xf32>
    %122 = vector.shape_cast %121 : vector<1x128x128xf32> to vector<128x128xf32>
    %cst_138 = arith.constant dense<0.000000e+00> : vector<128x128xf32>
    %123 = tpu.matmul %120, %122, %cst_138 {dimension_numbers = #tpu.dot_dimension_numbers<[1], [0], [0], [1], [0, 0, 1, 1], [], []>} : vector<128x128xf32>, vector<128x128xf32>, vector<128x128xf32> -> vector<128x128xf32>
    %124 = arith.addf %118, %123 : vector<128x128xf32>
    %c0_139 = arith.constant 0 : index
    %c2_140 = arith.constant 2 : index
    %c3_141 = arith.constant 3 : index
    %c0_142 = arith.constant 0 : index
    %125 = vector.load %arg11[%c0_139, %c2_140, %c3_141, %c0_142] : memref<2x12x12x128xf32, #tpu.memory_space<vmem>>, vector<2x8x8x128xf32>
    %126 = vector.shape_cast %125 : vector<2x8x8x128xf32> to vector<128x128xf32>
    %c13 = arith.constant 13 : index
    %c0_143 = arith.constant 0 : index
    %c0_144 = arith.constant 0 : index
    %127 = vector.load %arg4[%c13, %c0_143, %c0_144] : memref<25x128x128xf32, #tpu.memory_space<vmem>>, vector<1x128x128xf32>
    %128 = vector.shape_cast %127 : vector<1x128x128xf32> to vector<128x128xf32>
    %cst_145 = arith.constant dense<0.000000e+00> : vector<128x128xf32>
    %129 = tpu.matmul %126, %128, %cst_145 {dimension_numbers = #tpu.dot_dimension_numbers<[1], [0], [0], [1], [0, 0, 1, 1], [], []>} : vector<128x128xf32>, vector<128x128xf32>, vector<128x128xf32> -> vector<128x128xf32>
    %130 = arith.addf %124, %129 : vector<128x128xf32>
    %c0_146 = arith.constant 0 : index
    %c2_147 = arith.constant 2 : index
    %c4_148 = arith.constant 4 : index
    %c0_149 = arith.constant 0 : index
    %131 = vector.load %arg11[%c0_146, %c2_147, %c4_148, %c0_149] : memref<2x12x12x128xf32, #tpu.memory_space<vmem>>, vector<2x8x8x128xf32>
    %132 = vector.shape_cast %131 : vector<2x8x8x128xf32> to vector<128x128xf32>
    %c14 = arith.constant 14 : index
    %c0_150 = arith.constant 0 : index
    %c0_151 = arith.constant 0 : index
    %133 = vector.load %arg4[%c14, %c0_150, %c0_151] : memref<25x128x128xf32, #tpu.memory_space<vmem>>, vector<1x128x128xf32>
    %134 = vector.shape_cast %133 : vector<1x128x128xf32> to vector<128x128xf32>
    %cst_152 = arith.constant dense<0.000000e+00> : vector<128x128xf32>
    %135 = tpu.matmul %132, %134, %cst_152 {dimension_numbers = #tpu.dot_dimension_numbers<[1], [0], [0], [1], [0, 0, 1, 1], [], []>} : vector<128x128xf32>, vector<128x128xf32>, vector<128x128xf32> -> vector<128x128xf32>
    %136 = arith.addf %130, %135 : vector<128x128xf32>
    %c0_153 = arith.constant 0 : index
    %c3_154 = arith.constant 3 : index
    %c0_155 = arith.constant 0 : index
    %c0_156 = arith.constant 0 : index
    %137 = vector.load %arg11[%c0_153, %c3_154, %c0_155, %c0_156] : memref<2x12x12x128xf32, #tpu.memory_space<vmem>>, vector<2x8x8x128xf32>
    %138 = vector.shape_cast %137 : vector<2x8x8x128xf32> to vector<128x128xf32>
    %c15 = arith.constant 15 : index
    %c0_157 = arith.constant 0 : index
    %c0_158 = arith.constant 0 : index
    %139 = vector.load %arg4[%c15, %c0_157, %c0_158] : memref<25x128x128xf32, #tpu.memory_space<vmem>>, vector<1x128x128xf32>
    %140 = vector.shape_cast %139 : vector<1x128x128xf32> to vector<128x128xf32>
    %cst_159 = arith.constant dense<0.000000e+00> : vector<128x128xf32>
    %141 = tpu.matmul %138, %140, %cst_159 {dimension_numbers = #tpu.dot_dimension_numbers<[1], [0], [0], [1], [0, 0, 1, 1], [], []>} : vector<128x128xf32>, vector<128x128xf32>, vector<128x128xf32> -> vector<128x128xf32>
    %142 = arith.addf %136, %141 : vector<128x128xf32>
    %c0_160 = arith.constant 0 : index
    %c3_161 = arith.constant 3 : index
    %c1_162 = arith.constant 1 : index
    %c0_163 = arith.constant 0 : index
    %143 = vector.load %arg11[%c0_160, %c3_161, %c1_162, %c0_163] : memref<2x12x12x128xf32, #tpu.memory_space<vmem>>, vector<2x8x8x128xf32>
    %144 = vector.shape_cast %143 : vector<2x8x8x128xf32> to vector<128x128xf32>
    %c16 = arith.constant 16 : index
    %c0_164 = arith.constant 0 : index
    %c0_165 = arith.constant 0 : index
    %145 = vector.load %arg4[%c16, %c0_164, %c0_165] : memref<25x128x128xf32, #tpu.memory_space<vmem>>, vector<1x128x128xf32>
    %146 = vector.shape_cast %145 : vector<1x128x128xf32> to vector<128x128xf32>
    %cst_166 = arith.constant dense<0.000000e+00> : vector<128x128xf32>
    %147 = tpu.matmul %144, %146, %cst_166 {dimension_numbers = #tpu.dot_dimension_numbers<[1], [0], [0], [1], [0, 0, 1, 1], [], []>} : vector<128x128xf32>, vector<128x128xf32>, vector<128x128xf32> -> vector<128x128xf32>
    %148 = arith.addf %142, %147 : vector<128x128xf32>
    %c0_167 = arith.constant 0 : index
    %c3_168 = arith.constant 3 : index
    %c2_169 = arith.constant 2 : index
    %c0_170 = arith.constant 0 : index
    %149 = vector.load %arg11[%c0_167, %c3_168, %c2_169, %c0_170] : memref<2x12x12x128xf32, #tpu.memory_space<vmem>>, vector<2x8x8x128xf32>
    %150 = vector.shape_cast %149 : vector<2x8x8x128xf32> to vector<128x128xf32>
    %c17 = arith.constant 17 : index
    %c0_171 = arith.constant 0 : index
    %c0_172 = arith.constant 0 : index
    %151 = vector.load %arg4[%c17, %c0_171, %c0_172] : memref<25x128x128xf32, #tpu.memory_space<vmem>>, vector<1x128x128xf32>
    %152 = vector.shape_cast %151 : vector<1x128x128xf32> to vector<128x128xf32>
    %cst_173 = arith.constant dense<0.000000e+00> : vector<128x128xf32>
    %153 = tpu.matmul %150, %152, %cst_173 {dimension_numbers = #tpu.dot_dimension_numbers<[1], [0], [0], [1], [0, 0, 1, 1], [], []>} : vector<128x128xf32>, vector<128x128xf32>, vector<128x128xf32> -> vector<128x128xf32>
    %154 = arith.addf %148, %153 : vector<128x128xf32>
    %c0_174 = arith.constant 0 : index
    %c3_175 = arith.constant 3 : index
    %c3_176 = arith.constant 3 : index
    %c0_177 = arith.constant 0 : index
    %155 = vector.load %arg11[%c0_174, %c3_175, %c3_176, %c0_177] : memref<2x12x12x128xf32, #tpu.memory_space<vmem>>, vector<2x8x8x128xf32>
    %156 = vector.shape_cast %155 : vector<2x8x8x128xf32> to vector<128x128xf32>
    %c18 = arith.constant 18 : index
    %c0_178 = arith.constant 0 : index
    %c0_179 = arith.constant 0 : index
    %157 = vector.load %arg4[%c18, %c0_178, %c0_179] : memref<25x128x128xf32, #tpu.memory_space<vmem>>, vector<1x128x128xf32>
    %158 = vector.shape_cast %157 : vector<1x128x128xf32> to vector<128x128xf32>
    %cst_180 = arith.constant dense<0.000000e+00> : vector<128x128xf32>
    %159 = tpu.matmul %156, %158, %cst_180 {dimension_numbers = #tpu.dot_dimension_numbers<[1], [0], [0], [1], [0, 0, 1, 1], [], []>} : vector<128x128xf32>, vector<128x128xf32>, vector<128x128xf32> -> vector<128x128xf32>
    %160 = arith.addf %154, %159 : vector<128x128xf32>
    %c0_181 = arith.constant 0 : index
    %c3_182 = arith.constant 3 : index
    %c4_183 = arith.constant 4 : index
    %c0_184 = arith.constant 0 : index
    %161 = vector.load %arg11[%c0_181, %c3_182, %c4_183, %c0_184] : memref<2x12x12x128xf32, #tpu.memory_space<vmem>>, vector<2x8x8x128xf32>
    %162 = vector.shape_cast %161 : vector<2x8x8x128xf32> to vector<128x128xf32>
    %c19 = arith.constant 19 : index
    %c0_185 = arith.constant 0 : index
    %c0_186 = arith.constant 0 : index
    %163 = vector.load %arg4[%c19, %c0_185, %c0_186] : memref<25x128x128xf32, #tpu.memory_space<vmem>>, vector<1x128x128xf32>
    %164 = vector.shape_cast %163 : vector<1x128x128xf32> to vector<128x128xf32>
    %cst_187 = arith.constant dense<0.000000e+00> : vector<128x128xf32>
    %165 = tpu.matmul %162, %164, %cst_187 {dimension_numbers = #tpu.dot_dimension_numbers<[1], [0], [0], [1], [0, 0, 1, 1], [], []>} : vector<128x128xf32>, vector<128x128xf32>, vector<128x128xf32> -> vector<128x128xf32>
    %166 = arith.addf %160, %165 : vector<128x128xf32>
    %c0_188 = arith.constant 0 : index
    %c4_189 = arith.constant 4 : index
    %c0_190 = arith.constant 0 : index
    %c0_191 = arith.constant 0 : index
    %167 = vector.load %arg11[%c0_188, %c4_189, %c0_190, %c0_191] : memref<2x12x12x128xf32, #tpu.memory_space<vmem>>, vector<2x8x8x128xf32>
    %168 = vector.shape_cast %167 : vector<2x8x8x128xf32> to vector<128x128xf32>
    %c20 = arith.constant 20 : index
    %c0_192 = arith.constant 0 : index
    %c0_193 = arith.constant 0 : index
    %169 = vector.load %arg4[%c20, %c0_192, %c0_193] : memref<25x128x128xf32, #tpu.memory_space<vmem>>, vector<1x128x128xf32>
    %170 = vector.shape_cast %169 : vector<1x128x128xf32> to vector<128x128xf32>
    %cst_194 = arith.constant dense<0.000000e+00> : vector<128x128xf32>
    %171 = tpu.matmul %168, %170, %cst_194 {dimension_numbers = #tpu.dot_dimension_numbers<[1], [0], [0], [1], [0, 0, 1, 1], [], []>} : vector<128x128xf32>, vector<128x128xf32>, vector<128x128xf32> -> vector<128x128xf32>
    %172 = arith.addf %166, %171 : vector<128x128xf32>
    %c0_195 = arith.constant 0 : index
    %c4_196 = arith.constant 4 : index
    %c1_197 = arith.constant 1 : index
    %c0_198 = arith.constant 0 : index
    %173 = vector.load %arg11[%c0_195, %c4_196, %c1_197, %c0_198] : memref<2x12x12x128xf32, #tpu.memory_space<vmem>>, vector<2x8x8x128xf32>
    %174 = vector.shape_cast %173 : vector<2x8x8x128xf32> to vector<128x128xf32>
    %c21 = arith.constant 21 : index
    %c0_199 = arith.constant 0 : index
    %c0_200 = arith.constant 0 : index
    %175 = vector.load %arg4[%c21, %c0_199, %c0_200] : memref<25x128x128xf32, #tpu.memory_space<vmem>>, vector<1x128x128xf32>
    %176 = vector.shape_cast %175 : vector<1x128x128xf32> to vector<128x128xf32>
    %cst_201 = arith.constant dense<0.000000e+00> : vector<128x128xf32>
    %177 = tpu.matmul %174, %176, %cst_201 {dimension_numbers = #tpu.dot_dimension_numbers<[1], [0], [0], [1], [0, 0, 1, 1], [], []>} : vector<128x128xf32>, vector<128x128xf32>, vector<128x128xf32> -> vector<128x128xf32>
    %178 = arith.addf %172, %177 : vector<128x128xf32>
    %c0_202 = arith.constant 0 : index
    %c4_203 = arith.constant 4 : index
    %c2_204 = arith.constant 2 : index
    %c0_205 = arith.constant 0 : index
    %179 = vector.load %arg11[%c0_202, %c4_203, %c2_204, %c0_205] : memref<2x12x12x128xf32, #tpu.memory_space<vmem>>, vector<2x8x8x128xf32>
    %180 = vector.shape_cast %179 : vector<2x8x8x128xf32> to vector<128x128xf32>
    %c22 = arith.constant 22 : index
    %c0_206 = arith.constant 0 : index
    %c0_207 = arith.constant 0 : index
    %181 = vector.load %arg4[%c22, %c0_206, %c0_207] : memref<25x128x128xf32, #tpu.memory_space<vmem>>, vector<1x128x128xf32>
    %182 = vector.shape_cast %181 : vector<1x128x128xf32> to vector<128x128xf32>
    %cst_208 = arith.constant dense<0.000000e+00> : vector<128x128xf32>
    %183 = tpu.matmul %180, %182, %cst_208 {dimension_numbers = #tpu.dot_dimension_numbers<[1], [0], [0], [1], [0, 0, 1, 1], [], []>} : vector<128x128xf32>, vector<128x128xf32>, vector<128x128xf32> -> vector<128x128xf32>
    %184 = arith.addf %178, %183 : vector<128x128xf32>
    %c0_209 = arith.constant 0 : index
    %c4_210 = arith.constant 4 : index
    %c3_211 = arith.constant 3 : index
    %c0_212 = arith.constant 0 : index
    %185 = vector.load %arg11[%c0_209, %c4_210, %c3_211, %c0_212] : memref<2x12x12x128xf32, #tpu.memory_space<vmem>>, vector<2x8x8x128xf32>
    %186 = vector.shape_cast %185 : vector<2x8x8x128xf32> to vector<128x128xf32>
    %c23 = arith.constant 23 : index
    %c0_213 = arith.constant 0 : index
    %c0_214 = arith.constant 0 : index
    %187 = vector.load %arg4[%c23, %c0_213, %c0_214] : memref<25x128x128xf32, #tpu.memory_space<vmem>>, vector<1x128x128xf32>
    %188 = vector.shape_cast %187 : vector<1x128x128xf32> to vector<128x128xf32>
    %cst_215 = arith.constant dense<0.000000e+00> : vector<128x128xf32>
    %189 = tpu.matmul %186, %188, %cst_215 {dimension_numbers = #tpu.dot_dimension_numbers<[1], [0], [0], [1], [0, 0, 1, 1], [], []>} : vector<128x128xf32>, vector<128x128xf32>, vector<128x128xf32> -> vector<128x128xf32>
    %190 = arith.addf %184, %189 : vector<128x128xf32>
    %c0_216 = arith.constant 0 : index
    %c4_217 = arith.constant 4 : index
    %c4_218 = arith.constant 4 : index
    %c0_219 = arith.constant 0 : index
    %191 = vector.load %arg11[%c0_216, %c4_217, %c4_218, %c0_219] : memref<2x12x12x128xf32, #tpu.memory_space<vmem>>, vector<2x8x8x128xf32>
    %192 = vector.shape_cast %191 : vector<2x8x8x128xf32> to vector<128x128xf32>
    %c24 = arith.constant 24 : index
    %c0_220 = arith.constant 0 : index
    %c0_221 = arith.constant 0 : index
    %193 = vector.load %arg4[%c24, %c0_220, %c0_221] : memref<25x128x128xf32, #tpu.memory_space<vmem>>, vector<1x128x128xf32>
    %194 = vector.shape_cast %193 : vector<1x128x128xf32> to vector<128x128xf32>
    %cst_222 = arith.constant dense<0.000000e+00> : vector<128x128xf32>
    %195 = tpu.matmul %192, %194, %cst_222 {dimension_numbers = #tpu.dot_dimension_numbers<[1], [0], [0], [1], [0, 0, 1, 1], [], []>} : vector<128x128xf32>, vector<128x128xf32>, vector<128x128xf32> -> vector<128x128xf32>
    %196 = arith.addf %190, %195 : vector<128x128xf32>
    %c0_223 = arith.constant 0 : index
    %c0_224 = arith.constant 0 : index
    %197 = vector.load %arg5[%c0_223, %c0_224] : memref<1x128xf32, #tpu.memory_space<vmem>>, vector<1x128xf32>
    %198 = vector.broadcast %197 : vector<1x128xf32> to vector<128x128xf32>
    %199 = arith.addf %196, %198 : vector<128x128xf32>
    %200 = vector.shape_cast %199 : vector<128x128xf32> to vector<2x8x8x128xf32>
    %c0_225 = arith.constant 0 : index
    %c0_226 = arith.constant 0 : index
    %c0_227 = arith.constant 0 : index
    %c0_228 = arith.constant 0 : index
    %201 = vector.load %arg12[%c0_225, %c0_226, %c0_227, %c0_228] : memref<2x8x8x128xf32, #tpu.memory_space<vmem>>, vector<2x8x8x128xf32>
    tpu.vector_store %arg12[%c0_225, %c0_226, %c0_227, %c0_228], %200 {strides = array<i32>} : memref<2x8x8x128xf32, #tpu.memory_space<vmem>>, vector<2x8x8x128xf32>,
    %cst_229 = arith.constant 0.000000e+00 : f32
    %202 = vector.broadcast %cst_229 : f32 to vector<2x128xf32>
    %c0_230 = arith.constant 0 : index
    %c0_231 = arith.constant 0 : index
    %c0_232 = arith.constant 0 : index
    %c0_233 = arith.constant 0 : index
    %203 = vector.load %arg12[%c0_230, %c0_231, %c0_232, %c0_233] : memref<2x8x8x128xf32, #tpu.memory_space<vmem>>, vector<2x1x1x128xf32>
    %204 = vector.shape_cast %203 : vector<2x1x1x128xf32> to vector<2x128xf32>
    %c0_234 = arith.constant 0 : index
    %c0_235 = arith.constant 0 : index
    %c1_236 = arith.constant 1 : index
    %c0_237 = arith.constant 0 : index
    %205 = vector.load %arg12[%c0_234, %c0_235, %c1_236, %c0_237] : memref<2x8x8x128xf32, #tpu.memory_space<vmem>>, vector<2x1x1x128xf32>
    %206 = vector.shape_cast %205 : vector<2x1x1x128xf32> to vector<2x128xf32>
    %207 = arith.maximumf %204, %206 : vector<2x128xf32>
    %c0_238 = arith.constant 0 : index
    %c1_239 = arith.constant 1 : index
    %c0_240 = arith.constant 0 : index
    %c0_241 = arith.constant 0 : index
    %208 = vector.load %arg12[%c0_238, %c1_239, %c0_240, %c0_241] : memref<2x8x8x128xf32, #tpu.memory_space<vmem>>, vector<2x1x1x128xf32>
    %209 = vector.shape_cast %208 : vector<2x1x1x128xf32> to vector<2x128xf32>
    %c0_242 = arith.constant 0 : index
    %c1_243 = arith.constant 1 : index
    %c1_244 = arith.constant 1 : index
    %c0_245 = arith.constant 0 : index
    %210 = vector.load %arg12[%c0_242, %c1_243, %c1_244, %c0_245] : memref<2x8x8x128xf32, #tpu.memory_space<vmem>>, vector<2x1x1x128xf32>
    %211 = vector.shape_cast %210 : vector<2x1x1x128xf32> to vector<2x128xf32>
    %212 = arith.maximumf %209, %211 : vector<2x128xf32>
    %213 = arith.maximumf %207, %212 : vector<2x128xf32>
    %cst_246 = arith.constant 0.000000e+00 : f32
    %214 = vector.broadcast %cst_246 : f32 to vector<2x128xf32>
    %215 = arith.maximumf %213, %214 : vector<2x128xf32>
    %c0_247 = arith.constant 0 : index
    %c0_248 = arith.constant 0 : index
    %c0_249 = arith.constant 0 : index
    %216 = vector.load %arg6[%c0_247, %c0_248, %c0_249] : memref<16x128x128xf32, #tpu.memory_space<vmem>>, vector<1x128x128xf32>
    %217 = vector.shape_cast %216 : vector<1x128x128xf32> to vector<128x128xf32>
    %cst_250 = arith.constant dense<0.000000e+00> : vector<2x128xf32>
    %218 = tpu.matmul %215, %217, %cst_250 {dimension_numbers = #tpu.dot_dimension_numbers<[1], [0], [0], [1], [0, 0, 1, 1], [], []>} : vector<2x128xf32>, vector<128x128xf32>, vector<2x128xf32> -> vector<2x128xf32>
    %219 = arith.addf %202, %218 : vector<2x128xf32>
    %c0_251 = arith.constant 0 : index
    %c0_252 = arith.constant 0 : index
    %c2_253 = arith.constant 2 : index
    %c0_254 = arith.constant 0 : index
    %220 = vector.load %arg12[%c0_251, %c0_252, %c2_253, %c0_254] : memref<2x8x8x128xf32, #tpu.memory_space<vmem>>, vector<2x1x1x128xf32>
    %221 = vector.shape_cast %220 : vector<2x1x1x128xf32> to vector<2x128xf32>
    %c0_255 = arith.constant 0 : index
    %c0_256 = arith.constant 0 : index
    %c3_257 = arith.constant 3 : index
    %c0_258 = arith.constant 0 : index
    %222 = vector.load %arg12[%c0_255, %c0_256, %c3_257, %c0_258] : memref<2x8x8x128xf32, #tpu.memory_space<vmem>>, vector<2x1x1x128xf32>
    %223 = vector.shape_cast %222 : vector<2x1x1x128xf32> to vector<2x128xf32>
    %224 = arith.maximumf %221, %223 : vector<2x128xf32>
    %c0_259 = arith.constant 0 : index
    %c1_260 = arith.constant 1 : index
    %c2_261 = arith.constant 2 : index
    %c0_262 = arith.constant 0 : index
    %225 = vector.load %arg12[%c0_259, %c1_260, %c2_261, %c0_262] : memref<2x8x8x128xf32, #tpu.memory_space<vmem>>, vector<2x1x1x128xf32>
    %226 = vector.shape_cast %225 : vector<2x1x1x128xf32> to vector<2x128xf32>
    %c0_263 = arith.constant 0 : index
    %c1_264 = arith.constant 1 : index
    %c3_265 = arith.constant 3 : index
    %c0_266 = arith.constant 0 : index
    %227 = vector.load %arg12[%c0_263, %c1_264, %c3_265, %c0_266] : memref<2x8x8x128xf32, #tpu.memory_space<vmem>>, vector<2x1x1x128xf32>
    %228 = vector.shape_cast %227 : vector<2x1x1x128xf32> to vector<2x128xf32>
    %229 = arith.maximumf %226, %228 : vector<2x128xf32>
    %230 = arith.maximumf %224, %229 : vector<2x128xf32>
    %cst_267 = arith.constant 0.000000e+00 : f32
    %231 = vector.broadcast %cst_267 : f32 to vector<2x128xf32>
    %232 = arith.maximumf %230, %231 : vector<2x128xf32>
    %c1_268 = arith.constant 1 : index
    %c0_269 = arith.constant 0 : index
    %c0_270 = arith.constant 0 : index
    %233 = vector.load %arg6[%c1_268, %c0_269, %c0_270] : memref<16x128x128xf32, #tpu.memory_space<vmem>>, vector<1x128x128xf32>
    %234 = vector.shape_cast %233 : vector<1x128x128xf32> to vector<128x128xf32>
    %cst_271 = arith.constant dense<0.000000e+00> : vector<2x128xf32>
    %235 = tpu.matmul %232, %234, %cst_271 {dimension_numbers = #tpu.dot_dimension_numbers<[1], [0], [0], [1], [0, 0, 1, 1], [], []>} : vector<2x128xf32>, vector<128x128xf32>, vector<2x128xf32> -> vector<2x128xf32>
    %236 = arith.addf %219, %235 : vector<2x128xf32>
    %c0_272 = arith.constant 0 : index
    %c0_273 = arith.constant 0 : index
    %c4_274 = arith.constant 4 : index
    %c0_275 = arith.constant 0 : index
    %237 = vector.load %arg12[%c0_272, %c0_273, %c4_274, %c0_275] : memref<2x8x8x128xf32, #tpu.memory_space<vmem>>, vector<2x1x1x128xf32>
    %238 = vector.shape_cast %237 : vector<2x1x1x128xf32> to vector<2x128xf32>
    %c0_276 = arith.constant 0 : index
    %c0_277 = arith.constant 0 : index
    %c5_278 = arith.constant 5 : index
    %c0_279 = arith.constant 0 : index
    %239 = vector.load %arg12[%c0_276, %c0_277, %c5_278, %c0_279] : memref<2x8x8x128xf32, #tpu.memory_space<vmem>>, vector<2x1x1x128xf32>
    %240 = vector.shape_cast %239 : vector<2x1x1x128xf32> to vector<2x128xf32>
    %241 = arith.maximumf %238, %240 : vector<2x128xf32>
    %c0_280 = arith.constant 0 : index
    %c1_281 = arith.constant 1 : index
    %c4_282 = arith.constant 4 : index
    %c0_283 = arith.constant 0 : index
    %242 = vector.load %arg12[%c0_280, %c1_281, %c4_282, %c0_283] : memref<2x8x8x128xf32, #tpu.memory_space<vmem>>, vector<2x1x1x128xf32>
    %243 = vector.shape_cast %242 : vector<2x1x1x128xf32> to vector<2x128xf32>
    %c0_284 = arith.constant 0 : index
    %c1_285 = arith.constant 1 : index
    %c5_286 = arith.constant 5 : index
    %c0_287 = arith.constant 0 : index
    %244 = vector.load %arg12[%c0_284, %c1_285, %c5_286, %c0_287] : memref<2x8x8x128xf32, #tpu.memory_space<vmem>>, vector<2x1x1x128xf32>
    %245 = vector.shape_cast %244 : vector<2x1x1x128xf32> to vector<2x128xf32>
    %246 = arith.maximumf %243, %245 : vector<2x128xf32>
    %247 = arith.maximumf %241, %246 : vector<2x128xf32>
    %cst_288 = arith.constant 0.000000e+00 : f32
    %248 = vector.broadcast %cst_288 : f32 to vector<2x128xf32>
    %249 = arith.maximumf %247, %248 : vector<2x128xf32>
    %c2_289 = arith.constant 2 : index
    %c0_290 = arith.constant 0 : index
    %c0_291 = arith.constant 0 : index
    %250 = vector.load %arg6[%c2_289, %c0_290, %c0_291] : memref<16x128x128xf32, #tpu.memory_space<vmem>>, vector<1x128x128xf32>
    %251 = vector.shape_cast %250 : vector<1x128x128xf32> to vector<128x128xf32>
    %cst_292 = arith.constant dense<0.000000e+00> : vector<2x128xf32>
    %252 = tpu.matmul %249, %251, %cst_292 {dimension_numbers = #tpu.dot_dimension_numbers<[1], [0], [0], [1], [0, 0, 1, 1], [], []>} : vector<2x128xf32>, vector<128x128xf32>, vector<2x128xf32> -> vector<2x128xf32>
    %253 = arith.addf %236, %252 : vector<2x128xf32>
    %c0_293 = arith.constant 0 : index
    %c0_294 = arith.constant 0 : index
    %c6_295 = arith.constant 6 : index
    %c0_296 = arith.constant 0 : index
    %254 = vector.load %arg12[%c0_293, %c0_294, %c6_295, %c0_296] : memref<2x8x8x128xf32, #tpu.memory_space<vmem>>, vector<2x1x1x128xf32>
    %255 = vector.shape_cast %254 : vector<2x1x1x128xf32> to vector<2x128xf32>
    %c0_297 = arith.constant 0 : index
    %c0_298 = arith.constant 0 : index
    %c7_299 = arith.constant 7 : index
    %c0_300 = arith.constant 0 : index
    %256 = vector.load %arg12[%c0_297, %c0_298, %c7_299, %c0_300] : memref<2x8x8x128xf32, #tpu.memory_space<vmem>>, vector<2x1x1x128xf32>
    %257 = vector.shape_cast %256 : vector<2x1x1x128xf32> to vector<2x128xf32>
    %258 = arith.maximumf %255, %257 : vector<2x128xf32>
    %c0_301 = arith.constant 0 : index
    %c1_302 = arith.constant 1 : index
    %c6_303 = arith.constant 6 : index
    %c0_304 = arith.constant 0 : index
    %259 = vector.load %arg12[%c0_301, %c1_302, %c6_303, %c0_304] : memref<2x8x8x128xf32, #tpu.memory_space<vmem>>, vector<2x1x1x128xf32>
    %260 = vector.shape_cast %259 : vector<2x1x1x128xf32> to vector<2x128xf32>
    %c0_305 = arith.constant 0 : index
    %c1_306 = arith.constant 1 : index
    %c7_307 = arith.constant 7 : index
    %c0_308 = arith.constant 0 : index
    %261 = vector.load %arg12[%c0_305, %c1_306, %c7_307, %c0_308] : memref<2x8x8x128xf32, #tpu.memory_space<vmem>>, vector<2x1x1x128xf32>
    %262 = vector.shape_cast %261 : vector<2x1x1x128xf32> to vector<2x128xf32>
    %263 = arith.maximumf %260, %262 : vector<2x128xf32>
    %264 = arith.maximumf %258, %263 : vector<2x128xf32>
    %cst_309 = arith.constant 0.000000e+00 : f32
    %265 = vector.broadcast %cst_309 : f32 to vector<2x128xf32>
    %266 = arith.maximumf %264, %265 : vector<2x128xf32>
    %c3_310 = arith.constant 3 : index
    %c0_311 = arith.constant 0 : index
    %c0_312 = arith.constant 0 : index
    %267 = vector.load %arg6[%c3_310, %c0_311, %c0_312] : memref<16x128x128xf32, #tpu.memory_space<vmem>>, vector<1x128x128xf32>
    %268 = vector.shape_cast %267 : vector<1x128x128xf32> to vector<128x128xf32>
    %cst_313 = arith.constant dense<0.000000e+00> : vector<2x128xf32>
    %269 = tpu.matmul %266, %268, %cst_313 {dimension_numbers = #tpu.dot_dimension_numbers<[1], [0], [0], [1], [0, 0, 1, 1], [], []>} : vector<2x128xf32>, vector<128x128xf32>, vector<2x128xf32> -> vector<2x128xf32>
    %270 = arith.addf %253, %269 : vector<2x128xf32>
    %c0_314 = arith.constant 0 : index
    %c2_315 = arith.constant 2 : index
    %c0_316 = arith.constant 0 : index
    %c0_317 = arith.constant 0 : index
    %271 = vector.load %arg12[%c0_314, %c2_315, %c0_316, %c0_317] : memref<2x8x8x128xf32, #tpu.memory_space<vmem>>, vector<2x1x1x128xf32>
    %272 = vector.shape_cast %271 : vector<2x1x1x128xf32> to vector<2x128xf32>
    %c0_318 = arith.constant 0 : index
    %c2_319 = arith.constant 2 : index
    %c1_320 = arith.constant 1 : index
    %c0_321 = arith.constant 0 : index
    %273 = vector.load %arg12[%c0_318, %c2_319, %c1_320, %c0_321] : memref<2x8x8x128xf32, #tpu.memory_space<vmem>>, vector<2x1x1x128xf32>
    %274 = vector.shape_cast %273 : vector<2x1x1x128xf32> to vector<2x128xf32>
    %275 = arith.maximumf %272, %274 : vector<2x128xf32>
    %c0_322 = arith.constant 0 : index
    %c3_323 = arith.constant 3 : index
    %c0_324 = arith.constant 0 : index
    %c0_325 = arith.constant 0 : index
    %276 = vector.load %arg12[%c0_322, %c3_323, %c0_324, %c0_325] : memref<2x8x8x128xf32, #tpu.memory_space<vmem>>, vector<2x1x1x128xf32>
    %277 = vector.shape_cast %276 : vector<2x1x1x128xf32> to vector<2x128xf32>
    %c0_326 = arith.constant 0 : index
    %c3_327 = arith.constant 3 : index
    %c1_328 = arith.constant 1 : index
    %c0_329 = arith.constant 0 : index
    %278 = vector.load %arg12[%c0_326, %c3_327, %c1_328, %c0_329] : memref<2x8x8x128xf32, #tpu.memory_space<vmem>>, vector<2x1x1x128xf32>
    %279 = vector.shape_cast %278 : vector<2x1x1x128xf32> to vector<2x128xf32>
    %280 = arith.maximumf %277, %279 : vector<2x128xf32>
    %281 = arith.maximumf %275, %280 : vector<2x128xf32>
    %cst_330 = arith.constant 0.000000e+00 : f32
    %282 = vector.broadcast %cst_330 : f32 to vector<2x128xf32>
    %283 = arith.maximumf %281, %282 : vector<2x128xf32>
    %c4_331 = arith.constant 4 : index
    %c0_332 = arith.constant 0 : index
    %c0_333 = arith.constant 0 : index
    %284 = vector.load %arg6[%c4_331, %c0_332, %c0_333] : memref<16x128x128xf32, #tpu.memory_space<vmem>>, vector<1x128x128xf32>
    %285 = vector.shape_cast %284 : vector<1x128x128xf32> to vector<128x128xf32>
    %cst_334 = arith.constant dense<0.000000e+00> : vector<2x128xf32>
    %286 = tpu.matmul %283, %285, %cst_334 {dimension_numbers = #tpu.dot_dimension_numbers<[1], [0], [0], [1], [0, 0, 1, 1], [], []>} : vector<2x128xf32>, vector<128x128xf32>, vector<2x128xf32> -> vector<2x128xf32>
    %287 = arith.addf %270, %286 : vector<2x128xf32>
    %c0_335 = arith.constant 0 : index
    %c2_336 = arith.constant 2 : index
    %c2_337 = arith.constant 2 : index
    %c0_338 = arith.constant 0 : index
    %288 = vector.load %arg12[%c0_335, %c2_336, %c2_337, %c0_338] : memref<2x8x8x128xf32, #tpu.memory_space<vmem>>, vector<2x1x1x128xf32>
    %289 = vector.shape_cast %288 : vector<2x1x1x128xf32> to vector<2x128xf32>
    %c0_339 = arith.constant 0 : index
    %c2_340 = arith.constant 2 : index
    %c3_341 = arith.constant 3 : index
    %c0_342 = arith.constant 0 : index
    %290 = vector.load %arg12[%c0_339, %c2_340, %c3_341, %c0_342] : memref<2x8x8x128xf32, #tpu.memory_space<vmem>>, vector<2x1x1x128xf32>
    %291 = vector.shape_cast %290 : vector<2x1x1x128xf32> to vector<2x128xf32>
    %292 = arith.maximumf %289, %291 : vector<2x128xf32>
    %c0_343 = arith.constant 0 : index
    %c3_344 = arith.constant 3 : index
    %c2_345 = arith.constant 2 : index
    %c0_346 = arith.constant 0 : index
    %293 = vector.load %arg12[%c0_343, %c3_344, %c2_345, %c0_346] : memref<2x8x8x128xf32, #tpu.memory_space<vmem>>, vector<2x1x1x128xf32>
    %294 = vector.shape_cast %293 : vector<2x1x1x128xf32> to vector<2x128xf32>
    %c0_347 = arith.constant 0 : index
    %c3_348 = arith.constant 3 : index
    %c3_349 = arith.constant 3 : index
    %c0_350 = arith.constant 0 : index
    %295 = vector.load %arg12[%c0_347, %c3_348, %c3_349, %c0_350] : memref<2x8x8x128xf32, #tpu.memory_space<vmem>>, vector<2x1x1x128xf32>
    %296 = vector.shape_cast %295 : vector<2x1x1x128xf32> to vector<2x128xf32>
    %297 = arith.maximumf %294, %296 : vector<2x128xf32>
    %298 = arith.maximumf %292, %297 : vector<2x128xf32>
    %cst_351 = arith.constant 0.000000e+00 : f32
    %299 = vector.broadcast %cst_351 : f32 to vector<2x128xf32>
    %300 = arith.maximumf %298, %299 : vector<2x128xf32>
    %c5_352 = arith.constant 5 : index
    %c0_353 = arith.constant 0 : index
    %c0_354 = arith.constant 0 : index
    %301 = vector.load %arg6[%c5_352, %c0_353, %c0_354] : memref<16x128x128xf32, #tpu.memory_space<vmem>>, vector<1x128x128xf32>
    %302 = vector.shape_cast %301 : vector<1x128x128xf32> to vector<128x128xf32>
    %cst_355 = arith.constant dense<0.000000e+00> : vector<2x128xf32>
    %303 = tpu.matmul %300, %302, %cst_355 {dimension_numbers = #tpu.dot_dimension_numbers<[1], [0], [0], [1], [0, 0, 1, 1], [], []>} : vector<2x128xf32>, vector<128x128xf32>, vector<2x128xf32> -> vector<2x128xf32>
    %304 = arith.addf %287, %303 : vector<2x128xf32>
    %c0_356 = arith.constant 0 : index
    %c2_357 = arith.constant 2 : index
    %c4_358 = arith.constant 4 : index
    %c0_359 = arith.constant 0 : index
    %305 = vector.load %arg12[%c0_356, %c2_357, %c4_358, %c0_359] : memref<2x8x8x128xf32, #tpu.memory_space<vmem>>, vector<2x1x1x128xf32>
    %306 = vector.shape_cast %305 : vector<2x1x1x128xf32> to vector<2x128xf32>
    %c0_360 = arith.constant 0 : index
    %c2_361 = arith.constant 2 : index
    %c5_362 = arith.constant 5 : index
    %c0_363 = arith.constant 0 : index
    %307 = vector.load %arg12[%c0_360, %c2_361, %c5_362, %c0_363] : memref<2x8x8x128xf32, #tpu.memory_space<vmem>>, vector<2x1x1x128xf32>
    %308 = vector.shape_cast %307 : vector<2x1x1x128xf32> to vector<2x128xf32>
    %309 = arith.maximumf %306, %308 : vector<2x128xf32>
    %c0_364 = arith.constant 0 : index
    %c3_365 = arith.constant 3 : index
    %c4_366 = arith.constant 4 : index
    %c0_367 = arith.constant 0 : index
    %310 = vector.load %arg12[%c0_364, %c3_365, %c4_366, %c0_367] : memref<2x8x8x128xf32, #tpu.memory_space<vmem>>, vector<2x1x1x128xf32>
    %311 = vector.shape_cast %310 : vector<2x1x1x128xf32> to vector<2x128xf32>
    %c0_368 = arith.constant 0 : index
    %c3_369 = arith.constant 3 : index
    %c5_370 = arith.constant 5 : index
    %c0_371 = arith.constant 0 : index
    %312 = vector.load %arg12[%c0_368, %c3_369, %c5_370, %c0_371] : memref<2x8x8x128xf32, #tpu.memory_space<vmem>>, vector<2x1x1x128xf32>
    %313 = vector.shape_cast %312 : vector<2x1x1x128xf32> to vector<2x128xf32>
    %314 = arith.maximumf %311, %313 : vector<2x128xf32>
    %315 = arith.maximumf %309, %314 : vector<2x128xf32>
    %cst_372 = arith.constant 0.000000e+00 : f32
    %316 = vector.broadcast %cst_372 : f32 to vector<2x128xf32>
    %317 = arith.maximumf %315, %316 : vector<2x128xf32>
    %c6_373 = arith.constant 6 : index
    %c0_374 = arith.constant 0 : index
    %c0_375 = arith.constant 0 : index
    %318 = vector.load %arg6[%c6_373, %c0_374, %c0_375] : memref<16x128x128xf32, #tpu.memory_space<vmem>>, vector<1x128x128xf32>
    %319 = vector.shape_cast %318 : vector<1x128x128xf32> to vector<128x128xf32>
    %cst_376 = arith.constant dense<0.000000e+00> : vector<2x128xf32>
    %320 = tpu.matmul %317, %319, %cst_376 {dimension_numbers = #tpu.dot_dimension_numbers<[1], [0], [0], [1], [0, 0, 1, 1], [], []>} : vector<2x128xf32>, vector<128x128xf32>, vector<2x128xf32> -> vector<2x128xf32>
    %321 = arith.addf %304, %320 : vector<2x128xf32>
    %c0_377 = arith.constant 0 : index
    %c2_378 = arith.constant 2 : index
    %c6_379 = arith.constant 6 : index
    %c0_380 = arith.constant 0 : index
    %322 = vector.load %arg12[%c0_377, %c2_378, %c6_379, %c0_380] : memref<2x8x8x128xf32, #tpu.memory_space<vmem>>, vector<2x1x1x128xf32>
    %323 = vector.shape_cast %322 : vector<2x1x1x128xf32> to vector<2x128xf32>
    %c0_381 = arith.constant 0 : index
    %c2_382 = arith.constant 2 : index
    %c7_383 = arith.constant 7 : index
    %c0_384 = arith.constant 0 : index
    %324 = vector.load %arg12[%c0_381, %c2_382, %c7_383, %c0_384] : memref<2x8x8x128xf32, #tpu.memory_space<vmem>>, vector<2x1x1x128xf32>
    %325 = vector.shape_cast %324 : vector<2x1x1x128xf32> to vector<2x128xf32>
    %326 = arith.maximumf %323, %325 : vector<2x128xf32>
    %c0_385 = arith.constant 0 : index
    %c3_386 = arith.constant 3 : index
    %c6_387 = arith.constant 6 : index
    %c0_388 = arith.constant 0 : index
    %327 = vector.load %arg12[%c0_385, %c3_386, %c6_387, %c0_388] : memref<2x8x8x128xf32, #tpu.memory_space<vmem>>, vector<2x1x1x128xf32>
    %328 = vector.shape_cast %327 : vector<2x1x1x128xf32> to vector<2x128xf32>
    %c0_389 = arith.constant 0 : index
    %c3_390 = arith.constant 3 : index
    %c7_391 = arith.constant 7 : index
    %c0_392 = arith.constant 0 : index
    %329 = vector.load %arg12[%c0_389, %c3_390, %c7_391, %c0_392] : memref<2x8x8x128xf32, #tpu.memory_space<vmem>>, vector<2x1x1x128xf32>
    %330 = vector.shape_cast %329 : vector<2x1x1x128xf32> to vector<2x128xf32>
    %331 = arith.maximumf %328, %330 : vector<2x128xf32>
    %332 = arith.maximumf %326, %331 : vector<2x128xf32>
    %cst_393 = arith.constant 0.000000e+00 : f32
    %333 = vector.broadcast %cst_393 : f32 to vector<2x128xf32>
    %334 = arith.maximumf %332, %333 : vector<2x128xf32>
    %c7_394 = arith.constant 7 : index
    %c0_395 = arith.constant 0 : index
    %c0_396 = arith.constant 0 : index
    %335 = vector.load %arg6[%c7_394, %c0_395, %c0_396] : memref<16x128x128xf32, #tpu.memory_space<vmem>>, vector<1x128x128xf32>
    %336 = vector.shape_cast %335 : vector<1x128x128xf32> to vector<128x128xf32>
    %cst_397 = arith.constant dense<0.000000e+00> : vector<2x128xf32>
    %337 = tpu.matmul %334, %336, %cst_397 {dimension_numbers = #tpu.dot_dimension_numbers<[1], [0], [0], [1], [0, 0, 1, 1], [], []>} : vector<2x128xf32>, vector<128x128xf32>, vector<2x128xf32> -> vector<2x128xf32>
    %338 = arith.addf %321, %337 : vector<2x128xf32>
    %c0_398 = arith.constant 0 : index
    %c4_399 = arith.constant 4 : index
    %c0_400 = arith.constant 0 : index
    %c0_401 = arith.constant 0 : index
    %339 = vector.load %arg12[%c0_398, %c4_399, %c0_400, %c0_401] : memref<2x8x8x128xf32, #tpu.memory_space<vmem>>, vector<2x1x1x128xf32>
    %340 = vector.shape_cast %339 : vector<2x1x1x128xf32> to vector<2x128xf32>
    %c0_402 = arith.constant 0 : index
    %c4_403 = arith.constant 4 : index
    %c1_404 = arith.constant 1 : index
    %c0_405 = arith.constant 0 : index
    %341 = vector.load %arg12[%c0_402, %c4_403, %c1_404, %c0_405] : memref<2x8x8x128xf32, #tpu.memory_space<vmem>>, vector<2x1x1x128xf32>
    %342 = vector.shape_cast %341 : vector<2x1x1x128xf32> to vector<2x128xf32>
    %343 = arith.maximumf %340, %342 : vector<2x128xf32>
    %c0_406 = arith.constant 0 : index
    %c5_407 = arith.constant 5 : index
    %c0_408 = arith.constant 0 : index
    %c0_409 = arith.constant 0 : index
    %344 = vector.load %arg12[%c0_406, %c5_407, %c0_408, %c0_409] : memref<2x8x8x128xf32, #tpu.memory_space<vmem>>, vector<2x1x1x128xf32>
    %345 = vector.shape_cast %344 : vector<2x1x1x128xf32> to vector<2x128xf32>
    %c0_410 = arith.constant 0 : index
    %c5_411 = arith.constant 5 : index
    %c1_412 = arith.constant 1 : index
    %c0_413 = arith.constant 0 : index
    %346 = vector.load %arg12[%c0_410, %c5_411, %c1_412, %c0_413] : memref<2x8x8x128xf32, #tpu.memory_space<vmem>>, vector<2x1x1x128xf32>
    %347 = vector.shape_cast %346 : vector<2x1x1x128xf32> to vector<2x128xf32>
    %348 = arith.maximumf %345, %347 : vector<2x128xf32>
    %349 = arith.maximumf %343, %348 : vector<2x128xf32>
    %cst_414 = arith.constant 0.000000e+00 : f32
    %350 = vector.broadcast %cst_414 : f32 to vector<2x128xf32>
    %351 = arith.maximumf %349, %350 : vector<2x128xf32>
    %c8_415 = arith.constant 8 : index
    %c0_416 = arith.constant 0 : index
    %c0_417 = arith.constant 0 : index
    %352 = vector.load %arg6[%c8_415, %c0_416, %c0_417] : memref<16x128x128xf32, #tpu.memory_space<vmem>>, vector<1x128x128xf32>
    %353 = vector.shape_cast %352 : vector<1x128x128xf32> to vector<128x128xf32>
    %cst_418 = arith.constant dense<0.000000e+00> : vector<2x128xf32>
    %354 = tpu.matmul %351, %353, %cst_418 {dimension_numbers = #tpu.dot_dimension_numbers<[1], [0], [0], [1], [0, 0, 1, 1], [], []>} : vector<2x128xf32>, vector<128x128xf32>, vector<2x128xf32> -> vector<2x128xf32>
    %355 = arith.addf %338, %354 : vector<2x128xf32>
    %c0_419 = arith.constant 0 : index
    %c4_420 = arith.constant 4 : index
    %c2_421 = arith.constant 2 : index
    %c0_422 = arith.constant 0 : index
    %356 = vector.load %arg12[%c0_419, %c4_420, %c2_421, %c0_422] : memref<2x8x8x128xf32, #tpu.memory_space<vmem>>, vector<2x1x1x128xf32>
    %357 = vector.shape_cast %356 : vector<2x1x1x128xf32> to vector<2x128xf32>
    %c0_423 = arith.constant 0 : index
    %c4_424 = arith.constant 4 : index
    %c3_425 = arith.constant 3 : index
    %c0_426 = arith.constant 0 : index
    %358 = vector.load %arg12[%c0_423, %c4_424, %c3_425, %c0_426] : memref<2x8x8x128xf32, #tpu.memory_space<vmem>>, vector<2x1x1x128xf32>
    %359 = vector.shape_cast %358 : vector<2x1x1x128xf32> to vector<2x128xf32>
    %360 = arith.maximumf %357, %359 : vector<2x128xf32>
    %c0_427 = arith.constant 0 : index
    %c5_428 = arith.constant 5 : index
    %c2_429 = arith.constant 2 : index
    %c0_430 = arith.constant 0 : index
    %361 = vector.load %arg12[%c0_427, %c5_428, %c2_429, %c0_430] : memref<2x8x8x128xf32, #tpu.memory_space<vmem>>, vector<2x1x1x128xf32>
    %362 = vector.shape_cast %361 : vector<2x1x1x128xf32> to vector<2x128xf32>
    %c0_431 = arith.constant 0 : index
    %c5_432 = arith.constant 5 : index
    %c3_433 = arith.constant 3 : index
    %c0_434 = arith.constant 0 : index
    %363 = vector.load %arg12[%c0_431, %c5_432, %c3_433, %c0_434] : memref<2x8x8x128xf32, #tpu.memory_space<vmem>>, vector<2x1x1x128xf32>
    %364 = vector.shape_cast %363 : vector<2x1x1x128xf32> to vector<2x128xf32>
    %365 = arith.maximumf %362, %364 : vector<2x128xf32>
    %366 = arith.maximumf %360, %365 : vector<2x128xf32>
    %cst_435 = arith.constant 0.000000e+00 : f32
    %367 = vector.broadcast %cst_435 : f32 to vector<2x128xf32>
    %368 = arith.maximumf %366, %367 : vector<2x128xf32>
    %c9_436 = arith.constant 9 : index
    %c0_437 = arith.constant 0 : index
    %c0_438 = arith.constant 0 : index
    %369 = vector.load %arg6[%c9_436, %c0_437, %c0_438] : memref<16x128x128xf32, #tpu.memory_space<vmem>>, vector<1x128x128xf32>
    %370 = vector.shape_cast %369 : vector<1x128x128xf32> to vector<128x128xf32>
    %cst_439 = arith.constant dense<0.000000e+00> : vector<2x128xf32>
    %371 = tpu.matmul %368, %370, %cst_439 {dimension_numbers = #tpu.dot_dimension_numbers<[1], [0], [0], [1], [0, 0, 1, 1], [], []>} : vector<2x128xf32>, vector<128x128xf32>, vector<2x128xf32> -> vector<2x128xf32>
    %372 = arith.addf %355, %371 : vector<2x128xf32>
    %c0_440 = arith.constant 0 : index
    %c4_441 = arith.constant 4 : index
    %c4_442 = arith.constant 4 : index
    %c0_443 = arith.constant 0 : index
    %373 = vector.load %arg12[%c0_440, %c4_441, %c4_442, %c0_443] : memref<2x8x8x128xf32, #tpu.memory_space<vmem>>, vector<2x1x1x128xf32>
    %374 = vector.shape_cast %373 : vector<2x1x1x128xf32> to vector<2x128xf32>
    %c0_444 = arith.constant 0 : index
    %c4_445 = arith.constant 4 : index
    %c5_446 = arith.constant 5 : index
    %c0_447 = arith.constant 0 : index
    %375 = vector.load %arg12[%c0_444, %c4_445, %c5_446, %c0_447] : memref<2x8x8x128xf32, #tpu.memory_space<vmem>>, vector<2x1x1x128xf32>
    %376 = vector.shape_cast %375 : vector<2x1x1x128xf32> to vector<2x128xf32>
    %377 = arith.maximumf %374, %376 : vector<2x128xf32>
    %c0_448 = arith.constant 0 : index
    %c5_449 = arith.constant 5 : index
    %c4_450 = arith.constant 4 : index
    %c0_451 = arith.constant 0 : index
    %378 = vector.load %arg12[%c0_448, %c5_449, %c4_450, %c0_451] : memref<2x8x8x128xf32, #tpu.memory_space<vmem>>, vector<2x1x1x128xf32>
    %379 = vector.shape_cast %378 : vector<2x1x1x128xf32> to vector<2x128xf32>
    %c0_452 = arith.constant 0 : index
    %c5_453 = arith.constant 5 : index
    %c5_454 = arith.constant 5 : index
    %c0_455 = arith.constant 0 : index
    %380 = vector.load %arg12[%c0_452, %c5_453, %c5_454, %c0_455] : memref<2x8x8x128xf32, #tpu.memory_space<vmem>>, vector<2x1x1x128xf32>
    %381 = vector.shape_cast %380 : vector<2x1x1x128xf32> to vector<2x128xf32>
    %382 = arith.maximumf %379, %381 : vector<2x128xf32>
    %383 = arith.maximumf %377, %382 : vector<2x128xf32>
    %cst_456 = arith.constant 0.000000e+00 : f32
    %384 = vector.broadcast %cst_456 : f32 to vector<2x128xf32>
    %385 = arith.maximumf %383, %384 : vector<2x128xf32>
    %c10_457 = arith.constant 10 : index
    %c0_458 = arith.constant 0 : index
    %c0_459 = arith.constant 0 : index
    %386 = vector.load %arg6[%c10_457, %c0_458, %c0_459] : memref<16x128x128xf32, #tpu.memory_space<vmem>>, vector<1x128x128xf32>
    %387 = vector.shape_cast %386 : vector<1x128x128xf32> to vector<128x128xf32>
    %cst_460 = arith.constant dense<0.000000e+00> : vector<2x128xf32>
    %388 = tpu.matmul %385, %387, %cst_460 {dimension_numbers = #tpu.dot_dimension_numbers<[1], [0], [0], [1], [0, 0, 1, 1], [], []>} : vector<2x128xf32>, vector<128x128xf32>, vector<2x128xf32> -> vector<2x128xf32>
    %389 = arith.addf %372, %388 : vector<2x128xf32>
    %c0_461 = arith.constant 0 : index
    %c4_462 = arith.constant 4 : index
    %c6_463 = arith.constant 6 : index
    %c0_464 = arith.constant 0 : index
    %390 = vector.load %arg12[%c0_461, %c4_462, %c6_463, %c0_464] : memref<2x8x8x128xf32, #tpu.memory_space<vmem>>, vector<2x1x1x128xf32>
    %391 = vector.shape_cast %390 : vector<2x1x1x128xf32> to vector<2x128xf32>
    %c0_465 = arith.constant 0 : index
    %c4_466 = arith.constant 4 : index
    %c7_467 = arith.constant 7 : index
    %c0_468 = arith.constant 0 : index
    %392 = vector.load %arg12[%c0_465, %c4_466, %c7_467, %c0_468] : memref<2x8x8x128xf32, #tpu.memory_space<vmem>>, vector<2x1x1x128xf32>
    %393 = vector.shape_cast %392 : vector<2x1x1x128xf32> to vector<2x128xf32>
    %394 = arith.maximumf %391, %393 : vector<2x128xf32>
    %c0_469 = arith.constant 0 : index
    %c5_470 = arith.constant 5 : index
    %c6_471 = arith.constant 6 : index
    %c0_472 = arith.constant 0 : index
    %395 = vector.load %arg12[%c0_469, %c5_470, %c6_471, %c0_472] : memref<2x8x8x128xf32, #tpu.memory_space<vmem>>, vector<2x1x1x128xf32>
    %396 = vector.shape_cast %395 : vector<2x1x1x128xf32> to vector<2x128xf32>
    %c0_473 = arith.constant 0 : index
    %c5_474 = arith.constant 5 : index
    %c7_475 = arith.constant 7 : index
    %c0_476 = arith.constant 0 : index
    %397 = vector.load %arg12[%c0_473, %c5_474, %c7_475, %c0_476] : memref<2x8x8x128xf32, #tpu.memory_space<vmem>>, vector<2x1x1x128xf32>
    %398 = vector.shape_cast %397 : vector<2x1x1x128xf32> to vector<2x128xf32>
    %399 = arith.maximumf %396, %398 : vector<2x128xf32>
    %400 = arith.maximumf %394, %399 : vector<2x128xf32>
    %cst_477 = arith.constant 0.000000e+00 : f32
    %401 = vector.broadcast %cst_477 : f32 to vector<2x128xf32>
    %402 = arith.maximumf %400, %401 : vector<2x128xf32>
    %c11_478 = arith.constant 11 : index
    %c0_479 = arith.constant 0 : index
    %c0_480 = arith.constant 0 : index
    %403 = vector.load %arg6[%c11_478, %c0_479, %c0_480] : memref<16x128x128xf32, #tpu.memory_space<vmem>>, vector<1x128x128xf32>
    %404 = vector.shape_cast %403 : vector<1x128x128xf32> to vector<128x128xf32>
    %cst_481 = arith.constant dense<0.000000e+00> : vector<2x128xf32>
    %405 = tpu.matmul %402, %404, %cst_481 {dimension_numbers = #tpu.dot_dimension_numbers<[1], [0], [0], [1], [0, 0, 1, 1], [], []>} : vector<2x128xf32>, vector<128x128xf32>, vector<2x128xf32> -> vector<2x128xf32>
    %406 = arith.addf %389, %405 : vector<2x128xf32>
    %c0_482 = arith.constant 0 : index
    %c6_483 = arith.constant 6 : index
    %c0_484 = arith.constant 0 : index
    %c0_485 = arith.constant 0 : index
    %407 = vector.load %arg12[%c0_482, %c6_483, %c0_484, %c0_485] : memref<2x8x8x128xf32, #tpu.memory_space<vmem>>, vector<2x1x1x128xf32>
    %408 = vector.shape_cast %407 : vector<2x1x1x128xf32> to vector<2x128xf32>
    %c0_486 = arith.constant 0 : index
    %c6_487 = arith.constant 6 : index
    %c1_488 = arith.constant 1 : index
    %c0_489 = arith.constant 0 : index
    %409 = vector.load %arg12[%c0_486, %c6_487, %c1_488, %c0_489] : memref<2x8x8x128xf32, #tpu.memory_space<vmem>>, vector<2x1x1x128xf32>
    %410 = vector.shape_cast %409 : vector<2x1x1x128xf32> to vector<2x128xf32>
    %411 = arith.maximumf %408, %410 : vector<2x128xf32>
    %c0_490 = arith.constant 0 : index
    %c7_491 = arith.constant 7 : index
    %c0_492 = arith.constant 0 : index
    %c0_493 = arith.constant 0 : index
    %412 = vector.load %arg12[%c0_490, %c7_491, %c0_492, %c0_493] : memref<2x8x8x128xf32, #tpu.memory_space<vmem>>, vector<2x1x1x128xf32>
    %413 = vector.shape_cast %412 : vector<2x1x1x128xf32> to vector<2x128xf32>
    %c0_494 = arith.constant 0 : index
    %c7_495 = arith.constant 7 : index
    %c1_496 = arith.constant 1 : index
    %c0_497 = arith.constant 0 : index
    %414 = vector.load %arg12[%c0_494, %c7_495, %c1_496, %c0_497] : memref<2x8x8x128xf32, #tpu.memory_space<vmem>>, vector<2x1x1x128xf32>
    %415 = vector.shape_cast %414 : vector<2x1x1x128xf32> to vector<2x128xf32>
    %416 = arith.maximumf %413, %415 : vector<2x128xf32>
    %417 = arith.maximumf %411, %416 : vector<2x128xf32>
    %cst_498 = arith.constant 0.000000e+00 : f32
    %418 = vector.broadcast %cst_498 : f32 to vector<2x128xf32>
    %419 = arith.maximumf %417, %418 : vector<2x128xf32>
    %c12_499 = arith.constant 12 : index
    %c0_500 = arith.constant 0 : index
    %c0_501 = arith.constant 0 : index
    %420 = vector.load %arg6[%c12_499, %c0_500, %c0_501] : memref<16x128x128xf32, #tpu.memory_space<vmem>>, vector<1x128x128xf32>
    %421 = vector.shape_cast %420 : vector<1x128x128xf32> to vector<128x128xf32>
    %cst_502 = arith.constant dense<0.000000e+00> : vector<2x128xf32>
    %422 = tpu.matmul %419, %421, %cst_502 {dimension_numbers = #tpu.dot_dimension_numbers<[1], [0], [0], [1], [0, 0, 1, 1], [], []>} : vector<2x128xf32>, vector<128x128xf32>, vector<2x128xf32> -> vector<2x128xf32>
    %423 = arith.addf %406, %422 : vector<2x128xf32>
    %c0_503 = arith.constant 0 : index
    %c6_504 = arith.constant 6 : index
    %c2_505 = arith.constant 2 : index
    %c0_506 = arith.constant 0 : index
    %424 = vector.load %arg12[%c0_503, %c6_504, %c2_505, %c0_506] : memref<2x8x8x128xf32, #tpu.memory_space<vmem>>, vector<2x1x1x128xf32>
    %425 = vector.shape_cast %424 : vector<2x1x1x128xf32> to vector<2x128xf32>
    %c0_507 = arith.constant 0 : index
    %c6_508 = arith.constant 6 : index
    %c3_509 = arith.constant 3 : index
    %c0_510 = arith.constant 0 : index
    %426 = vector.load %arg12[%c0_507, %c6_508, %c3_509, %c0_510] : memref<2x8x8x128xf32, #tpu.memory_space<vmem>>, vector<2x1x1x128xf32>
    %427 = vector.shape_cast %426 : vector<2x1x1x128xf32> to vector<2x128xf32>
    %428 = arith.maximumf %425, %427 : vector<2x128xf32>
    %c0_511 = arith.constant 0 : index
    %c7_512 = arith.constant 7 : index
    %c2_513 = arith.constant 2 : index
    %c0_514 = arith.constant 0 : index
    %429 = vector.load %arg12[%c0_511, %c7_512, %c2_513, %c0_514] : memref<2x8x8x128xf32, #tpu.memory_space<vmem>>, vector<2x1x1x128xf32>
    %430 = vector.shape_cast %429 : vector<2x1x1x128xf32> to vector<2x128xf32>
    %c0_515 = arith.constant 0 : index
    %c7_516 = arith.constant 7 : index
    %c3_517 = arith.constant 3 : index
    %c0_518 = arith.constant 0 : index
    %431 = vector.load %arg12[%c0_515, %c7_516, %c3_517, %c0_518] : memref<2x8x8x128xf32, #tpu.memory_space<vmem>>, vector<2x1x1x128xf32>
    %432 = vector.shape_cast %431 : vector<2x1x1x128xf32> to vector<2x128xf32>
    %433 = arith.maximumf %430, %432 : vector<2x128xf32>
    %434 = arith.maximumf %428, %433 : vector<2x128xf32>
    %cst_519 = arith.constant 0.000000e+00 : f32
    %435 = vector.broadcast %cst_519 : f32 to vector<2x128xf32>
    %436 = arith.maximumf %434, %435 : vector<2x128xf32>
    %c13_520 = arith.constant 13 : index
    %c0_521 = arith.constant 0 : index
    %c0_522 = arith.constant 0 : index
    %437 = vector.load %arg6[%c13_520, %c0_521, %c0_522] : memref<16x128x128xf32, #tpu.memory_space<vmem>>, vector<1x128x128xf32>
    %438 = vector.shape_cast %437 : vector<1x128x128xf32> to vector<128x128xf32>
    %cst_523 = arith.constant dense<0.000000e+00> : vector<2x128xf32>
    %439 = tpu.matmul %436, %438, %cst_523 {dimension_numbers = #tpu.dot_dimension_numbers<[1], [0], [0], [1], [0, 0, 1, 1], [], []>} : vector<2x128xf32>, vector<128x128xf32>, vector<2x128xf32> -> vector<2x128xf32>
    %440 = arith.addf %423, %439 : vector<2x128xf32>
    %c0_524 = arith.constant 0 : index
    %c6_525 = arith.constant 6 : index
    %c4_526 = arith.constant 4 : index
    %c0_527 = arith.constant 0 : index
    %441 = vector.load %arg12[%c0_524, %c6_525, %c4_526, %c0_527] : memref<2x8x8x128xf32, #tpu.memory_space<vmem>>, vector<2x1x1x128xf32>
    %442 = vector.shape_cast %441 : vector<2x1x1x128xf32> to vector<2x128xf32>
    %c0_528 = arith.constant 0 : index
    %c6_529 = arith.constant 6 : index
    %c5_530 = arith.constant 5 : index
    %c0_531 = arith.constant 0 : index
    %443 = vector.load %arg12[%c0_528, %c6_529, %c5_530, %c0_531] : memref<2x8x8x128xf32, #tpu.memory_space<vmem>>, vector<2x1x1x128xf32>
    %444 = vector.shape_cast %443 : vector<2x1x1x128xf32> to vector<2x128xf32>
    %445 = arith.maximumf %442, %444 : vector<2x128xf32>
    %c0_532 = arith.constant 0 : index
    %c7_533 = arith.constant 7 : index
    %c4_534 = arith.constant 4 : index
    %c0_535 = arith.constant 0 : index
    %446 = vector.load %arg12[%c0_532, %c7_533, %c4_534, %c0_535] : memref<2x8x8x128xf32, #tpu.memory_space<vmem>>, vector<2x1x1x128xf32>
    %447 = vector.shape_cast %446 : vector<2x1x1x128xf32> to vector<2x128xf32>
    %c0_536 = arith.constant 0 : index
    %c7_537 = arith.constant 7 : index
    %c5_538 = arith.constant 5 : index
    %c0_539 = arith.constant 0 : index
    %448 = vector.load %arg12[%c0_536, %c7_537, %c5_538, %c0_539] : memref<2x8x8x128xf32, #tpu.memory_space<vmem>>, vector<2x1x1x128xf32>
    %449 = vector.shape_cast %448 : vector<2x1x1x128xf32> to vector<2x128xf32>
    %450 = arith.maximumf %447, %449 : vector<2x128xf32>
    %451 = arith.maximumf %445, %450 : vector<2x128xf32>
    %cst_540 = arith.constant 0.000000e+00 : f32
    %452 = vector.broadcast %cst_540 : f32 to vector<2x128xf32>
    %453 = arith.maximumf %451, %452 : vector<2x128xf32>
    %c14_541 = arith.constant 14 : index
    %c0_542 = arith.constant 0 : index
    %c0_543 = arith.constant 0 : index
    %454 = vector.load %arg6[%c14_541, %c0_542, %c0_543] : memref<16x128x128xf32, #tpu.memory_space<vmem>>, vector<1x128x128xf32>
    %455 = vector.shape_cast %454 : vector<1x128x128xf32> to vector<128x128xf32>
    %cst_544 = arith.constant dense<0.000000e+00> : vector<2x128xf32>
    %456 = tpu.matmul %453, %455, %cst_544 {dimension_numbers = #tpu.dot_dimension_numbers<[1], [0], [0], [1], [0, 0, 1, 1], [], []>} : vector<2x128xf32>, vector<128x128xf32>, vector<2x128xf32> -> vector<2x128xf32>
    %457 = arith.addf %440, %456 : vector<2x128xf32>
    %c0_545 = arith.constant 0 : index
    %c6_546 = arith.constant 6 : index
    %c6_547 = arith.constant 6 : index
    %c0_548 = arith.constant 0 : index
    %458 = vector.load %arg12[%c0_545, %c6_546, %c6_547, %c0_548] : memref<2x8x8x128xf32, #tpu.memory_space<vmem>>, vector<2x1x1x128xf32>
    %459 = vector.shape_cast %458 : vector<2x1x1x128xf32> to vector<2x128xf32>
    %c0_549 = arith.constant 0 : index
    %c6_550 = arith.constant 6 : index
    %c7_551 = arith.constant 7 : index
    %c0_552 = arith.constant 0 : index
    %460 = vector.load %arg12[%c0_549, %c6_550, %c7_551, %c0_552] : memref<2x8x8x128xf32, #tpu.memory_space<vmem>>, vector<2x1x1x128xf32>
    %461 = vector.shape_cast %460 : vector<2x1x1x128xf32> to vector<2x128xf32>
    %462 = arith.maximumf %459, %461 : vector<2x128xf32>
    %c0_553 = arith.constant 0 : index
    %c7_554 = arith.constant 7 : index
    %c6_555 = arith.constant 6 : index
    %c0_556 = arith.constant 0 : index
    %463 = vector.load %arg12[%c0_553, %c7_554, %c6_555, %c0_556] : memref<2x8x8x128xf32, #tpu.memory_space<vmem>>, vector<2x1x1x128xf32>
    %464 = vector.shape_cast %463 : vector<2x1x1x128xf32> to vector<2x128xf32>
    %c0_557 = arith.constant 0 : index
    %c7_558 = arith.constant 7 : index
    %c7_559 = arith.constant 7 : index
    %c0_560 = arith.constant 0 : index
    %465 = vector.load %arg12[%c0_557, %c7_558, %c7_559, %c0_560] : memref<2x8x8x128xf32, #tpu.memory_space<vmem>>, vector<2x1x1x128xf32>
    %466 = vector.shape_cast %465 : vector<2x1x1x128xf32> to vector<2x128xf32>
    %467 = arith.maximumf %464, %466 : vector<2x128xf32>
    %468 = arith.maximumf %462, %467 : vector<2x128xf32>
    %cst_561 = arith.constant 0.000000e+00 : f32
    %469 = vector.broadcast %cst_561 : f32 to vector<2x128xf32>
    %470 = arith.maximumf %468, %469 : vector<2x128xf32>
    %c15_562 = arith.constant 15 : index
    %c0_563 = arith.constant 0 : index
    %c0_564 = arith.constant 0 : index
    %471 = vector.load %arg6[%c15_562, %c0_563, %c0_564] : memref<16x128x128xf32, #tpu.memory_space<vmem>>, vector<1x128x128xf32>
    %472 = vector.shape_cast %471 : vector<1x128x128xf32> to vector<128x128xf32>
    %cst_565 = arith.constant dense<0.000000e+00> : vector<2x128xf32>
    %473 = tpu.matmul %470, %472, %cst_565 {dimension_numbers = #tpu.dot_dimension_numbers<[1], [0], [0], [1], [0, 0, 1, 1], [], []>} : vector<2x128xf32>, vector<128x128xf32>, vector<2x128xf32> -> vector<2x128xf32>
    %474 = arith.addf %457, %473 : vector<2x128xf32>
    %c0_566 = arith.constant 0 : index
    %c0_567 = arith.constant 0 : index
    %475 = vector.load %arg7[%c0_566, %c0_567] : memref<1x128xf32, #tpu.memory_space<vmem>>, vector<1x128xf32>
    %476 = vector.broadcast %475 : vector<1x128xf32> to vector<2x128xf32>
    %477 = arith.addf %474, %476 : vector<2x128xf32>
    %cst_568 = arith.constant 0.000000e+00 : f32
    %478 = vector.broadcast %cst_568 : f32 to vector<2x128xf32>
    %479 = arith.maximumf %477, %478 : vector<2x128xf32>
    %c0_569 = arith.constant 0 : index
    %c0_570 = arith.constant 0 : index
    %480 = vector.load %arg8[%c0_569, %c0_570] : memref<128x128xf32, #tpu.memory_space<vmem>>, vector<128x128xf32>
    %cst_571 = arith.constant dense<0.000000e+00> : vector<2x128xf32>
    %481 = tpu.matmul %479, %480, %cst_571 {dimension_numbers = #tpu.dot_dimension_numbers<[1], [0], [0], [1], [0, 0, 1, 1], [], []>} : vector<2x128xf32>, vector<128x128xf32>, vector<2x128xf32> -> vector<2x128xf32>
    %c0_572 = arith.constant 0 : index
    %c0_573 = arith.constant 0 : index
    %482 = vector.load %arg9[%c0_572, %c0_573] : memref<1x128xf32, #tpu.memory_space<vmem>>, vector<1x128xf32>
    %483 = vector.broadcast %482 : vector<1x128xf32> to vector<2x128xf32>
    %484 = arith.addf %481, %483 : vector<2x128xf32>
    %485 = tpu.iota {dimensions = array<i32: 1>} : vector<2x128xi32>
    %c10_i32 = arith.constant 10 : i32
    %486 = vector.broadcast %c10_i32 : i32 to vector<2x128xi32>
    %487 = arith.cmpi slt, %485, %486 : vector<2x128xi32>
    %cst_574 = arith.constant -1.000000e+30 : f32
    %488 = vector.broadcast %cst_574 : f32 to vector<2x128xf32>
    %489 = arith.select %487, %484, %488 : vector<2x128xi1>, vector<2x128xf32>
    %cst_575 = arith.constant dense<0xFF800000> : vector<2xf32>
    %490 = vector.multi_reduction <maximumf>, %489, %cst_575 [1] : vector<2x128xf32> to vector<2xf32>
    %491 = vector.shape_cast %490 : vector<2xf32> to vector<2x1xf32>
    %492 = vector.broadcast %491 : vector<2x1xf32> to vector<2x128xf32>
    %493 = arith.subf %489, %492 : vector<2x128xf32>
    %494 = math.exp %493 : vector<2x128xf32>
    %cst_576 = arith.constant dense<0.000000e+00> : vector<2xf32>
    %495 = vector.multi_reduction <add>, %494, %cst_576 [1] : vector<2x128xf32> to vector<2xf32>
    %496 = vector.shape_cast %495 : vector<2xf32> to vector<2x1xf32>
    %497 = math.log %496 : vector<2x1xf32>
    %498 = vector.broadcast %497 : vector<2x1xf32> to vector<2x128xf32>
    %499 = arith.subf %493, %498 : vector<2x128xf32>
    %c0_577 = arith.constant 0 : index
    %c0_578 = arith.constant 0 : index
    %500 = vector.load %arg10[%c0_577, %c0_578] : memref<2x128xf32, #tpu.memory_space<vmem>>, vector<2x128xf32>
    tpu.vector_store %arg10[%c0_577, %c0_578], %499 {strides = array<i32>} : memref<2x128xf32, #tpu.memory_space<vmem>>, vector<2x128xf32>,
    return
  }
  func.func @transform_0(%arg0: i32) -> (i32, i32, i32, i32) {
    %c0_i32 = arith.constant 0 : i32
    %c0_i32_0 = arith.constant 0 : i32
    %c0_i32_1 = arith.constant 0 : i32
    %c0_i32_2 = arith.constant 0 : i32
    %c0_i32_3 = arith.constant 0 : i32
    return %c0_i32, %c0_i32_0, %c0_i32_1, %c0_i32_2 : i32, i32, i32, i32
  }
  func.func @transform_1(%arg0: i32) -> (i32, i32, i32) {
    %c0_i32 = arith.constant 0 : i32
    %c0_i32_0 = arith.constant 0 : i32
    %c0_i32_1 = arith.constant 0 : i32
    %c0_i32_2 = arith.constant 0 : i32
    return %c0_i32, %c0_i32_0, %c0_i32_1 : i32, i32, i32
  }
  func.func @transform_2(%arg0: i32) -> (i32, i32) {
    %c0_i32 = arith.constant 0 : i32
    %c0_i32_0 = arith.constant 0 : i32
    %c0_i32_1 = arith.constant 0 : i32
    return %c0_i32, %c0_i32_0 : i32, i32
  }
  func.func @transform_3(%arg0: i32) -> (i32, i32, i32) {
    %c0_i32 = arith.constant 0 : i32
    %c0_i32_0 = arith.constant 0 : i32
    %c0_i32_1 = arith.constant 0 : i32
    %c0_i32_2 = arith.constant 0 : i32
    return %c0_i32, %c0_i32_0, %c0_i32_1 : i32, i32, i32
  }
  func.func @transform_4(%arg0: i32) -> (i32, i32) {
    %c0_i32 = arith.constant 0 : i32
    %c0_i32_0 = arith.constant 0 : i32
    %c0_i32_1 = arith.constant 0 : i32
    return %c0_i32, %c0_i32_0 : i32, i32
  }
  func.func @transform_5(%arg0: i32) -> (i32, i32, i32) {
    %c0_i32 = arith.constant 0 : i32
    %c0_i32_0 = arith.constant 0 : i32
    %c0_i32_1 = arith.constant 0 : i32
    %c0_i32_2 = arith.constant 0 : i32
    return %c0_i32, %c0_i32_0, %c0_i32_1 : i32, i32, i32
  }
  func.func @transform_6(%arg0: i32) -> (i32, i32) {
    %c0_i32 = arith.constant 0 : i32
    %c0_i32_0 = arith.constant 0 : i32
    %c0_i32_1 = arith.constant 0 : i32
    return %c0_i32, %c0_i32_0 : i32, i32
  }
  func.func @transform_7(%arg0: i32) -> (i32, i32) {
    %c0_i32 = arith.constant 0 : i32
    %c0_i32_0 = arith.constant 0 : i32
    %c0_i32_1 = arith.constant 0 : i32
    return %c0_i32, %c0_i32_0 : i32, i32
  }
  func.func @transform_8(%arg0: i32) -> (i32, i32) {
    %c0_i32 = arith.constant 0 : i32
    %c0_i32_0 = arith.constant 0 : i32
    %c0_i32_1 = arith.constant 0 : i32
    return %c0_i32, %c0_i32_0 : i32, i32
  }
  func.func @transform_9(%arg0: i32) -> (i32, i32) {
    %c0_i32 = arith.constant 0 : i32
    %c0_i32_0 = arith.constant 0 : i32
    %c0_i32_1 = arith.constant 0 : i32
    return %c0_i32, %c0_i32_0 : i32, i32
  }
}

</mosaic_0001>

<bundles_post_ra>
// kernel: convnet_forward.1
= control target key start
LH: loop header
LB: loop body
LE: loop exit
PB: predicated region body
PF: predicated region fallthrough
CT: control target
= control target key end

     0   :  { %vm998_vm0 = vcmask 1044480   ;;  %vm421_vm1 = vcmask 39936   ;;  %s34863_s0 = inlined_call_operand.vmem [shape: f32[2,28,32,5], index: 0, kind: input, shape index: {}]   ;;  %s34864_s1 = inlined_call_operand.vmem [shape: f32[5,5,128], index: 1, kind: input, shape index: {}]   ;;  %s34865_s2 = inlined_call_operand.vmem [shape: f32[1,128], index: 2, kind: input, shape index: {}]   ;;  %s34866_s3 = inlined_call_operand.vmem [shape: f32[25,128,128], index: 3, kind: input, shape index: {}]   ;;  %s34867_s4 = inlined_call_operand.vmem [shape: f32[1,128], index: 4, kind: input, shape index: {}]   ;;  %s34868_s5 = inlined_call_operand.vmem [shape: f32[16,128,128], index: 5, kind: input, shape index: {}]   ;;  %s34869_s6 = inlined_call_operand.vmem [shape: f32[1,128], index: 6, kind: input, shape index: {}]   ;;  %s34870_s7 = inlined_call_operand.vmem [shape: f32[128,128], index: 7, kind: input, shape index: {}]   ;;  %s34871_s8 = inlined_call_operand.vmem [shape: f32[1,128], index: 8, kind: input, shape index: {}]   ;;  %s34872_s9 = inlined_call_operand.hbm [shape: f32[2,128], index: 9, kind: output, shape index: {}]  }
   0x1   :  { %v16978_v0 = vld [vmem:[%s34864_s1 + $0x8] sm:$0x1f]  ;;  %v27139_v1 = vld [vmem:[%s34863_s0 + $0x20] sm:$0xff]  ;;  %v27155_v4 = vld [vmem:[%s34863_s0 + $0x30] sm:$0xff] }
   0x2   :  { %v27144_v2 = vld [vmem:[%s34863_s0 + $0x28] sm:$0xff]  ;;  %21205 = vmatprep.subr.msk.mxu0 %vm998_vm0, %v16978_v0  ;;  %21207 = vmatprep.mubr.msk.f32.mxu0 %vm421_vm1, %v27139_v1  ;;  %v225_v3 = vld [vmem:[%s34864_s1] sm:$0x1f]  ;;  %v27168_v5 = vld [vmem:[%s34863_s0 + $0x38] sm:$0xff] }
   0x3   :  { %21206 = vmatpush3.msk.msra.mxu0 %vm998_vm0, %v16978_v0  ;;  %25858 = vmatprep.subr.msk.mxu1 %vm998_vm0, %v16978_v0  ;;  %v27173_v6 = vld [vmem:[%s34863_s0 + $0x40] sm:$0xff]  ;;  %v27183_v7 = vld [vmem:[%s34863_s0 + $0x48] sm:$0xff]  ;;  %v27188_v8 = vld [vmem:[%s34863_s0 + $0x50] sm:$0xff] }
   0x4   :  { %21208 = vmatmul.mubr.msk.f32.vlgmr.msra.gmra.mrb[0].mxu0 %vm421_vm1, %v27144_v2  ;;  %21495 = vmatprep.subr.msk.mxu0 %vm998_vm0, %v225_v3  ;;  %v27197_v9 = vld [vmem:[%s34863_s0 + $0x58] sm:$0xff]  ;;  %v27202_v10 = vld [vmem:[%s34863_s0 + $0x60] sm:$0xff]  ;;  %v27209_v11 = vld [vmem:[%s34864_s1 + $0x10] sm:$0x1f] }
   0x5   :  { %21496 = vmatpush3.msk.msra.mxu0 %vm998_vm0, %v225_v3  ;;  %21210 = vmatprep.mubr.msk.f32.mxu0 %vm421_vm1, %v27155_v4  ;;  %v27216_v12 = vld [vmem:[%s34863_s0 + $0x68] sm:$0xff] }
   0x6   :  { %25859 = vmatpush3.msk.msra.mxu1 %vm998_vm0, %v16978_v0  ;;  %21785 = vmatprep.subr.msk.mxu0 %vm998_vm0, %v27209_v11 }
   0x8   :  { %21211 = vmatmul.mubr.msk.f32.gmra.mrb[2].mxu0 %vm421_vm1, %v27168_v5 }
   0x9   :  { %21213 = vmatprep.mubr.msk.f32.mxu0 %vm421_vm1, %v27173_v6 }
   0xc   :  { %21214 = vmatmul.mubr.msk.f32.gmra.mrb[4].mxu0 %vm421_vm1, %v27183_v7 }
   0xd   :  { %21216 = vmatprep.mubr.msk.f32.mxu0 %vm421_vm1, %v27188_v8 }
  0x10   :  { %21217 = vmatmul.mubr.msk.f32.gmra.mrb[6].mxu0 %vm421_vm1, %v27197_v9 }
  0x11   :  { %21219 = vmatprep.mubr.msk.f32.mxu0 %vm421_vm1, %v27202_v10 }
  0x12   :  { %14 = vsyncpa [#allocation5], 0  ;;  %v27223_v13 = vld [vmem:[%s34863_s0 + $0x70] sm:$0xff]  ;;  %v27232_v14 = vld [vmem:[%s34863_s0 + $0x78] sm:$0xff]  ;;  %vm27080_vm2 = vmmov 0   ;;  %vm14972_vm3 = vcmask 1041409  }
  0x13   :  { %v27237_v15 = vld [vmem:[%s34863_s0 + $0x80] sm:$0xff]  ;;  %v27246_v16 = vld [vmem:[%s34863_s0 + $0x88] sm:$0xff]  ;;  %v27251_v17 = vld [vmem:[%s34863_s0 + $0x90] sm:$0xff]  ;;  %vm16758_vm5 = vcmask 1041408  }
  0x14   :  { %21220 = vmatmul.mubr.msk.f32.gmra.mrb[8].mxu0 %vm421_vm1, %v27216_v12  ;;  %v27260_v18 = vld [vmem:[%s34863_s0 + $0x98] sm:$0xff]  ;;  %v27265_v19 = vld [vmem:[%s34863_s0 + $0xa0] sm:$0xff]  ;;  %v27274_v20 = vld [vmem:[%s34863_s0 + $0xa8] sm:$0xff] }
  0x15   :  { %21222 = vmatprep.mubr.msk.f32.mxu0 %vm421_vm1, %v27223_v13  ;;  %v27279_v21 = vld [vmem:[%s34863_s0 + $0xb0] sm:$0xff]  ;;  %v27288_v22 = vld [vmem:[%s34863_s0 + $0xb8] sm:$0xff]  ;;  %v27293_v23 = vld [vmem:[%s34863_s0 + $0xc0] sm:$0xff] }
  0x16   :  { %v27302_v24 = vld [vmem:[%s34863_s0 + $0xc8] sm:$0xff]  ;;  %v27307_v25 = vld [vmem:[%s34863_s0 + $0xd0] sm:$0xff]  ;;  %v27316_v26 = vld [vmem:[%s34863_s0 + $0xd8] sm:$0xff] }
  0x17   :  { %v27321_v27 = vld [vmem:[%s34863_s0 + $0xe0] sm:$0xff]  ;;  %v27330_v28 = vld [vmem:[%s34863_s0 + $0xe8] sm:$0xff]  ;;  %v27335_v29 = vld [vmem:[%s34863_s0 + $0xf0] sm:$0xff] }
  0x18   :  { %21223 = vmatmul.mubr.msk.f32.gmra.mrb[10].mxu0 %vm421_vm1, %v27232_v14  ;;  %v27344_v30 = vld [vmem:[%s34863_s0 + $0xf8] sm:$0xff]  ;;  %v27349_v31 = vld [vmem:[%s34863_s0 + $0x100] sm:$0xff]  ;;  %v27358_v32 = vld [vmem:[%s34863_s0 + $0x108] sm:$0xff] }
  0x19   :  { %21225 = vmatprep.mubr.msk.f32.mxu0 %vm421_vm1, %v27237_v15  ;;  %v27363_v33 = vld [vmem:[%s34863_s0 + $0x110] sm:$0xff]  ;;  %v27372_v34 = vld [vmem:[%s34863_s0 + $0x118] sm:$0xff]  ;;  %v27377_v35 = vld [vmem:[%s34863_s0 + $0x120] sm:$0xff] }
  0x1a   :  { %v27386_v36 = vld [vmem:[%s34863_s0 + $0x128] sm:$0xff]  ;;  %v27391_v37 = vld [vmem:[%s34863_s0 + $0x130] sm:$0xff]  ;;  %v27400_v38 = vld [vmem:[%s34863_s0 + $0x138] sm:$0xff] }
  0x1b   :  { %v27405_v39 = vld [vmem:[%s34863_s0 + $0x140] sm:$0xff]  ;;  %v27414_v40 = vld [vmem:[%s34863_s0 + $0x148] sm:$0xff]  ;;  %v27419_v41 = vld [vmem:[%s34863_s0 + $0x150] sm:$0xff] }
  0x1c   :  { %21226 = vmatmul.mubr.msk.f32.gmra.mrb[12].mxu0 %vm421_vm1, %v27246_v16  ;;  %v27428_v42 = vld [vmem:[%s34863_s0 + $0x158] sm:$0xff]  ;;  %v27433_v43 = vld [vmem:[%s34863_s0 + $0x160] sm:$0xff]  ;;  %v27442_v44 = vld [vmem:[%s34863_s0 + $0x168] sm:$0xff] }
  0x1d   :  { %21228 = vmatprep.mubr.msk.f32.mxu0 %vm421_vm1, %v27251_v17  ;;  %v33_v45 = vld [vmem:[%s34863_s0] sm:$0xff]  ;;  %v34_v46 = vld [vmem:[%s34863_s0 + $0x8] sm:$0xff]  ;;  %v35_v47 = vld [vmem:[%s34863_s0 + $0x10] sm:$0xff] }
  0x1e   :  { %v36_v48 = vld [vmem:[%s34863_s0 + $0x18] sm:$0xff]  ;;  %v27549_v49 = vld [vmem:[%s34863_s0 + $0x170] sm:$0xff]  ;;  %v27563_v51 = vld [vmem:[%s34863_s0 + $0x180] sm:$0xff] }
  0x1f   :  { %v27558_v50 = vld [vmem:[%s34863_s0 + $0x178] sm:$0xff]  ;;  %v27572_v52 = vld [vmem:[%s34863_s0 + $0x188] sm:$0xff]  ;;  %v27577_v53 = vld [vmem:[%s34863_s0 + $0x190] sm:$0xff] }
  0x20   :  { %21229 = vmatmul.mubr.msk.f32.gmra.mrb[14].mxu0 %vm421_vm1, %v27260_v18  ;;  %v27586_v54 = vld [vmem:[%s34863_s0 + $0x198] sm:$0xff]  ;;  %v27591_v55 = vld [vmem:[%s34863_s0 + $0x1a0] sm:$0xff]  ;;  %v27600_v56 = vld [vmem:[%s34863_s0 + $0x1a8] sm:$0xff] }
  0x21   :  { %21231 = vmatprep.mubr.msk.f32.mxu0 %vm421_vm1, %v27265_v19  ;;  %v27605_v57 = vld [vmem:[%s34863_s0 + $0x1b0] sm:$0xff]  ;;  %v27614_v58 = vld [vmem:[%s34863_s0 + $0x1b8] sm:$0xff]  ;;  %v27619_v59 = vld [vmem:[%s34863_s0 + $0x1c0] sm:$0xff] }
  0x22   :  { %v27628_v60 = vld [vmem:[%s34863_s0 + $0x1c8] sm:$0xff]  ;;  %v27633_v61 = vld [vmem:[%s34863_s0 + $0x1d0] sm:$0xff]  ;;  %v27642_v62 = vld [vmem:[%s34863_s0 + $0x1d8] sm:$0xff] }
  0x23   :  { %v27647_v63 = vld [vmem:[%s34863_s0 + $0x1e0] sm:$0xff]  ;;  %v27656_v0 = vld [vmem:[%s34863_s0 + $0x1e8] sm:$0xff] }
  0x24   :  { %21232 = vmatmul.mubr.msk.f32.gmra.mrb[16].mxu0 %vm421_vm1, %v27274_v20  ;;  %v27675_v3 = vld [vmem:[%s34863_s0 + $0x200] sm:$0xff] }
  0x25   :  { %21234 = vmatprep.mubr.msk.f32.mxu0 %vm421_vm1, %v27279_v21 }
  0x28   :  { %21235 = vmatmul.mubr.msk.f32.gmra.mrb[18].mxu0 %vm421_vm1, %v27288_v22 }
  0x29   :  { %21237 = vmatprep.mubr.msk.f32.mxu0 %vm421_vm1, %v27293_v23 }
  0x2c   :  { %21238 = vmatmul.mubr.msk.f32.gmra.mrb[20].mxu0 %vm421_vm1, %v27302_v24 }
  0x2d   :  { %21240 = vmatprep.mubr.msk.f32.mxu0 %vm421_vm1, %v27307_v25 }
  0x30   :  { %21241 = vmatmul.mubr.msk.f32.gmra.mrb[22].mxu0 %vm421_vm1, %v27316_v26 }
  0x31   :  { %21243 = vmatprep.mubr.msk.f32.mxu0 %vm421_vm1, %v27321_v27 }
  0x34   :  { %21244 = vmatmul.mubr.msk.f32.gmra.mrb[24].mxu0 %vm421_vm1, %v27330_v28 }
  0x35   :  { %21246 = vmatprep.mubr.msk.f32.mxu0 %vm421_vm1, %v27335_v29 }
  0x38   :  { %21247 = vmatmul.mubr.msk.f32.gmra.mrb[26].mxu0 %vm421_vm1, %v27344_v30 }
  0x39   :  { %21249 = vmatprep.mubr.msk.f32.mxu0 %vm421_vm1, %v27349_v31 }
  0x3c   :  { %21250 = vmatmul.mubr.msk.f32.gmra.mrb[28].mxu0 %vm421_vm1, %v27358_v32 }
  0x3d   :  { %21252 = vmatprep.mubr.msk.f32.mxu0 %vm421_vm1, %v27363_v33 }
  0x40   :  { %21253 = vmatmul.mubr.msk.f32.gmra.mrb[30].mxu0 %vm421_vm1, %v27372_v34 }
  0x41   :  { %21255 = vmatprep.mubr.msk.f32.mxu0 %vm421_vm1, %v27377_v35 }
  0x44   :  { %21256 = vmatmul.mubr.msk.f32.gmra.mrb[32].mxu0 %vm421_vm1, %v27386_v36 }
  0x45   :  { %21258 = vmatprep.mubr.msk.f32.mxu0 %vm421_vm1, %v27391_v37 }
  0x48   :  { %21259 = vmatmul.mubr.msk.f32.gmra.mrb[34].mxu0 %vm421_vm1, %v27400_v38 }
  0x49   :  { %21261 = vmatprep.mubr.msk.f32.mxu0 %vm421_vm1, %v27405_v39 }
  0x4c   :  { %21262 = vmatmul.mubr.msk.f32.gmra.mrb[36].mxu0 %vm421_vm1, %v27414_v40 }
  0x4d   :  { %21264 = vmatprep.mubr.msk.f32.mxu0 %vm421_vm1, %v27419_v41 }
  0x50   :  { %21265 = vmatmul.mubr.msk.f32.gmra.mrb[38].mxu0 %vm421_vm1, %v27428_v42 }
  0x51   :  { %21267 = vmatprep.mubr.msk.f32.mxu0 %vm421_vm1, %v27433_v43 }
  0x54   :  { %21268 = vmatmul.mubr.msk.f32.gmra.mrb[40].mxu0 %vm421_vm1, %v27442_v44 }
  0x55   :  { %21497 = vmatprep.mubr.msk.f32.mxu0 %vm421_vm1, %v33_v45  ;;  %v27703_v45 = vld [vmem:[%s34863_s0 + $0x220] sm:$0xff] }
  0x56   :  { %35045 = vst [vmem:[#allocation8_spill] sm:$0xff] %v27703_v45 }
  0x58   :  { %21498 = vmatmul.mubr.msk.f32.vlgmr.msra.gmra.mrb[0].mxu0 %vm421_vm1, %v34_v46  ;;  %v27712_v46 = vld [vmem:[%s34863_s0 + $0x228] sm:$0xff] }
  0x59   :  { %21786 = vmatpush3.msk.msra.mxu0 %vm998_vm0, %v27209_v11  ;;  %21500 = vmatprep.mubr.msk.f32.mxu0 %vm421_vm1, %v35_v47  ;;  %v27698_v11 = vld [vmem:[%s34863_s0 + $0x218] sm:$0xff]  ;;  %35046 = vst [vmem:[#allocation9_spill] sm:$0xff] %v27712_v46  ;;  %v27717_v47 = vld [vmem:[%s34863_s0 + $0x230] sm:$0xff] }
  0x5a   :  { %35044 = vst [vmem:[#allocation7_spill] sm:$0xff] %v27698_v11  ;;  %35047 = vst [vmem:[#allocation10_spill] sm:$0xff] %v27717_v47 }
  0x5c   :  { %21501 = vmatmul.mubr.msk.f32.gmra.mrb[2].mxu0 %vm421_vm1, %v36_v48  ;;  %v27726_v48 = vld [vmem:[%s34863_s0 + $0x238] sm:$0xff] }
  0x5d   :  { %21503 = vmatprep.mubr.msk.f32.mxu0 %vm421_vm1, %v27139_v1  ;;  %v27661_v1 = vld [vmem:[%s34863_s0 + $0x1f0] sm:$0xff]  ;;  %35048 = vst [vmem:[#allocation11_spill] sm:$0xff] %v27726_v48 }
  0x60   :  { %21504 = vmatmul.mubr.msk.f32.gmra.mrb[4].mxu0 %vm421_vm1, %v27144_v2  ;;  %v27670_v2 = vld [vmem:[%s34863_s0 + $0x1f8] sm:$0xff] }
  0x61   :  { %21506 = vmatprep.mubr.msk.f32.mxu0 %vm421_vm1, %v27155_v4  ;;  %v27684_v4 = vld [vmem:[%s34863_s0 + $0x208] sm:$0xff] }
  0x64   :  { %21507 = vmatmul.mubr.msk.f32.gmra.mrb[6].mxu0 %vm421_vm1, %v27168_v5  ;;  %v27689_v5 = vld [vmem:[%s34863_s0 + $0x210] sm:$0xff] }
  0x65   :  { %21509 = vmatprep.mubr.msk.f32.mxu0 %vm421_vm1, %v27173_v6 }
  0x68   :  { %21510 = vmatmul.mubr.msk.f32.gmra.mrb[8].mxu0 %vm421_vm1, %v27183_v7 }
  0x69   :  { %21512 = vmatprep.mubr.msk.f32.mxu0 %vm421_vm1, %v27188_v8 }
  0x6c   :  { %21513 = vmatmul.mubr.msk.f32.gmra.mrb[10].mxu0 %vm421_vm1, %v27197_v9 }
  0x6d   :  { %21515 = vmatprep.mubr.msk.f32.mxu0 %vm421_vm1, %v27202_v10 }
  0x70   :  { %21516 = vmatmul.mubr.msk.f32.gmra.mrb[12].mxu0 %vm421_vm1, %v27216_v12 }
  0x71   :  { %21518 = vmatprep.mubr.msk.f32.mxu0 %vm421_vm1, %v27223_v13 }
  0x74   :  { %21519 = vmatmul.mubr.msk.f32.gmra.mrb[14].mxu0 %vm421_vm1, %v27232_v14 }
  0x75   :  { %21521 = vmatprep.mubr.msk.f32.mxu0 %vm421_vm1, %v27237_v15 }
  0x78   :  { %21522 = vmatmul.mubr.msk.f32.gmra.mrb[16].mxu0 %vm421_vm1, %v27246_v16 }
  0x79   :  { %21524 = vmatprep.mubr.msk.f32.mxu0 %vm421_vm1, %v27251_v17 }
  0x7c   :  { %21525 = vmatmul.mubr.msk.f32.gmra.mrb[18].mxu0 %vm421_vm1, %v27260_v18 }
  0x7d   :  { %21527 = vmatprep.mubr.msk.f32.mxu0 %vm421_vm1, %v27265_v19 }
  0x80   :  { %21528 = vmatmul.mubr.msk.f32.gmra.mrb[20].mxu0 %vm421_vm1, %v27274_v20 }
  0x81   :  { %21530 = vmatprep.mubr.msk.f32.mxu0 %vm421_vm1, %v27279_v21 }
  0x84   :  { %21531 = vmatmul.mubr.msk.f32.gmra.mrb[22].mxu0 %vm421_vm1, %v27288_v22 }
  0x85   :  { %21533 = vmatprep.mubr.msk.f32.mxu0 %vm421_vm1, %v27293_v23 }
  0x88   :  { %21534 = vmatmul.mubr.msk.f32.gmra.mrb[24].mxu0 %vm421_vm1, %v27302_v24 }
  0x89   :  { %21536 = vmatprep.mubr.msk.f32.mxu0 %vm421_vm1, %v27307_v25 }
  0x8c   :  { %21537 = vmatmul.mubr.msk.f32.gmra.mrb[26].mxu0 %vm421_vm1, %v27316_v26 }
  0x8d   :  { %21539 = vmatprep.mubr.msk.f32.mxu0 %vm421_vm1, %v27321_v27 }
  0x90   :  { %21540 = vmatmul.mubr.msk.f32.gmra.mrb[28].mxu0 %vm421_vm1, %v27330_v28 }
  0x91   :  { %21542 = vmatprep.mubr.msk.f32.mxu0 %vm421_vm1, %v27335_v29 }
  0x94   :  { %21543 = vmatmul.mubr.msk.f32.gmra.mrb[30].mxu0 %vm421_vm1, %v27344_v30 }
  0x95   :  { %21545 = vmatprep.mubr.msk.f32.mxu0 %vm421_vm1, %v27349_v31 }
  0x98   :  { %21546 = vmatmul.mubr.msk.f32.gmra.mrb[32].mxu0 %vm421_vm1, %v27358_v32 }
  0x99   :  { %21548 = vmatprep.mubr.msk.f32.mxu0 %vm421_vm1, %v27363_v33 }
  0x9c   :  { %21549 = vmatmul.mubr.msk.f32.gmra.mrb[34].mxu0 %vm421_vm1, %v27372_v34 }
  0x9d   :  { %21551 = vmatprep.mubr.msk.f32.mxu0 %vm421_vm1, %v27377_v35 }
  0xa0   :  { %21552 = vmatmul.mubr.msk.f32.gmra.mrb[36].mxu0 %vm421_vm1, %v27386_v36 }
  0xa1   :  { %21554 = vmatprep.mubr.msk.f32.mxu0 %vm421_vm1, %v27391_v37 }
  0xa4   :  { %21555 = vmatmul.mubr.msk.f32.gmra.mrb[38].mxu0 %vm421_vm1, %v27400_v38 }
  0xa5   :  { %21557 = vmatprep.mubr.msk.f32.mxu0 %vm421_vm1, %v27405_v39 }
  0xa8   :  { %21558 = vmatmul.mubr.msk.f32.gmra.mrb[40].mxu0 %vm421_vm1, %v27414_v40 }
  0xa9   :  { %21560 = vmatprep.mubr.msk.f32.mxu0 %vm421_vm1, %v27419_v41 }
  0xac   :  { %21561 = vmatmul.mubr.msk.f32.gmra.mrb[42].mxu0 %vm421_vm1, %v27428_v42 }
  0xad   :  { %21563 = vmatprep.mubr.msk.f32.mxu0 %vm421_vm1, %v27433_v43 }
  0xb0   :  { %21564 = vmatmul.mubr.msk.f32.gmra.mrb[44].mxu0 %vm421_vm1, %v27442_v44 }
  0xb1   :  { %21566 = vmatprep.mubr.msk.f32.mxu0 %vm421_vm1, %v27549_v49 }
  0xb4   :  { %21567 = vmatmul.mubr.msk.f32.gmra.mrb[46].mxu0 %vm421_vm1, %v27558_v50 }
  0xb5   :  { %21569 = vmatprep.mubr.msk.f32.mxu0 %vm421_vm1, %v27563_v51 }
  0xb8   :  { %21570 = vmatmul.mubr.msk.f32.gmra.mrb[48].mxu0 %vm421_vm1, %v27572_v52 }
  0xb9   :  { %21572 = vmatprep.mubr.msk.f32.mxu0 %vm421_vm1, %v27577_v53 }
  0xbc   :  { %21573 = vmatmul.mubr.msk.f32.gmra.mrb[50].mxu0 %vm421_vm1, %v27586_v54 }
  0xbd   :  { %21575 = vmatprep.mubr.msk.f32.mxu0 %vm421_vm1, %v27591_v55 }
  0xc0   :  { %21576 = vmatmul.mubr.msk.f32.gmra.mrb[52].mxu0 %vm421_vm1, %v27600_v56 }
  0xc1   :  { %21578 = vmatprep.mubr.msk.f32.mxu0 %vm421_vm1, %v27605_v57 }
  0xc4   :  { %21579 = vmatmul.mubr.msk.f32.gmra.mrb[54].mxu0 %vm421_vm1, %v27614_v58 }
  0xc5   :  { %21581 = vmatprep.mubr.msk.f32.mxu0 %vm421_vm1, %v27619_v59 }
  0xc8   :  { %21582 = vmatmul.mubr.msk.f32.gmra.mrb[56].mxu0 %vm421_vm1, %v27628_v60 }
  0xc9   :  { %21584 = vmatprep.mubr.msk.f32.mxu0 %vm421_vm1, %v27633_v61 }
  0xcc   :  { %21585 = vmatmul.mubr.msk.f32.gmra.mrb[58].mxu0 %vm421_vm1, %v27642_v62 }
  0xcd   :  { %21587 = vmatprep.mubr.msk.f32.mxu0 %vm421_vm1, %v27647_v63 }
  0xd0   :  { %21588 = vmatmul.mubr.msk.f32.gmra.mrb[60].mxu0 %vm421_vm1, %v27656_v0 }
  0xd1   :  { %21590 = vmatprep.mubr.msk.f32.mxu0 %vm421_vm1, %v27661_v1 }
  0xd4   :  { %21591 = vmatmul.mubr.msk.f32.gmra.mrb[62].mxu0 %vm421_vm1, %v27670_v2 }
  0xd5   :  { %21593 = vmatprep.mubr.msk.f32.mxu0 %vm421_vm1, %v27675_v3 }
  0xd8   :  { %21594 = vmatmul.mubr.msk.f32.gmra.mrb[64].mxu0 %vm421_vm1, %v27684_v4 }
  0xd9   :  { %21596 = vmatprep.mubr.msk.f32.mxu0 %vm421_vm1, %v27689_v5 }
  0xdc   :  { %21597 = vmatmul.mubr.msk.f32.gmra.mrb[66].mxu0 %vm421_vm1, %v27698_v11  ;;  %v132_v11 = vld [vmem:[%s34863_s0 + $0x398] sm:$0xff] }
  0xdd   :  { %21599 = vmatprep.mubr.msk.f32.mxu0 %vm421_vm1, %v27703_v45  ;;  %v27731_v45 = vld [vmem:[%s34863_s0 + $0x240] sm:$0xff] }
  0xde   :  { %35049 = vst [vmem:[#allocation12_spill] sm:$0xff] %v27731_v45 }
  0xe0   :  { %21600 = vmatmul.mubr.msk.f32.gmra.mrb[68].mxu0 %vm421_vm1, %v27712_v46  ;;  %v27745_v46 = vld [vmem:[%s34863_s0 + $0x250] sm:$0xff] }
  0xe1   :  { %21602 = vmatprep.mubr.msk.f32.mxu0 %vm421_vm1, %v27717_v47  ;;  %v27740_v47 = vld [vmem:[%s34863_s0 + $0x248] sm:$0xff]  ;;  %35051 = vst [vmem:[#allocation14_spill] sm:$0xff] %v27745_v46 }
  0xe2   :  { %35050 = vst [vmem:[#allocation13_spill] sm:$0xff] %v27740_v47 }
  0xe4   :  { %21603 = vmatmul.mubr.msk.f32.gmra.mrb[70].mxu0 %vm421_vm1, %v27726_v48  ;;  %v27759_v48 = vld [vmem:[%s34863_s0 + $0x260] sm:$0xff] }
  0xe5   :  { %21605 = vmatprep.mubr.msk.f32.mxu0 %vm421_vm1, %v27731_v45  ;;  %v27754_v45 = vld [vmem:[%s34863_s0 + $0x258] sm:$0xff]  ;;  %35053 = vst [vmem:[#allocation16_spill] sm:$0xff] %v27759_v48 }
  0xe6   :  { %35052 = vst [vmem:[#allocation15_spill] sm:$0xff] %v27754_v45 }
  0xe8   :  { %21606 = vmatmul.mubr.msk.f32.gmra.mrb[72].mxu0 %vm421_vm1, %v27740_v47  ;;  %v27773_v47 = vld [vmem:[%s34863_s0 + $0x270] sm:$0xff] }
  0xe9   :  { %21608 = vmatprep.mubr.msk.f32.mxu0 %vm421_vm1, %v27745_v46  ;;  %v27768_v46 = vld [vmem:[%s34863_s0 + $0x268] sm:$0xff]  ;;  %35055 = vst [vmem:[#allocation18_spill] sm:$0xff] %v27773_v47 }
  0xea   :  { %35054 = vst [vmem:[#allocation17_spill] sm:$0xff] %v27768_v46 }
  0xec   :  { %21609 = vmatmul.mubr.msk.f32.gmra.mrb[74].mxu0 %vm421_vm1, %v27754_v45  ;;  %v27787_v45 = vld [vmem:[%s34863_s0 + $0x280] sm:$0xff] }
  0xed   :  { %21611 = vmatprep.mubr.msk.f32.mxu0 %vm421_vm1, %v27759_v48  ;;  %v27782_v48 = vld [vmem:[%s34863_s0 + $0x278] sm:$0xff]  ;;  %35057 = vst [vmem:[#allocation20_spill] sm:$0xff] %v27787_v45 }
  0xee   :  { %35056 = vst [vmem:[#allocation19_spill] sm:$0xff] %v27782_v48 }
  0xf0   :  { %21612 = vmatmul.mubr.msk.f32.gmra.mrb[76].mxu0 %vm421_vm1, %v27768_v46  ;;  %v27801_v46 = vld [vmem:[%s34863_s0 + $0x290] sm:$0xff] }
  0xf1   :  { %21614 = vmatprep.mubr.msk.f32.mxu0 %vm421_vm1, %v27773_v47  ;;  %v27796_v47 = vld [vmem:[%s34863_s0 + $0x288] sm:$0xff]  ;;  %35059 = vst [vmem:[#allocation22_spill] sm:$0xff] %v27801_v46 }
  0xf2   :  { %35058 = vst [vmem:[#allocation21_spill] sm:$0xff] %v27796_v47 }
  0xf4   :  { %21615 = vmatmul.mubr.msk.f32.gmra.mrb[78].mxu0 %vm421_vm1, %v27782_v48  ;;  %v27815_v48 = vld [vmem:[%s34863_s0 + $0x2a0] sm:$0xff] }
  0xf5   :  { %21617 = vmatprep.mubr.msk.f32.mxu0 %vm421_vm1, %v27787_v45  ;;  %v27810_v45 = vld [vmem:[%s34863_s0 + $0x298] sm:$0xff]  ;;  %35061 = vst [vmem:[#allocation24_spill] sm:$0xff] %v27815_v48 }
  0xf6   :  { %35060 = vst [vmem:[#allocation23_spill] sm:$0xff] %v27810_v45 }
  0xf8   :  { %21618 = vmatmul.mubr.msk.f32.gmra.mrb[80].mxu0 %vm421_vm1, %v27796_v47  ;;  %v27829_v47 = vld [vmem:[%s34863_s0 + $0x2b0] sm:$0xff] }
  0xf9   :  { %21620 = vmatprep.mubr.msk.f32.mxu0 %vm421_vm1, %v27801_v46  ;;  %v27824_v46 = vld [vmem:[%s34863_s0 + $0x2a8] sm:$0xff]  ;;  %35063 = vst [vmem:[#allocation26_spill] sm:$0xff] %v27829_v47 }
  0xfa   :  { %35062 = vst [vmem:[#allocation25_spill] sm:$0xff] %v27824_v46 }
  0xfc   :  { %21621 = vmatmul.mubr.msk.f32.gmra.mrb[82].mxu0 %vm421_vm1, %v27810_v45  ;;  %v27843_v45 = vld [vmem:[%s34863_s0 + $0x2c0] sm:$0xff] }
  0xfd   :  { %21623 = vmatprep.mubr.msk.f32.mxu0 %vm421_vm1, %v27815_v48  ;;  %v27838_v48 = vld [vmem:[%s34863_s0 + $0x2b8] sm:$0xff]  ;;  %35065 = vst [vmem:[#allocation28_spill] sm:$0xff] %v27843_v45 }
  0xfe   :  { %35064 = vst [vmem:[#allocation27_spill] sm:$0xff] %v27838_v48 }
 0x100   :  { %21624 = vmatmul.mubr.msk.f32.gmra.mrb[84].mxu0 %vm421_vm1, %v27824_v46  ;;  %v27857_v46 = vld [vmem:[%s34863_s0 + $0x2d0] sm:$0xff] }
 0x101   :  { %21626 = vmatprep.mubr.msk.f32.mxu0 %vm421_vm1, %v27829_v47  ;;  %v27852_v47 = vld [vmem:[%s34863_s0 + $0x2c8] sm:$0xff]  ;;  %35067 = vst [vmem:[#allocation30_spill] sm:$0xff] %v27857_v46 }
 0x102   :  { %35066 = vst [vmem:[#allocation29_spill] sm:$0xff] %v27852_v47 }
 0x104   :  { %21627 = vmatmul.mubr.msk.f32.gmra.mrb[86].mxu0 %vm421_vm1, %v27838_v48  ;;  %v27871_v48 = vld [vmem:[%s34863_s0 + $0x2e0] sm:$0xff] }
 0x105   :  { %21629 = vmatprep.mubr.msk.f32.mxu0 %vm421_vm1, %v27843_v45  ;;  %v27866_v45 = vld [vmem:[%s34863_s0 + $0x2d8] sm:$0xff]  ;;  %35069 = vst [vmem:[#allocation32_spill] sm:$0xff] %v27871_v48 }
 0x106   :  { %35068 = vst [vmem:[#allocation31_spill] sm:$0xff] %v27866_v45 }
 0x108   :  { %21630 = vmatmul.mubr.msk.f32.gmra.mrb[88].mxu0 %vm421_vm1, %v27852_v47  ;;  %v27885_v47 = vld [vmem:[%s34863_s0 + $0x2f0] sm:$0xff] }
 0x109   :  { %21632 = vmatprep.mubr.msk.f32.mxu0 %vm421_vm1, %v27857_v46  ;;  %v27880_v46 = vld [vmem:[%s34863_s0 + $0x2e8] sm:$0xff]  ;;  %35071 = vst [vmem:[#allocation34_spill] sm:$0xff] %v27885_v47 }
 0x10a   :  { %35070 = vst [vmem:[#allocation33_spill] sm:$0xff] %v27880_v46 }
 0x10c   :  { %21633 = vmatmul.mubr.msk.f32.gmra.mrb[90].mxu0 %vm421_vm1, %v27866_v45  ;;  %v129_v45 = vld [vmem:[%s34863_s0 + $0x380] sm:$0xff] }
 0x10d   :  { %21635 = vmatprep.mubr.msk.f32.mxu0 %vm421_vm1, %v27871_v48  ;;  %v27894_v48 = vld [vmem:[%s34863_s0 + $0x2f8] sm:$0xff] }
 0x10e   :  { %35072 = vst [vmem:[#allocation35_spill] sm:$0xff] %v27894_v48 }
 0x110   :  { %21636 = vmatmul.mubr.msk.f32.gmra.mrb[92].mxu0 %vm421_vm1, %v27880_v46  ;;  %v130_v46 = vld [vmem:[%s34863_s0 + $0x388] sm:$0xff] }
 0x111   :  { %21638 = vmatprep.mubr.msk.f32.mxu0 %vm421_vm1, %v27885_v47  ;;  %v131_v47 = vld [vmem:[%s34863_s0 + $0x390] sm:$0xff] }
 0x114   :  { %21639 = vmatmul.mubr.msk.f32.gmra.mrb[94].mxu0 %vm421_vm1, %v27894_v48  ;;  %v134_v48 = vld [vmem:[%s34863_s0 + $0x3a8] sm:$0xff] }
 0x115   :  { %21641 = vmatprep.mubr.msk.f32.mxu0 %vm421_vm1, %v129_v45  ;;  %v133_v45 = vld [vmem:[%s34863_s0 + $0x3a0] sm:$0xff] }
 0x118   :  { %21642 = vmatmul.mubr.msk.f32.gmra.mrb[96].mxu0 %vm421_vm1, %v130_v46  ;;  %v135_v46 = vld [vmem:[%s34863_s0 + $0x3b0] sm:$0xff] }
 0x119   :  { %21644 = vmatprep.mubr.msk.f32.mxu0 %vm421_vm1, %v131_v47  ;;  %v136_v47 = vld [vmem:[%s34863_s0 + $0x3b8] sm:$0xff] }
 0x11c   :  { %21645 = vmatmul.mubr.msk.f32.gmra.mrb[98].mxu0 %vm421_vm1, %v132_v11  ;;  %v27932_v11 = vld [vmem:[%s34863_s0 + $0x3c0] sm:$0xff] }
 0x11d   :  { %21647 = vmatprep.mubr.msk.f32.mxu0 %vm421_vm1, %v133_v45  ;;  %35073 = vst [vmem:[#allocation36_spill] sm:$0xff] %v27932_v11  ;;  %v27945_v45 = vld [vmem:[%s34863_s0 + $0x3d0] sm:$0xff] }
 0x11e   :  { %35075 = vst [vmem:[#allocation38_spill] sm:$0xff] %v27945_v45 }
 0x120   :  { %21648 = vmatmul.mubr.msk.f32.gmra.mrb[100].mxu0 %vm421_vm1, %v134_v48  ;;  %v27940_v48 = vld [vmem:[%s34863_s0 + $0x3c8] sm:$0xff] }
 0x121   :  { %21650 = vmatprep.mubr.msk.f32.mxu0 %vm421_vm1, %v135_v46  ;;  %35074 = vst [vmem:[#allocation37_spill] sm:$0xff] %v27940_v48  ;;  %v27954_v46 = vld [vmem:[%s34863_s0 + $0x3d8] sm:$0xff] }
 0x122   :  { %35076 = vst [vmem:[#allocation39_spill] sm:$0xff] %v27954_v46 }
 0x124   :  { %21651 = vmatmul.mubr.msk.f32.gmra.mrb[102].mxu0 %vm421_vm1, %v136_v47  ;;  %v27959_v47 = vld [vmem:[%s34863_s0 + $0x3e0] sm:$0xff] }
 0x125   :  { %21653 = vmatprep.mubr.msk.f32.mxu0 %vm421_vm1, %v27932_v11  ;;  %35077 = vst [vmem:[#allocation40_spill] sm:$0xff] %v27959_v47  ;;  %v28148_v11 = vld [vmem:[%s34863_s0 + $0x4b0] sm:$0xff] }
 0x126   :  { %35103 = vst [vmem:[#allocation66_spill] sm:$0xff] %v28148_v11 }
 0x128   :  { %21654 = vmatmul.mubr.msk.f32.gmra.mrb[104].mxu0 %vm421_vm1, %v27940_v48  ;;  %v27973_v48 = vld [vmem:[%s34863_s0 + $0x3f0] sm:$0xff] }
 0x129   :  { %21656 = vmatprep.mubr.msk.f32.mxu0 %vm421_vm1, %v27945_v45  ;;  %v27968_v45 = vld [vmem:[%s34863_s0 + $0x3e8] sm:$0xff]  ;;  %35079 = vst [vmem:[#allocation42_spill] sm:$0xff] %v27973_v48 }
 0x12a   :  { %35078 = vst [vmem:[#allocation41_spill] sm:$0xff] %v27968_v45 }
 0x12c   :  { %21657 = vmatmul.mubr.msk.f32.gmra.mrb[106].mxu0 %vm421_vm1, %v27954_v46  ;;  %v27987_v46 = vld [vmem:[%s34863_s0 + $0x400] sm:$0xff] }
 0x12d   :  { %21659 = vmatprep.mubr.msk.f32.mxu0 %vm421_vm1, %v27959_v47  ;;  %v27982_v47 = vld [vmem:[%s34863_s0 + $0x3f8] sm:$0xff]  ;;  %35081 = vst [vmem:[#allocation44_spill] sm:$0xff] %v27987_v46 }
 0x12e   :  { %35080 = vst [vmem:[#allocation43_spill] sm:$0xff] %v27982_v47 }
 0x130   :  { %21660 = vmatmul.mubr.msk.f32.gmra.mrb[108].mxu0 %vm421_vm1, %v27968_v45  ;;  %v28001_v45 = vld [vmem:[%s34863_s0 + $0x410] sm:$0xff] }
 0x131   :  { %21662 = vmatprep.mubr.msk.f32.mxu0 %vm421_vm1, %v27973_v48  ;;  %v27996_v48 = vld [vmem:[%s34863_s0 + $0x408] sm:$0xff]  ;;  %35083 = vst [vmem:[#allocation46_spill] sm:$0xff] %v28001_v45 }
 0x132   :  { %35082 = vst [vmem:[#allocation45_spill] sm:$0xff] %v27996_v48 }
 0x134   :  { %21663 = vmatmul.mubr.msk.f32.gmra.mrb[110].mxu0 %vm421_vm1, %v27982_v47  ;;  %v28015_v47 = vld [vmem:[%s34863_s0 + $0x420] sm:$0xff] }
 0x135   :  { %21665 = vmatprep.mubr.msk.f32.mxu0 %vm421_vm1, %v27987_v46  ;;  %v28010_v46 = vld [vmem:[%s34863_s0 + $0x418] sm:$0xff]  ;;  %35085 = vst [vmem:[#allocation48_spill] sm:$0xff] %v28015_v47 }
 0x136   :  { %35084 = vst [vmem:[#allocation47_spill] sm:$0xff] %v28010_v46 }
 0x138   :  { %21666 = vmatmul.mubr.msk.f32.gmra.mrb[112].mxu0 %vm421_vm1, %v27996_v48  ;;  %v28029_v48 = vld [vmem:[%s34863_s0 + $0x430] sm:$0xff] }
 0x139   :  { %21668 = vmatprep.mubr.msk.f32.mxu0 %vm421_vm1, %v28001_v45  ;;  %v28024_v45 = vld [vmem:[%s34863_s0 + $0x428] sm:$0xff]  ;;  %35087 = vst [vmem:[#allocation50_spill] sm:$0xff] %v28029_v48 }
 0x13a   :  { %35086 = vst [vmem:[#allocation49_spill] sm:$0xff] %v28024_v45 }
 0x13c   :  { %21669 = vmatmul.mubr.msk.f32.gmra.mrb[114].mxu0 %vm421_vm1, %v28010_v46  ;;  %v28043_v46 = vld [vmem:[%s34863_s0 + $0x440] sm:$0xff] }
 0x13d   :  { %21671 = vmatprep.mubr.msk.f32.mxu0 %vm421_vm1, %v28015_v47  ;;  %v28038_v47 = vld [vmem:[%s34863_s0 + $0x438] sm:$0xff]  ;;  %35089 = vst [vmem:[#allocation52_spill] sm:$0xff] %v28043_v46 }
 0x13e   :  { %35088 = vst [vmem:[#allocation51_spill] sm:$0xff] %v28038_v47 }
 0x140   :  { %21672 = vmatmul.mubr.msk.f32.gmra.mrb[116].mxu0 %vm421_vm1, %v28024_v45  ;;  %v28057_v45 = vld [vmem:[%s34863_s0 + $0x450] sm:$0xff] }
 0x141   :  { %21674 = vmatprep.mubr.msk.f32.mxu0 %vm421_vm1, %v28029_v48  ;;  %v28052_v48 = vld [vmem:[%s34863_s0 + $0x448] sm:$0xff]  ;;  %35091 = vst [vmem:[#allocation54_spill] sm:$0xff] %v28057_v45 }
 0x142   :  { %35090 = vst [vmem:[#allocation53_spill] sm:$0xff] %v28052_v48 }
 0x144   :  { %21675 = vmatmul.mubr.msk.f32.gmra.mrb[118].mxu0 %vm421_vm1, %v28038_v47  ;;  %v28071_v47 = vld [vmem:[%s34863_s0 + $0x460] sm:$0xff] }
 0x145   :  { %21677 = vmatprep.mubr.msk.f32.mxu0 %vm421_vm1, %v28043_v46  ;;  %v28066_v46 = vld [vmem:[%s34863_s0 + $0x458] sm:$0xff]  ;;  %35093 = vst [vmem:[#allocation56_spill] sm:$0xff] %v28071_v47 }
 0x146   :  { %35092 = vst [vmem:[#allocation55_spill] sm:$0xff] %v28066_v46 }
 0x148   :  { %21678 = vmatmul.mubr.msk.f32.gmra.mrb[120].mxu0 %vm421_vm1, %v28052_v48  ;;  %v28085_v48 = vld [vmem:[%s34863_s0 + $0x470] sm:$0xff] }
 0x149   :  { %21680 = vmatprep.mubr.msk.f32.mxu0 %vm421_vm1, %v28057_v45  ;;  %v28080_v45 = vld [vmem:[%s34863_s0 + $0x468] sm:$0xff]  ;;  %35095 = vst [vmem:[#allocation58_spill] sm:$0xff] %v28085_v48 }
 0x14a   :  { %35094 = vst [vmem:[#allocation57_spill] sm:$0xff] %v28080_v45 }
 0x14c   :  { %21681 = vmatmul.mubr.msk.f32.gmra.mrb[122].mxu0 %vm421_vm1, %v28066_v46  ;;  %v28099_v46 = vld [vmem:[%s34863_s0 + $0x480] sm:$0xff] }
 0x14d   :  { %21683 = vmatprep.mubr.msk.f32.mxu0 %vm421_vm1, %v28071_v47  ;;  %v28094_v47 = vld [vmem:[%s34863_s0 + $0x478] sm:$0xff]  ;;  %35097 = vst [vmem:[#allocation60_spill] sm:$0xff] %v28099_v46 }
 0x14e   :  { %35096 = vst [vmem:[#allocation59_spill] sm:$0xff] %v28094_v47 }
 0x150   :  { %21684 = vmatmul.mubr.msk.f32.gmra.mrb[124].mxu0 %vm421_vm1, %v28080_v45  ;;  %v28113_v45 = vld [vmem:[%s34863_s0 + $0x490] sm:$0xff] }
 0x151   :  { %21686 = vmatprep.mubr.msk.f32.mxu0 %vm421_vm1, %v28085_v48  ;;  %v28108_v48 = vld [vmem:[%s34863_s0 + $0x488] sm:$0xff]  ;;  %35099 = vst [vmem:[#allocation62_spill] sm:$0xff] %v28113_v45 }
 0x152   :  { %35098 = vst [vmem:[#allocation61_spill] sm:$0xff] %v28108_v48 }
 0x154   :  { %21687 = vmatmul.mubr.msk.f32.gmra.mrb[126].mxu0 %vm421_vm1, %v28094_v47  ;;  %v28120_v47 = vld [vmem:[%s34864_s1 + $0x18] sm:$0x1f] }
 0x155   :  { %21689 = vmatprep.mubr.msk.f32.mxu0 %vm421_vm1, %v28099_v46  ;;  %v28127_v46 = vld [vmem:[%s34863_s0 + $0x498] sm:$0xff]  ;;  %22075 = vmatprep.subr.msk.mxu0 %vm998_vm0, %v28120_v47 }
 0x156   :  { %35100 = vst [vmem:[#allocation63_spill] sm:$0xff] %v28127_v46 }
 0x158   :  { %21690 = vmatmul.mubr.msk.f32.gmra.mrb[128].mxu0 %vm421_vm1, %v28108_v48  ;;  %v28134_v48 = vld [vmem:[%s34863_s0 + $0x4a0] sm:$0xff] }
 0x159   :  { %21692 = vmatprep.mubr.msk.f32.mxu0 %vm421_vm1, %v28113_v45  ;;  %35101 = vst [vmem:[#allocation64_spill] sm:$0xff] %v28134_v48  ;;  %v28143_v45 = vld [vmem:[%s34863_s0 + $0x4a8] sm:$0xff] }
 0x15a   :  { %35102 = vst [vmem:[#allocation65_spill] sm:$0xff] %v28143_v45 }
 0x15c   :  { %21693 = vmatmul.mubr.msk.f32.gmra.mrb[130].mxu0 %vm421_vm1, %v28127_v46  ;;  %v28162_v46 = vld [vmem:[%s34863_s0 + $0x4c0] sm:$0xff] }
 0x15d   :  { %21695 = vmatprep.mubr.msk.f32.mxu0 %vm421_vm1, %v28134_v48  ;;  %v28157_v48 = vld [vmem:[%s34863_s0 + $0x4b8] sm:$0xff]  ;;  %35105 = vst [vmem:[#allocation68_spill] sm:$0xff] %v28162_v46 }
 0x15e   :  { %35104 = vst [vmem:[#allocation67_spill] sm:$0xff] %v28157_v48 }
 0x160   :  { %21696 = vmatmul.mubr.msk.f32.gmra.mrb[132].mxu0 %vm421_vm1, %v28143_v45  ;;  %v28176_v45 = vld [vmem:[%s34863_s0 + $0x4d0] sm:$0xff] }
 0x161   :  { %21698 = vmatprep.mubr.msk.f32.mxu0 %vm421_vm1, %v28148_v11  ;;  %v28171_v11 = vld [vmem:[%s34863_s0 + $0x4c8] sm:$0xff]  ;;  %35107 = vst [vmem:[#allocation70_spill] sm:$0xff] %v28176_v45 }
 0x162   :  { %35106 = vst [vmem:[#allocation69_spill] sm:$0xff] %v28171_v11 }
 0x164   :  { %21699 = vmatmul.mubr.msk.f32.gmra.mrb[134].mxu0 %vm421_vm1, %v28157_v48  ;;  %v28190_v48 = vld [vmem:[%s34863_s0 + $0x4e0] sm:$0xff] }
 0x165   :  { %21701 = vmatprep.mubr.msk.f32.mxu0 %vm421_vm1, %v28162_v46  ;;  %v28185_v46 = vld [vmem:[%s34863_s0 + $0x4d8] sm:$0xff]  ;;  %35109 = vst [vmem:[#allocation72_spill] sm:$0xff] %v28190_v48 }
 0x166   :  { %35108 = vst [vmem:[#allocation71_spill] sm:$0xff] %v28185_v46 }
 0x168   :  { %21702 = vmatmul.mubr.msk.f32.gmra.mrb[136].mxu0 %vm421_vm1, %v28171_v11  ;;  %v28204_v11 = vld [vmem:[%s34863_s0 + $0x4f0] sm:$0xff] }
 0x169   :  { %21704 = vmatprep.mubr.msk.f32.mxu0 %vm421_vm1, %v28176_v45  ;;  %v28199_v45 = vld [vmem:[%s34863_s0 + $0x4e8] sm:$0xff]  ;;  %35111 = vst [vmem:[#allocation74_spill] sm:$0xff] %v28204_v11 }
 0x16a   :  { %35110 = vst [vmem:[#allocation73_spill] sm:$0xff] %v28199_v45 }
 0x16c   :  { %21705 = vmatmul.mubr.msk.f32.gmra.mrb[138].mxu0 %vm421_vm1, %v28185_v46  ;;  %v28218_v46 = vld [vmem:[%s34863_s0 + $0x500] sm:$0xff] }
 0x16d   :  { %21707 = vmatprep.mubr.msk.f32.mxu0 %vm421_vm1, %v28190_v48  ;;  %v28213_v48 = vld [vmem:[%s34863_s0 + $0x4f8] sm:$0xff]  ;;  %35113 = vst [vmem:[#allocation76_spill] sm:$0xff] %v28218_v46 }
 0x16e   :  { %35112 = vst [vmem:[#allocation75_spill] sm:$0xff] %v28213_v48 }
 0x170   :  { %21708 = vmatmul.mubr.msk.f32.gmra.mrb[140].mxu0 %vm421_vm1, %v28199_v45  ;;  %v28232_v45 = vld [vmem:[%s34863_s0 + $0x510] sm:$0xff] }
 0x171   :  { %21710 = vmatprep.mubr.msk.f32.mxu0 %vm421_vm1, %v28204_v11  ;;  %v28227_v11 = vld [vmem:[%s34863_s0 + $0x508] sm:$0xff]  ;;  %35115 = vst [vmem:[#allocation78_spill] sm:$0xff] %v28232_v45 }
 0x172   :  { %35114 = vst [vmem:[#allocation77_spill] sm:$0xff] %v28227_v11 }
 0x174   :  { %21711 = vmatmul.mubr.msk.f32.gmra.mrb[142].mxu0 %vm421_vm1, %v28213_v48  ;;  %v28246_v48 = vld [vmem:[%s34863_s0 + $0x520] sm:$0xff] }
 0x175   :  { %21713 = vmatprep.mubr.msk.f32.mxu0 %vm421_vm1, %v28218_v46  ;;  %v28241_v46 = vld [vmem:[%s34863_s0 + $0x518] sm:$0xff]  ;;  %35117 = vst [vmem:[#allocation80_spill] sm:$0xff] %v28246_v48 }
 0x176   :  { %35116 = vst [vmem:[#allocation79_spill] sm:$0xff] %v28241_v46 }
 0x178   :  { %21714 = vmatmul.mubr.msk.f32.gmra.mrb[144].mxu0 %vm421_vm1, %v28227_v11  ;;  %v28260_v11 = vld [vmem:[%s34863_s0 + $0x530] sm:$0xff] }
 0x179   :  { %21716 = vmatprep.mubr.msk.f32.mxu0 %vm421_vm1, %v28232_v45  ;;  %v28255_v45 = vld [vmem:[%s34863_s0 + $0x528] sm:$0xff]  ;;  %35119 = vst [vmem:[#allocation82_spill] sm:$0xff] %v28260_v11 }
 0x17a   :  { %35118 = vst [vmem:[#allocation81_spill] sm:$0xff] %v28255_v45 }
 0x17c   :  { %21717 = vmatmul.mubr.msk.f32.gmra.mrb[146].mxu0 %vm421_vm1, %v28241_v46  ;;  %v28274_v46 = vld [vmem:[%s34863_s0 + $0x540] sm:$0xff] }
 0x17d   :  { %21719 = vmatprep.mubr.msk.f32.mxu0 %vm421_vm1, %v28246_v48  ;;  %v28269_v48 = vld [vmem:[%s34863_s0 + $0x538] sm:$0xff]  ;;  %35121 = vst [vmem:[#allocation84_spill] sm:$0xff] %v28274_v46 }
 0x17e   :  { %35120 = vst [vmem:[#allocation83_spill] sm:$0xff] %v28269_v48 }
 0x180   :  { %21720 = vmatmul.mubr.msk.f32.gmra.mrb[148].mxu0 %vm421_vm1, %v28255_v45  ;;  %v28288_v45 = vld [vmem:[%s34863_s0 + $0x550] sm:$0xff] }
 0x181   :  { %21722 = vmatprep.mubr.msk.f32.mxu0 %vm421_vm1, %v28260_v11  ;;  %v28283_v11 = vld [vmem:[%s34863_s0 + $0x548] sm:$0xff]  ;;  %35123 = vst [vmem:[#allocation86_spill] sm:$0xff] %v28288_v45 }
 0x182   :  { %35122 = vst [vmem:[#allocation85_spill] sm:$0xff] %v28283_v11 }
 0x184   :  { %21723 = vmatmul.mubr.msk.f32.gmra.mrb[150].mxu0 %vm421_vm1, %v28269_v48  ;;  %v28302_v48 = vld [vmem:[%s34863_s0 + $0x560] sm:$0xff] }
 0x185   :  { %21725 = vmatprep.mubr.msk.f32.mxu0 %vm421_vm1, %v28274_v46  ;;  %v28297_v46 = vld [vmem:[%s34863_s0 + $0x558] sm:$0xff]  ;;  %35125 = vst [vmem:[#allocation88_spill] sm:$0xff] %v28302_v48 }
 0x186   :  { %35124 = vst [vmem:[#allocation87_spill] sm:$0xff] %v28297_v46 }
 0x188   :  { %21726 = vmatmul.mubr.msk.f32.gmra.mrb[152].mxu0 %vm421_vm1, %v28283_v11  ;;  %v28316_v11 = vld [vmem:[%s34863_s0 + $0x570] sm:$0xff] }
 0x189   :  { %21728 = vmatprep.mubr.msk.f32.mxu0 %vm421_vm1, %v28288_v45  ;;  %v28311_v45 = vld [vmem:[%s34863_s0 + $0x568] sm:$0xff]  ;;  %35127 = vst [vmem:[#allocation90_spill] sm:$0xff] %v28316_v11 }
 0x18a   :  { %35126 = vst [vmem:[#allocation89_spill] sm:$0xff] %v28311_v45 }
 0x18c   :  { %21729 = vmatmul.mubr.msk.f32.gmra.mrb[154].mxu0 %vm421_vm1, %v28297_v46  ;;  %v28330_v46 = vld [vmem:[%s34863_s0 + $0x580] sm:$0xff] }
 0x18d   :  { %21731 = vmatprep.mubr.msk.f32.mxu0 %vm421_vm1, %v28302_v48  ;;  %v28325_v48 = vld [vmem:[%s34863_s0 + $0x578] sm:$0xff]  ;;  %35129 = vst [vmem:[#allocation92_spill] sm:$0xff] %v28330_v46 }
 0x18e   :  { %35128 = vst [vmem:[#allocation91_spill] sm:$0xff] %v28325_v48 }
 0x190   :  { %21732 = vmatmul.mubr.msk.f32.gmra.mrb[156].mxu0 %vm421_vm1, %v28311_v45  ;;  %v28344_v45 = vld [vmem:[%s34863_s0 + $0x590] sm:$0xff] }
 0x191   :  { %21734 = vmatprep.mubr.msk.f32.mxu0 %vm421_vm1, %v28316_v11  ;;  %v28339_v11 = vld [vmem:[%s34863_s0 + $0x588] sm:$0xff]  ;;  %35131 = vst [vmem:[#allocation94_spill] sm:$0xff] %v28344_v45 }
 0x192   :  { %35130 = vst [vmem:[#allocation93_spill] sm:$0xff] %v28339_v11 }
 0x194   :  { %21735 = vmatmul.mubr.msk.f32.gmra.mrb[158].mxu0 %vm421_vm1, %v28325_v48  ;;  %v28358_v48 = vld [vmem:[%s34863_s0 + $0x5a0] sm:$0xff] }
 0x195   :  { %21737 = vmatprep.mubr.msk.f32.mxu0 %vm421_vm1, %v28330_v46  ;;  %v28353_v46 = vld [vmem:[%s34863_s0 + $0x598] sm:$0xff]  ;;  %35133 = vst [vmem:[#allocation96_spill] sm:$0xff] %v28358_v48 }
 0x196   :  { %35132 = vst [vmem:[#allocation95_spill] sm:$0xff] %v28353_v46 }
 0x198   :  { %21738 = vmatmul.mubr.msk.f32.gmra.mrb[160].mxu0 %vm421_vm1, %v28339_v11  ;;  %v28372_v11 = vld [vmem:[%s34863_s0 + $0x5b0] sm:$0xff] }
 0x199   :  { %21740 = vmatprep.mubr.msk.f32.mxu0 %vm421_vm1, %v28344_v45  ;;  %v28367_v45 = vld [vmem:[%s34863_s0 + $0x5a8] sm:$0xff]  ;;  %35135 = vst [vmem:[#allocation98_spill] sm:$0xff] %v28372_v11 }
 0x19a   :  { %35134 = vst [vmem:[#allocation97_spill] sm:$0xff] %v28367_v45 }
 0x19c   :  { %21741 = vmatmul.mubr.msk.f32.gmra.mrb[162].mxu0 %vm421_vm1, %v28353_v46  ;;  %v28386_v46 = vld [vmem:[%s34863_s0 + $0x5c0] sm:$0xff] }
 0x19d   :  { %21743 = vmatprep.mubr.msk.f32.mxu0 %vm421_vm1, %v28358_v48  ;;  %v28381_v48 = vld [vmem:[%s34863_s0 + $0x5b8] sm:$0xff]  ;;  %35137 = vst [vmem:[#allocation100_spill] sm:$0xff] %v28386_v46 }
 0x19e   :  { %35136 = vst [vmem:[#allocation99_spill] sm:$0xff] %v28381_v48 }
 0x1a0   :  { %21744 = vmatmul.mubr.msk.f32.gmra.mrb[164].mxu0 %vm421_vm1, %v28367_v45  ;;  %v28400_v45 = vld [vmem:[%s34863_s0 + $0x5d0] sm:$0xff] }
 0x1a1   :  { %21746 = vmatprep.mubr.msk.f32.mxu0 %vm421_vm1, %v28372_v11  ;;  %v28395_v11 = vld [vmem:[%s34863_s0 + $0x5c8] sm:$0xff]  ;;  %35139 = vst [vmem:[#allocation102_spill] sm:$0xff] %v28400_v45 }
 0x1a2   :  { %35138 = vst [vmem:[#allocation101_spill] sm:$0xff] %v28395_v11 }
 0x1a4   :  { %21747 = vmatmul.mubr.msk.f32.gmra.mrb[166].mxu0 %vm421_vm1, %v28381_v48  ;;  %v28414_v48 = vld [vmem:[%s34863_s0 + $0x5e0] sm:$0xff] }
 0x1a5   :  { %21749 = vmatprep.mubr.msk.f32.mxu0 %vm421_vm1, %v28386_v46  ;;  %v28409_v46 = vld [vmem:[%s34863_s0 + $0x5d8] sm:$0xff]  ;;  %35141 = vst [vmem:[#allocation104_spill] sm:$0xff] %v28414_v48 }
 0x1a6   :  { %35140 = vst [vmem:[#allocation103_spill] sm:$0xff] %v28409_v46 }
 0x1a8   :  { %21750 = vmatmul.mubr.msk.f32.gmra.mrb[168].mxu0 %vm421_vm1, %v28395_v11  ;;  %v28428_v11 = vld [vmem:[%s34863_s0 + $0x5f0] sm:$0xff] }
 0x1a9   :  { %21752 = vmatprep.mubr.msk.f32.mxu0 %vm421_vm1, %v28400_v45  ;;  %v28423_v45 = vld [vmem:[%s34863_s0 + $0x5e8] sm:$0xff]  ;;  %35143 = vst [vmem:[#allocation106_spill] sm:$0xff] %v28428_v11 }
 0x1aa   :  { %35142 = vst [vmem:[#allocation105_spill] sm:$0xff] %v28423_v45 }
 0x1ac   :  { %21753 = vmatmul.mubr.msk.f32.gmra.mrb[170].mxu0 %vm421_vm1, %v28409_v46  ;;  %v28442_v46 = vld [vmem:[%s34863_s0 + $0x600] sm:$0xff] }
 0x1ad   :  { %21755 = vmatprep.mubr.msk.f32.mxu0 %vm421_vm1, %v28414_v48  ;;  %v28437_v48 = vld [vmem:[%s34863_s0 + $0x5f8] sm:$0xff]  ;;  %35145 = vst [vmem:[#allocation108_spill] sm:$0xff] %v28442_v46 }
 0x1ae   :  { %35144 = vst [vmem:[#allocation107_spill] sm:$0xff] %v28437_v48 }
 0x1b0   :  { %21756 = vmatmul.mubr.msk.f32.gmra.mrb[172].mxu0 %vm421_vm1, %v28423_v45  ;;  %v28456_v45 = vld [vmem:[%s34863_s0 + $0x610] sm:$0xff] }
 0x1b1   :  { %21758 = vmatprep.mubr.msk.f32.mxu0 %vm421_vm1, %v28428_v11  ;;  %v28451_v11 = vld [vmem:[%s34863_s0 + $0x608] sm:$0xff]  ;;  %35147 = vst [vmem:[#allocation110_spill] sm:$0xff] %v28456_v45 }
 0x1b2   :  { %35146 = vst [vmem:[#allocation109_spill] sm:$0xff] %v28451_v11 }
 0x1b4   :  { %21759 = vmatmul.mubr.msk.f32.gmra.mrb[174].mxu0 %vm421_vm1, %v28437_v48  ;;  %v28470_v48 = vld [vmem:[%s34863_s0 + $0x620] sm:$0xff] }
 0x1b5   :  { %21761 = vmatprep.mubr.msk.f32.mxu0 %vm421_vm1, %v28442_v46  ;;  %v28465_v46 = vld [vmem:[%s34863_s0 + $0x618] sm:$0xff]  ;;  %35149 = vst [vmem:[#allocation112_spill] sm:$0xff] %v28470_v48 }
 0x1b6   :  { %35148 = vst [vmem:[#allocation111_spill] sm:$0xff] %v28465_v46 }
 0x1b8   :  { %21762 = vmatmul.mubr.msk.f32.gmra.mrb[176].mxu0 %vm421_vm1, %v28451_v11  ;;  %v28484_v11 = vld [vmem:[%s34863_s0 + $0x630] sm:$0xff] }
 0x1b9   :  { %21764 = vmatprep.mubr.msk.f32.mxu0 %vm421_vm1, %v28456_v45  ;;  %v28479_v45 = vld [vmem:[%s34863_s0 + $0x628] sm:$0xff]  ;;  %35151 = vst [vmem:[#allocation114_spill] sm:$0xff] %v28484_v11 }
 0x1ba   :  { %35150 = vst [vmem:[#allocation113_spill] sm:$0xff] %v28479_v45 }
 0x1bc   :  { %21765 = vmatmul.mubr.msk.f32.gmra.mrb[178].mxu0 %vm421_vm1, %v28465_v46  ;;  %v28498_v46 = vld [vmem:[%s34863_s0 + $0x640] sm:$0xff] }
 0x1bd   :  { %21767 = vmatprep.mubr.msk.f32.mxu0 %vm421_vm1, %v28470_v48  ;;  %v28493_v48 = vld [vmem:[%s34863_s0 + $0x638] sm:$0xff]  ;;  %35153 = vst [vmem:[#allocation116_spill] sm:$0xff] %v28498_v46 }
 0x1be   :  { %35152 = vst [vmem:[#allocation115_spill] sm:$0xff] %v28493_v48 }
 0x1c0   :  { %21768 = vmatmul.mubr.msk.f32.gmra.mrb[180].mxu0 %vm421_vm1, %v28479_v45  ;;  %v28512_v45 = vld [vmem:[%s34863_s0 + $0x650] sm:$0xff] }
 0x1c1   :  { %21770 = vmatprep.mubr.msk.f32.mxu0 %vm421_vm1, %v28484_v11  ;;  %v28507_v11 = vld [vmem:[%s34863_s0 + $0x648] sm:$0xff]  ;;  %35155 = vst [vmem:[#allocation118_spill] sm:$0xff] %v28512_v45 }
 0x1c2   :  { %35154 = vst [vmem:[#allocation117_spill] sm:$0xff] %v28507_v11 }
 0x1c4   :  { %21771 = vmatmul.mubr.msk.f32.gmra.mrb[182].mxu0 %vm421_vm1, %v28493_v48  ;;  %v28526_v48 = vld [vmem:[%s34863_s0 + $0x660] sm:$0xff] }
 0x1c5   :  { %21773 = vmatprep.mubr.msk.f32.mxu0 %vm421_vm1, %v28498_v46  ;;  %v28521_v46 = vld [vmem:[%s34863_s0 + $0x658] sm:$0xff]  ;;  %35156 = vst [vmem:[#allocation119_spill] sm:$0xff] %v28526_v48 }
 0x1c8   :  { %21774 = vmatmul.mubr.msk.f32.gmra.mrb[184].mxu0 %vm421_vm1, %v28507_v11  ;;  %v28540_v11 = vld [vmem:[%s34863_s0 + $0x670] sm:$0xff] }
 0x1c9   :  { %21776 = vmatprep.mubr.msk.f32.mxu0 %vm421_vm1, %v28512_v45  ;;  %v28535_v45 = vld [vmem:[%s34863_s0 + $0x668] sm:$0xff] }
 0x1cc   :  { %21777 = vmatmul.mubr.msk.f32.gmra.mrb[186].mxu0 %vm421_vm1, %v28521_v46 }
 0x1cd   :  { %21779 = vmatprep.mubr.msk.f32.mxu0 %vm421_vm1, %v28526_v48  ;;  %v28549_v48 = vld [vmem:[%s34863_s0 + $0x678] sm:$0xff] }
 0x1d0   :  { %21780 = vmatmul.mubr.msk.f32.gmra.mrb[188].mxu0 %vm421_vm1, %v28535_v45 }
 0x1d1   :  { %21782 = vmatprep.mubr.msk.f32.mxu0 %vm421_vm1, %v28540_v11 }
 0x1d4   :  { %21783 = vmatmul.mubr.msk.f32.gmra.mrb[190].mxu0 %vm421_vm1, %v28549_v48 }
 0x1d5   :  { %21787 = vmatprep.mubr.msk.f32.mxu0 %vm421_vm1, %v27173_v6  ;;  %v35157_v6 = vld [vmem:[#allocation7_spill] sm:$0xff] }
 0x1d8   :  { %21788 = vmatmul.mubr.msk.f32.vlgmr.msra.gmra.mrb[0].mxu0 %vm421_vm1, %v27183_v7  ;;  %v35158_v7 = vld [vmem:[#allocation8_spill] sm:$0xff] }
 0x1d9   :  { %22076 = vmatpush3.msk.msra.mxu0 %vm998_vm0, %v28120_v47  ;;  %21790 = vmatprep.mubr.msk.f32.mxu0 %vm421_vm1, %v27188_v8  ;;  %v35159_v8 = vld [vmem:[#allocation9_spill] sm:$0xff]  ;;  %v35208_v47 = vld [vmem:[#allocation58_spill] sm:$0xff] }
 0x1dc   :  { %21791 = vmatmul.mubr.msk.f32.gmra.mrb[2].mxu0 %vm421_vm1, %v27197_v9  ;;  %v35160_v9 = vld [vmem:[#allocation10_spill] sm:$0xff] }
 0x1dd   :  { %21793 = vmatprep.mubr.msk.f32.mxu0 %vm421_vm1, %v27202_v10  ;;  %v35161_v10 = vld [vmem:[#allocation11_spill] sm:$0xff] }
 0x1e0   :  { %21794 = vmatmul.mubr.msk.f32.gmra.mrb[4].mxu0 %vm421_vm1, %v27216_v12  ;;  %v35162_v12 = vld [vmem:[#allocation12_spill] sm:$0xff] }
 0x1e1   :  { %21796 = vmatprep.mubr.msk.f32.mxu0 %vm421_vm1, %v27223_v13  ;;  %v35163_v13 = vld [vmem:[#allocation13_spill] sm:$0xff] }
 0x1e4   :  { %21797 = vmatmul.mubr.msk.f32.gmra.mrb[6].mxu0 %vm421_vm1, %v27232_v14  ;;  %v35164_v14 = vld [vmem:[#allocation14_spill] sm:$0xff] }
 0x1e5   :  { %21799 = vmatprep.mubr.msk.f32.mxu0 %vm421_vm1, %v27237_v15  ;;  %v35165_v15 = vld [vmem:[#allocation15_spill] sm:$0xff] }
 0x1e8   :  { %21800 = vmatmul.mubr.msk.f32.gmra.mrb[8].mxu0 %vm421_vm1, %v27246_v16  ;;  %v35166_v16 = vld [vmem:[#allocation16_spill] sm:$0xff] }
 0x1e9   :  { %21802 = vmatprep.mubr.msk.f32.mxu0 %vm421_vm1, %v27251_v17  ;;  %v35167_v17 = vld [vmem:[#allocation17_spill] sm:$0xff] }
 0x1ec   :  { %21803 = vmatmul.mubr.msk.f32.gmra.mrb[10].mxu0 %vm421_vm1, %v27260_v18  ;;  %v35168_v18 = vld [vmem:[#allocation18_spill] sm:$0xff] }
 0x1ed   :  { %21805 = vmatprep.mubr.msk.f32.mxu0 %vm421_vm1, %v27265_v19  ;;  %v35169_v19 = vld [vmem:[#allocation19_spill] sm:$0xff] }
 0x1f0   :  { %21806 = vmatmul.mubr.msk.f32.gmra.mrb[12].mxu0 %vm421_vm1, %v27274_v20  ;;  %v35170_v20 = vld [vmem:[#allocation20_spill] sm:$0xff] }
 0x1f1   :  { %21808 = vmatprep.mubr.msk.f32.mxu0 %vm421_vm1, %v27279_v21  ;;  %v35171_v21 = vld [vmem:[#allocation21_spill] sm:$0xff] }
 0x1f4   :  { %21809 = vmatmul.mubr.msk.f32.gmra.mrb[14].mxu0 %vm421_vm1, %v27288_v22  ;;  %v35172_v22 = vld [vmem:[#allocation22_spill] sm:$0xff] }
 0x1f5   :  { %21811 = vmatprep.mubr.msk.f32.mxu0 %vm421_vm1, %v27293_v23  ;;  %v35173_v23 = vld [vmem:[#allocation23_spill] sm:$0xff] }
 0x1f8   :  { %21812 = vmatmul.mubr.msk.f32.gmra.mrb[16].mxu0 %vm421_vm1, %v27302_v24  ;;  %v35174_v24 = vld [vmem:[#allocation24_spill] sm:$0xff] }
 0x1f9   :  { %21814 = vmatprep.mubr.msk.f32.mxu0 %vm421_vm1, %v27307_v25  ;;  %v35175_v25 = vld [vmem:[#allocation25_spill] sm:$0xff] }
 0x1fc   :  { %21815 = vmatmul.mubr.msk.f32.gmra.mrb[18].mxu0 %vm421_vm1, %v27316_v26  ;;  %v35176_v26 = vld [vmem:[#allocation26_spill] sm:$0xff] }
 0x1fd   :  { %21817 = vmatprep.mubr.msk.f32.mxu0 %vm421_vm1, %v27321_v27  ;;  %v35177_v27 = vld [vmem:[#allocation27_spill] sm:$0xff] }
 0x200   :  { %21818 = vmatmul.mubr.msk.f32.gmra.mrb[20].mxu0 %vm421_vm1, %v27330_v28  ;;  %v35178_v28 = vld [vmem:[#allocation28_spill] sm:$0xff] }
 0x201   :  { %21820 = vmatprep.mubr.msk.f32.mxu0 %vm421_vm1, %v27335_v29  ;;  %v35179_v29 = vld [vmem:[#allocation29_spill] sm:$0xff] }
 0x204   :  { %21821 = vmatmul.mubr.msk.f32.gmra.mrb[22].mxu0 %vm421_vm1, %v27344_v30  ;;  %v35180_v30 = vld [vmem:[#allocation30_spill] sm:$0xff] }
 0x205   :  { %21823 = vmatprep.mubr.msk.f32.mxu0 %vm421_vm1, %v27349_v31  ;;  %v35181_v31 = vld [vmem:[#allocation31_spill] sm:$0xff] }
 0x208   :  { %21824 = vmatmul.mubr.msk.f32.gmra.mrb[24].mxu0 %vm421_vm1, %v27358_v32  ;;  %v35182_v32 = vld [vmem:[#allocation32_spill] sm:$0xff] }
 0x209   :  { %21826 = vmatprep.mubr.msk.f32.mxu0 %vm421_vm1, %v27363_v33  ;;  %v35183_v33 = vld [vmem:[#allocation33_spill] sm:$0xff] }
 0x20c   :  { %21827 = vmatmul.mubr.msk.f32.gmra.mrb[26].mxu0 %vm421_vm1, %v27372_v34  ;;  %v35184_v34 = vld [vmem:[#allocation34_spill] sm:$0xff] }
 0x20d   :  { %21829 = vmatprep.mubr.msk.f32.mxu0 %vm421_vm1, %v27377_v35  ;;  %v28732_v35 = vld [vmem:[%s34863_s0 + $0x300] sm:$0xff] }
 0x210   :  { %21830 = vmatmul.mubr.msk.f32.gmra.mrb[28].mxu0 %vm421_vm1, %v27386_v36  ;;  %v35185_v36 = vld [vmem:[#allocation35_spill] sm:$0xff] }
 0x211   :  { %21832 = vmatprep.mubr.msk.f32.mxu0 %vm421_vm1, %v27391_v37  ;;  %v28741_v37 = vld [vmem:[%s34863_s0 + $0x308] sm:$0xff] }
 0x214   :  { %21833 = vmatmul.mubr.msk.f32.gmra.mrb[30].mxu0 %vm421_vm1, %v27400_v38  ;;  %v28746_v38 = vld [vmem:[%s34863_s0 + $0x310] sm:$0xff] }
 0x215   :  { %21835 = vmatprep.mubr.msk.f32.mxu0 %vm421_vm1, %v27405_v39  ;;  %v28755_v39 = vld [vmem:[%s34863_s0 + $0x318] sm:$0xff] }
 0x218   :  { %21836 = vmatmul.mubr.msk.f32.gmra.mrb[32].mxu0 %vm421_vm1, %v27414_v40  ;;  %v28760_v40 = vld [vmem:[%s34863_s0 + $0x320] sm:$0xff] }
 0x219   :  { %21838 = vmatprep.mubr.msk.f32.mxu0 %vm421_vm1, %v27419_v41  ;;  %v28769_v41 = vld [vmem:[%s34863_s0 + $0x328] sm:$0xff] }
 0x21c   :  { %21839 = vmatmul.mubr.msk.f32.gmra.mrb[34].mxu0 %vm421_vm1, %v27428_v42  ;;  %v28774_v42 = vld [vmem:[%s34863_s0 + $0x330] sm:$0xff] }
 0x21d   :  { %21841 = vmatprep.mubr.msk.f32.mxu0 %vm421_vm1, %v27433_v43  ;;  %v28783_v43 = vld [vmem:[%s34863_s0 + $0x338] sm:$0xff] }
 0x220   :  { %21842 = vmatmul.mubr.msk.f32.gmra.mrb[36].mxu0 %vm421_vm1, %v27442_v44  ;;  %v35186_v44 = vld [vmem:[#allocation36_spill] sm:$0xff] }
 0x221   :  { %21844 = vmatprep.mubr.msk.f32.mxu0 %vm421_vm1, %v27549_v49  ;;  %v35187_v49 = vld [vmem:[#allocation37_spill] sm:$0xff] }
 0x224   :  { %21845 = vmatmul.mubr.msk.f32.gmra.mrb[38].mxu0 %vm421_vm1, %v27558_v50  ;;  %v35188_v50 = vld [vmem:[#allocation38_spill] sm:$0xff] }
 0x225   :  { %21847 = vmatprep.mubr.msk.f32.mxu0 %vm421_vm1, %v27563_v51  ;;  %v35189_v51 = vld [vmem:[#allocation39_spill] sm:$0xff] }
 0x228   :  { %21848 = vmatmul.mubr.msk.f32.gmra.mrb[40].mxu0 %vm421_vm1, %v27572_v52  ;;  %v35190_v52 = vld [vmem:[#allocation40_spill] sm:$0xff] }
 0x229   :  { %21850 = vmatprep.mubr.msk.f32.mxu0 %vm421_vm1, %v27577_v53  ;;  %v35191_v53 = vld [vmem:[#allocation41_spill] sm:$0xff] }
 0x22c   :  { %21851 = vmatmul.mubr.msk.f32.gmra.mrb[42].mxu0 %vm421_vm1, %v27586_v54  ;;  %v35192_v54 = vld [vmem:[#allocation42_spill] sm:$0xff] }
 0x22d   :  { %21853 = vmatprep.mubr.msk.f32.mxu0 %vm421_vm1, %v27591_v55  ;;  %v35193_v55 = vld [vmem:[#allocation43_spill] sm:$0xff] }
 0x230   :  { %21854 = vmatmul.mubr.msk.f32.gmra.mrb[44].mxu0 %vm421_vm1, %v27600_v56  ;;  %v35194_v56 = vld [vmem:[#allocation44_spill] sm:$0xff] }
 0x231   :  { %21856 = vmatprep.mubr.msk.f32.mxu0 %vm421_vm1, %v27605_v57  ;;  %v35195_v57 = vld [vmem:[#allocation45_spill] sm:$0xff] }
 0x234   :  { %21857 = vmatmul.mubr.msk.f32.gmra.mrb[46].mxu0 %vm421_vm1, %v27614_v58  ;;  %v35196_v58 = vld [vmem:[#allocation46_spill] sm:$0xff] }
 0x235   :  { %21859 = vmatprep.mubr.msk.f32.mxu0 %vm421_vm1, %v27619_v59  ;;  %v35197_v59 = vld [vmem:[#allocation47_spill] sm:$0xff] }
 0x238   :  { %21860 = vmatmul.mubr.msk.f32.gmra.mrb[48].mxu0 %vm421_vm1, %v27628_v60  ;;  %v35198_v60 = vld [vmem:[#allocation48_spill] sm:$0xff] }
 0x239   :  { %21862 = vmatprep.mubr.msk.f32.mxu0 %vm421_vm1, %v27633_v61  ;;  %v35199_v61 = vld [vmem:[#allocation49_spill] sm:$0xff] }
 0x23c   :  { %21863 = vmatmul.mubr.msk.f32.gmra.mrb[50].mxu0 %vm421_vm1, %v27642_v62  ;;  %v35200_v62 = vld [vmem:[#allocation50_spill] sm:$0xff] }
 0x23d   :  { %21865 = vmatprep.mubr.msk.f32.mxu0 %vm421_vm1, %v27647_v63  ;;  %v35201_v63 = vld [vmem:[#allocation51_spill] sm:$0xff] }
 0x240   :  { %21866 = vmatmul.mubr.msk.f32.gmra.mrb[52].mxu0 %vm421_vm1, %v27656_v0  ;;  %v35202_v0 = vld [vmem:[#allocation52_spill] sm:$0xff] }
 0x241   :  { %21868 = vmatprep.mubr.msk.f32.mxu0 %vm421_vm1, %v27661_v1  ;;  %v35203_v1 = vld [vmem:[#allocation53_spill] sm:$0xff] }
 0x244   :  { %21869 = vmatmul.mubr.msk.f32.gmra.mrb[54].mxu0 %vm421_vm1, %v27670_v2  ;;  %v35204_v2 = vld [vmem:[#allocation54_spill] sm:$0xff] }
 0x245   :  { %21871 = vmatprep.mubr.msk.f32.mxu0 %vm421_vm1, %v27675_v3  ;;  %v35205_v3 = vld [vmem:[#allocation55_spill] sm:$0xff] }
 0x248   :  { %21872 = vmatmul.mubr.msk.f32.gmra.mrb[56].mxu0 %vm421_vm1, %v27684_v4  ;;  %v35206_v4 = vld [vmem:[#allocation56_spill] sm:$0xff] }
 0x249   :  { %21874 = vmatprep.mubr.msk.f32.mxu0 %vm421_vm1, %v27689_v5  ;;  %v35207_v5 = vld [vmem:[#allocation57_spill] sm:$0xff] }
 0x24c   :  { %21875 = vmatmul.mubr.msk.f32.gmra.mrb[58].mxu0 %vm421_vm1, %v35157_v6  ;;  %v35209_v6 = vld [vmem:[#allocation59_spill] sm:$0xff] }
 0x24d   :  { %21877 = vmatprep.mubr.msk.f32.mxu0 %vm421_vm1, %v35158_v7  ;;  %v35210_v7 = vld [vmem:[#allocation60_spill] sm:$0xff] }
 0x250   :  { %21878 = vmatmul.mubr.msk.f32.gmra.mrb[60].mxu0 %vm421_vm1, %v35159_v8  ;;  %v35211_v8 = vld [vmem:[#allocation61_spill] sm:$0xff] }
 0x251   :  { %21880 = vmatprep.mubr.msk.f32.mxu0 %vm421_vm1, %v35160_v9  ;;  %v35212_v9 = vld [vmem:[#allocation62_spill] sm:$0xff] }
 0x254   :  { %21881 = vmatmul.mubr.msk.f32.gmra.mrb[62].mxu0 %vm421_vm1, %v35161_v10  ;;  %v35213_v10 = vld [vmem:[#allocation63_spill] sm:$0xff] }
 0x255   :  { %21883 = vmatprep.mubr.msk.f32.mxu0 %vm421_vm1, %v35162_v12  ;;  %v35214_v12 = vld [vmem:[#allocation64_spill] sm:$0xff] }
 0x258   :  { %21884 = vmatmul.mubr.msk.f32.gmra.mrb[64].mxu0 %vm421_vm1, %v35163_v13  ;;  %v35215_v13 = vld [vmem:[#allocation65_spill] sm:$0xff] }
 0x259   :  { %21886 = vmatprep.mubr.msk.f32.mxu0 %vm421_vm1, %v35164_v14  ;;  %v35216_v14 = vld [vmem:[#allocation66_spill] sm:$0xff] }
 0x25c   :  { %21887 = vmatmul.mubr.msk.f32.gmra.mrb[66].mxu0 %vm421_vm1, %v35165_v15  ;;  %v35217_v15 = vld [vmem:[#allocation67_spill] sm:$0xff] }
 0x25d   :  { %21889 = vmatprep.mubr.msk.f32.mxu0 %vm421_vm1, %v35166_v16  ;;  %v35218_v16 = vld [vmem:[#allocation68_spill] sm:$0xff] }
 0x260   :  { %21890 = vmatmul.mubr.msk.f32.gmra.mrb[68].mxu0 %vm421_vm1, %v35167_v17  ;;  %v35219_v17 = vld [vmem:[#allocation69_spill] sm:$0xff] }
 0x261   :  { %21892 = vmatprep.mubr.msk.f32.mxu0 %vm421_vm1, %v35168_v18  ;;  %v28858_v18 = vld [vmem:[%s34864_s1 + $0x20] sm:$0x1f] }
 0x262   :  { %22365 = vmatprep.subr.msk.mxu0 %vm998_vm0, %v28858_v18 }
 0x264   :  { %21893 = vmatmul.mubr.msk.f32.gmra.mrb[70].mxu0 %vm421_vm1, %v35169_v19  ;;  %v35220_v19 = vld [vmem:[#allocation70_spill] sm:$0xff] }
 0x265   :  { %21895 = vmatprep.mubr.msk.f32.mxu0 %vm421_vm1, %v35170_v20  ;;  %v35221_v20 = vld [vmem:[#allocation71_spill] sm:$0xff] }
 0x268   :  { %21896 = vmatmul.mubr.msk.f32.gmra.mrb[72].mxu0 %vm421_vm1, %v35171_v21  ;;  %v35222_v21 = vld [vmem:[#allocation72_spill] sm:$0xff] }
 0x269   :  { %21898 = vmatprep.mubr.msk.f32.mxu0 %vm421_vm1, %v35172_v22  ;;  %v35223_v22 = vld [vmem:[#allocation73_spill] sm:$0xff] }
 0x26c   :  { %21899 = vmatmul.mubr.msk.f32.gmra.mrb[74].mxu0 %vm421_vm1, %v35173_v23  ;;  %v35224_v23 = vld [vmem:[#allocation74_spill] sm:$0xff] }
 0x26d   :  { %21901 = vmatprep.mubr.msk.f32.mxu0 %vm421_vm1, %v35174_v24  ;;  %v35225_v24 = vld [vmem:[#allocation75_spill] sm:$0xff] }
 0x270   :  { %21902 = vmatmul.mubr.msk.f32.gmra.mrb[76].mxu0 %vm421_vm1, %v35175_v25  ;;  %v35226_v25 = vld [vmem:[#allocation76_spill] sm:$0xff] }
 0x271   :  { %21904 = vmatprep.mubr.msk.f32.mxu0 %vm421_vm1, %v35176_v26  ;;  %v35227_v26 = vld [vmem:[#allocation77_spill] sm:$0xff] }
 0x274   :  { %21905 = vmatmul.mubr.msk.f32.gmra.mrb[78].mxu0 %vm421_vm1, %v35177_v27  ;;  %v35228_v27 = vld [vmem:[#allocation78_spill] sm:$0xff] }
 0x275   :  { %21907 = vmatprep.mubr.msk.f32.mxu0 %vm421_vm1, %v35178_v28  ;;  %v35229_v28 = vld [vmem:[#allocation79_spill] sm:$0xff] }
 0x278   :  { %21908 = vmatmul.mubr.msk.f32.gmra.mrb[80].mxu0 %vm421_vm1, %v35179_v29  ;;  %v35230_v29 = vld [vmem:[#allocation80_spill] sm:$0xff] }
 0x279   :  { %21910 = vmatprep.mubr.msk.f32.mxu0 %vm421_vm1, %v35180_v30  ;;  %v35231_v30 = vld [vmem:[#allocation81_spill] sm:$0xff] }
 0x27c   :  { %21911 = vmatmul.mubr.msk.f32.gmra.mrb[82].mxu0 %vm421_vm1, %v35181_v31  ;;  %v35232_v31 = vld [vmem:[#allocation82_spill] sm:$0xff] }
 0x27d   :  { %21913 = vmatprep.mubr.msk.f32.mxu0 %vm421_vm1, %v35182_v32  ;;  %v35233_v32 = vld [vmem:[#allocation83_spill] sm:$0xff] }
 0x280   :  { %21914 = vmatmul.mubr.msk.f32.gmra.mrb[84].mxu0 %vm421_vm1, %v35183_v33  ;;  %v35234_v33 = vld [vmem:[#allocation84_spill] sm:$0xff] }
 0x281   :  { %21916 = vmatprep.mubr.msk.f32.mxu0 %vm421_vm1, %v35184_v34  ;;  %v35235_v34 = vld [vmem:[#allocation85_spill] sm:$0xff] }
 0x284   :  { %21917 = vmatmul.mubr.msk.f32.gmra.mrb[86].mxu0 %vm421_vm1, %v35185_v36  ;;  %v35236_v36 = vld [vmem:[#allocation86_spill] sm:$0xff] }
 0x285   :  { %21919 = vmatprep.mubr.msk.f32.mxu0 %vm421_vm1, %v28732_v35 }
 0x288   :  { %21920 = vmatmul.mubr.msk.f32.gmra.mrb[88].mxu0 %vm421_vm1, %v28741_v37 }
 0x289   :  { %21922 = vmatprep.mubr.msk.f32.mxu0 %vm421_vm1, %v28746_v38 }
 0x28c   :  { %21923 = vmatmul.mubr.msk.f32.gmra.mrb[90].mxu0 %vm421_vm1, %v28755_v39 }
 0x28d   :  { %21925 = vmatprep.mubr.msk.f32.mxu0 %vm421_vm1, %v28760_v40 }
 0x290   :  { %21926 = vmatmul.mubr.msk.f32.gmra.mrb[92].mxu0 %vm421_vm1, %v28769_v41 }
 0x291   :  { %21928 = vmatprep.mubr.msk.f32.mxu0 %vm421_vm1, %v28774_v42 }
 0x294   :  { %21929 = vmatmul.mubr.msk.f32.gmra.mrb[94].mxu0 %vm421_vm1, %v28783_v43 }
 0x295   :  { %21931 = vmatprep.mubr.msk.f32.mxu0 %vm421_vm1, %v35186_v44  ;;  %v35237_v44 = vld [vmem:[#allocation87_spill] sm:$0xff] }
 0x298   :  { %21932 = vmatmul.mubr.msk.f32.gmra.mrb[96].mxu0 %vm421_vm1, %v35187_v49  ;;  %v35238_v49 = vld [vmem:[#allocation88_spill] sm:$0xff] }
 0x299   :  { %21934 = vmatprep.mubr.msk.f32.mxu0 %vm421_vm1, %v35188_v50  ;;  %v35239_v50 = vld [vmem:[#allocation89_spill] sm:$0xff] }
 0x29c   :  { %21935 = vmatmul.mubr.msk.f32.gmra.mrb[98].mxu0 %vm421_vm1, %v35189_v51  ;;  %v35240_v51 = vld [vmem:[#allocation90_spill] sm:$0xff] }
 0x29d   :  { %21937 = vmatprep.mubr.msk.f32.mxu0 %vm421_vm1, %v35190_v52  ;;  %v35241_v52 = vld [vmem:[#allocation91_spill] sm:$0xff] }
 0x2a0   :  { %21938 = vmatmul.mubr.msk.f32.gmra.mrb[100].mxu0 %vm421_vm1, %v35191_v53  ;;  %v35242_v53 = vld [vmem:[#allocation92_spill] sm:$0xff] }
 0x2a1   :  { %21940 = vmatprep.mubr.msk.f32.mxu0 %vm421_vm1, %v35192_v54  ;;  %v35243_v54 = vld [vmem:[#allocation93_spill] sm:$0xff] }
 0x2a4   :  { %21941 = vmatmul.mubr.msk.f32.gmra.mrb[102].mxu0 %vm421_vm1, %v35193_v55  ;;  %v35244_v55 = vld [vmem:[#allocation94_spill] sm:$0xff] }
 0x2a5   :  { %21943 = vmatprep.mubr.msk.f32.mxu0 %vm421_vm1, %v35194_v56  ;;  %v35245_v56 = vld [vmem:[#allocation95_spill] sm:$0xff] }
 0x2a8   :  { %21944 = vmatmul.mubr.msk.f32.gmra.mrb[104].mxu0 %vm421_vm1, %v35195_v57  ;;  %v35246_v57 = vld [vmem:[#allocation96_spill] sm:$0xff] }
 0x2a9   :  { %21946 = vmatprep.mubr.msk.f32.mxu0 %vm421_vm1, %v35196_v58  ;;  %v35247_v58 = vld [vmem:[#allocation97_spill] sm:$0xff] }
 0x2ac   :  { %21947 = vmatmul.mubr.msk.f32.gmra.mrb[106].mxu0 %vm421_vm1, %v35197_v59  ;;  %v35248_v59 = vld [vmem:[#allocation98_spill] sm:$0xff] }
 0x2ad   :  { %21949 = vmatprep.mubr.msk.f32.mxu0 %vm421_vm1, %v35198_v60  ;;  %v35249_v60 = vld [vmem:[#allocation99_spill] sm:$0xff] }
 0x2b0   :  { %21950 = vmatmul.mubr.msk.f32.gmra.mrb[108].mxu0 %vm421_vm1, %v35199_v61  ;;  %v35250_v61 = vld [vmem:[#allocation100_spill] sm:$0xff] }
 0x2b1   :  { %21952 = vmatprep.mubr.msk.f32.mxu0 %vm421_vm1, %v35200_v62  ;;  %v35251_v62 = vld [vmem:[#allocation101_spill] sm:$0xff] }
 0x2b4   :  { %21953 = vmatmul.mubr.msk.f32.gmra.mrb[110].mxu0 %vm421_vm1, %v35201_v63  ;;  %v28929_v63 = vld [vmem:[%s34863_s0 + $0x170] sm:$0xff] }
 0x2b5   :  { %21955 = vmatprep.mubr.msk.f32.mxu0 %vm421_vm1, %v35202_v0  ;;  %v35252_v0 = vld [vmem:[#allocation102_spill] sm:$0xff]  ;;  %21270 = vmatprep.mubr.msk.f32.mxu1 %vm421_vm1, %v28929_v63 }
 0x2b8   :  { %21956 = vmatmul.mubr.msk.f32.gmra.mrb[112].mxu0 %vm421_vm1, %v35203_v1  ;;  %v28936_v1 = vld [vmem:[%s34863_s0 + $0x178] sm:$0xff] }
 0x2b9   :  { %21958 = vmatprep.mubr.msk.f32.mxu0 %vm421_vm1, %v35204_v2  ;;  %21271 = vmatmul.mubr.msk.f32.vlgmr.msra.gmra.mrb[0].mxu1 %vm421_vm1, %v28936_v1  ;;  %v35253_v2 = vld [vmem:[#allocation103_spill] sm:$0xff] }
 0x2bc   :  { %21959 = vmatmul.mubr.msk.f32.gmra.mrb[114].mxu0 %vm421_vm1, %v35205_v3  ;;  %v28947_v3 = vld [vmem:[%s34863_s0 + $0x180] sm:$0xff] }
 0x2bd   :  { %21961 = vmatprep.mubr.msk.f32.mxu0 %vm421_vm1, %v35206_v4  ;;  %v35254_v4 = vld [vmem:[#allocation104_spill] sm:$0xff]  ;;  %21273 = vmatprep.mubr.msk.f32.mxu1 %vm421_vm1, %v28947_v3 }
 0x2c0   :  { %21962 = vmatmul.mubr.msk.f32.gmra.mrb[116].mxu0 %vm421_vm1, %v35207_v5  ;;  %v28954_v5 = vld [vmem:[%s34863_s0 + $0x188] sm:$0xff] }
 0x2c1   :  { %21964 = vmatprep.mubr.msk.f32.mxu0 %vm421_vm1, %v35208_v47  ;;  %21274 = vmatmul.mubr.msk.f32.gmra.mrb[2].mxu1 %vm421_vm1, %v28954_v5  ;;  %v35255_v47 = vld [vmem:[#allocation105_spill] sm:$0xff] }
 0x2c4   :  { %21965 = vmatmul.mubr.msk.f32.gmra.mrb[118].mxu0 %vm421_vm1, %v35209_v6  ;;  %v28965_v6 = vld [vmem:[%s34863_s0 + $0x190] sm:$0xff] }
 0x2c5   :  { %21967 = vmatprep.mubr.msk.f32.mxu0 %vm421_vm1, %v35210_v7  ;;  %v35256_v7 = vld [vmem:[#allocation106_spill] sm:$0xff]  ;;  %21276 = vmatprep.mubr.msk.f32.mxu1 %vm421_vm1, %v28965_v6 }
 0x2c8   :  { %21968 = vmatmul.mubr.msk.f32.gmra.mrb[120].mxu0 %vm421_vm1, %v35211_v8  ;;  %v28972_v8 = vld [vmem:[%s34863_s0 + $0x198] sm:$0xff] }
 0x2c9   :  { %21970 = vmatprep.mubr.msk.f32.mxu0 %vm421_vm1, %v35212_v9  ;;  %21277 = vmatmul.mubr.msk.f32.gmra.mrb[4].mxu1 %vm421_vm1, %v28972_v8  ;;  %v35257_v9 = vld [vmem:[#allocation107_spill] sm:$0xff] }
 0x2cc   :  { %21971 = vmatmul.mubr.msk.f32.gmra.mrb[122].mxu0 %vm421_vm1, %v35213_v10  ;;  %v28983_v10 = vld [vmem:[%s34863_s0 + $0x1a0] sm:$0xff] }
 0x2cd   :  { %21973 = vmatprep.mubr.msk.f32.mxu0 %vm421_vm1, %v35214_v12  ;;  %v35258_v12 = vld [vmem:[#allocation108_spill] sm:$0xff]  ;;  %21279 = vmatprep.mubr.msk.f32.mxu1 %vm421_vm1, %v28983_v10 }
 0x2d0   :  { %21974 = vmatmul.mubr.msk.f32.gmra.mrb[124].mxu0 %vm421_vm1, %v35215_v13  ;;  %v28990_v13 = vld [vmem:[%s34863_s0 + $0x1a8] sm:$0xff] }
 0x2d1   :  { %21976 = vmatprep.mubr.msk.f32.mxu0 %vm421_vm1, %v35216_v14  ;;  %21280 = vmatmul.mubr.msk.f32.gmra.mrb[6].mxu1 %vm421_vm1, %v28990_v13  ;;  %v35259_v14 = vld [vmem:[#allocation109_spill] sm:$0xff] }
 0x2d4   :  { %21977 = vmatmul.mubr.msk.f32.gmra.mrb[126].mxu0 %vm421_vm1, %v35217_v15  ;;  %v29001_v15 = vld [vmem:[%s34863_s0 + $0x1b0] sm:$0xff] }
 0x2d5   :  { %21979 = vmatprep.mubr.msk.f32.mxu0 %vm421_vm1, %v35218_v16  ;;  %v35260_v16 = vld [vmem:[#allocation110_spill] sm:$0xff]  ;;  %21282 = vmatprep.mubr.msk.f32.mxu1 %vm421_vm1, %v29001_v15 }
 0x2d8   :  { %21980 = vmatmul.mubr.msk.f32.gmra.mrb[128].mxu0 %vm421_vm1, %v35219_v17  ;;  %v29008_v17 = vld [vmem:[%s34863_s0 + $0x1b8] sm:$0xff] }
 0x2d9   :  { %21982 = vmatprep.mubr.msk.f32.mxu0 %vm421_vm1, %v35220_v19  ;;  %21283 = vmatmul.mubr.msk.f32.gmra.mrb[8].mxu1 %vm421_vm1, %v29008_v17  ;;  %v35261_v19 = vld [vmem:[#allocation111_spill] sm:$0xff] }
 0x2dc   :  { %21983 = vmatmul.mubr.msk.f32.gmra.mrb[130].mxu0 %vm421_vm1, %v35221_v20  ;;  %v29019_v20 = vld [vmem:[%s34863_s0 + $0x1c0] sm:$0xff] }
 0x2dd   :  { %21985 = vmatprep.mubr.msk.f32.mxu0 %vm421_vm1, %v35222_v21  ;;  %v35262_v21 = vld [vmem:[#allocation112_spill] sm:$0xff]  ;;  %21285 = vmatprep.mubr.msk.f32.mxu1 %vm421_vm1, %v29019_v20 }
 0x2e0   :  { %21986 = vmatmul.mubr.msk.f32.gmra.mrb[132].mxu0 %vm421_vm1, %v35223_v22  ;;  %v29026_v22 = vld [vmem:[%s34863_s0 + $0x1c8] sm:$0xff] }
 0x2e1   :  { %21988 = vmatprep.mubr.msk.f32.mxu0 %vm421_vm1, %v35224_v23  ;;  %21286 = vmatmul.mubr.msk.f32.gmra.mrb[10].mxu1 %vm421_vm1, %v29026_v22  ;;  %v35263_v23 = vld [vmem:[#allocation113_spill] sm:$0xff] }
 0x2e4   :  { %21989 = vmatmul.mubr.msk.f32.gmra.mrb[134].mxu0 %vm421_vm1, %v35225_v24  ;;  %v29037_v24 = vld [vmem:[%s34863_s0 + $0x1d0] sm:$0xff] }
 0x2e5   :  { %21991 = vmatprep.mubr.msk.f32.mxu0 %vm421_vm1, %v35226_v25  ;;  %v35264_v25 = vld [vmem:[#allocation114_spill] sm:$0xff]  ;;  %21288 = vmatprep.mubr.msk.f32.mxu1 %vm421_vm1, %v29037_v24 }
 0x2e8   :  { %21992 = vmatmul.mubr.msk.f32.gmra.mrb[136].mxu0 %vm421_vm1, %v35227_v26  ;;  %v29044_v26 = vld [vmem:[%s34863_s0 + $0x1d8] sm:$0xff] }
 0x2e9   :  { %21994 = vmatprep.mubr.msk.f32.mxu0 %vm421_vm1, %v35228_v27  ;;  %21289 = vmatmul.mubr.msk.f32.gmra.mrb[12].mxu1 %vm421_vm1, %v29044_v26  ;;  %v35265_v27 = vld [vmem:[#allocation115_spill] sm:$0xff] }
 0x2ec   :  { %21995 = vmatmul.mubr.msk.f32.gmra.mrb[138].mxu0 %vm421_vm1, %v35229_v28  ;;  %v29055_v28 = vld [vmem:[%s34863_s0 + $0x1e0] sm:$0xff] }
 0x2ed   :  { %21997 = vmatprep.mubr.msk.f32.mxu0 %vm421_vm1, %v35230_v29  ;;  %v35266_v29 = vld [vmem:[#allocation116_spill] sm:$0xff]  ;;  %21291 = vmatprep.mubr.msk.f32.mxu1 %vm421_vm1, %v29055_v28 }
 0x2f0   :  { %21998 = vmatmul.mubr.msk.f32.gmra.mrb[140].mxu0 %vm421_vm1, %v35231_v30  ;;  %v29062_v30 = vld [vmem:[%s34863_s0 + $0x1e8] sm:$0xff] }
 0x2f1   :  { %22000 = vmatprep.mubr.msk.f32.mxu0 %vm421_vm1, %v35232_v31  ;;  %21292 = vmatmul.mubr.msk.f32.gmra.mrb[14].mxu1 %vm421_vm1, %v29062_v30  ;;  %v35267_v31 = vld [vmem:[#allocation117_spill] sm:$0xff] }
 0x2f4   :  { %22001 = vmatmul.mubr.msk.f32.gmra.mrb[142].mxu0 %vm421_vm1, %v35233_v32  ;;  %v29073_v32 = vld [vmem:[%s34863_s0 + $0x1f0] sm:$0xff] }
 0x2f5   :  { %22003 = vmatprep.mubr.msk.f32.mxu0 %vm421_vm1, %v35234_v33  ;;  %v35268_v33 = vld [vmem:[#allocation118_spill] sm:$0xff]  ;;  %21294 = vmatprep.mubr.msk.f32.mxu1 %vm421_vm1, %v29073_v32 }
 0x2f8   :  { %22004 = vmatmul.mubr.msk.f32.gmra.mrb[144].mxu0 %vm421_vm1, %v35235_v34  ;;  %v29080_v34 = vld [vmem:[%s34863_s0 + $0x1f8] sm:$0xff] }
 0x2f9   :  { %22006 = vmatprep.mubr.msk.f32.mxu0 %vm421_vm1, %v35236_v36  ;;  %21295 = vmatmul.mubr.msk.f32.gmra.mrb[16].mxu1 %vm421_vm1, %v29080_v34  ;;  %v29091_v36 = vld [vmem:[%s34863_s0 + $0x200] sm:$0xff] }
 0x2fa   :  { %21297 = vmatprep.mubr.msk.f32.mxu1 %vm421_vm1, %v29091_v36 }
 0x2fc   :  { %22007 = vmatmul.mubr.msk.f32.gmra.mrb[146].mxu0 %vm421_vm1, %v35237_v44  ;;  %v35269_v44 = vld [vmem:[#allocation119_spill] sm:$0xff] }
 0x2fd   :  { %22009 = vmatprep.mubr.msk.f32.mxu0 %vm421_vm1, %v35238_v49  ;;  %v29098_v49 = vld [vmem:[%s34863_s0 + $0x208] sm:$0xff] }
 0x2fe   :  { %21298 = vmatmul.mubr.msk.f32.gmra.mrb[18].mxu1 %vm421_vm1, %v29098_v49 }
 0x300   :  { %22010 = vmatmul.mubr.msk.f32.gmra.mrb[148].mxu0 %vm421_vm1, %v35239_v50  ;;  %v29116_v50 = vld [vmem:[%s34863_s0 + $0x218] sm:$0xff] }
 0x301   :  { %22012 = vmatprep.mubr.msk.f32.mxu0 %vm421_vm1, %v35240_v51  ;;  %v29139_v51 = vld [vmem:[%s34863_s0 + $0x688] sm:$0xff] }
 0x304   :  { %22013 = vmatmul.mubr.msk.f32.gmra.mrb[150].mxu0 %vm421_vm1, %v35241_v52  ;;  %v29144_v52 = vld [vmem:[%s34863_s0 + $0x228] sm:$0xff] }
 0x305   :  { %22015 = vmatprep.mubr.msk.f32.mxu0 %vm421_vm1, %v35242_v53  ;;  %v29160_v53 = vld [vmem:[%s34863_s0 + $0x230] sm:$0xff] }
 0x308   :  { %22016 = vmatmul.mubr.msk.f32.gmra.mrb[152].mxu0 %vm421_vm1, %v35243_v54  ;;  %v29167_v54 = vld [vmem:[%s34863_s0 + $0x698] sm:$0xff] }
 0x309   :  { %22018 = vmatprep.mubr.msk.f32.mxu0 %vm421_vm1, %v35244_v55  ;;  %35271 = vst [vmem:[#allocation8_spill] sm:$0xff] %v29167_v54  ;;  %v29172_v55 = vld [vmem:[%s34863_s0 + $0x238] sm:$0xff] }
 0x30c   :  { %22019 = vmatmul.mubr.msk.f32.gmra.mrb[154].mxu0 %vm421_vm1, %v35245_v56  ;;  %v29179_v56 = vld [vmem:[%s34863_s0 + $0x6a0] sm:$0xff] }
 0x30d   :  { %22021 = vmatprep.mubr.msk.f32.mxu0 %vm421_vm1, %v35246_v57  ;;  %35272 = vst [vmem:[#allocation9_spill] sm:$0xff] %v29179_v56  ;;  %v29188_v57 = vld [vmem:[%s34863_s0 + $0x240] sm:$0xff] }
 0x310   :  { %22022 = vmatmul.mubr.msk.f32.gmra.mrb[156].mxu0 %vm421_vm1, %v35247_v58  ;;  %v29195_v58 = vld [vmem:[%s34863_s0 + $0x6a8] sm:$0xff] }
 0x311   :  { %22024 = vmatprep.mubr.msk.f32.mxu0 %vm421_vm1, %v35248_v59  ;;  %35273 = vst [vmem:[#allocation10_spill] sm:$0xff] %v29195_v58  ;;  %v29200_v59 = vld [vmem:[%s34863_s0 + $0x248] sm:$0xff] }
 0x314   :  { %22025 = vmatmul.mubr.msk.f32.gmra.mrb[158].mxu0 %vm421_vm1, %v35249_v60  ;;  %v29207_v60 = vld [vmem:[%s34863_s0 + $0x6b0] sm:$0xff] }
 0x315   :  { %22027 = vmatprep.mubr.msk.f32.mxu0 %vm421_vm1, %v35250_v61  ;;  %35274 = vst [vmem:[#allocation11_spill] sm:$0xff] %v29207_v60  ;;  %v29216_v61 = vld [vmem:[%s34863_s0 + $0x250] sm:$0xff] }
 0x318   :  { %22028 = vmatmul.mubr.msk.f32.gmra.mrb[160].mxu0 %vm421_vm1, %v35251_v62  ;;  %v29223_v62 = vld [vmem:[%s34863_s0 + $0x6b8] sm:$0xff] }
 0x319   :  { %22030 = vmatprep.mubr.msk.f32.mxu0 %vm421_vm1, %v35252_v0  ;;  %35275 = vst [vmem:[#allocation12_spill] sm:$0xff] %v29223_v62  ;;  %v29228_v0 = vld [vmem:[%s34863_s0 + $0x258] sm:$0xff] }
 0x31c   :  { %22031 = vmatmul.mubr.msk.f32.gmra.mrb[162].mxu0 %vm421_vm1, %v35253_v2  ;;  %v17751_v2 = vld [vmem:[%s34863_s0 + $0x60] sm:$0xff] }
 0x31d   :  { %22033 = vmatprep.mubr.msk.f32.mxu0 %vm421_vm1, %v35254_v4  ;;  %v29242_v4 = vld [vmem:[%s34863_s0 + $0x260] sm:$0xff] }
 0x320   :  { %22034 = vmatmul.mubr.msk.f32.gmra.mrb[164].mxu0 %vm421_vm1, %v35255_v47  ;;  %v17752_v47 = vld [vmem:[%s34863_s0 + $0x68] sm:$0xff] }
 0x321   :  { %22036 = vmatprep.mubr.msk.f32.mxu0 %vm421_vm1, %v35256_v7  ;;  %v29251_v7 = vld [vmem:[%s34863_s0 + $0x268] sm:$0xff] }
 0x324   :  { %22037 = vmatmul.mubr.msk.f32.gmra.mrb[166].mxu0 %vm421_vm1, %v35257_v9  ;;  %v17753_v9 = vld [vmem:[%s34863_s0 + $0x70] sm:$0xff] }
 0x325   :  { %22039 = vmatprep.mubr.msk.f32.mxu0 %vm421_vm1, %v35258_v12  ;;  %v17754_v12 = vld [vmem:[%s34863_s0 + $0x78] sm:$0xff] }
 0x328   :  { %22040 = vmatmul.mubr.msk.f32.gmra.mrb[168].mxu0 %vm421_vm1, %v35259_v14  ;;  %v29270_v14 = vld [vmem:[%s34863_s0 + $0x270] sm:$0xff] }
 0x329   :  { %22042 = vmatprep.mubr.msk.f32.mxu0 %vm421_vm1, %v35260_v16  ;;  %v29275_v16 = vld [vmem:[%s34863_s0 + $0x80] sm:$0xff] }
 0x32a   :  { %35276 = vst [vmem:[#allocation13_spill] sm:$0xff] %v29275_v16 }
 0x32c   :  { %22043 = vmatmul.mubr.msk.f32.gmra.mrb[170].mxu0 %vm421_vm1, %v35261_v19  ;;  %v29290_v19 = vld [vmem:[%s34863_s0 + $0x280] sm:$0xff] }
 0x32d   :  { %22045 = vmatprep.mubr.msk.f32.mxu0 %vm421_vm1, %v35262_v21  ;;  %v29297_v21 = vld [vmem:[%s34863_s0 + $0x88] sm:$0xff] }
 0x32e   :  { %35277 = vst [vmem:[#allocation14_spill] sm:$0xff] %v29297_v21 }
 0x330   :  { %22046 = vmatmul.mubr.msk.f32.gmra.mrb[172].mxu0 %vm421_vm1, %v35263_v23  ;;  %v29304_v23 = vld [vmem:[%s34863_s0 + $0x90] sm:$0xff] }
 0x331   :  { %22048 = vmatprep.mubr.msk.f32.mxu0 %vm421_vm1, %v35264_v25  ;;  %35278 = vst [vmem:[#allocation15_spill] sm:$0xff] %v29304_v23  ;;  %v29309_v25 = vld [vmem:[%s34863_s0 + $0x288] sm:$0xff] }
 0x334   :  { %22049 = vmatmul.mubr.msk.f32.gmra.mrb[174].mxu0 %vm421_vm1, %v35265_v27  ;;  %v29318_v27 = vld [vmem:[%s34863_s0 + $0x290] sm:$0xff] }
 0x335   :  { %22051 = vmatprep.mubr.msk.f32.mxu0 %vm421_vm1, %v35266_v29  ;;  %v29325_v29 = vld [vmem:[%s34863_s0 + $0x98] sm:$0xff] }
 0x336   :  { %35279 = vst [vmem:[#allocation16_spill] sm:$0xff] %v29325_v29 }
 0x338   :  { %22052 = vmatmul.mubr.msk.f32.gmra.mrb[176].mxu0 %vm421_vm1, %v35267_v31  ;;  %v29332_v31 = vld [vmem:[%s34863_s0 + $0xa0] sm:$0xff] }
 0x339   :  { %22054 = vmatprep.mubr.msk.f32.mxu0 %vm421_vm1, %v35268_v33  ;;  %35280 = vst [vmem:[#allocation17_spill] sm:$0xff] %v29332_v31  ;;  %v29337_v33 = vld [vmem:[%s34863_s0 + $0x298] sm:$0xff] }
 0x33c   :  { %22055 = vmatmul.mubr.msk.f32.gmra.mrb[178].mxu0 %vm421_vm1, %v28521_v46  ;;  %v29109_v46 = vld [vmem:[%s34863_s0 + $0x210] sm:$0xff] }
 0x33d   :  { %22057 = vmatprep.mubr.msk.f32.mxu0 %vm421_vm1, %v35269_v44  ;;  %21300 = vmatprep.mubr.msk.f32.mxu1 %vm421_vm1, %v29109_v46  ;;  %v29346_v44 = vld [vmem:[%s34863_s0 + $0x2a0] sm:$0xff] }
 0x33e   :  { %21301 = vmatmul.mubr.msk.f32.gmra.mrb[20].mxu1 %vm421_vm1, %v29116_v50 }
 0x340   :  { %22058 = vmatmul.mubr.msk.f32.gmra.mrb[180].mxu0 %vm421_vm1, %v28535_v45  ;;  %v29123_v45 = vld [vmem:[%s34863_s0 + $0x680] sm:$0xff] }
 0x341   :  { %22060 = vmatprep.mubr.msk.f32.mxu0 %vm421_vm1, %v28540_v11  ;;  %v29132_v11 = vld [vmem:[%s34863_s0 + $0x220] sm:$0xff] }
 0x342   :  { %21303 = vmatprep.mubr.msk.f32.mxu1 %vm421_vm1, %v29132_v11 }
 0x343   :  { %21304 = vmatmul.mubr.msk.f32.gmra.mrb[22].mxu1 %vm421_vm1, %v29144_v52 }
 0x344   :  { %22061 = vmatmul.mubr.msk.f32.gmra.mrb[182].mxu0 %vm421_vm1, %v28549_v48  ;;  %v29151_v48 = vld [vmem:[%s34863_s0 + $0x690] sm:$0xff]  ;;  %21306 = vmatprep.mubr.msk.f32.mxu1 %vm421_vm1, %v29160_v53 }
 0x345   :  { %22063 = vmatprep.mubr.msk.f32.mxu0 %vm421_vm1, %v29123_v45  ;;  %35270 = vst [vmem:[#allocation7_spill] sm:$0xff] %v29151_v48 }
 0x347   :  { %21307 = vmatmul.mubr.msk.f32.gmra.mrb[24].mxu1 %vm421_vm1, %v29172_v55 }
 0x348   :  { %22064 = vmatmul.mubr.msk.f32.gmra.mrb[184].mxu0 %vm421_vm1, %v29139_v51  ;;  %21309 = vmatprep.mubr.msk.f32.mxu1 %vm421_vm1, %v29188_v57 }
 0x349   :  { %22066 = vmatprep.mubr.msk.f32.mxu0 %vm421_vm1, %v29151_v48  ;;  %v29521_v48 = vld [vmem:[%s34863_s0 + $0x110] sm:$0xff] }
 0x34a   :  { %35294 = vst [vmem:[#allocation31_spill] sm:$0xff] %v29521_v48 }
 0x34b   :  { %21310 = vmatmul.mubr.msk.f32.gmra.mrb[26].mxu1 %vm421_vm1, %v29200_v59 }
 0x34c   :  { %22067 = vmatmul.mubr.msk.f32.gmra.mrb[186].mxu0 %vm421_vm1, %v29167_v54  ;;  %21312 = vmatprep.mubr.msk.f32.mxu1 %vm421_vm1, %v29216_v61  ;;  %v29505_v54 = vld [vmem:[%s34863_s0 + $0x2f8] sm:$0xff] }
 0x34d   :  { %22069 = vmatprep.mubr.msk.f32.mxu0 %vm421_vm1, %v29179_v56  ;;  %v29493_v56 = vld [vmem:[%s34863_s0 + $0xf8] sm:$0xff] }
 0x34e   :  { %35291 = vst [vmem:[#allocation28_spill] sm:$0xff] %v29493_v56 }
 0x34f   :  { %21313 = vmatmul.mubr.msk.f32.gmra.mrb[28].mxu1 %vm421_vm1, %v29228_v0 }
 0x350   :  { %22070 = vmatmul.mubr.msk.f32.gmra.mrb[188].mxu0 %vm421_vm1, %v29195_v58  ;;  %21315 = vmatprep.mubr.msk.f32.mxu1 %vm421_vm1, %v29242_v4  ;;  %v29477_v58 = vld [vmem:[%s34863_s0 + $0x2e8] sm:$0xff] }
 0x351   :  { %22072 = vmatprep.mubr.msk.f32.mxu0 %vm421_vm1, %v29207_v60  ;;  %v29465_v60 = vld [vmem:[%s34863_s0 + $0xe8] sm:$0xff] }
 0x352   :  { %35289 = vst [vmem:[#allocation26_spill] sm:$0xff] %v29465_v60 }
 0x353   :  { %21316 = vmatmul.mubr.msk.f32.gmra.mrb[30].mxu1 %vm421_vm1, %v29251_v7 }
 0x354   :  { %22073 = vmatmul.mubr.msk.f32.gmra.mrb[190].mxu0 %vm421_vm1, %v29223_v62  ;;  %21318 = vmatprep.mubr.msk.f32.mxu1 %vm421_vm1, %v29270_v14  ;;  %v29449_v62 = vld [vmem:[%s34863_s0 + $0x2d8] sm:$0xff] }
 0x355   :  { %22077 = vmatprep.mubr.msk.f32.mxu0 %vm421_vm1, %v17751_v2  ;;  %v29353_v2 = vld [vmem:[%s34863_s0 + $0xa8] sm:$0xff] }
 0x356   :  { %35281 = vst [vmem:[#allocation18_spill] sm:$0xff] %v29353_v2 }
 0x358   :  { %22078 = vmatmul.mubr.msk.f32.vlgmr.msra.gmra.mrb[0].mxu0 %vm421_vm1, %v17752_v47  ;;  %v29360_v47 = vld [vmem:[%s34863_s0 + $0xb0] sm:$0xff] }
 0x359   :  { %22366 = vmatpush3.msk.msra.mxu0 %vm998_vm0, %v28858_v18  ;;  %22080 = vmatprep.mubr.msk.f32.mxu0 %vm421_vm1, %v17753_v9  ;;  %v29280_v18 = vld [vmem:[%s34863_s0 + $0x278] sm:$0xff]  ;;  %35282 = vst [vmem:[#allocation19_spill] sm:$0xff] %v29360_v47  ;;  %v29365_v9 = vld [vmem:[%s34863_s0 + $0x2a8] sm:$0xff] }
 0x35a   :  { %21319 = vmatmul.mubr.msk.f32.gmra.mrb[32].mxu1 %vm421_vm1, %v29280_v18 }
 0x35b   :  { %21321 = vmatprep.mubr.msk.f32.mxu1 %vm421_vm1, %v29290_v19 }
 0x35c   :  { %22081 = vmatmul.mubr.msk.f32.gmra.mrb[2].mxu0 %vm421_vm1, %v17754_v12  ;;  %v29374_v12 = vld [vmem:[%s34863_s0 + $0x2b0] sm:$0xff] }
 0x35d   :  { %22083 = vmatprep.mubr.msk.f32.mxu0 %vm421_vm1, %v29275_v16  ;;  %v29437_v16 = vld [vmem:[%s34863_s0 + $0xd8] sm:$0xff] }
 0x35e   :  { %21322 = vmatmul.mubr.msk.f32.gmra.mrb[34].mxu1 %vm421_vm1, %v29309_v25  ;;  %35287 = vst [vmem:[#allocation24_spill] sm:$0xff] %v29437_v16 }
 0x35f   :  { %21324 = vmatprep.mubr.msk.f32.mxu1 %vm421_vm1, %v29318_v27 }
 0x360   :  { %22084 = vmatmul.mubr.msk.f32.gmra.mrb[4].mxu0 %vm421_vm1, %v29297_v21  ;;  %v29421_v21 = vld [vmem:[%s34863_s0 + $0x2c8] sm:$0xff] }
 0x361   :  { %22086 = vmatprep.mubr.msk.f32.mxu0 %vm421_vm1, %v29304_v23  ;;  %v29409_v23 = vld [vmem:[%s34863_s0 + $0xc8] sm:$0xff] }
 0x362   :  { %21325 = vmatmul.mubr.msk.f32.gmra.mrb[36].mxu1 %vm421_vm1, %v29337_v33  ;;  %35285 = vst [vmem:[#allocation22_spill] sm:$0xff] %v29409_v23 }
 0x363   :  { %21327 = vmatprep.mubr.msk.f32.mxu1 %vm421_vm1, %v29346_v44 }
 0x364   :  { %22087 = vmatmul.mubr.msk.f32.gmra.mrb[6].mxu0 %vm421_vm1, %v29325_v29  ;;  %v29393_v29 = vld [vmem:[%s34863_s0 + $0x2b8] sm:$0xff] }
 0x365   :  { %22089 = vmatprep.mubr.msk.f32.mxu0 %vm421_vm1, %v29332_v31  ;;  %v29381_v31 = vld [vmem:[%s34863_s0 + $0xb8] sm:$0xff] }
 0x366   :  { %21328 = vmatmul.mubr.msk.f32.gmra.mrb[38].mxu1 %vm421_vm1, %v29365_v9  ;;  %35283 = vst [vmem:[#allocation20_spill] sm:$0xff] %v29381_v31 }
 0x367   :  { %21330 = vmatprep.mubr.msk.f32.mxu1 %vm421_vm1, %v29374_v12 }
 0x368   :  { %22090 = vmatmul.mubr.msk.f32.gmra.mrb[8].mxu0 %vm421_vm1, %v29353_v2  ;;  %v29388_v2 = vld [vmem:[%s34863_s0 + $0xc0] sm:$0xff] }
 0x369   :  { %22092 = vmatprep.mubr.msk.f32.mxu0 %vm421_vm1, %v29360_v47  ;;  %35284 = vst [vmem:[#allocation21_spill] sm:$0xff] %v29388_v2  ;;  %v29402_v47 = vld [vmem:[%s34863_s0 + $0x2c0] sm:$0xff] }
 0x36a   :  { %21331 = vmatmul.mubr.msk.f32.gmra.mrb[40].mxu1 %vm421_vm1, %v29393_v29 }
 0x36b   :  { %21333 = vmatprep.mubr.msk.f32.mxu1 %vm421_vm1, %v29402_v47 }
 0x36c   :  { %22093 = vmatmul.mubr.msk.f32.gmra.mrb[10].mxu0 %vm421_vm1, %v29381_v31  ;;  %v29416_v31 = vld [vmem:[%s34863_s0 + $0xd0] sm:$0xff] }
 0x36d   :  { %22095 = vmatprep.mubr.msk.f32.mxu0 %vm421_vm1, %v29388_v2  ;;  %35286 = vst [vmem:[#allocation23_spill] sm:$0xff] %v29416_v31  ;;  %v29430_v2 = vld [vmem:[%s34863_s0 + $0x2d0] sm:$0xff] }
 0x36e   :  { %21334 = vmatmul.mubr.msk.f32.gmra.mrb[42].mxu1 %vm421_vm1, %v29421_v21 }
 0x36f   :  { %21336 = vmatprep.mubr.msk.f32.mxu1 %vm421_vm1, %v29430_v2 }
 0x370   :  { %22096 = vmatmul.mubr.msk.f32.gmra.mrb[12].mxu0 %vm421_vm1, %v29409_v23  ;;  %v29444_v23 = vld [vmem:[%s34863_s0 + $0xe0] sm:$0xff] }
 0x371   :  { %22098 = vmatprep.mubr.msk.f32.mxu0 %vm421_vm1, %v29416_v31  ;;  %35288 = vst [vmem:[#allocation25_spill] sm:$0xff] %v29444_v23  ;;  %v29458_v31 = vld [vmem:[%s34863_s0 + $0x2e0] sm:$0xff] }
 0x372   :  { %21337 = vmatmul.mubr.msk.f32.gmra.mrb[44].mxu1 %vm421_vm1, %v29449_v62 }
 0x373   :  { %21339 = vmatprep.mubr.msk.f32.mxu1 %vm421_vm1, %v29458_v31 }
 0x374   :  { %22099 = vmatmul.mubr.msk.f32.gmra.mrb[14].mxu0 %vm421_vm1, %v29437_v16  ;;  %v29472_v16 = vld [vmem:[%s34863_s0 + $0xf0] sm:$0xff] }
 0x375   :  { %22101 = vmatprep.mubr.msk.f32.mxu0 %vm421_vm1, %v29444_v23  ;;  %35290 = vst [vmem:[#allocation27_spill] sm:$0xff] %v29472_v16  ;;  %v29486_v23 = vld [vmem:[%s34863_s0 + $0x2f0] sm:$0xff] }
 0x376   :  { %21340 = vmatmul.mubr.msk.f32.gmra.mrb[46].mxu1 %vm421_vm1, %v29477_v58 }
 0x377   :  { %21342 = vmatprep.mubr.msk.f32.mxu1 %vm421_vm1, %v29486_v23 }
 0x378   :  { %22102 = vmatmul.mubr.msk.f32.gmra.mrb[16].mxu0 %vm421_vm1, %v29465_v60  ;;  %v29500_v60 = vld [vmem:[%s34863_s0 + $0x100] sm:$0xff] }
 0x379   :  { %22104 = vmatprep.mubr.msk.f32.mxu0 %vm421_vm1, %v29472_v16  ;;  %35292 = vst [vmem:[#allocation29_spill] sm:$0xff] %v29500_v60  ;;  %v29516_v16 = vld [vmem:[%s34863_s0 + $0x108] sm:$0xff] }
 0x37a   :  { %21343 = vmatmul.mubr.msk.f32.gmra.mrb[48].mxu1 %vm421_vm1, %v29505_v54  ;;  %35293 = vst [vmem:[#allocation30_spill] sm:$0xff] %v29516_v16 }
 0x37c   :  { %22105 = vmatmul.mubr.msk.f32.gmra.mrb[18].mxu0 %vm421_vm1, %v29493_v56  ;;  %v29535_v56 = vld [vmem:[%s34863_s0 + $0x120] sm:$0xff] }
 0x37d   :  { %22107 = vmatprep.mubr.msk.f32.mxu0 %vm421_vm1, %v29500_v60  ;;  %v29530_v60 = vld [vmem:[%s34863_s0 + $0x118] sm:$0xff]  ;;  %35296 = vst [vmem:[#allocation33_spill] sm:$0xff] %v29535_v56 }
 0x37e   :  { %35295 = vst [vmem:[#allocation32_spill] sm:$0xff] %v29530_v60 }
 0x380   :  { %22108 = vmatmul.mubr.msk.f32.gmra.mrb[20].mxu0 %vm421_vm1, %v29516_v16  ;;  %v29549_v16 = vld [vmem:[%s34863_s0 + $0x130] sm:$0xff] }
 0x381   :  { %22110 = vmatprep.mubr.msk.f32.mxu0 %vm421_vm1, %v29521_v48  ;;  %v29544_v48 = vld [vmem:[%s34863_s0 + $0x128] sm:$0xff]  ;;  %35298 = vst [vmem:[#allocation35_spill] sm:$0xff] %v29549_v16 }
 0x382   :  { %35297 = vst [vmem:[#allocation34_spill] sm:$0xff] %v29544_v48 }
 0x384   :  { %22111 = vmatmul.mubr.msk.f32.gmra.mrb[22].mxu0 %vm421_vm1, %v29530_v60  ;;  %v29563_v60 = vld [vmem:[%s34863_s0 + $0x140] sm:$0xff] }
 0x385   :  { %22113 = vmatprep.mubr.msk.f32.mxu0 %vm421_vm1, %v29535_v56  ;;  %v29558_v56 = vld [vmem:[%s34863_s0 + $0x138] sm:$0xff]  ;;  %35300 = vst [vmem:[#allocation37_spill] sm:$0xff] %v29563_v60 }
 0x386   :  { %35299 = vst [vmem:[#allocation36_spill] sm:$0xff] %v29558_v56 }
 0x388   :  { %22114 = vmatmul.mubr.msk.f32.gmra.mrb[24].mxu0 %vm421_vm1, %v29544_v48  ;;  %v29577_v48 = vld [vmem:[%s34863_s0 + $0x150] sm:$0xff] }
 0x389   :  { %22116 = vmatprep.mubr.msk.f32.mxu0 %vm421_vm1, %v29549_v16  ;;  %v29572_v16 = vld [vmem:[%s34863_s0 + $0x148] sm:$0xff]  ;;  %35302 = vst [vmem:[#allocation39_spill] sm:$0xff] %v29577_v48 }
 0x38a   :  { %35301 = vst [vmem:[#allocation38_spill] sm:$0xff] %v29572_v16 }
 0x38c   :  { %22117 = vmatmul.mubr.msk.f32.gmra.mrb[26].mxu0 %vm421_vm1, %v29558_v56  ;;  %v29591_v56 = vld [vmem:[%s34863_s0 + $0x160] sm:$0xff] }
 0x38d   :  { %22119 = vmatprep.mubr.msk.f32.mxu0 %vm421_vm1, %v29563_v60  ;;  %v29586_v60 = vld [vmem:[%s34863_s0 + $0x158] sm:$0xff]  ;;  %35304 = vst [vmem:[#allocation41_spill] sm:$0xff] %v29591_v56 }
 0x38e   :  { %35303 = vst [vmem:[#allocation40_spill] sm:$0xff] %v29586_v60 }
 0x390   :  { %22120 = vmatmul.mubr.msk.f32.gmra.mrb[28].mxu0 %vm421_vm1, %v29572_v16  ;;  %v30183_v16 = vld [vmem:[%s34863_s0 + $0x5b8] sm:$0xff] }
 0x391   :  { %22122 = vmatprep.mubr.msk.f32.mxu0 %vm421_vm1, %v29577_v48  ;;  %v29600_v48 = vld [vmem:[%s34863_s0 + $0x168] sm:$0xff]  ;;  %35313 = vst [vmem:[#allocation50_spill] sm:$0xff] %v30183_v16 }
 0x392   :  { %35305 = vst [vmem:[#allocation42_spill] sm:$0xff] %v29600_v48 }
 0x394   :  { %22123 = vmatmul.mubr.msk.f32.gmra.mrb[30].mxu0 %vm421_vm1, %v29586_v60  ;;  %v30169_v60 = vld [vmem:[%s34863_s0 + $0x5b0] sm:$0xff] }
 0x395   :  { %22125 = vmatprep.mubr.msk.f32.mxu0 %vm421_vm1, %v29591_v56  ;;  %v30157_v56 = vld [vmem:[%s34863_s0 + $0x5a8] sm:$0xff]  ;;  %35312 = vst [vmem:[#allocation49_spill] sm:$0xff] %v30169_v60 }
 0x396   :  { %35310 = vst [vmem:[#allocation47_spill] sm:$0xff] %v30157_v56 }
 0x398   :  { %22126 = vmatmul.mubr.msk.f32.gmra.mrb[32].mxu0 %vm421_vm1, %v29600_v48  ;;  %v30141_v48 = vld [vmem:[%s34863_s0 + $0x5a0] sm:$0xff] }
 0x399   :  { %22128 = vmatprep.mubr.msk.f32.mxu0 %vm421_vm1, %v28929_v63  ;;  %v29765_v63 = vld [vmem:[%s34863_s0 + $0x400] sm:$0xff]  ;;  %35308 = vst [vmem:[#allocation45_spill] sm:$0xff] %v30141_v48 }
 0x39c   :  { %22129 = vmatmul.mubr.msk.f32.gmra.mrb[34].mxu0 %vm421_vm1, %v28936_v1  ;;  %v29774_v1 = vld [vmem:[%s34863_s0 + $0x408] sm:$0xff] }
 0x39d   :  { %22131 = vmatprep.mubr.msk.f32.mxu0 %vm421_vm1, %v28947_v3  ;;  %v29779_v3 = vld [vmem:[%s34863_s0 + $0x410] sm:$0xff] }
 0x3a0   :  { %22132 = vmatmul.mubr.msk.f32.gmra.mrb[36].mxu0 %vm421_vm1, %v28954_v5  ;;  %v29788_v5 = vld [vmem:[%s34863_s0 + $0x418] sm:$0xff] }
 0x3a1   :  { %22134 = vmatprep.mubr.msk.f32.mxu0 %vm421_vm1, %v28965_v6  ;;  %v29793_v6 = vld [vmem:[%s34863_s0 + $0x420] sm:$0xff] }
 0x3a4   :  { %22135 = vmatmul.mubr.msk.f32.gmra.mrb[38].mxu0 %vm421_vm1, %v28972_v8  ;;  %v29802_v8 = vld [vmem:[%s34863_s0 + $0x428] sm:$0xff] }
 0x3a5   :  { %22137 = vmatprep.mubr.msk.f32.mxu0 %vm421_vm1, %v28983_v10  ;;  %v29807_v10 = vld [vmem:[%s34863_s0 + $0x430] sm:$0xff] }
 0x3a8   :  { %22138 = vmatmul.mubr.msk.f32.gmra.mrb[40].mxu0 %vm421_vm1, %v28990_v13  ;;  %v29816_v13 = vld [vmem:[%s34863_s0 + $0x438] sm:$0xff] }
 0x3a9   :  { %22140 = vmatprep.mubr.msk.f32.mxu0 %vm421_vm1, %v29001_v15  ;;  %v29821_v15 = vld [vmem:[%s34863_s0 + $0x440] sm:$0xff] }
 0x3ac   :  { %22141 = vmatmul.mubr.msk.f32.gmra.mrb[42].mxu0 %vm421_vm1, %v29008_v17  ;;  %v29830_v17 = vld [vmem:[%s34863_s0 + $0x448] sm:$0xff] }
 0x3ad   :  { %22143 = vmatprep.mubr.msk.f32.mxu0 %vm421_vm1, %v29019_v20  ;;  %v29835_v20 = vld [vmem:[%s34863_s0 + $0x450] sm:$0xff] }
 0x3b0   :  { %22144 = vmatmul.mubr.msk.f32.gmra.mrb[44].mxu0 %vm421_vm1, %v29026_v22  ;;  %v29844_v22 = vld [vmem:[%s34863_s0 + $0x458] sm:$0xff] }
 0x3b1   :  { %22146 = vmatprep.mubr.msk.f32.mxu0 %vm421_vm1, %v29037_v24  ;;  %v29849_v24 = vld [vmem:[%s34863_s0 + $0x460] sm:$0xff] }
 0x3b4   :  { %22147 = vmatmul.mubr.msk.f32.gmra.mrb[46].mxu0 %vm421_vm1, %v29044_v26  ;;  %v29858_v26 = vld [vmem:[%s34863_s0 + $0x468] sm:$0xff] }
 0x3b5   :  { %22149 = vmatprep.mubr.msk.f32.mxu0 %vm421_vm1, %v29055_v28  ;;  %v29863_v28 = vld [vmem:[%s34863_s0 + $0x470] sm:$0xff] }
 0x3b8   :  { %22150 = vmatmul.mubr.msk.f32.gmra.mrb[48].mxu0 %vm421_vm1, %v29062_v30  ;;  %v29872_v30 = vld [vmem:[%s34863_s0 + $0x478] sm:$0xff] }
 0x3b9   :  { %22152 = vmatprep.mubr.msk.f32.mxu0 %vm421_vm1, %v29073_v32  ;;  %v29877_v32 = vld [vmem:[%s34863_s0 + $0x480] sm:$0xff] }
 0x3bc   :  { %22153 = vmatmul.mubr.msk.f32.gmra.mrb[50].mxu0 %vm421_vm1, %v29080_v34  ;;  %v29886_v34 = vld [vmem:[%s34863_s0 + $0x488] sm:$0xff] }
 0x3bd   :  { %22155 = vmatprep.mubr.msk.f32.mxu0 %vm421_vm1, %v29091_v36  ;;  %v29891_v36 = vld [vmem:[%s34863_s0 + $0x490] sm:$0xff] }
 0x3c0   :  { %22156 = vmatmul.mubr.msk.f32.gmra.mrb[52].mxu0 %vm421_vm1, %v29098_v49  ;;  %v29900_v49 = vld [vmem:[%s34863_s0 + $0x498] sm:$0xff] }
 0x3c1   :  { %22158 = vmatprep.mubr.msk.f32.mxu0 %vm421_vm1, %v29109_v46  ;;  %v29905_v46 = vld [vmem:[%s34863_s0 + $0x4a0] sm:$0xff] }
 0x3c4   :  { %22159 = vmatmul.mubr.msk.f32.gmra.mrb[54].mxu0 %vm421_vm1, %v29116_v50  ;;  %v29914_v50 = vld [vmem:[%s34863_s0 + $0x4a8] sm:$0xff] }
 0x3c5   :  { %22161 = vmatprep.mubr.msk.f32.mxu0 %vm421_vm1, %v29132_v11  ;;  %v29919_v11 = vld [vmem:[%s34863_s0 + $0x4b0] sm:$0xff] }
 0x3c8   :  { %22162 = vmatmul.mubr.msk.f32.gmra.mrb[56].mxu0 %vm421_vm1, %v29144_v52  ;;  %v29928_v52 = vld [vmem:[%s34863_s0 + $0x4b8] sm:$0xff] }
 0x3c9   :  { %22164 = vmatprep.mubr.msk.f32.mxu0 %vm421_vm1, %v29160_v53  ;;  %v29933_v53 = vld [vmem:[%s34863_s0 + $0x4c0] sm:$0xff] }
 0x3cc   :  { %22165 = vmatmul.mubr.msk.f32.gmra.mrb[58].mxu0 %vm421_vm1, %v29172_v55  ;;  %v29947_v55 = vld [vmem:[%s34863_s0 + $0x4d0] sm:$0xff] }
 0x3cd   :  { %22167 = vmatprep.mubr.msk.f32.mxu0 %vm421_vm1, %v29188_v57  ;;  %v29956_v57 = vld [vmem:[%s34863_s0 + $0x4d8] sm:$0xff] }
 0x3d0   :  { %22168 = vmatmul.mubr.msk.f32.gmra.mrb[60].mxu0 %vm421_vm1, %v29200_v59  ;;  %v29970_v59 = vld [vmem:[%s34863_s0 + $0x4e8] sm:$0xff] }
 0x3d1   :  { %22170 = vmatprep.mubr.msk.f32.mxu0 %vm421_vm1, %v29216_v61  ;;  %v29975_v61 = vld [vmem:[%s34863_s0 + $0x4f0] sm:$0xff] }
 0x3d4   :  { %22171 = vmatmul.mubr.msk.f32.gmra.mrb[62].mxu0 %vm421_vm1, %v29228_v0  ;;  %v29989_v0 = vld [vmem:[%s34863_s0 + $0x500] sm:$0xff] }
 0x3d5   :  { %22173 = vmatprep.mubr.msk.f32.mxu0 %vm421_vm1, %v29242_v4  ;;  %v29998_v4 = vld [vmem:[%s34863_s0 + $0x508] sm:$0xff] }
 0x3d8   :  { %22174 = vmatmul.mubr.msk.f32.gmra.mrb[64].mxu0 %vm421_vm1, %v29251_v7  ;;  %v30003_v7 = vld [vmem:[%s34863_s0 + $0x510] sm:$0xff] }
 0x3d9   :  { %22176 = vmatprep.mubr.msk.f32.mxu0 %vm421_vm1, %v29270_v14  ;;  %v30012_v14 = vld [vmem:[%s34863_s0 + $0x518] sm:$0xff] }
 0x3dc   :  { %22177 = vmatmul.mubr.msk.f32.gmra.mrb[66].mxu0 %vm421_vm1, %v29280_v18  ;;  %v30017_v18 = vld [vmem:[%s34863_s0 + $0x520] sm:$0xff] }
 0x3dd   :  { %22179 = vmatprep.mubr.msk.f32.mxu0 %vm421_vm1, %v29290_v19  ;;  %v30026_v19 = vld [vmem:[%s34863_s0 + $0x528] sm:$0xff] }
 0x3e0   :  { %22180 = vmatmul.mubr.msk.f32.gmra.mrb[68].mxu0 %vm421_vm1, %v29309_v25  ;;  %v30045_v25 = vld [vmem:[%s34863_s0 + $0x540] sm:$0xff] }
 0x3e1   :  { %22182 = vmatprep.mubr.msk.f32.mxu0 %vm421_vm1, %v29318_v27  ;;  %v30054_v27 = vld [vmem:[%s34863_s0 + $0x548] sm:$0xff] }
 0x3e4   :  { %22183 = vmatmul.mubr.msk.f32.gmra.mrb[70].mxu0 %vm421_vm1, %v29337_v33  ;;  %v30073_v33 = vld [vmem:[%s34863_s0 + $0x560] sm:$0xff] }
 0x3e5   :  { %22185 = vmatprep.mubr.msk.f32.mxu0 %vm421_vm1, %v29346_v44  ;;  %v30082_v44 = vld [vmem:[%s34863_s0 + $0x568] sm:$0xff] }
 0x3e8   :  { %22186 = vmatmul.mubr.msk.f32.gmra.mrb[72].mxu0 %vm421_vm1, %v29365_v9  ;;  %v30101_v9 = vld [vmem:[%s34863_s0 + $0x580] sm:$0xff] }
 0x3e9   :  { %22188 = vmatprep.mubr.msk.f32.mxu0 %vm421_vm1, %v29374_v12  ;;  %v30110_v12 = vld [vmem:[%s34863_s0 + $0x588] sm:$0xff] }
 0x3ec   :  { %22189 = vmatmul.mubr.msk.f32.gmra.mrb[74].mxu0 %vm421_vm1, %v29393_v29  ;;  %v30059_v29 = vld [vmem:[%s34863_s0 + $0x550] sm:$0xff] }
 0x3ed   :  { %22191 = vmatprep.mubr.msk.f32.mxu0 %vm421_vm1, %v29402_v47  ;;  %v30096_v47 = vld [vmem:[%s34863_s0 + $0x578] sm:$0xff] }
 0x3f0   :  { %22192 = vmatmul.mubr.msk.f32.gmra.mrb[76].mxu0 %vm421_vm1, %v29421_v21  ;;  %v30031_v21 = vld [vmem:[%s34863_s0 + $0x530] sm:$0xff] }
 0x3f1   :  { %22194 = vmatprep.mubr.msk.f32.mxu0 %vm421_vm1, %v29430_v2  ;;  %v30087_v2 = vld [vmem:[%s34863_s0 + $0x570] sm:$0xff] }
 0x3f4   :  { %22195 = vmatmul.mubr.msk.f32.gmra.mrb[78].mxu0 %vm421_vm1, %v29449_v62  ;;  %v29984_v62 = vld [vmem:[%s34863_s0 + $0x4f8] sm:$0xff] }
 0x3f5   :  { %22197 = vmatprep.mubr.msk.f32.mxu0 %vm421_vm1, %v29458_v31  ;;  %v30068_v31 = vld [vmem:[%s34863_s0 + $0x558] sm:$0xff] }
 0x3f8   :  { %22198 = vmatmul.mubr.msk.f32.gmra.mrb[80].mxu0 %vm421_vm1, %v29477_v58  ;;  %v29961_v58 = vld [vmem:[%s34863_s0 + $0x4e0] sm:$0xff] }
 0x3f9   :  { %22200 = vmatprep.mubr.msk.f32.mxu0 %vm421_vm1, %v29486_v23  ;;  %v30040_v23 = vld [vmem:[%s34863_s0 + $0x538] sm:$0xff] }
 0x3fc   :  { %22201 = vmatmul.mubr.msk.f32.gmra.mrb[82].mxu0 %vm421_vm1, %v29505_v54  ;;  %v29942_v54 = vld [vmem:[%s34863_s0 + $0x4c8] sm:$0xff] }
 0x3fd   :  { %22203 = vmatprep.mubr.msk.f32.mxu0 %vm421_vm1, %v28732_v35  ;;  %v17843_v35 = vld [vmem:[%s34863_s0 + $0x340] sm:$0xff] }
 0x400   :  { %22204 = vmatmul.mubr.msk.f32.gmra.mrb[84].mxu0 %vm421_vm1, %v28741_v37  ;;  %v17844_v37 = vld [vmem:[%s34863_s0 + $0x348] sm:$0xff] }
 0x401   :  { %22206 = vmatprep.mubr.msk.f32.mxu0 %vm421_vm1, %v28746_v38  ;;  %v17845_v38 = vld [vmem:[%s34863_s0 + $0x350] sm:$0xff] }
 0x404   :  { %22207 = vmatmul.mubr.msk.f32.gmra.mrb[86].mxu0 %vm421_vm1, %v28755_v39  ;;  %v17846_v39 = vld [vmem:[%s34863_s0 + $0x358] sm:$0xff] }
 0x405   :  { %22209 = vmatprep.mubr.msk.f32.mxu0 %vm421_vm1, %v28760_v40  ;;  %v29738_v40 = vld [vmem:[%s34863_s0 + $0x3e0] sm:$0xff] }
 0x408   :  { %22210 = vmatmul.mubr.msk.f32.gmra.mrb[88].mxu0 %vm421_vm1, %v28769_v41  ;;  %v29746_v41 = vld [vmem:[%s34863_s0 + $0x3e8] sm:$0xff] }
 0x409   :  { %22212 = vmatprep.mubr.msk.f32.mxu0 %vm421_vm1, %v28774_v42  ;;  %v29751_v42 = vld [vmem:[%s34863_s0 + $0x3f0] sm:$0xff] }
 0x40c   :  { %22213 = vmatmul.mubr.msk.f32.gmra.mrb[90].mxu0 %vm421_vm1, %v28783_v43  ;;  %v29760_v43 = vld [vmem:[%s34863_s0 + $0x3f8] sm:$0xff] }
 0x40d   :  { %22215 = vmatprep.mubr.msk.f32.mxu0 %vm421_vm1, %v17843_v35  ;;  %v30115_v35 = vld [vmem:[%s34863_s0 + $0x590] sm:$0xff] }
 0x410   :  { %22216 = vmatmul.mubr.msk.f32.gmra.mrb[92].mxu0 %vm421_vm1, %v17844_v37  ;;  %v30122_v37 = vld [vmem:[%s34863_s0 + $0x300] sm:$0xff] }
 0x411   :  { %22218 = vmatprep.mubr.msk.f32.mxu0 %vm421_vm1, %v17845_v38  ;;  %35306 = vst [vmem:[#allocation43_spill] sm:$0xff] %v30122_v37  ;;  %v30129_v38 = vld [vmem:[%s34863_s0 + $0x598] sm:$0xff]  ;;  %21345 = vmatprep.mubr.msk.f32.mxu1 %vm421_vm1, %v30122_v37  ;;  %v30150_v37 = vld [vmem:[%s34863_s0 + $0x310] sm:$0xff] }
 0x412   :  { %35309 = vst [vmem:[#allocation46_spill] sm:$0xff] %v30150_v37 }
 0x414   :  { %22219 = vmatmul.mubr.msk.f32.gmra.mrb[94].mxu0 %vm421_vm1, %v17846_v39  ;;  %v30136_v39 = vld [vmem:[%s34863_s0 + $0x308] sm:$0xff] }
 0x415   :  { %22221 = vmatprep.mubr.msk.f32.mxu0 %vm421_vm1, %v29738_v40  ;;  %35307 = vst [vmem:[#allocation44_spill] sm:$0xff] %v30136_v39  ;;  %21346 = vmatmul.mubr.msk.f32.gmra.mrb[50].mxu1 %vm421_vm1, %v30136_v39  ;;  %v30164_v39 = vld [vmem:[%s34863_s0 + $0x318] sm:$0xff] }
 0x416   :  { %21348 = vmatprep.mubr.msk.f32.mxu1 %vm421_vm1, %v30150_v37  ;;  %35311 = vst [vmem:[#allocation48_spill] sm:$0xff] %v30164_v39  ;;  %v16882_v37 = vld [vmem:[%s34863_s0 + $0x3a0] sm:$0xff] }
 0x418   :  { %22222 = vmatmul.mubr.msk.f32.gmra.mrb[96].mxu0 %vm421_vm1, %v29746_v41 }
 0x419   :  { %22224 = vmatprep.mubr.msk.f32.mxu0 %vm421_vm1, %v29751_v42  ;;  %21349 = vmatmul.mubr.msk.f32.gmra.mrb[52].mxu1 %vm421_vm1, %v30164_v39  ;;  %v16883_v39 = vld [vmem:[%s34863_s0 + $0x3a8] sm:$0xff] }
 0x41a   :  { %21351 = vmatprep.mubr.msk.f32.mxu1 %vm421_vm1, %v16882_v37  ;;  %v30205_v37 = vld [vmem:[%s34863_s0 + $0x5c8] sm:$0xff] }
 0x41b   :  { %35315 = vst [vmem:[#allocation52_spill] sm:$0xff] %v30205_v37 }
 0x41c   :  { %22225 = vmatmul.mubr.msk.f32.gmra.mrb[98].mxu0 %vm421_vm1, %v29760_v43 }
 0x41d   :  { %22227 = vmatprep.mubr.msk.f32.mxu0 %vm421_vm1, %v29765_v63  ;;  %21352 = vmatmul.mubr.msk.f32.gmra.mrb[54].mxu1 %vm421_vm1, %v16883_v39  ;;  %v16885_v39 = vld [vmem:[%s34863_s0 + $0x3b8] sm:$0xff] }
 0x420   :  { %22228 = vmatmul.mubr.msk.f32.gmra.mrb[100].mxu0 %vm421_vm1, %v29774_v1 }
 0x421   :  { %22230 = vmatprep.mubr.msk.f32.mxu0 %vm421_vm1, %v29779_v3 }
 0x424   :  { %22231 = vmatmul.mubr.msk.f32.gmra.mrb[102].mxu0 %vm421_vm1, %v29788_v5 }
 0x425   :  { %22233 = vmatprep.mubr.msk.f32.mxu0 %vm421_vm1, %v29793_v6 }
 0x428   :  { %22234 = vmatmul.mubr.msk.f32.gmra.mrb[104].mxu0 %vm421_vm1, %v29802_v8 }
 0x429   :  { %22236 = vmatprep.mubr.msk.f32.mxu0 %vm421_vm1, %v29807_v10 }
 0x42c   :  { %22237 = vmatmul.mubr.msk.f32.gmra.mrb[106].mxu0 %vm421_vm1, %v29816_v13 }
 0x42d   :  { %22239 = vmatprep.mubr.msk.f32.mxu0 %vm421_vm1, %v29821_v15 }
 0x430   :  { %22240 = vmatmul.mubr.msk.f32.gmra.mrb[108].mxu0 %vm421_vm1, %v29830_v17 }
 0x431   :  { %22242 = vmatprep.mubr.msk.f32.mxu0 %vm421_vm1, %v29835_v20 }
 0x434   :  { %22243 = vmatmul.mubr.msk.f32.gmra.mrb[110].mxu0 %vm421_vm1, %v29844_v22 }
 0x435   :  { %22245 = vmatprep.mubr.msk.f32.mxu0 %vm421_vm1, %v29849_v24 }
 0x438   :  { %22246 = vmatmul.mubr.msk.f32.gmra.mrb[112].mxu0 %vm421_vm1, %v29858_v26 }
 0x439   :  { %22248 = vmatprep.mubr.msk.f32.mxu0 %vm421_vm1, %v29863_v28 }
 0x43c   :  { %22249 = vmatmul.mubr.msk.f32.gmra.mrb[114].mxu0 %vm421_vm1, %v29872_v30 }
 0x43d   :  { %22251 = vmatprep.mubr.msk.f32.mxu0 %vm421_vm1, %v29877_v32 }
 0x440   :  { %22252 = vmatmul.mubr.msk.f32.gmra.mrb[116].mxu0 %vm421_vm1, %v29886_v34 }
 0x441   :  { %22254 = vmatprep.mubr.msk.f32.mxu0 %vm421_vm1, %v29891_v36 }
 0x444   :  { %22255 = vmatmul.mubr.msk.f32.gmra.mrb[118].mxu0 %vm421_vm1, %v29900_v49 }
 0x445   :  { %22257 = vmatprep.mubr.msk.f32.mxu0 %vm421_vm1, %v29905_v46 }
 0x448   :  { %22258 = vmatmul.mubr.msk.f32.gmra.mrb[120].mxu0 %vm421_vm1, %v29914_v50 }
 0x449   :  { %22260 = vmatprep.mubr.msk.f32.mxu0 %vm421_vm1, %v29919_v11 }
 0x44c   :  { %22261 = vmatmul.mubr.msk.f32.gmra.mrb[122].mxu0 %vm421_vm1, %v29928_v52 }
 0x44d   :  { %22263 = vmatprep.mubr.msk.f32.mxu0 %vm421_vm1, %v29933_v53 }
 0x450   :  { %22264 = vmatmul.mubr.msk.f32.gmra.mrb[124].mxu0 %vm421_vm1, %v29942_v54 }
 0x451   :  { %22266 = vmatprep.mubr.msk.f32.mxu0 %vm421_vm1, %v29947_v55 }
 0x454   :  { %22267 = vmatmul.mubr.msk.f32.gmra.mrb[126].mxu0 %vm421_vm1, %v29956_v57 }
 0x455   :  { %22269 = vmatprep.mubr.msk.f32.mxu0 %vm421_vm1, %v29961_v58 }
 0x458   :  { %22270 = vmatmul.mubr.msk.f32.gmra.mrb[128].mxu0 %vm421_vm1, %v29970_v59 }
 0x459   :  { %22272 = vmatprep.mubr.msk.f32.mxu0 %vm421_vm1, %v29975_v61 }
 0x45c   :  { %22273 = vmatmul.mubr.msk.f32.gmra.mrb[130].mxu0 %vm421_vm1, %v29984_v62 }
 0x45d   :  { %22275 = vmatprep.mubr.msk.f32.mxu0 %vm421_vm1, %v29989_v0 }
 0x460   :  { %22276 = vmatmul.mubr.msk.f32.gmra.mrb[132].mxu0 %vm421_vm1, %v29998_v4 }
 0x461   :  { %22278 = vmatprep.mubr.msk.f32.mxu0 %vm421_vm1, %v30003_v7 }
 0x464   :  { %22279 = vmatmul.mubr.msk.f32.gmra.mrb[134].mxu0 %vm421_vm1, %v30012_v14 }
 0x465   :  { %22281 = vmatprep.mubr.msk.f32.mxu0 %vm421_vm1, %v30017_v18 }
 0x468   :  { %22282 = vmatmul.mubr.msk.f32.gmra.mrb[136].mxu0 %vm421_vm1, %v30026_v19 }
 0x469   :  { %22284 = vmatprep.mubr.msk.f32.mxu0 %vm421_vm1, %v30031_v21 }
 0x46c   :  { %22285 = vmatmul.mubr.msk.f32.gmra.mrb[138].mxu0 %vm421_vm1, %v30040_v23 }
 0x46d   :  { %22287 = vmatprep.mubr.msk.f32.mxu0 %vm421_vm1, %v30045_v25 }
 0x470   :  { %22288 = vmatmul.mubr.msk.f32.gmra.mrb[140].mxu0 %vm421_vm1, %v30054_v27 }
 0x471   :  { %22290 = vmatprep.mubr.msk.f32.mxu0 %vm421_vm1, %v30059_v29 }
 0x474   :  { %22291 = vmatmul.mubr.msk.f32.gmra.mrb[142].mxu0 %vm421_vm1, %v30068_v31 }
 0x475   :  { %22293 = vmatprep.mubr.msk.f32.mxu0 %vm421_vm1, %v30073_v33 }
 0x478   :  { %22294 = vmatmul.mubr.msk.f32.gmra.mrb[144].mxu0 %vm421_vm1, %v30082_v44 }
 0x479   :  { %22296 = vmatprep.mubr.msk.f32.mxu0 %vm421_vm1, %v30087_v2 }
 0x47c   :  { %22297 = vmatmul.mubr.msk.f32.gmra.mrb[146].mxu0 %vm421_vm1, %v30096_v47 }
 0x47d   :  { %22299 = vmatprep.mubr.msk.f32.mxu0 %vm421_vm1, %v30101_v9 }
 0x480   :  { %22300 = vmatmul.mubr.msk.f32.gmra.mrb[148].mxu0 %vm421_vm1, %v30110_v12 }
 0x481   :  { %22302 = vmatprep.mubr.msk.f32.mxu0 %vm421_vm1, %v30115_v35 }
 0x484   :  { %22303 = vmatmul.mubr.msk.f32.gmra.mrb[150].mxu0 %vm421_vm1, %v30129_v38 }
 0x485   :  { %22305 = vmatprep.mubr.msk.f32.mxu0 %vm421_vm1, %v30141_v48  ;;  %v16889_v48 = vld [vmem:[%s34863_s0 + $0x3d8] sm:$0xff] }
 0x488   :  { %22306 = vmatmul.mubr.msk.f32.gmra.mrb[152].mxu0 %vm421_vm1, %v30157_v56  ;;  %v30192_v56 = vld [vmem:[%s34863_s0 + $0x5c0] sm:$0xff] }
 0x489   :  { %22308 = vmatprep.mubr.msk.f32.mxu0 %vm421_vm1, %v30169_v60  ;;  %35314 = vst [vmem:[#allocation51_spill] sm:$0xff] %v30192_v56  ;;  %v16884_v60 = vld [vmem:[%s34863_s0 + $0x3b0] sm:$0xff] }
 0x48a   :  { %21354 = vmatprep.mubr.msk.f32.mxu1 %vm421_vm1, %v16884_v60  ;;  %v30227_v60 = vld [vmem:[%s34863_s0 + $0x5d8] sm:$0xff] }
 0x48b   :  { %21355 = vmatmul.mubr.msk.f32.gmra.mrb[56].mxu1 %vm421_vm1, %v16885_v39  ;;  %v16887_v39 = vld [vmem:[%s34863_s0 + $0x3c8] sm:$0xff] }
 0x48c   :  { %22309 = vmatmul.mubr.msk.f32.gmra.mrb[154].mxu0 %vm421_vm1, %v30183_v16  ;;  %v30214_v16 = vld [vmem:[%s34863_s0 + $0x5d0] sm:$0xff] }
 0x48d   :  { %22311 = vmatprep.mubr.msk.f32.mxu0 %vm421_vm1, %v30192_v56  ;;  %35316 = vst [vmem:[#allocation53_spill] sm:$0xff] %v30214_v16  ;;  %v16886_v56 = vld [vmem:[%s34863_s0 + $0x3c0] sm:$0xff] }
 0x48e   :  { %21357 = vmatprep.mubr.msk.f32.mxu1 %vm421_vm1, %v16886_v56  ;;  %v17912_v56 = vld [vmem:[%s34863_s0 + $0x5e8] sm:$0xff] }
 0x48f   :  { %21358 = vmatmul.mubr.msk.f32.gmra.mrb[58].mxu1 %vm421_vm1, %v16887_v39  ;;  %v17913_v39 = vld [vmem:[%s34863_s0 + $0x5f0] sm:$0xff] }
 0x490   :  { %22312 = vmatmul.mubr.msk.f32.gmra.mrb[156].mxu0 %vm421_vm1, %v30205_v37  ;;  %v17911_v37 = vld [vmem:[%s34863_s0 + $0x5e0] sm:$0xff] }
 0x491   :  { %22314 = vmatprep.mubr.msk.f32.mxu0 %vm421_vm1, %v30214_v16  ;;  %v16888_v16 = vld [vmem:[%s34863_s0 + $0x3d0] sm:$0xff] }
 0x492   :  { %21360 = vmatprep.mubr.msk.f32.mxu1 %vm421_vm1, %v16888_v16  ;;  %v17914_v16 = vld [vmem:[%s34863_s0 + $0x5f8] sm:$0xff] }
 0x493   :  { %21361 = vmatmul.mubr.msk.f32.gmra.mrb[60].mxu1 %vm421_vm1, %v16889_v48  ;;  %v17916_v48 = vld [vmem:[%s34863_s0 + $0x608] sm:$0xff] }
 0x494   :  { %22315 = vmatmul.mubr.msk.f32.gmra.mrb[158].mxu0 %vm421_vm1, %v30227_v60  ;;  %21363 = vmatprep.mubr.msk.f32.mxu1 %vm421_vm1, %v29738_v40  ;;  %v17917_v40 = vld [vmem:[%s34863_s0 + $0x610] sm:$0xff] }
 0x495   :  { %22317 = vmatprep.mubr.msk.f32.mxu0 %vm421_vm1, %v17911_v37  ;;  %v17915_v37 = vld [vmem:[%s34863_s0 + $0x600] sm:$0xff] }
 0x497   :  { %21364 = vmatmul.mubr.msk.f32.gmra.mrb[62].mxu1 %vm421_vm1, %v29746_v41  ;;  %v17918_v41 = vld [vmem:[%s34863_s0 + $0x618] sm:$0xff] }
 0x498   :  { %22318 = vmatmul.mubr.msk.f32.gmra.mrb[160].mxu0 %vm421_vm1, %v17912_v56  ;;  %21366 = vmatprep.mubr.msk.f32.mxu1 %vm421_vm1, %v29751_v42  ;;  %v17919_v42 = vld [vmem:[%s34863_s0 + $0x620] sm:$0xff] }
 0x499   :  { %22320 = vmatprep.mubr.msk.f32.mxu0 %vm421_vm1, %v17913_v39  ;;  %v35357_v56 = vld [vmem:[#allocation42_spill] sm:$0xff]  ;;  %v27020_v39 = vld [vmem:[%s34863_s0 + $0x170] sm:$0xff] }
 0x49b   :  { %21367 = vmatmul.mubr.msk.f32.gmra.mrb[64].mxu1 %vm421_vm1, %v29760_v43  ;;  %v17920_v43 = vld [vmem:[%s34863_s0 + $0x628] sm:$0xff] }
 0x49c   :  { %22321 = vmatmul.mubr.msk.f32.gmra.mrb[162].mxu0 %vm421_vm1, %v17914_v16  ;;  %21369 = vmatprep.mubr.msk.f32.mxu1 %vm421_vm1, %v29765_v63  ;;  %v17921_v63 = vld [vmem:[%s34863_s0 + $0x630] sm:$0xff] }
 0x49d   :  { %22323 = vmatprep.mubr.msk.f32.mxu0 %vm421_vm1, %v17915_v37  ;;  %v35358_v16 = vld [vmem:[#allocation52_spill] sm:$0xff]  ;;  %v35359_v37 = vld [vmem:[#allocation53_spill] sm:$0xff] }
 0x49f   :  { %21370 = vmatmul.mubr.msk.f32.gmra.mrb[66].mxu1 %vm421_vm1, %v29774_v1  ;;  %v17922_v1 = vld [vmem:[%s34863_s0 + $0x638] sm:$0xff] }
 0x4a0   :  { %22324 = vmatmul.mubr.msk.f32.gmra.mrb[164].mxu0 %vm421_vm1, %v17916_v48  ;;  %21372 = vmatprep.mubr.msk.f32.mxu1 %vm421_vm1, %v29779_v3  ;;  %v17923_v3 = vld [vmem:[%s34863_s0 + $0x640] sm:$0xff]  ;;  %v27021_v48 = vld [vmem:[%s34863_s0 + $0x178] sm:$0xff] }
 0x4a1   :  { %22326 = vmatprep.mubr.msk.f32.mxu0 %vm421_vm1, %v17917_v40  ;;  %v27022_v40 = vld [vmem:[%s34863_s0 + $0x180] sm:$0xff] }
 0x4a3   :  { %21373 = vmatmul.mubr.msk.f32.gmra.mrb[68].mxu1 %vm421_vm1, %v29788_v5  ;;  %v17924_v5 = vld [vmem:[%s34863_s0 + $0x648] sm:$0xff] }
 0x4a4   :  { %22327 = vmatmul.mubr.msk.f32.gmra.mrb[166].mxu0 %vm421_vm1, %v17918_v41  ;;  %21375 = vmatprep.mubr.msk.f32.mxu1 %vm421_vm1, %v29793_v6  ;;  %v17925_v6 = vld [vmem:[%s34863_s0 + $0x650] sm:$0xff]  ;;  %v27023_v41 = vld [vmem:[%s34863_s0 + $0x188] sm:$0xff] }
 0x4a5   :  { %22329 = vmatprep.mubr.msk.f32.mxu0 %vm421_vm1, %v17919_v42  ;;  %v16954_v42 = vld [vmem:[%s34863_s0 + $0x5e0] sm:$0xff] }
 0x4a7   :  { %21376 = vmatmul.mubr.msk.f32.gmra.mrb[70].mxu1 %vm421_vm1, %v29802_v8  ;;  %v17926_v8 = vld [vmem:[%s34863_s0 + $0x658] sm:$0xff] }
 0x4a8   :  { %22330 = vmatmul.mubr.msk.f32.gmra.mrb[168].mxu0 %vm421_vm1, %v17920_v43  ;;  %21378 = vmatprep.mubr.msk.f32.mxu1 %vm421_vm1, %v29807_v10  ;;  %v17927_v10 = vld [vmem:[%s34863_s0 + $0x660] sm:$0xff]  ;;  %v27024_v43 = vld [vmem:[%s34863_s0 + $0x190] sm:$0xff] }
 0x4a9   :  { %22332 = vmatprep.mubr.msk.f32.mxu0 %vm421_vm1, %v17921_v63  ;;  %v27025_v63 = vld [vmem:[%s34863_s0 + $0x198] sm:$0xff] }
 0x4ab   :  { %21379 = vmatmul.mubr.msk.f32.gmra.mrb[72].mxu1 %vm421_vm1, %v29816_v13  ;;  %v17928_v13 = vld [vmem:[%s34863_s0 + $0x668] sm:$0xff] }
 0x4ac   :  { %22333 = vmatmul.mubr.msk.f32.gmra.mrb[170].mxu0 %vm421_vm1, %v17922_v1  ;;  %21381 = vmatprep.mubr.msk.f32.mxu1 %vm421_vm1, %v29821_v15  ;;  %v17929_v15 = vld [vmem:[%s34863_s0 + $0x670] sm:$0xff] }
 0x4ad   :  { %22335 = vmatprep.mubr.msk.f32.mxu0 %vm421_vm1, %v17923_v3  ;;  %v16956_v1 = vld [vmem:[%s34863_s0 + $0x5f0] sm:$0xff]  ;;  %v27026_v3 = vld [vmem:[%s34863_s0 + $0x1a0] sm:$0xff] }
 0x4af   :  { %21382 = vmatmul.mubr.msk.f32.gmra.mrb[74].mxu1 %vm421_vm1, %v29830_v17  ;;  %v17930_v17 = vld [vmem:[%s34863_s0 + $0x678] sm:$0xff] }
 0x4b0   :  { %22336 = vmatmul.mubr.msk.f32.gmra.mrb[172].mxu0 %vm421_vm1, %v17924_v5  ;;  %21384 = vmatprep.mubr.msk.f32.mxu1 %vm421_vm1, %v29835_v20  ;;  %v35317_v20 = vld [vmem:[#allocation7_spill] sm:$0xff]  ;;  %v16957_v5 = vld [vmem:[%s34863_s0 + $0x5f8] sm:$0xff] }
 0x4b1   :  { %22338 = vmatprep.mubr.msk.f32.mxu0 %vm421_vm1, %v17925_v6  ;;  %v27027_v6 = vld [vmem:[%s34863_s0 + $0x1a8] sm:$0xff] }
 0x4b3   :  { %21385 = vmatmul.mubr.msk.f32.gmra.mrb[76].mxu1 %vm421_vm1, %v29844_v22  ;;  %v35318_v22 = vld [vmem:[#allocation8_spill] sm:$0xff] }
 0x4b4   :  { %22339 = vmatmul.mubr.msk.f32.gmra.mrb[174].mxu0 %vm421_vm1, %v17926_v8  ;;  %21387 = vmatprep.mubr.msk.f32.mxu1 %vm421_vm1, %v29849_v24  ;;  %v35321_v24 = vld [vmem:[#allocation11_spill] sm:$0xff] }
 0x4b5   :  { %22341 = vmatprep.mubr.msk.f32.mxu0 %vm421_vm1, %v17927_v10  ;;  %v16958_v8 = vld [vmem:[%s34863_s0 + $0x600] sm:$0xff]  ;;  %v27028_v10 = vld [vmem:[%s34863_s0 + $0x1b0] sm:$0xff] }
 0x4b7   :  { %21388 = vmatmul.mubr.msk.f32.gmra.mrb[78].mxu1 %vm421_vm1, %v29858_v26  ;;  %v17939_v26 = vld [vmem:[%s34863_s0 + $0x6c0] sm:$0xff] }
 0x4b8   :  { %22342 = vmatmul.mubr.msk.f32.gmra.mrb[176].mxu0 %vm421_vm1, %v17928_v13  ;;  %21390 = vmatprep.mubr.msk.f32.mxu1 %vm421_vm1, %v29863_v28  ;;  %v35322_v28 = vld [vmem:[#allocation12_spill] sm:$0xff]  ;;  %v18176_v13 = vld [vmem:[%s34863_s0 + $0x1b8] sm:$0xff] }
 0x4b9   :  { %22344 = vmatprep.mubr.msk.f32.mxu0 %vm421_vm1, %v17929_v15  ;;  %v16959_v15 = vld [vmem:[%s34863_s0 + $0x608] sm:$0xff] }
 0x4bb   :  { %21391 = vmatmul.mubr.msk.f32.gmra.mrb[80].mxu1 %vm421_vm1, %v29872_v30  ;;  %v17940_v30 = vld [vmem:[%s34863_s0 + $0x6c8] sm:$0xff] }
 0x4bc   :  { %22345 = vmatmul.mubr.msk.f32.gmra.mrb[178].mxu0 %vm421_vm1, %v17930_v17  ;;  %21393 = vmatprep.mubr.msk.f32.mxu1 %vm421_vm1, %v29877_v32  ;;  %v17941_v32 = vld [vmem:[%s34863_s0 + $0x6d0] sm:$0xff]  ;;  %v18177_v17 = vld [vmem:[%s34863_s0 + $0x1c0] sm:$0xff] }
 0x4bd   :  { %22347 = vmatprep.mubr.msk.f32.mxu0 %vm421_vm1, %v29123_v45  ;;  %v35319_v45 = vld [vmem:[#allocation9_spill] sm:$0xff] }
 0x4bf   :  { %21394 = vmatmul.mubr.msk.f32.gmra.mrb[82].mxu1 %vm421_vm1, %v29886_v34  ;;  %v17942_v34 = vld [vmem:[%s34863_s0 + $0x6d8] sm:$0xff] }
 0x4c0   :  { %22348 = vmatmul.mubr.msk.f32.gmra.mrb[180].mxu0 %vm421_vm1, %v29139_v51  ;;  %21396 = vmatprep.mubr.msk.f32.mxu1 %vm421_vm1, %v29891_v36  ;;  %v35320_v51 = vld [vmem:[#allocation10_spill] sm:$0xff]  ;;  %v35323_v36 = vld [vmem:[#allocation13_spill] sm:$0xff] }
 0x4c1   :  { %22350 = vmatprep.mubr.msk.f32.mxu0 %vm421_vm1, %v35317_v20  ;;  %v16960_v20 = vld [vmem:[%s34863_s0 + $0x610] sm:$0xff] }
 0x4c3   :  { %21397 = vmatmul.mubr.msk.f32.gmra.mrb[84].mxu1 %vm421_vm1, %v29900_v49  ;;  %v35324_v49 = vld [vmem:[#allocation14_spill] sm:$0xff] }
 0x4c4   :  { %22351 = vmatmul.mubr.msk.f32.gmra.mrb[182].mxu0 %vm421_vm1, %v35318_v22  ;;  %21399 = vmatprep.mubr.msk.f32.mxu1 %vm421_vm1, %v29905_v46  ;;  %v35325_v46 = vld [vmem:[#allocation15_spill] sm:$0xff] }
 0x4c5   :  { %22353 = vmatprep.mubr.msk.f32.mxu0 %vm421_vm1, %v35319_v45  ;;  %v18178_v22 = vld [vmem:[%s34863_s0 + $0x1c8] sm:$0xff]  ;;  %v16961_v45 = vld [vmem:[%s34863_s0 + $0x618] sm:$0xff] }
 0x4c7   :  { %21400 = vmatmul.mubr.msk.f32.gmra.mrb[86].mxu1 %vm421_vm1, %v29914_v50  ;;  %v35326_v50 = vld [vmem:[#allocation16_spill] sm:$0xff] }
 0x4c8   :  { %22354 = vmatmul.mubr.msk.f32.gmra.mrb[184].mxu0 %vm421_vm1, %v35320_v51  ;;  %21402 = vmatprep.mubr.msk.f32.mxu1 %vm421_vm1, %v29919_v11  ;;  %v35327_v11 = vld [vmem:[#allocation17_spill] sm:$0xff] }
 0x4c9   :  { %22356 = vmatprep.mubr.msk.f32.mxu0 %vm421_vm1, %v35321_v24  ;;  %v18179_v51 = vld [vmem:[%s34863_s0 + $0x1d0] sm:$0xff]  ;;  %v16962_v24 = vld [vmem:[%s34863_s0 + $0x620] sm:$0xff] }
 0x4cb   :  { %21403 = vmatmul.mubr.msk.f32.gmra.mrb[88].mxu1 %vm421_vm1, %v29928_v52  ;;  %v35328_v52 = vld [vmem:[#allocation18_spill] sm:$0xff] }
 0x4cc   :  { %22357 = vmatmul.mubr.msk.f32.gmra.mrb[186].mxu0 %vm421_vm1, %v35322_v28  ;;  %21405 = vmatprep.mubr.msk.f32.mxu1 %vm421_vm1, %v29933_v53  ;;  %v35329_v53 = vld [vmem:[#allocation19_spill] sm:$0xff] }
 0x4cd   :  { %22359 = vmatprep.mubr.msk.f32.mxu0 %vm421_vm1, %v17939_v26  ;;  %v18180_v26 = vld [vmem:[%s34863_s0 + $0x1d8] sm:$0xff]  ;;  %v18181_v28 = vld [vmem:[%s34863_s0 + $0x1e0] sm:$0xff] }
 0x4cf   :  { %21406 = vmatmul.mubr.msk.f32.gmra.mrb[90].mxu1 %vm421_vm1, %v29942_v54  ;;  %v35330_v54 = vld [vmem:[#allocation20_spill] sm:$0xff] }
 0x4d0   :  { %22360 = vmatmul.mubr.msk.f32.gmra.mrb[188].mxu0 %vm421_vm1, %v17940_v30  ;;  %21408 = vmatprep.mubr.msk.f32.mxu1 %vm421_vm1, %v29947_v55  ;;  %v35331_v55 = vld [vmem:[#allocation21_spill] sm:$0xff]  ;;  %v16963_v30 = vld [vmem:[%s34863_s0 + $0x628] sm:$0xff] }
 0x4d1   :  { %22362 = vmatprep.mubr.msk.f32.mxu0 %vm421_vm1, %v17941_v32  ;;  %v18182_v32 = vld [vmem:[%s34863_s0 + $0x1e8] sm:$0xff] }
 0x4d3   :  { %21409 = vmatmul.mubr.msk.f32.gmra.mrb[92].mxu1 %vm421_vm1, %v29956_v57  ;;  %v35332_v57 = vld [vmem:[#allocation22_spill] sm:$0xff] }
 0x4d4   :  { %22363 = vmatmul.mubr.msk.f32.gmra.mrb[190].mxu0 %vm421_vm1, %v17942_v34  ;;  %21411 = vmatprep.mubr.msk.f32.mxu1 %vm421_vm1, %v29961_v58  ;;  %v35333_v58 = vld [vmem:[#allocation23_spill] sm:$0xff]  ;;  %v16964_v34 = vld [vmem:[%s34863_s0 + $0x630] sm:$0xff] }
 0x4d5   :  { %22367 = vmatprep.mubr.msk.f32.mxu0 %vm421_vm1, %v35323_v36  ;;  %v18183_v36 = vld [vmem:[%s34863_s0 + $0x1f0] sm:$0xff] }
 0x4d7   :  { %21412 = vmatmul.mubr.msk.f32.gmra.mrb[94].mxu1 %vm421_vm1, %v29970_v59  ;;  %v35334_v59 = vld [vmem:[#allocation24_spill] sm:$0xff] }
 0x4d8   :  { %22368 = vmatmul.mubr.msk.f32.vlgmr.msra.gmra.mrb[0].mxu0 %vm421_vm1, %v35324_v49  ;;  %21414 = vmatprep.mubr.msk.f32.mxu1 %vm421_vm1, %v29975_v61  ;;  %v35335_v61 = vld [vmem:[#allocation25_spill] sm:$0xff] }
 0x4d9   :  { %22370 = vmatprep.mubr.msk.f32.mxu0 %vm421_vm1, %v35325_v46  ;;  %v16965_v49 = vld [vmem:[%s34863_s0 + $0x638] sm:$0xff] }
 0x4da   :  { %v18184_v46 = vld [vmem:[%s34863_s0 + $0x1f8] sm:$0xff] }
 0x4db   :  { %21415 = vmatmul.mubr.msk.f32.gmra.mrb[96].mxu1 %vm421_vm1, %v29984_v62  ;;  %v35336_v62 = vld [vmem:[#allocation26_spill] sm:$0xff] }
 0x4dc   :  { %22371 = vmatmul.mubr.msk.f32.gmra.mrb[2].mxu0 %vm421_vm1, %v35326_v50  ;;  %21417 = vmatprep.mubr.msk.f32.mxu1 %vm421_vm1, %v29989_v0  ;;  %v35337_v0 = vld [vmem:[#allocation27_spill] sm:$0xff] }
 0x4dd   :  { %22373 = vmatprep.mubr.msk.f32.mxu0 %vm421_vm1, %v35327_v11  ;;  %v16966_v50 = vld [vmem:[%s34863_s0 + $0x640] sm:$0xff] }
 0x4de   :  { %v18185_v11 = vld [vmem:[%s34863_s0 + $0x200] sm:$0xff] }
 0x4df   :  { %21418 = vmatmul.mubr.msk.f32.gmra.mrb[98].mxu1 %vm421_vm1, %v29998_v4  ;;  %v35338_v4 = vld [vmem:[#allocation28_spill] sm:$0xff] }
 0x4e0   :  { %22374 = vmatmul.mubr.msk.f32.gmra.mrb[4].mxu0 %vm421_vm1, %v35328_v52  ;;  %21420 = vmatprep.mubr.msk.f32.mxu1 %vm421_vm1, %v30003_v7  ;;  %v35339_v7 = vld [vmem:[#allocation29_spill] sm:$0xff]  ;;  %v16967_v52 = vld [vmem:[%s34863_s0 + $0x648] sm:$0xff] }
 0x4e1   :  { %22376 = vmatprep.mubr.msk.f32.mxu0 %vm421_vm1, %v35329_v53  ;;  %v18186_v53 = vld [vmem:[%s34863_s0 + $0x208] sm:$0xff] }
 0x4e3   :  { %21421 = vmatmul.mubr.msk.f32.gmra.mrb[100].mxu1 %vm421_vm1, %v30012_v14  ;;  %v35340_v14 = vld [vmem:[#allocation30_spill] sm:$0xff] }
 0x4e4   :  { %22377 = vmatmul.mubr.msk.f32.gmra.mrb[6].mxu0 %vm421_vm1, %v35330_v54  ;;  %21423 = vmatprep.mubr.msk.f32.mxu1 %vm421_vm1, %v30017_v18  ;;  %v35341_v18 = vld [vmem:[#allocation31_spill] sm:$0xff]  ;;  %v18187_v54 = vld [vmem:[%s34863_s0 + $0x210] sm:$0xff] }
 0x4e5   :  { %22379 = vmatprep.mubr.msk.f32.mxu0 %vm421_vm1, %v35331_v55  ;;  %v18524_v55 = vld [vmem:[%s34866_s3 + $0x80] sm:$0xff] }
 0x4e7   :  { %21424 = vmatmul.mubr.msk.f32.gmra.mrb[102].mxu1 %vm421_vm1, %v30026_v19  ;;  %v35342_v19 = vld [vmem:[#allocation32_spill] sm:$0xff] }
 0x4e8   :  { %22380 = vmatmul.mubr.msk.f32.gmra.mrb[8].mxu0 %vm421_vm1, %v35332_v57  ;;  %21426 = vmatprep.mubr.msk.f32.mxu1 %vm421_vm1, %v30031_v21  ;;  %v35343_v21 = vld [vmem:[#allocation33_spill] sm:$0xff]  ;;  %v18525_v57 = vld [vmem:[%s34866_s3 + $0x88] sm:$0xff] }
 0x4e9   :  { %22382 = vmatprep.mubr.msk.f32.mxu0 %vm421_vm1, %v35333_v58  ;;  %v16968_v58 = vld [vmem:[%s34863_s0 + $0x650] sm:$0xff] }
 0x4eb   :  { %21427 = vmatmul.mubr.msk.f32.gmra.mrb[104].mxu1 %vm421_vm1, %v30040_v23  ;;  %v35344_v23 = vld [vmem:[#allocation34_spill] sm:$0xff] }
 0x4ec   :  { %22383 = vmatmul.mubr.msk.f32.gmra.mrb[10].mxu0 %vm421_vm1, %v35334_v59  ;;  %21429 = vmatprep.mubr.msk.f32.mxu1 %vm421_vm1, %v30045_v25  ;;  %v35345_v25 = vld [vmem:[#allocation35_spill] sm:$0xff]  ;;  %v24650_v59 = vpack.c.bf16 %v18525_v57, %v18524_v55  ;;  %v35361_v55 = vld [vmem:[#allocation44_spill] sm:$0xff]  ;;  %v35362_v57 = vld [vmem:[#allocation46_spill] sm:$0xff] }
 0x4ed   :  { %22385 = vmatprep.mubr.msk.f32.mxu0 %vm421_vm1, %v35335_v61  ;;  %v16969_v61 = vld [vmem:[%s34863_s0 + $0x658] sm:$0xff] }
 0x4ee   :  { %24651 = vmatprep.subr.bf16.mxu1 %v24650_v59 }
 0x4ef   :  { %21430 = vmatmul.mubr.msk.f32.gmra.mrb[106].mxu1 %vm421_vm1, %v30054_v27  ;;  %v35346_v27 = vld [vmem:[#allocation36_spill] sm:$0xff] }
 0x4f0   :  { %22386 = vmatmul.mubr.msk.f32.gmra.mrb[12].mxu0 %vm421_vm1, %v35336_v62  ;;  %21432 = vmatprep.mubr.msk.f32.mxu1 %vm421_vm1, %v30059_v29  ;;  %v35347_v29 = vld [vmem:[#allocation37_spill] sm:$0xff] }
 0x4f1   :  { %22388 = vmatprep.mubr.msk.f32.mxu0 %vm421_vm1, %v35337_v0  ;;  %v18188_v62 = vld [vmem:[%s34863_s0 + $0x218] sm:$0xff]  ;;  %v18189_v0 = vld [vmem:[%s34863_s0 + $0x220] sm:$0xff]  ;;  %24653 = vmatpush3.bf16.msra.mxu1 %v24650_v59  ;;  %v35363_v59 = vld [vmem:[#allocation48_spill] sm:$0xff] }
 0x4f3   :  { %21433 = vmatmul.mubr.msk.f32.gmra.mrb[108].mxu1 %vm421_vm1, %v30068_v31  ;;  %v35348_v31 = vld [vmem:[#allocation45_spill] sm:$0xff] }
 0x4f4   :  { %22389 = vmatmul.mubr.msk.f32.gmra.mrb[14].mxu0 %vm421_vm1, %v35338_v4  ;;  %21435 = vmatprep.mubr.msk.f32.mxu1 %vm421_vm1, %v30073_v33  ;;  %v35349_v33 = vld [vmem:[#allocation38_spill] sm:$0xff] }
 0x4f5   :  { %22391 = vmatprep.mubr.msk.f32.mxu0 %vm421_vm1, %v35339_v7  ;;  %v16970_v4 = vld [vmem:[%s34863_s0 + $0x660] sm:$0xff]  ;;  %v18526_v7 = vld [vmem:[%s34866_s3 + $0x90] sm:$0xff] }
 0x4f7   :  { %21436 = vmatmul.mubr.msk.f32.gmra.mrb[110].mxu1 %vm421_vm1, %v30082_v44  ;;  %v35350_v44 = vld [vmem:[#allocation39_spill] sm:$0xff] }
 0x4f8   :  { %22392 = vmatmul.mubr.msk.f32.gmra.mrb[16].mxu0 %vm421_vm1, %v35340_v14  ;;  %21438 = vmatprep.mubr.msk.f32.mxu1 %vm421_vm1, %v30087_v2  ;;  %v35351_v2 = vld [vmem:[#allocation47_spill] sm:$0xff] }
 0x4f9   :  { %22394 = vmatprep.mubr.msk.f32.mxu0 %vm421_vm1, %v35341_v18  ;;  %v16971_v14 = vld [vmem:[%s34863_s0 + $0x668] sm:$0xff]  ;;  %v18527_v18 = vld [vmem:[%s34866_s3 + $0x98] sm:$0xff] }
 0x4fb   :  { %21439 = vmatmul.mubr.msk.f32.gmra.mrb[112].mxu1 %vm421_vm1, %v30096_v47  ;;  %v35352_v47 = vld [vmem:[#allocation49_spill] sm:$0xff] }
 0x4fc   :  { %22395 = vmatmul.mubr.msk.f32.gmra.mrb[18].mxu0 %vm421_vm1, %v35342_v19  ;;  %21441 = vmatprep.mubr.msk.f32.mxu1 %vm421_vm1, %v30101_v9  ;;  %v35353_v9 = vld [vmem:[#allocation40_spill] sm:$0xff]  ;;  %v24654_v19 = vpack.c.bf16 %v18527_v18, %v18526_v7  ;;  %v18224_v7 = vld [vmem:[%s34863_s0 + $0x338] sm:$0xff] }
 0x4fd   :  { %22397 = vmatprep.mubr.msk.f32.mxu0 %vm421_vm1, %v35343_v21  ;;  %v18190_v21 = vld [vmem:[%s34863_s0 + $0x228] sm:$0xff] }
 0x4fe   :  { %24655 = vmatprep.subr.bf16.mxu1 %v24654_v19 }
 0x4ff   :  { %21442 = vmatmul.mubr.msk.f32.gmra.mrb[114].mxu1 %vm421_vm1, %v30110_v12  ;;  %v35354_v12 = vld [vmem:[#allocation41_spill] sm:$0xff] }
 0x500   :  { %22398 = vmatmul.mubr.msk.f32.gmra.mrb[20].mxu0 %vm421_vm1, %v35344_v23  ;;  %21444 = vmatprep.mubr.msk.f32.mxu1 %vm421_vm1, %v30115_v35  ;;  %v35355_v35 = vld [vmem:[#allocation50_spill] sm:$0xff]  ;;  %v18191_v23 = vld [vmem:[%s34863_s0 + $0x230] sm:$0xff] }
 0x501   :  { %22400 = vmatprep.mubr.msk.f32.mxu0 %vm421_vm1, %v35345_v25  ;;  %v16972_v25 = vld [vmem:[%s34863_s0 + $0x670] sm:$0xff]  ;;  %24657 = vmatpush3.bf16.msra.mxu1 %v24654_v19 }
 0x503   :  { %21445 = vmatmul.mubr.msk.f32.gmra.mrb[116].mxu1 %vm421_vm1, %v30129_v38  ;;  %v35356_v38 = vld [vmem:[#allocation51_spill] sm:$0xff] }
 0x504   :  { %22401 = vmatmul.mubr.msk.f32.gmra.mrb[22].mxu0 %vm421_vm1, %v35346_v27  ;;  %21447 = vmatprep.mubr.msk.f32.mxu1 %vm421_vm1, %v35348_v31  ;;  %v18528_v27 = vld [vmem:[%s34866_s3 + $0xa0] sm:$0xff]  ;;  %v18529_v31 = vld [vmem:[%s34866_s3 + $0xa8] sm:$0xff] }
 0x505   :  { %22403 = vmatprep.mubr.msk.f32.mxu0 %vm421_vm1, %v35347_v29  ;;  %v16973_v29 = vld [vmem:[%s34863_s0 + $0x678] sm:$0xff] }
 0x507   :  { %21448 = vmatmul.mubr.msk.f32.gmra.mrb[118].mxu1 %vm421_vm1, %v35351_v2  ;;  %v16974_v2 = vld [vmem:[%s34863_s0 + $0x680] sm:$0xff] }
 0x508   :  { %22404 = vmatmul.mubr.msk.f32.gmra.mrb[24].mxu0 %vm421_vm1, %v35349_v33  ;;  %21450 = vmatprep.mubr.msk.f32.mxu1 %vm421_vm1, %v35352_v47  ;;  %v24658_v33 = vpack.c.bf16 %v18529_v31, %v18528_v27  ;;  %v18193_v47 = vld [vmem:[%s34863_s0 + $0x240] sm:$0xff] }
 0x509   :  { %22406 = vmatprep.mubr.msk.f32.mxu0 %vm421_vm1, %v35350_v44  ;;  %v18192_v44 = vld [vmem:[%s34863_s0 + $0x238] sm:$0xff]  ;;  %v18229_v31 = vld [vmem:[%s34863_s0 + $0x360] sm:$0xff] }
 0x50a   :  { %24659 = vmatprep.subr.bf16.mxu1 %v24658_v33 }
 0x50b   :  { %21451 = vmatmul.mubr.msk.f32.gmra.mrb[120].mxu1 %vm421_vm1, %v35355_v35  ;;  %v16975_v35 = vld [vmem:[%s34863_s0 + $0x688] sm:$0xff] }
 0x50c   :  { %22407 = vmatmul.mubr.msk.f32.gmra.mrb[26].mxu0 %vm421_vm1, %v35353_v9  ;;  %21453 = vmatprep.mubr.msk.f32.mxu1 %vm421_vm1, %v35356_v38  ;;  %v18530_v9 = vld [vmem:[%s34866_s3 + $0xb0] sm:$0xff] }
 0x50d   :  { %22409 = vmatprep.mubr.msk.f32.mxu0 %vm421_vm1, %v35354_v12  ;;  %v18531_v12 = vld [vmem:[%s34866_s3 + $0xb8] sm:$0xff]  ;;  %24661 = vmatpush3.bf16.msra.mxu1 %v24658_v33 }
 0x50e   :  { %v24662_v38 = vpack.c.bf16 %v18531_v12, %v18530_v9 }
 0x50f   :  { %21454 = vmatmul.mubr.msk.f32.gmra.mrb[122].mxu1 %vm421_vm1, %v35358_v16  ;;  %v16976_v16 = vld [vmem:[%s34863_s0 + $0x690] sm:$0xff] }
 0x510   :  { %22410 = vmatmul.mubr.msk.f32.gmra.mrb[28].mxu0 %vm421_vm1, %v35357_v56  ;;  %21456 = vmatprep.mubr.msk.f32.mxu1 %vm421_vm1, %v35359_v37  ;;  %v18194_v56 = vld [vmem:[%s34863_s0 + $0x248] sm:$0xff]  ;;  %v18532_v37 = vld [vmem:[%s34866_s3 + $0xc0] sm:$0xff] }
 0x511   :  { %22412 = vmatprep.mubr.msk.f32.mxu0 %vm421_vm1, %v27020_v39  ;;  %24663 = vmatprep.subr.bf16.mxu1 %v24662_v38  ;;  %v18195_v39 = vld [vmem:[%s34863_s0 + $0x250] sm:$0xff] }
 0x512   :  { %24665 = vmatpush3.bf16.msra.mxu1 %v24662_v38  ;;  %v18233_v38 = vld [vmem:[%s34863_s0 + $0x400] sm:$0xff] }
 0x513   :  { %21457 = vmatmul.mubr.msk.f32.gmra.mrb[124].mxu1 %vm421_vm1, %v30227_v60  ;;  %v16955_v60 = vld [vmem:[%s34863_s0 + $0x5e8] sm:$0xff] }
 0x514   :  { %22413 = vmatmul.mubr.msk.f32.gmra.mrb[30].mxu0 %vm421_vm1, %v27021_v48  ;;  %21459 = vmatprep.mubr.msk.f32.mxu1 %vm421_vm1, %v16954_v42  ;;  %v16977_v48 = vld [vmem:[%s34863_s0 + $0x698] sm:$0xff] }
 0x515   :  { %22415 = vmatprep.mubr.msk.f32.mxu0 %vm421_vm1, %v27022_v40  ;;  %v18533_v40 = vld [vmem:[%s34866_s3 + $0xc8] sm:$0xff]  ;;  %v18196_v42 = vld [vmem:[%s34863_s0 + $0x258] sm:$0xff] }
 0x517   :  { %21460 = vmatmul.mubr.msk.f32.gmra.mrb[126].mxu1 %vm421_vm1, %v16955_v60  ;;  %v18534_v60 = vld [vmem:[%s34866_s3 + $0xd0] sm:$0xff] }
 0x518   :  { %22416 = vmatmul.mubr.msk.f32.gmra.mrb[32].mxu0 %vm421_vm1, %v27023_v41  ;;  %21462 = vmatprep.mubr.msk.f32.mxu1 %vm421_vm1, %v16956_v1  ;;  %v24666_v41 = vpack.c.bf16 %v18533_v40, %v18532_v37  ;;  %v18235_v37 = vld [vmem:[%s34863_s0 + $0x410] sm:$0xff] }
 0x519   :  { %22418 = vmatprep.mubr.msk.f32.mxu0 %vm421_vm1, %v27024_v43  ;;  %v18197_v43 = vld [vmem:[%s34863_s0 + $0x260] sm:$0xff] }
 0x51a   :  { %24667 = vmatprep.subr.bf16.mxu1 %v24666_v41 }
 0x51b   :  { %21463 = vmatmul.mubr.msk.f32.gmra.mrb[128].mxu1 %vm421_vm1, %v16957_v5  ;;  %v18199_v5 = vld [vmem:[%s34863_s0 + $0x270] sm:$0xff] }
 0x51c   :  { %22419 = vmatmul.mubr.msk.f32.gmra.mrb[34].mxu0 %vm421_vm1, %v27025_v63  ;;  %21465 = vmatprep.mubr.msk.f32.mxu1 %vm421_vm1, %v16958_v8  ;;  %v18535_v63 = vld [vmem:[%s34866_s3 + $0xd8] sm:$0xff]  ;;  %v18537_v8 = vld [vmem:[%s34866_s3 + $0xe8] sm:$0xff] }
 0x51d   :  { %22421 = vmatprep.mubr.msk.f32.mxu0 %vm421_vm1, %v27026_v3  ;;  %24669 = vmatpush3.bf16.msra.mxu1 %v24666_v41  ;;  %v24670_v1 = vpack.c.bf16 %v18535_v63, %v18534_v60  ;;  %v18198_v3 = vld [vmem:[%s34863_s0 + $0x268] sm:$0xff]  ;;  %v18236_v41 = vld [vmem:[%s34863_s0 + $0x418] sm:$0xff] }
 0x51e   :  { %v18238_v63 = vld [vmem:[%s34863_s0 + $0x428] sm:$0xff] }
 0x51f   :  { %21466 = vmatmul.mubr.msk.f32.gmra.mrb[130].mxu1 %vm421_vm1, %v16959_v15  ;;  %24671 = vmatprep.subr.bf16.mxu1 %v24670_v1  ;;  %v18201_v15 = vld [vmem:[%s34863_s0 + $0x280] sm:$0xff] }
 0x520   :  { %22422 = vmatmul.mubr.msk.f32.gmra.mrb[36].mxu0 %vm421_vm1, %v27027_v6  ;;  %21468 = vmatprep.mubr.msk.f32.mxu1 %vm421_vm1, %v16960_v20  ;;  %v18536_v6 = vld [vmem:[%s34866_s3 + $0xe0] sm:$0xff]  ;;  %v18539_v20 = vld [vmem:[%s34866_s3 + $0xf8] sm:$0xff] }
 0x521   :  { %22424 = vmatprep.mubr.msk.f32.mxu0 %vm421_vm1, %v27028_v10  ;;  %24673 = vmatpush3.bf16.msra.mxu1 %v24670_v1  ;;  %v24674_v10 = vpack.c.bf16 %v18537_v8, %v18536_v6  ;;  %v18239_v1 = vld [vmem:[%s34863_s0 + $0x430] sm:$0xff]  ;;  %v18240_v6 = vld [vmem:[%s34863_s0 + $0x438] sm:$0xff]  ;;  %v18241_v8 = vld [vmem:[%s34863_s0 + $0x440] sm:$0xff] }
 0x523   :  { %21469 = vmatmul.mubr.msk.f32.gmra.mrb[132].mxu1 %vm421_vm1, %v16961_v45  ;;  %24675 = vmatprep.subr.bf16.mxu1 %v24674_v10  ;;  %v18202_v45 = vld [vmem:[%s34863_s0 + $0x288] sm:$0xff] }
 0x524   :  { %22425 = vmatmul.mubr.msk.f32.gmra.mrb[38].mxu0 %vm421_vm1, %v18176_v13  ;;  %21471 = vmatprep.mubr.msk.f32.mxu1 %vm421_vm1, %v16962_v24  ;;  %v18200_v13 = vld [vmem:[%s34863_s0 + $0x278] sm:$0xff] }
 0x525   :  { %22427 = vmatprep.mubr.msk.f32.mxu0 %vm421_vm1, %v18177_v17  ;;  %v18538_v17 = vld [vmem:[%s34866_s3 + $0xf0] sm:$0xff]  ;;  %24677 = vmatpush3.bf16.msra.mxu1 %v24674_v10  ;;  %v18204_v24 = vld [vmem:[%s34863_s0 + $0x298] sm:$0xff] }
 0x527   :  { %21472 = vmatmul.mubr.msk.f32.gmra.mrb[134].mxu1 %vm421_vm1, %v16963_v30  ;;  %v18207_v30 = vld [vmem:[%s34863_s0 + $0x2b0] sm:$0xff] }
 0x528   :  { %22428 = vmatmul.mubr.msk.f32.gmra.mrb[40].mxu0 %vm421_vm1, %v18178_v22  ;;  %21474 = vmatprep.mubr.msk.f32.mxu1 %vm421_vm1, %v16964_v34  ;;  %v24678_v22 = vpack.c.bf16 %v18539_v20, %v18538_v17  ;;  %v18209_v34 = vld [vmem:[%s34863_s0 + $0x2c0] sm:$0xff]  ;;  %v18243_v17 = vld [vmem:[%s34863_s0 + $0x450] sm:$0xff] }
 0x529   :  { %22430 = vmatprep.mubr.msk.f32.mxu0 %vm421_vm1, %v18179_v51  ;;  %v18203_v51 = vld [vmem:[%s34863_s0 + $0x290] sm:$0xff] }
 0x52a   :  { %24679 = vmatprep.subr.bf16.mxu1 %v24678_v22 }
 0x52b   :  { %21475 = vmatmul.mubr.msk.f32.gmra.mrb[136].mxu1 %vm421_vm1, %v16965_v49  ;;  %v18211_v49 = vld [vmem:[%s34863_s0 + $0x2d0] sm:$0xff] }
 0x52c   :  { %22431 = vmatmul.mubr.msk.f32.gmra.mrb[42].mxu0 %vm421_vm1, %v18180_v26  ;;  %21477 = vmatprep.mubr.msk.f32.mxu1 %vm421_vm1, %v16966_v50  ;;  %v18205_v26 = vld [vmem:[%s34863_s0 + $0x2a0] sm:$0xff] }
 0x52d   :  { %22433 = vmatprep.mubr.msk.f32.mxu0 %vm421_vm1, %v18181_v28  ;;  %24681 = vmatpush3.bf16.msra.mxu1 %v24678_v22  ;;  %v18206_v28 = vld [vmem:[%s34863_s0 + $0x2a8] sm:$0xff]  ;;  %v18213_v50 = vld [vmem:[%s34863_s0 + $0x2e0] sm:$0xff] }
 0x52f   :  { %21478 = vmatmul.mubr.msk.f32.gmra.mrb[138].mxu1 %vm421_vm1, %v16967_v52  ;;  %v18215_v52 = vld [vmem:[%s34863_s0 + $0x2f0] sm:$0xff] }
 0x530   :  { %22434 = vmatmul.mubr.msk.f32.gmra.mrb[44].mxu0 %vm421_vm1, %v18182_v32  ;;  %21480 = vmatprep.mubr.msk.f32.mxu1 %vm421_vm1, %v16968_v58  ;;  %v18208_v32 = vld [vmem:[%s34863_s0 + $0x2b8] sm:$0xff]  ;;  %v18221_v58 = vld [vmem:[%s34863_s0 + $0x320] sm:$0xff] }
 0x531   :  { %22436 = vmatprep.mubr.msk.f32.mxu0 %vm421_vm1, %v18183_v36  ;;  %v18210_v36 = vld [vmem:[%s34863_s0 + $0x2c8] sm:$0xff] }
 0x533   :  { %21481 = vmatmul.mubr.msk.f32.gmra.mrb[140].mxu1 %vm421_vm1, %v16969_v61  ;;  %v18222_v61 = vld [vmem:[%s34863_s0 + $0x328] sm:$0xff] }
 0x534   :  { %22437 = vmatmul.mubr.msk.f32.gmra.mrb[46].mxu0 %vm421_vm1, %v18184_v46  ;;  %21483 = vmatprep.mubr.msk.f32.mxu1 %vm421_vm1, %v16970_v4  ;;  %v18212_v46 = vld [vmem:[%s34863_s0 + $0x2d8] sm:$0xff] }
 0x535   :  { %22439 = vmatprep.mubr.msk.f32.mxu0 %vm421_vm1, %v18185_v11  ;;  %v18214_v11 = vld [vmem:[%s34863_s0 + $0x2e8] sm:$0xff] }
 0x537   :  { %21484 = vmatmul.mubr.msk.f32.gmra.mrb[142].mxu1 %vm421_vm1, %v16971_v14  ;;  %v18225_v14 = vld [vmem:[%s34863_s0 + $0x340] sm:$0xff] }
 0x538   :  { %22440 = vmatmul.mubr.msk.f32.gmra.mrb[48].mxu0 %vm421_vm1, %v18186_v53  ;;  %21486 = vmatprep.mubr.msk.f32.mxu1 %vm421_vm1, %v16972_v25  ;;  %v18216_v53 = vld [vmem:[%s34863_s0 + $0x2f8] sm:$0xff] }
 0x539   :  { %22442 = vmatprep.mubr.msk.f32.mxu0 %vm421_vm1, %v18187_v54  ;;  %v35360_v54 = vld [vmem:[#allocation43_spill] sm:$0xff] }
 0x53b   :  { %21487 = vmatmul.mubr.msk.f32.gmra.mrb[144].mxu1 %vm421_vm1, %v16973_v29  ;;  %v18228_v29 = vld [vmem:[%s34863_s0 + $0x358] sm:$0xff] }
 0x53c   :  { %22443 = vmatmul.mubr.msk.f32.gmra.mrb[50].mxu0 %vm421_vm1, %v18188_v62  ;;  %21489 = vmatprep.mubr.msk.f32.mxu1 %vm421_vm1, %v16974_v2  ;;  %v18223_v62 = vld [vmem:[%s34863_s0 + $0x330] sm:$0xff]  ;;  %v18230_v2 = vld [vmem:[%s34863_s0 + $0x368] sm:$0xff] }
 0x53d   :  { %22445 = vmatprep.mubr.msk.f32.mxu0 %vm421_vm1, %v18189_v0  ;;  %v30906_v0 = vpop.f32.mrb[0].mxu1 }
 0x53e   :  { %v30908_v4 = vpop.f32.mrb[1].mxu1 }
 0x53f   :  { %21490 = vmatmul.mubr.msk.f32.gmra.mrb[146].mxu1 %vm421_vm1, %v16975_v35  ;;  %v30918_v18 = vpop.f32.mrb[2].mxu1  ;;  %v18232_v35 = vld [vmem:[%s34863_s0 + $0x378] sm:$0xff] }
 0x540   :  { %22446 = vmatmul.mubr.msk.f32.gmra.mrb[52].mxu0 %vm421_vm1, %v18190_v21  ;;  %21492 = vmatprep.mubr.msk.f32.mxu1 %vm421_vm1, %v16976_v16  ;;  %v30920_v19 = vpop.f32.mrb[3].mxu1  ;;  %v18226_v21 = vld [vmem:[%s34863_s0 + $0x348] sm:$0xff] }
 0x541   :  { %22448 = vmatprep.mubr.msk.f32.mxu0 %vm421_vm1, %v18191_v23  ;;  %v18227_v23 = vld [vmem:[%s34863_s0 + $0x350] sm:$0xff]  ;;  %v30930_v25 = vpop.f32.mrb[4].mxu1  ;;  %v18234_v16 = vld [vmem:[%s34863_s0 + $0x408] sm:$0xff] }
 0x542   :  { %v30932_v27 = vpop.f32.mrb[5].mxu1 }
 0x543   :  { %21493 = vmatmul.mubr.msk.f32.gmra.mrb[148].mxu1 %vm421_vm1, %v16977_v48  ;;  %v30942_v33 = vpop.f32.mrb[6].mxu1 }
 0x544   :  { %22449 = vmatmul.mubr.msk.f32.gmra.mrb[54].mxu0 %vm421_vm1, %v18192_v44  ;;  %v30944_v44 = vpop.f32.mrb[7].mxu1 }
 0x545   :  { %22451 = vmatprep.mubr.msk.f32.mxu0 %vm421_vm1, %v18193_v47  ;;  %v18231_v47 = vld [vmem:[%s34863_s0 + $0x370] sm:$0xff]  ;;  %v30954_v9 = vpop.f32.mrb[8].mxu1 }
 0x546   :  { %v30956_v12 = vpop.f32.mrb[9].mxu1 }
 0x548   :  { %22452 = vmatmul.mubr.msk.f32.gmra.mrb[56].mxu0 %vm421_vm1, %v18194_v56  ;;  %v30966_v56 = vpop.f32.mrb[10].mxu1 }
 0x549   :  { %22454 = vmatprep.mubr.msk.f32.mxu0 %vm421_vm1, %v18195_v39  ;;  %v30968_v39 = vpop.f32.mrb[11].mxu1 }
 0x54a   :  { %v30978_v48 = vpop.f32.mrb[12].mxu1 }
 0x54b   :  { %v30980_v40 = vpop.f32.mrb[13].mxu1 }
 0x54c   :  { %22455 = vmatmul.mubr.msk.f32.gmra.mrb[58].mxu0 %vm421_vm1, %v18196_v42  ;;  %v18237_v42 = vld [vmem:[%s34863_s0 + $0x420] sm:$0xff] }
 0x54d   :  { %22457 = vmatprep.mubr.msk.f32.mxu0 %vm421_vm1, %v18197_v43  ;;  %v30990_v43 = vpop.f32.mrb[14].mxu1 }
 0x54e   :  { %v30992_v60 = vpop.f32.mrb[15].mxu1 }
 0x550   :  { %22458 = vmatmul.mubr.msk.f32.gmra.mrb[60].mxu0 %vm421_vm1, %v18198_v3  ;;  %v31002_v3 = vpop.f32.mrb[16].mxu1 }
 0x551   :  { %22460 = vmatprep.mubr.msk.f32.mxu0 %vm421_vm1, %v18199_v5  ;;  %v31004_v5 = vpop.f32.mrb[17].mxu1 }
 0x552   :  { %v31014_v10 = vpop.f32.mrb[18].mxu1 }
 0x554   :  { %22461 = vmatmul.mubr.msk.f32.gmra.mrb[62].mxu0 %vm421_vm1, %v18200_v13  ;;  %v31016_v13 = vpop.f32.mrb[19].mxu1 }
 0x555   :  { %22463 = vmatprep.mubr.msk.f32.mxu0 %vm421_vm1, %v18201_v15  ;;  %v18242_v15 = vld [vmem:[%s34863_s0 + $0x448] sm:$0xff]  ;;  %v31026_v20 = vpop.f32.mrb[20].mxu1 }
 0x556   :  { %v31028_v22 = vpop.f32.mrb[21].mxu1 }
 0x558   :  { %22464 = vmatmul.mubr.msk.f32.gmra.mrb[64].mxu0 %vm421_vm1, %v18202_v45  ;;  %v18244_v45 = vld [vmem:[%s34863_s0 + $0x458] sm:$0xff] }
 0x559   :  { %22466 = vmatprep.mubr.msk.f32.mxu0 %vm421_vm1, %v18203_v51  ;;  %v18245_v51 = vld [vmem:[%s34863_s0 + $0x460] sm:$0xff] }
 0x55c   :  { %22467 = vmatmul.mubr.msk.f32.gmra.mrb[66].mxu0 %vm421_vm1, %v18204_v24  ;;  %v31038_v24 = vpop.f32.mrb[22].mxu1 }
 0x55d   :  { %22469 = vmatprep.mubr.msk.f32.mxu0 %vm421_vm1, %v18205_v26 }
 0x560   :  { %22470 = vmatmul.mubr.msk.f32.gmra.mrb[68].mxu0 %vm421_vm1, %v18206_v28  ;;  %v31040_v28 = vpop.f32.mrb[23].mxu1 }
 0x561   :  { %22472 = vmatprep.mubr.msk.f32.mxu0 %vm421_vm1, %v18207_v30 }
 0x564   :  { %22473 = vmatmul.mubr.msk.f32.gmra.mrb[70].mxu0 %vm421_vm1, %v18208_v32  ;;  %v18246_v32 = vld [vmem:[%s34863_s0 + $0x468] sm:$0xff] }
 0x565   :  { %22475 = vmatprep.mubr.msk.f32.mxu0 %vm421_vm1, %v18209_v34  ;;  %v18247_v34 = vld [vmem:[%s34863_s0 + $0x470] sm:$0xff] }
 0x568   :  { %22476 = vmatmul.mubr.msk.f32.gmra.mrb[72].mxu0 %vm421_vm1, %v18210_v36  ;;  %v31050_v36 = vpop.f32.mrb[24].mxu1 }
 0x569   :  { %22478 = vmatprep.mubr.msk.f32.mxu0 %vm421_vm1, %v18211_v49 }
 0x56c   :  { %22479 = vmatmul.mubr.msk.f32.gmra.mrb[74].mxu0 %vm421_vm1, %v18212_v46  ;;  %v31052_v46 = vpop.f32.mrb[25].mxu1 }
 0x56d   :  { %22481 = vmatprep.mubr.msk.f32.mxu0 %vm421_vm1, %v18213_v50 }
 0x570   :  { %22482 = vmatmul.mubr.msk.f32.gmra.mrb[76].mxu0 %vm421_vm1, %v18214_v11  ;;  %v31058_v11 = vld [vmem:[%s34865_s2] ss:$0 sm:$0xff] }
 0x571   :  { %22484 = vmatprep.mubr.msk.f32.mxu0 %vm421_vm1, %v18215_v52  ;;  %v18248_v52 = vld [vmem:[%s34863_s0 + $0x478] sm:$0xff] }
 0x574   :  { %22485 = vmatmul.mubr.msk.f32.gmra.mrb[78].mxu0 %vm421_vm1, %v18216_v53  ;;  %v18249_v53 = vld [vmem:[%s34863_s0 + $0x480] sm:$0xff] }
 0x575   :  { %22487 = vmatprep.mubr.msk.f32.mxu0 %vm421_vm1, %v35360_v54  ;;  %v31067_v54 = vpop.f32.mrb[26].mxu1 }
 0x578   :  { %22488 = vmatmul.mubr.msk.f32.gmra.mrb[80].mxu0 %vm421_vm1, %v35361_v55 }
 0x579   :  { %22490 = vmatprep.mubr.msk.f32.mxu0 %vm421_vm1, %v35362_v57  ;;  %v31069_v57 = vpop.f32.mrb[27].mxu1 }
 0x57c   :  { %22491 = vmatmul.mubr.msk.f32.gmra.mrb[82].mxu0 %vm421_vm1, %v35363_v59 }
 0x57d   :  { %22493 = vmatprep.mubr.msk.f32.mxu0 %vm421_vm1, %v18221_v58 }
 0x580   :  { %22494 = vmatmul.mubr.msk.f32.gmra.mrb[84].mxu0 %vm421_vm1, %v18222_v61 }
 0x581   :  { %22496 = vmatprep.mubr.msk.f32.mxu0 %vm421_vm1, %v18223_v62 }
 0x584   :  { %22497 = vmatmul.mubr.msk.f32.gmra.mrb[86].mxu0 %vm421_vm1, %v18224_v7 }
 0x585   :  { %22499 = vmatprep.mubr.msk.f32.mxu0 %vm421_vm1, %v18225_v14  ;;  %v18250_v14 = vld [vmem:[%s34863_s0 + $0x488] sm:$0xff] }
 0x588   :  { %22500 = vmatmul.mubr.msk.f32.gmra.mrb[88].mxu0 %vm421_vm1, %v18226_v21 }
 0x589   :  { %22502 = vmatprep.mubr.msk.f32.mxu0 %vm421_vm1, %v18227_v23  ;;  %v18251_v23 = vld [vmem:[%s34863_s0 + $0x490] sm:$0xff] }
 0x58c   :  { %22503 = vmatmul.mubr.msk.f32.gmra.mrb[90].mxu0 %vm421_vm1, %v18228_v29  ;;  %v31083_v29 = vpop.f32.mrb[28].mxu1 }
 0x58d   :  { %22505 = vmatprep.mubr.msk.f32.mxu0 %vm421_vm1, %v18229_v31 }
 0x590   :  { %22506 = vmatmul.mubr.msk.f32.gmra.mrb[92].mxu0 %vm421_vm1, %v18230_v2 }
 0x591   :  { %22508 = vmatprep.mubr.msk.f32.mxu0 %vm421_vm1, %v18231_v47  ;;  %v31085_v47 = vpop.f32.mrb[29].mxu1 }
 0x594   :  { %22509 = vmatmul.mubr.msk.f32.gmra.mrb[94].mxu0 %vm421_vm1, %v18232_v35 }
 0x595   :  { %22511 = vmatprep.mubr.msk.f32.mxu0 %vm421_vm1, %v18233_v38 }
 0x598   :  { %22512 = vmatmul.mubr.msk.f32.gmra.mrb[96].mxu0 %vm421_vm1, %v18234_v16 }
 0x599   :  { %22514 = vmatprep.mubr.msk.f32.mxu0 %vm421_vm1, %v18235_v37 }
 0x59c   :  { %22515 = vmatmul.mubr.msk.f32.gmra.mrb[98].mxu0 %vm421_vm1, %v18236_v41 }
 0x59d   :  { %22517 = vmatprep.mubr.msk.f32.mxu0 %vm421_vm1, %v18237_v42  ;;  %v18252_v42 = vld [vmem:[%s34863_s0 + $0x498] sm:$0xff] }
 0x5a0   :  { %22518 = vmatmul.mubr.msk.f32.gmra.mrb[100].mxu0 %vm421_vm1, %v18238_v63 }
 0x5a1   :  { %22520 = vmatprep.mubr.msk.f32.mxu0 %vm421_vm1, %v18239_v1  ;;  %v18253_v1 = vld [vmem:[%s34863_s0 + $0x4a0] sm:$0xff] }
 0x5a4   :  { %22521 = vmatmul.mubr.msk.f32.gmra.mrb[102].mxu0 %vm421_vm1, %v18240_v6  ;;  %v31099_v6 = vpop.f32.mrb[30].mxu1 }
 0x5a5   :  { %22523 = vmatprep.mubr.msk.f32.mxu0 %vm421_vm1, %v18241_v8 }
 0x5a8   :  { %22524 = vmatmul.mubr.msk.f32.gmra.mrb[104].mxu0 %vm421_vm1, %v18242_v15 }
 0x5a9   :  { %22526 = vmatprep.mubr.msk.f32.mxu0 %vm421_vm1, %v18243_v17  ;;  %v31101_v17 = vpop.f32.mrb[31].mxu1 }
 0x5ab   :  { %v22369_v26 = vpop.f32.mrb[0].mxu0 }
 0x5ac   :  { %v8453_v30 = vpop.f32.mrb[1].mxu0  ;;  %22527 = vmatmul.mubr.msk.f32.gmra.mrb[106].mxu0 %vm421_vm1, %v18244_v45  ;;  %v9612_v58 = vadd.f32 %v22369_v26, %v31058_v11 }
 0x5ad   :  { %22529 = vmatprep.mubr.msk.f32.mxu0 %vm421_vm1, %v18245_v51  ;;  %v9611_v62 = vadd.f32 %v31058_v11, %v8453_v30  ;;  %v18254_v30 = vld [vmem:[%s34863_s0 + $0x4a8] sm:$0xff] }
 0x5af   :  { %v22372_v49 = vpop.f32.mrb[2].mxu0 }
 0x5b0   :  { %v8463_v50 = vpop.f32.mrb[3].mxu0  ;;  %22530 = vmatmul.mubr.msk.f32.gmra.mrb[108].mxu0 %vm421_vm1, %v18246_v32  ;;  %v9614_v35 = vadd.f32 %v22372_v49, %v31058_v11  ;;  %v31111_v49 = vpop.f32.mrb[32].mxu1 }
 0x5b1   :  { %22532 = vmatprep.mubr.msk.f32.mxu0 %vm421_vm1, %v18247_v34  ;;  %v9613_v37 = vadd.f32 %v31058_v11, %v8463_v50  ;;  %v18255_v34 = vld [vmem:[%s34863_s0 + $0x4b0] sm:$0xff] }
 0x5b3   :  { %v22375_v55 = vpop.f32.mrb[4].mxu0 }
 0x5b4   :  { %v9616_v59 = vadd.f32 %v22375_v55, %v31058_v11  ;;  %v8473_v61 = vpop.f32.mrb[5].mxu0  ;;  %22533 = vmatmul.mubr.msk.f32.gmra.mrb[110].mxu0 %vm421_vm1, %v18248_v52 }
 0x5b5   :  { %v9615_v7 = vadd.f32 %v31058_v11, %v8473_v61  ;;  %22535 = vmatprep.mubr.msk.f32.mxu0 %vm421_vm1, %v18249_v53  ;;  %v31113_v53 = vpop.f32.mrb[33].mxu1 }
 0x5b6   :  { %v9804_v21 = vmax.f32 %v9612_v58, %v9616_v59  ;;  %v18256_v58 = vld [vmem:[%s34863_s0 + $0x4b8] sm:$0xff]  ;;  %v18257_v59 = vld [vmem:[%s34863_s0 + $0x4c0] sm:$0xff]  ;;  %v31123_v61 = vpop.f32.mrb[34].mxu1 }
 0x5b7   :  { %v9803_v31 = vmax.f32 %v9611_v62, %v9615_v7  ;;  %v22378_v2 = vpop.f32.mrb[6].mxu0  ;;  %v31125_v7 = vpop.f32.mrb[35].mxu1 }
 0x5b8   :  { %v9618_v38 = vadd.f32 %v22378_v2, %v31058_v11  ;;  %v8483_v16 = vpop.f32.mrb[7].mxu0  ;;  %22536 = vmatmul.mubr.msk.f32.gmra.mrb[112].mxu0 %vm421_vm1, %v18250_v14 }
 0x5b9   :  { %v9617_v41 = vadd.f32 %v31058_v11, %v8483_v16  ;;  %22538 = vmatprep.mubr.msk.f32.mxu0 %vm421_vm1, %v18251_v23  ;;  %v18259_v16 = vld [vmem:[%s34863_s0 + $0x4d0] sm:$0xff] }
 0x5ba   :  { %v9806_v63 = vmax.f32 %v9614_v35, %v9618_v38  ;;  %v18258_v35 = vld [vmem:[%s34863_s0 + $0x4c8] sm:$0xff] }
 0x5bb   :  { %v9805_v8 = vmax.f32 %v9613_v37, %v9617_v41  ;;  %v22381_v15 = vpop.f32.mrb[8].mxu0  ;;  %v31139_v37 = vpop.f32.mrb[36].mxu1 }
 0x5bc   :  { %v9900_v45 = vmax.f32 %v9804_v21, %v9806_v63  ;;  %v8493_v51 = vpop.f32.mrb[9].mxu0  ;;  %22539 = vmatmul.mubr.msk.f32.gmra.mrb[114].mxu0 %vm421_vm1, %v18252_v42  ;;  %v9620_v14 = vadd.f32 %v22381_v15, %v31058_v11  ;;  %v31141_v63 = vpop.f32.mrb[37].mxu1 }
 0x5bd   :  { %v9899_v26 = vmax.f32 %v9803_v31, %v9805_v8  ;;  %22541 = vmatprep.mubr.msk.f32.mxu0 %vm421_vm1, %v18253_v1  ;;  %v9619_v31 = vadd.f32 %v31058_v11, %v8493_v51 }
 0x5be   :  { %v9948_v32 = vmax.f32 %v9900_v45, 0.0 }
 0x5bf   :  { %v9947_v50 = vmax.f32 %v9899_v26, 0.0  ;;  %v22384_v52 = vpop.f32.mrb[10].mxu0 }
 0x5c0   :  { %9996 = vst [vmem:[#allocation2 + $0x8] sm:$0xf] %v9948_v32  ;;  %v8503_v55 = vpop.f32.mrb[11].mxu0  ;;  %22542 = vmatmul.mubr.msk.f32.gmra.mrb[116].mxu0 %vm421_vm1, %v18254_v30  ;;  %v9622_v1 = vadd.f32 %v22384_v52, %v31058_v11  ;;  %v18260_v30 = vld [vmem:[%s34863_s0 + $0x4d8] sm:$0xff] }
 0x5c1   :  { %9995 = vst [vmem:[#allocation2] sm:$0xff] %v9947_v50  ;;  %22544 = vmatprep.mubr.msk.f32.mxu0 %vm421_vm1, %v18255_v34  ;;  %v9621_v51 = vadd.f32 %v31058_v11, %v8503_v55  ;;  %v18261_v34 = vld [vmem:[%s34863_s0 + $0x4e0] sm:$0xff]  ;;  %v31155_v50 = vpop.f32.mrb[38].mxu1 }
 0x5c3   :  { %v22387_v62 = vpop.f32.mrb[12].mxu0 }
 0x5c4   :  { %v9624_v21 = vadd.f32 %v22387_v62, %v31058_v11  ;;  %v8513_v23 = vpop.f32.mrb[13].mxu0  ;;  %22545 = vmatmul.mubr.msk.f32.gmra.mrb[118].mxu0 %vm421_vm1, %v18256_v58 }
 0x5c5   :  { %v9623_v2 = vadd.f32 %v31058_v11, %v8513_v23  ;;  %22547 = vmatprep.mubr.msk.f32.mxu0 %vm421_vm1, %v18257_v59  ;;  %v31157_v59 = vpop.f32.mrb[39].mxu1 }
 0x5c6   :  { %v9808_v38 = vmax.f32 %v9620_v14, %v9624_v21  ;;  %v18262_v21 = vld [vmem:[%s34863_s0 + $0x4e8] sm:$0xff] }
 0x5c7   :  { %v9807_v41 = vmax.f32 %v9619_v31, %v9623_v2  ;;  %v22390_v42 = vpop.f32.mrb[14].mxu0  ;;  %v18263_v31 = vld [vmem:[%s34863_s0 + $0x4f0] sm:$0xff]  ;;  %v31167_v2 = vpop.f32.mrb[40].mxu1 }
 0x5c8   :  { %v9626_v8 = vadd.f32 %v22390_v42, %v31058_v11  ;;  %v8523_v15 = vpop.f32.mrb[15].mxu0  ;;  %22548 = vmatmul.mubr.msk.f32.gmra.mrb[120].mxu0 %vm421_vm1, %v18258_v35  ;;  %v10075_v45 = vld [vmem:[#allocation2 + $0x1] sm:$0xff] }
 0x5c9   :  { %v9625_v26 = vadd.f32 %v31058_v11, %v8523_v15  ;;  %22687 = vmatprep.mubr.f32.mxu1 %v10075_v45  ;;  %22550 = vmatprep.mubr.msk.f32.mxu0 %vm421_vm1, %v18259_v16 }
 0x5ca   :  { %v9810_v32 = vmax.f32 %v9622_v1, %v9626_v8  ;;  %v18265_v1 = vld [vmem:[%s34863_s0 + $0x500] sm:$0xff] }
 0x5cb   :  { %v9809_v52 = vmax.f32 %v9621_v51, %v9625_v26  ;;  %v22393_v58 = vpop.f32.mrb[16].mxu0 }
 0x5cc   :  { %v9902_v55 = vmax.f32 %v9808_v38, %v9810_v32  ;;  %v8533_v62 = vpop.f32.mrb[17].mxu0  ;;  %22551 = vmatmul.mubr.msk.f32.gmra.mrb[122].mxu0 %vm421_vm1, %v18260_v30  ;;  %v31169_v38 = vpop.f32.mrb[41].mxu1  ;;  %v9628_v51 = vadd.f32 %v22393_v58, %v31058_v11  ;;  %v18267_v58 = vld [vmem:[%s34863_s0 + $0x510] sm:$0xff] }
 0x5cd   :  { %v9901_v14 = vmax.f32 %v9807_v41, %v9809_v52  ;;  %22553 = vmatprep.mubr.msk.f32.mxu0 %vm421_vm1, %v18261_v34  ;;  %v18264_v41 = vld [vmem:[%s34863_s0 + $0x4f8] sm:$0xff]  ;;  %v31179_v8 = vpop.f32.mrb[42].mxu1  ;;  %v9627_v32 = vadd.f32 %v31058_v11, %v8533_v62  ;;  %v18266_v52 = vld [vmem:[%s34863_s0 + $0x508] sm:$0xff] }
 0x5ce   :  { %v9950_v23 = vmax.f32 %v9902_v55, 0.0  ;;  %v31181_v45 = vpop.f32.mrb[43].mxu1 }
 0x5cf   :  { %v9949_v35 = vmax.f32 %v9901_v14, 0.0  ;;  %v22396_v16 = vpop.f32.mrb[18].mxu0  ;;  %v31195_v14 = vpop.f32.mrb[44].mxu1 }
 0x5d0   :  { %9998 = vst [vmem:[#allocation2 + $0x18] sm:$0xf] %v9950_v23  ;;  %v8543_v42 = vpop.f32.mrb[19].mxu0  ;;  %22554 = vmatmul.mubr.msk.f32.gmra.mrb[124].mxu0 %vm421_vm1, %v18262_v21  ;;  %v9630_v62 = vadd.f32 %v22396_v16, %v31058_v11  ;;  %v18269_v16 = vld [vmem:[%s34863_s0 + $0x520] sm:$0xff] }
 0x5d1   :  { %9997 = vst [vmem:[#allocation2 + $0x10] sm:$0xff] %v9949_v35  ;;  %22556 = vmatprep.mubr.msk.f32.mxu0 %vm421_vm1, %v18263_v31  ;;  %v31197_v31 = vpop.f32.mrb[45].mxu1 }
 0x5d3   :  { %v22399_v15 = vpop.f32.mrb[20].mxu0 }
 0x5d4   :  { %v9632_v26 = vadd.f32 %v22399_v15, %v31058_v11  ;;  %v8553_v30 = vpop.f32.mrb[21].mxu0  ;;  %22557 = vmatmul.mubr.msk.f32.gmra.mrb[126].mxu0 %vm421_vm1, %v18264_v41  ;;  %v9629_v15 = vadd.f32 %v31058_v11, %v8543_v42 }
 0x5d5   :  { %v9631_v34 = vadd.f32 %v31058_v11, %v8553_v30  ;;  %22559 = vmatprep.mubr.msk.f32.mxu0 %vm421_vm1, %v18265_v1 }
 0x5d6   :  { %v9812_v55 = vmax.f32 %v9628_v51, %v9632_v26  ;;  %v18268_v26 = vld [vmem:[%s34863_s0 + $0x518] sm:$0xff] }
 0x5d7   :  { %v9811_v21 = vmax.f32 %v9627_v32, %v9631_v34  ;;  %v22402_v23 = vpop.f32.mrb[22].mxu0  ;;  %v31211_v32 = vpop.f32.mrb[46].mxu1 }
 0x5d8   :  { %v9634_v35 = vadd.f32 %v22402_v23, %v31058_v11  ;;  %v8563_v41 = vpop.f32.mrb[23].mxu0  ;;  %22560 = vmatmul.mubr.msk.f32.gmra.mrb[128].mxu0 %vm421_vm1, %v18266_v52  ;;  %v10076_v1 = vld [vmem:[#allocation2 + $0x11] sm:$0xff]  ;;  %35364 = vst [vmem:[#allocation54_spill] sm:$0xff] %v31211_v32  ;;  %v31213_v23 = vpop.f32.mrb[47].mxu1 }
 0x5d9   :  { %v9633_v51 = vadd.f32 %v31058_v11, %v8563_v41  ;;  %22688 = vmatmul.mubr.f32.vlgmr.msra.gmra.mrb[150].mxu1 %v10076_v1  ;;  %22562 = vmatprep.mubr.msk.f32.mxu0 %vm421_vm1, %v18267_v58  ;;  %35365 = vst [vmem:[#allocation55_spill] sm:$0xff] %v31213_v23  ;;  %v18271_v1 = vld [vmem:[%s34863_s0 + $0x530] sm:$0xff] }
 0x5da   :  { %v9814_v30 = vmax.f32 %v9630_v62, %v9634_v35  ;;  %v18270_v62 = vld [vmem:[%s34863_s0 + $0x528] sm:$0xff] }
 0x5db   :  { %v9813_v34 = vmax.f32 %v9629_v15, %v9633_v51  ;;  %v22405_v52 = vpop.f32.mrb[24].mxu0  ;;  %v31223_v15 = vpop.f32.mrb[48].mxu1 }
 0x5dc   :  { %v9904_v42 = vmax.f32 %v9812_v55, %v9814_v30  ;;  %v8573_v41 = vpop.f32.mrb[25].mxu0  ;;  %22563 = vmatmul.mubr.msk.f32.gmra.mrb[130].mxu0 %vm421_vm1, %v18268_v26  ;;  %35366 = vst [vmem:[#allocation56_spill] sm:$0xff] %v31223_v15  ;;  %v31225_v55 = vpop.f32.mrb[49].mxu1  ;;  %v18273_v30 = vld [vmem:[%s34863_s0 + $0x540] sm:$0xff] }
 0x5dd   :  { %v9903_v58 = vmax.f32 %v9811_v21, %v9813_v34  ;;  %22565 = vmatprep.mubr.msk.f32.mxu0 %vm421_vm1, %v18269_v16  ;;  %35367 = vst [vmem:[#allocation57_spill] sm:$0xff] %v31225_v55  ;;  %v18272_v21 = vld [vmem:[%s34863_s0 + $0x538] sm:$0xff]  ;;  %v31235_v16 = vpop.f32.mrb[50].mxu1 }
 0x5de   :  { %v9952_v35 = vmax.f32 %v9904_v42, 0.0  ;;  %35368 = vst [vmem:[#allocation58_spill] sm:$0xff] %v31235_v16  ;;  %v31237_v42 = vpop.f32.mrb[51].mxu1  ;;  %v18274_v16 = vld [vmem:[%s34863_s0 + $0x548] sm:$0xff] }
 0x5df   :  { %v9951_v51 = vmax.f32 %v9903_v58, 0.0  ;;  %v22408_v23 = vpop.f32.mrb[26].mxu0  ;;  %35369 = vst [vmem:[#allocation59_spill] sm:$0xff] %v31237_v42  ;;  %v9636_v58 = vadd.f32 %v22405_v52, %v31058_v11  ;;  %v18275_v52 = vld [vmem:[%s34863_s0 + $0x550] sm:$0xff]  ;;  %v31251_v42 = vpop.f32.mrb[52].mxu1 }
 0x5e0   :  { %10000 = vst [vmem:[#allocation2 + $0x28] sm:$0xf] %v9952_v35  ;;  %v8583_v26 = vpop.f32.mrb[27].mxu0  ;;  %22566 = vmatmul.mubr.msk.f32.gmra.mrb[132].mxu0 %vm421_vm1, %v18270_v62  ;;  %35370 = vst [vmem:[#allocation60_spill] sm:$0xff] %v31251_v42 }
 0x5e1   :  { %9999 = vst [vmem:[#allocation2 + $0x20] sm:$0xff] %v9951_v51  ;;  %22568 = vmatprep.mubr.msk.f32.mxu0 %vm421_vm1, %v18271_v1  ;;  %v9635_v1 = vadd.f32 %v31058_v11, %v8573_v41  ;;  %v9638_v41 = vadd.f32 %v22408_v23, %v31058_v11  ;;  %v18277_v23 = vld [vmem:[%s34863_s0 + $0x560] sm:$0xff] }
 0x5e3   :  { %v22411_v34 = vpop.f32.mrb[28].mxu0 }
 0x5e4   :  { %v9640_v62 = vadd.f32 %v22411_v34, %v31058_v11  ;;  %v8593_v35 = vpop.f32.mrb[29].mxu0  ;;  %22569 = vmatmul.mubr.msk.f32.gmra.mrb[134].mxu0 %vm421_vm1, %v18272_v21  ;;  %v31253_v21 = vpop.f32.mrb[53].mxu1 }
 0x5e5   :  { %v9639_v51 = vadd.f32 %v31058_v11, %v8593_v35  ;;  %22571 = vmatprep.mubr.msk.f32.mxu0 %vm421_vm1, %v18273_v30  ;;  %35371 = vst [vmem:[#allocation61_spill] sm:$0xff] %v31253_v21 }
 0x5e6   :  { %v9816_v55 = vmax.f32 %v9636_v58, %v9640_v62  ;;  %v9637_v58 = vadd.f32 %v31058_v11, %v8583_v26 }
 0x5e7   :  { %v9815_v34 = vmax.f32 %v9635_v1, %v9639_v51  ;;  %v22414_v15 = vpop.f32.mrb[30].mxu0  ;;  %v18276_v1 = vld [vmem:[%s34863_s0 + $0x558] sm:$0xff] }
 0x5e8   :  { %v9642_v35 = vadd.f32 %v22414_v15, %v31058_v11  ;;  %v8603_v30 = vpop.f32.mrb[31].mxu0  ;;  %22572 = vmatmul.mubr.msk.f32.gmra.mrb[136].mxu0 %vm421_vm1, %v18274_v16  ;;  %v10077_v32 = vld [vmem:[#allocation2 + $0x21] sm:$0xff]  ;;  %v31267_v15 = vpop.f32.mrb[54].mxu1 }
 0x5e9   :  { %v9641_v62 = vadd.f32 %v31058_v11, %v8603_v30  ;;  %22690 = vmatprep.mubr.f32.mxu1 %v10077_v32  ;;  %22574 = vmatprep.mubr.msk.f32.mxu0 %vm421_vm1, %v18275_v52  ;;  %35372 = vst [vmem:[#allocation62_spill] sm:$0xff] %v31267_v15  ;;  %v31269_v42 = vpop.f32.mrb[55].mxu1  ;;  %v18278_v52 = vld [vmem:[%s34863_s0 + $0x568] sm:$0xff] }
 0x5ea   :  { %v9818_v51 = vmax.f32 %v9638_v41, %v9642_v35  ;;  %35373 = vst [vmem:[#allocation63_spill] sm:$0xff] %v31269_v42  ;;  %v18279_v35 = vld [vmem:[%s34863_s0 + $0x570] sm:$0xff] }
 0x5eb   :  { %v9817_v16 = vmax.f32 %v9637_v58, %v9641_v62  ;;  %v22417_v21 = vpop.f32.mrb[32].mxu0  ;;  %v31279_v58 = vpop.f32.mrb[56].mxu1 }
 0x5ec   :  { %v9906_v26 = vmax.f32 %v9816_v55, %v9818_v51  ;;  %v8613_v30 = vpop.f32.mrb[33].mxu0  ;;  %22575 = vmatmul.mubr.msk.f32.gmra.mrb[138].mxu0 %vm421_vm1, %v18276_v1  ;;  %35374 = vst [vmem:[#allocation64_spill] sm:$0xff] %v31279_v58  ;;  %v31281_v55 = vpop.f32.mrb[57].mxu1  ;;  %v18281_v51 = vld [vmem:[%s34863_s0 + $0x580] sm:$0xff] }
 0x5ed   :  { %v9905_v32 = vmax.f32 %v9815_v34, %v9817_v16  ;;  %22577 = vmatprep.mubr.msk.f32.mxu0 %vm421_vm1, %v18277_v23  ;;  %35375 = vst [vmem:[#allocation65_spill] sm:$0xff] %v31281_v55  ;;  %v18280_v34 = vld [vmem:[%s34863_s0 + $0x578] sm:$0xff]  ;;  %v31291_v23 = vpop.f32.mrb[58].mxu1 }
 0x5ee   :  { %v9954_v41 = vmax.f32 %v9906_v26, 0.0  ;;  %35376 = vst [vmem:[#allocation66_spill] sm:$0xff] %v31291_v23  ;;  %v31293_v26 = vpop.f32.mrb[59].mxu1  ;;  %v18282_v23 = vld [vmem:[%s34863_s0 + $0x588] sm:$0xff] }
 0x5ef   :  { %v9953_v62 = vmax.f32 %v9905_v32, 0.0  ;;  %v22420_v42 = vpop.f32.mrb[34].mxu0  ;;  %35377 = vst [vmem:[#allocation67_spill] sm:$0xff] %v31293_v26  ;;  %v9644_v32 = vadd.f32 %v22417_v21, %v31058_v11  ;;  %v18283_v21 = vld [vmem:[%s34863_s0 + $0x590] sm:$0xff]  ;;  %v31307_v26 = vpop.f32.mrb[60].mxu1 }
 0x5f0   :  { %10002 = vst [vmem:[#allocation2 + $0x38] sm:$0xf] %v9954_v41  ;;  %v8623_v1 = vpop.f32.mrb[35].mxu0  ;;  %22578 = vmatmul.mubr.msk.f32.gmra.mrb[140].mxu0 %vm421_vm1, %v18278_v52  ;;  %35378 = vst [vmem:[#allocation68_spill] sm:$0xff] %v31307_v26 }
 0x5f1   :  { %10001 = vst [vmem:[#allocation2 + $0x30] sm:$0xff] %v9953_v62  ;;  %22580 = vmatprep.mubr.msk.f32.mxu0 %vm421_vm1, %v18279_v35  ;;  %v9643_v35 = vadd.f32 %v31058_v11, %v8613_v30  ;;  %v9646_v30 = vadd.f32 %v22420_v42, %v31058_v11  ;;  %v18285_v42 = vld [vmem:[%s34863_s0 + $0x5a0] sm:$0xff] }
 0x5f3   :  { %v22423_v16 = vpop.f32.mrb[36].mxu0 }
 0x5f4   :  { %v9648_v52 = vadd.f32 %v22423_v16, %v31058_v11  ;;  %v8633_v41 = vpop.f32.mrb[37].mxu0  ;;  %22581 = vmatmul.mubr.msk.f32.gmra.mrb[142].mxu0 %vm421_vm1, %v18280_v34  ;;  %v31309_v34 = vpop.f32.mrb[61].mxu1 }
 0x5f5   :  { %v9647_v62 = vadd.f32 %v31058_v11, %v8633_v41  ;;  %22583 = vmatprep.mubr.msk.f32.mxu0 %vm421_vm1, %v18281_v51  ;;  %35379 = vst [vmem:[#allocation69_spill] sm:$0xff] %v31309_v34 }
 0x5f6   :  { %v9820_v55 = vmax.f32 %v9644_v32, %v9648_v52  ;;  %v9645_v32 = vadd.f32 %v31058_v11, %v8623_v1 }
 0x5f7   :  { %v9819_v16 = vmax.f32 %v9643_v35, %v9647_v62  ;;  %v22426_v58 = vpop.f32.mrb[38].mxu0  ;;  %v18284_v35 = vld [vmem:[%s34863_s0 + $0x598] sm:$0xff] }
 0x5f8   :  { %v9650_v41 = vadd.f32 %v22426_v58, %v31058_v11  ;;  %v8643_v51 = vpop.f32.mrb[39].mxu0  ;;  %22584 = vmatmul.mubr.msk.f32.gmra.mrb[144].mxu0 %vm421_vm1, %v18282_v23  ;;  %v10078_v15 = vld [vmem:[#allocation2 + $0x31] sm:$0xff]  ;;  %v31323_v58 = vpop.f32.mrb[62].mxu1 }
 0x5f9   :  { %v9649_v52 = vadd.f32 %v31058_v11, %v8643_v51  ;;  %22691 = vmatmul.mubr.f32.gmra.mrb[152].mxu1 %v10078_v15  ;;  %22586 = vmatprep.mubr.msk.f32.mxu0 %vm421_vm1, %v18283_v21  ;;  %v31325_v26 = vpop.f32.mrb[63].mxu1  ;;  %v18286_v21 = vld [vmem:[%s34863_s0 + $0x5a8] sm:$0xff] }
 0x5fa   :  { %v9822_v62 = vmax.f32 %v9646_v30, %v9650_v41  ;;  %35380 = vst [vmem:[#allocation70_spill] sm:$0xff] %v31325_v26  ;;  %v18287_v41 = vld [vmem:[%s34863_s0 + $0x5b0] sm:$0xff] }
 0x5fb   :  { %v9821_v23 = vmax.f32 %v9645_v32, %v9649_v52  ;;  %v22429_v34 = vpop.f32.mrb[40].mxu0  ;;  %v31335_v32 = vpop.f32.mrb[64].mxu1 }
 0x5fc   :  { %v9908_v1 = vmax.f32 %v9820_v55, %v9822_v62  ;;  %v8653_v51 = vpop.f32.mrb[41].mxu0  ;;  %22587 = vmatmul.mubr.msk.f32.gmra.mrb[146].mxu0 %vm421_vm1, %v18284_v35  ;;  %v31337_v55 = vpop.f32.mrb[65].mxu1 }
 0x5fd   :  { %v9907_v15 = vmax.f32 %v9819_v16, %v9821_v23  ;;  %22589 = vmatprep.mubr.msk.f32.mxu0 %vm421_vm1, %v18285_v42  ;;  %35381 = vst [vmem:[#allocation71_spill] sm:$0xff] %v31337_v55  ;;  %v18288_v42 = vld [vmem:[%s34863_s0 + $0x5b8] sm:$0xff]  ;;  %v18289_v23 = vld [vmem:[%s34863_s0 + $0x5c0] sm:$0xff] }
 0x5fe   :  { %v9956_v30 = vmax.f32 %v9908_v1, 0.0  ;;  %v31349_v1 = vpop.f32.mrb[66].mxu1 }
 0x5ff   :  { %v9955_v52 = vmax.f32 %v9907_v15, 0.0  ;;  %v22432_v26 = vpop.f32.mrb[42].mxu0  ;;  %35382 = vst [vmem:[#allocation72_spill] sm:$0xff] %v31349_v1 }
 0x600   :  { %10004 = vst [vmem:[#allocation2 + $0x48] sm:$0xf] %v9956_v30  ;;  %v25860_v16 = vadd.f32 %v22432_v26, %v30906_v0  ;;  %v8663_v35 = vpop.f32.mrb[43].mxu0  ;;  %22590 = vmatmul.mubr.msk.f32.gmra.mrb[148].mxu0 %vm421_vm1, %v18286_v21  ;;  %v31351_v0 = vpop.f32.mrb[67].mxu1  ;;  %v18290_v30 = vld [vmem:[%s34863_s0 + $0x5c8] sm:$0xff] }
 0x601   :  { %10003 = vst [vmem:[#allocation2 + $0x40] sm:$0xff] %v9955_v52  ;;  %v25861_v62 = vadd.f32 %v8663_v35, %v30908_v4  ;;  %22592 = vmatprep.mubr.msk.f32.mxu0 %vm421_vm1, %v18287_v41  ;;  %35383 = vst [vmem:[#allocation73_spill] sm:$0xff] %v31351_v0  ;;  %v9652_v41 = vadd.f32 %v22429_v34, %v31058_v11  ;;  %v18291_v35 = vld [vmem:[%s34863_s0 + $0x5d0] sm:$0xff] }
 0x603   :  { %v22435_v15 = vpop.f32.mrb[44].mxu0 }
 0x604   :  { %v25862_v26 = vadd.f32 %v22435_v15, %v30918_v18  ;;  %v8673_v21 = vpop.f32.mrb[45].mxu0  ;;  %22593 = vmatmul.mubr.msk.f32.gmra.mrb[150].mxu0 %vm421_vm1, %v18288_v42  ;;  %v31365_v18 = vpop.f32.mrb[68].mxu1  ;;  %v9651_v42 = vadd.f32 %v31058_v11, %v8653_v51  ;;  %v18292_v51 = vld [vmem:[%s34863_s0 + $0x5d8] sm:$0xff] }
 0x605   :  { %v25863_v4 = vadd.f32 %v8673_v21, %v30920_v19  ;;  %22595 = vmatprep.mubr.msk.f32.mxu0 %vm421_vm1, %v18289_v23  ;;  %v31369_v23 = vpop.f32.mrb[69].mxu1 }
 0x606   :  { %v9656_v52 = vadd.f32 %v25862_v26, %v31058_v11 }
 0x607   :  { %v9655_v19 = vadd.f32 %v25863_v4, %v31058_v11  ;;  %v22438_v15 = vpop.f32.mrb[46].mxu0  ;;  %v9654_v4 = vadd.f32 %v25860_v16, %v31058_v11 }
 0x608   :  { %v9824_v21 = vmax.f32 %v9652_v41, %v9656_v52  ;;  %v25864_v0 = vadd.f32 %v22438_v15, %v30930_v25  ;;  %v8683_v1 = vpop.f32.mrb[47].mxu0  ;;  %22596 = vmatmul.mubr.msk.f32.gmra.mrb[152].mxu0 %vm421_vm1, %v18290_v30  ;;  %v10079_v34 = vld [vmem:[#allocation2 + $0x41] sm:$0xff]  ;;  %v31380_v52 = vpop.f32.mrb[70].mxu1  ;;  %v9653_v25 = vadd.f32 %v25861_v62, %v31058_v11 }
 0x609   :  { %v9823_v26 = vmax.f32 %v9651_v42, %v9655_v19  ;;  %v25865_v55 = vadd.f32 %v8683_v1, %v30932_v27  ;;  %22693 = vmatprep.mubr.f32.mxu1 %v10079_v34  ;;  %22598 = vmatprep.mubr.msk.f32.mxu0 %vm421_vm1, %v18291_v35  ;;  %v31384_v19 = vpop.f32.mrb[71].mxu1 }
 0x60a   :  { %v9658_v41 = vadd.f32 %v25864_v0, %v31058_v11  ;;  %35384 = vst [vmem:[#allocation74_spill] sm:$0xff] %v31384_v19  ;;  %v27029_v0 = vld [vmem:[%s34863_s0 + $0x5e0] sm:$0xff] }
 0x60b   :  { %v9657_v30 = vadd.f32 %v25865_v55, %v31058_v11  ;;  %v22441_v42 = vpop.f32.mrb[48].mxu0  ;;  %v31393_v55 = vpop.f32.mrb[72].mxu1 }
 0x60c   :  { %v9826_v27 = vmax.f32 %v9654_v4, %v9658_v41  ;;  %v25866_v1 = vadd.f32 %v22441_v42, %v30942_v33  ;;  %v8693_v35 = vpop.f32.mrb[49].mxu0  ;;  %22599 = vmatmul.mubr.msk.f32.gmra.mrb[154].mxu0 %vm421_vm1, %v18292_v51  ;;  %v31395_v4 = vpop.f32.mrb[73].mxu1 }
 0x60d   :  { %v9825_v15 = vmax.f32 %v9653_v25, %v9657_v30  ;;  %v25867_v16 = vadd.f32 %v8693_v35, %v30944_v44  ;;  %22601 = vmatprep.mubr.msk.f32.mxu0 %vm421_vm1, %v27029_v0  ;;  %v27030_v44 = vld [vmem:[%s34863_s0 + $0x5e8] sm:$0xff] }
 0x60e   :  { %v9910_v62 = vmax.f32 %v9824_v21, %v9826_v27  ;;  %v27031_v21 = vld [vmem:[%s34863_s0 + $0x5f0] sm:$0xff]  ;;  %v9660_v0 = vadd.f32 %v25866_v1, %v31058_v11 }
 0x60f   :  { %v9909_v34 = vmax.f32 %v9823_v26, %v9825_v15  ;;  %v22444_v19 = vpop.f32.mrb[50].mxu0  ;;  %v31407_v26 = vpop.f32.mrb[74].mxu1  ;;  %v27033_v15 = vld [vmem:[%s34863_s0 + $0x600] sm:$0xff] }
 0x610   :  { %v9958_v33 = vmax.f32 %v9910_v62, 0.0  ;;  %v25868_v41 = vadd.f32 %v22444_v19, %v30954_v9  ;;  %v8703_v51 = vpop.f32.mrb[51].mxu0  ;;  %22602 = vmatmul.mubr.msk.f32.gmra.mrb[156].mxu0 %vm421_vm1, %v27030_v44  ;;  %v31409_v42 = vpop.f32.mrb[75].mxu1 }
 0x611   :  { %v9957_v25 = vmax.f32 %v9909_v34, 0.0  ;;  %v25869_v30 = vadd.f32 %v8703_v51, %v30956_v12  ;;  %22604 = vmatprep.mubr.msk.f32.mxu0 %vm421_vm1, %v27031_v21  ;;  %v27032_v12 = vld [vmem:[%s34863_s0 + $0x5f8] sm:$0xff]  ;;  %v9659_v34 = vadd.f32 %v25867_v16, %v31058_v11  ;;  %v27035_v16 = vld [vmem:[%s34863_s0 + $0x610] sm:$0xff] }
 0x612   :  { %10006 = vst [vmem:[#allocation2 + $0x58] sm:$0xf] %v9958_v33 }
 0x613   :  { %10005 = vst [vmem:[#allocation2 + $0x50] sm:$0xff] %v9957_v25  ;;  %v22447_v9 = vpop.f32.mrb[52].mxu0 }
 0x614   :  { %v25870_v19 = vadd.f32 %v22447_v9, %v30966_v56  ;;  %v8713_v27 = vpop.f32.mrb[53].mxu0  ;;  %22605 = vmatmul.mubr.msk.f32.gmra.mrb[158].mxu0 %vm421_vm1, %v27032_v12  ;;  %v31423_v56 = vpop.f32.mrb[76].mxu1  ;;  %v27034_v9 = vld [vmem:[%s34863_s0 + $0x608] sm:$0xff] }
 0x615   :  { %v25871_v35 = vadd.f32 %v8713_v27, %v30968_v39  ;;  %22607 = vmatprep.mubr.msk.f32.mxu0 %vm421_vm1, %v27033_v15  ;;  %v31427_v44 = vpop.f32.mrb[77].mxu1  ;;  %v9662_v27 = vadd.f32 %v25868_v41, %v31058_v11  ;;  %v9661_v15 = vadd.f32 %v25869_v30, %v31058_v11  ;;  %v27036_v41 = vld [vmem:[%s34863_s0 + $0x618] sm:$0xff]  ;;  %v27037_v30 = vld [vmem:[%s34863_s0 + $0x620] sm:$0xff] }
 0x616   :  { %v9664_v62 = vadd.f32 %v25870_v19, %v31058_v11 }
 0x617   :  { %v9663_v33 = vadd.f32 %v25871_v35, %v31058_v11  ;;  %v22450_v51 = vpop.f32.mrb[54].mxu0  ;;  %v31441_v35 = vpop.f32.mrb[78].mxu1 }
 0x618   :  { %v9828_v39 = vmax.f32 %v9660_v0, %v9664_v62  ;;  %v25872_v25 = vadd.f32 %v22450_v51, %v30978_v48  ;;  %v8723_v21 = vpop.f32.mrb[55].mxu0  ;;  %22608 = vmatmul.mubr.msk.f32.gmra.mrb[160].mxu0 %vm421_vm1, %v27034_v9 }
 0x619   :  { %v9827_v1 = vmax.f32 %v9659_v34, %v9663_v33  ;;  %v25873_v19 = vadd.f32 %v8723_v21, %v30980_v40  ;;  %22610 = vmatprep.mubr.msk.f32.mxu0 %vm421_vm1, %v27035_v16  ;;  %v31445_v40 = vpop.f32.mrb[79].mxu1 }
 0x61a   :  { %v9666_v48 = vadd.f32 %v25872_v25, %v31058_v11  ;;  %v10080_v12 = vld [vmem:[#allocation2 + $0x51] sm:$0xff] }
 0x61b   :  { %v9665_v0 = vadd.f32 %v25873_v19, %v31058_v11  ;;  %v22453_v62 = vpop.f32.mrb[56].mxu0  ;;  %22694 = vmatmul.mubr.f32.gmra.mrb[154].mxu1 %v10080_v12  ;;  %v31457_v19 = vpop.f32.mrb[80].mxu1 }
 0x61c   :  { %v9830_v34 = vmax.f32 %v9662_v27, %v9666_v48  ;;  %v25874_v33 = vadd.f32 %v22453_v62, %v30990_v43  ;;  %v8733_v51 = vpop.f32.mrb[57].mxu0  ;;  %22611 = vmatmul.mubr.msk.f32.gmra.mrb[162].mxu0 %vm421_vm1, %v27036_v41  ;;  %v31459_v27 = vpop.f32.mrb[81].mxu1 }
 0x61d   :  { %v9829_v25 = vmax.f32 %v9661_v15, %v9665_v0  ;;  %v25875_v21 = vadd.f32 %v8733_v51, %v30992_v60  ;;  %22613 = vmatprep.mubr.msk.f32.mxu0 %vm421_vm1, %v27037_v30  ;;  %v27038_v60 = vld [vmem:[%s34863_s0 + $0x628] sm:$0xff]  ;;  %v27041_v30 = vld [vmem:[%s34863_s0 + $0x640] sm:$0xff] }
 0x61e   :  { %v9912_v9 = vmax.f32 %v9828_v39, %v9830_v34  ;;  %v27039_v39 = vld [vmem:[%s34863_s0 + $0x630] sm:$0xff] }
 0x61f   :  { %v9911_v43 = vmax.f32 %v9827_v1, %v9829_v25  ;;  %v22456_v16 = vpop.f32.mrb[58].mxu0  ;;  %v31471_v1 = vpop.f32.mrb[82].mxu1 }
 0x620   :  { %v9960_v48 = vmax.f32 %v9912_v9, 0.0  ;;  %v25876_v12 = vadd.f32 %v22456_v16, %v31002_v3  ;;  %v8743_v62 = vpop.f32.mrb[59].mxu0  ;;  %22614 = vmatmul.mubr.msk.f32.gmra.mrb[164].mxu0 %vm421_vm1, %v27038_v60  ;;  %v31473_v34 = vpop.f32.mrb[83].mxu1  ;;  %v9668_v9 = vadd.f32 %v25874_v33, %v31058_v11  ;;  %v9667_v16 = vadd.f32 %v25875_v21, %v31058_v11  ;;  %v27043_v21 = vld [vmem:[%s34863_s0 + $0x650] sm:$0xff] }
 0x621   :  { %v9959_v15 = vmax.f32 %v9911_v43, 0.0  ;;  %v25877_v0 = vadd.f32 %v8743_v62, %v31004_v5  ;;  %22616 = vmatprep.mubr.msk.f32.mxu0 %vm421_vm1, %v27039_v39  ;;  %v27040_v5 = vld [vmem:[%s34863_s0 + $0x638] sm:$0xff] }
 0x622   :  { %10008 = vst [vmem:[#allocation2 + $0x68] sm:$0xf] %v9960_v48 }
 0x623   :  { %10007 = vst [vmem:[#allocation2 + $0x60] sm:$0xff] %v9959_v15  ;;  %v22459_v3 = vpop.f32.mrb[60].mxu0 }
 0x624   :  { %v25878_v51 = vadd.f32 %v22459_v3, %v31014_v10  ;;  %v8753_v41 = vpop.f32.mrb[61].mxu0  ;;  %22617 = vmatmul.mubr.msk.f32.gmra.mrb[166].mxu0 %vm421_vm1, %v27040_v5  ;;  %v31487_v10 = vpop.f32.mrb[84].mxu1  ;;  %v27042_v3 = vld [vmem:[%s34863_s0 + $0x648] sm:$0xff] }
 0x625   :  { %v25879_v25 = vadd.f32 %v8753_v41, %v31016_v13  ;;  %22619 = vmatprep.mubr.msk.f32.mxu0 %vm421_vm1, %v27041_v30  ;;  %v31491_v60 = vpop.f32.mrb[85].mxu1  ;;  %v9670_v41 = vadd.f32 %v25876_v12, %v31058_v11  ;;  %v9669_v30 = vadd.f32 %v25877_v0, %v31058_v11  ;;  %v27044_v12 = vld [vmem:[%s34863_s0 + $0x658] sm:$0xff]  ;;  %v27045_v0 = vld [vmem:[%s34863_s0 + $0x660] sm:$0xff] }
 0x626   :  { %v9672_v43 = vadd.f32 %v25878_v51, %v31058_v11 }
 0x627   :  { %v9671_v48 = vadd.f32 %v25879_v25, %v31058_v11  ;;  %v22462_v62 = vpop.f32.mrb[62].mxu0  ;;  %v31505_v25 = vpop.f32.mrb[86].mxu1 }
 0x628   :  { %v9832_v13 = vmax.f32 %v9668_v9, %v9672_v43  ;;  %v25880_v15 = vadd.f32 %v22462_v62, %v31026_v20  ;;  %v8763_v39 = vpop.f32.mrb[63].mxu0  ;;  %22620 = vmatmul.mubr.msk.f32.gmra.mrb[168].mxu0 %vm421_vm1, %v27042_v3 }
 0x629   :  { %v9831_v33 = vmax.f32 %v9667_v16, %v9671_v48  ;;  %v25881_v51 = vadd.f32 %v8763_v39, %v31028_v22  ;;  %22622 = vmatprep.mubr.msk.f32.mxu0 %vm421_vm1, %v27043_v21  ;;  %v31509_v22 = vpop.f32.mrb[87].mxu1 }
 0x62a   :  { %v9674_v20 = vadd.f32 %v25880_v15, %v31058_v11  ;;  %v10081_v5 = vld [vmem:[#allocation2 + $0x61] sm:$0xff] }
 0x62b   :  { %v9673_v9 = vadd.f32 %v25881_v51, %v31058_v11  ;;  %v22465_v43 = vpop.f32.mrb[64].mxu0  ;;  %22696 = vmatprep.mubr.f32.mxu1 %v10081_v5  ;;  %v31521_v51 = vpop.f32.mrb[88].mxu1 }
 0x62c   :  { %v9834_v16 = vmax.f32 %v9670_v41, %v9674_v20  ;;  %v25882_v48 = vadd.f32 %v22465_v43, %v31038_v24  ;;  %v8773_v62 = vpop.f32.mrb[65].mxu0  ;;  %22623 = vmatmul.mubr.msk.f32.gmra.mrb[170].mxu0 %vm421_vm1, %v27044_v12  ;;  %v31523_v41 = vpop.f32.mrb[89].mxu1 }
 0x62d   :  { %v9833_v15 = vmax.f32 %v9669_v30, %v9673_v9  ;;  %v25883_v39 = vadd.f32 %v8773_v62, %v31040_v28  ;;  %22625 = vmatprep.mubr.msk.f32.mxu0 %vm421_vm1, %v27045_v0  ;;  %v27046_v28 = vld [vmem:[%s34863_s0 + $0x668] sm:$0xff]  ;;  %v27049_v0 = vld [vmem:[%s34863_s0 + $0x680] sm:$0xff] }
 0x62e   :  { %v9914_v3 = vmax.f32 %v9832_v13, %v9834_v16  ;;  %v27047_v13 = vld [vmem:[%s34863_s0 + $0x670] sm:$0xff] }
 0x62f   :  { %v9913_v24 = vmax.f32 %v9831_v33, %v9833_v15  ;;  %v22468_v21 = vpop.f32.mrb[66].mxu0  ;;  %v31535_v33 = vpop.f32.mrb[90].mxu1 }
 0x630   :  { %v9962_v20 = vmax.f32 %v9914_v3, 0.0  ;;  %v25884_v5 = vadd.f32 %v22468_v21, %v31050_v36  ;;  %v8783_v43 = vpop.f32.mrb[67].mxu0  ;;  %22626 = vmatmul.mubr.msk.f32.gmra.mrb[172].mxu0 %vm421_vm1, %v27046_v28  ;;  %v31537_v16 = vpop.f32.mrb[91].mxu1  ;;  %v9676_v3 = vadd.f32 %v25882_v48, %v31058_v11  ;;  %v9675_v21 = vadd.f32 %v25883_v39, %v31058_v11  ;;  %v27051_v39 = vld [vmem:[%s34863_s0 + $0x690] sm:$0xff] }
 0x631   :  { %v9961_v30 = vmax.f32 %v9913_v24, 0.0  ;;  %v25885_v9 = vadd.f32 %v8783_v43, %v31052_v46  ;;  %22628 = vmatprep.mubr.msk.f32.mxu0 %vm421_vm1, %v27047_v13  ;;  %v27048_v46 = vld [vmem:[%s34863_s0 + $0x678] sm:$0xff] }
 0x632   :  { %10010 = vst [vmem:[#allocation2 + $0x78] sm:$0xf] %v9962_v20 }
 0x633   :  { %10009 = vst [vmem:[#allocation2 + $0x70] sm:$0xff] %v9961_v30  ;;  %v22471_v36 = vpop.f32.mrb[68].mxu0 }
 0x634   :  { %v25886_v62 = vadd.f32 %v22471_v36, %v31067_v54  ;;  %v8793_v12 = vpop.f32.mrb[69].mxu0  ;;  %22629 = vmatmul.mubr.msk.f32.gmra.mrb[174].mxu0 %vm421_vm1, %v27048_v46  ;;  %v31551_v54 = vpop.f32.mrb[92].mxu1  ;;  %v27050_v36 = vld [vmem:[%s34863_s0 + $0x688] sm:$0xff] }
 0x635   :  { %v25887_v15 = vadd.f32 %v8793_v12, %v31069_v57  ;;  %22631 = vmatprep.mubr.msk.f32.mxu0 %vm421_vm1, %v27049_v0  ;;  %v31555_v28 = vpop.f32.mrb[93].mxu1  ;;  %v9678_v12 = vadd.f32 %v25884_v5, %v31058_v11 }
 0x636   :  { %v9680_v24 = vadd.f32 %v25886_v62, %v31058_v11  ;;  %v31572_v0 = vpop.f32.mrb[94].mxu1 }
 0x637   :  { %v9679_v20 = vadd.f32 %v25887_v15, %v31058_v11  ;;  %v22474_v43 = vpop.f32.mrb[70].mxu0  ;;  %v18317_v15 = vld [vmem:[%s34863_s0 + $0x6a0] sm:$0xff] }
 0x638   :  { %v9836_v57 = vmax.f32 %v9676_v3, %v9680_v24  ;;  %v25888_v30 = vadd.f32 %v22474_v43, %v31083_v29  ;;  %v8803_v13 = vpop.f32.mrb[71].mxu0  ;;  %22632 = vmatmul.mubr.msk.f32.gmra.mrb[176].mxu0 %vm421_vm1, %v27050_v36  ;;  %v9677_v3 = vadd.f32 %v25885_v9, %v31058_v11  ;;  %v18318_v9 = vld [vmem:[%s34863_s0 + $0x6a8] sm:$0xff] }
 0x639   :  { %v9835_v48 = vmax.f32 %v9675_v21, %v9679_v20  ;;  %v25889_v62 = vadd.f32 %v8803_v13, %v31085_v47  ;;  %22634 = vmatprep.mubr.msk.f32.mxu0 %vm421_vm1, %v27051_v39  ;;  %v31576_v21 = vpop.f32.mrb[95].mxu1 }
 0x63a   :  { %v9682_v29 = vadd.f32 %v25888_v30, %v31058_v11  ;;  %v10082_v46 = vld [vmem:[#allocation2 + $0x71] sm:$0xff]  ;;  %v31591_v39 = vpop.f32.mrb[96].mxu1 }
 0x63b   :  { %v9681_v47 = vadd.f32 %v25889_v62, %v31058_v11  ;;  %v22477_v24 = vpop.f32.mrb[72].mxu0  ;;  %22697 = vmatmul.mubr.f32.gmra.mrb[156].mxu1 %v10082_v46  ;;  %v27052_v30 = vld [vmem:[%s34863_s0 + $0x698] sm:$0xff]  ;;  %v31593_v46 = vpop.f32.mrb[97].mxu1 }
 0x63c   :  { %v9838_v20 = vmax.f32 %v9678_v12, %v9682_v29  ;;  %v25890_v5 = vadd.f32 %v22477_v24, %v31099_v6  ;;  %v8813_v43 = vpop.f32.mrb[73].mxu0  ;;  %22635 = vmatmul.mubr.msk.f32.gmra.mrb[178].mxu0 %vm421_vm1, %v27052_v30  ;;  %v18319_v6 = vld [vmem:[%s34863_s0 + $0x6b0] sm:$0xff] }
 0x63d   :  { %v9837_v13 = vmax.f32 %v9677_v3, %v9681_v47  ;;  %v25891_v36 = vadd.f32 %v8813_v43, %v31101_v17  ;;  %22637 = vmatprep.mubr.msk.f32.mxu0 %vm421_vm1, %v18317_v15 }
 0x63e   :  { %v9916_v62 = vmax.f32 %v9836_v57, %v9838_v20  ;;  %v18320_v57 = vld [vmem:[%s34863_s0 + $0x6b8] sm:$0xff]  ;;  %v31605_v20 = vpop.f32.mrb[98].mxu1 }
 0x63f   :  { %v9915_v12 = vmax.f32 %v9835_v48, %v9837_v13  ;;  %v22480_v29 = vpop.f32.mrb[74].mxu0  ;;  %v18321_v48 = vld [vmem:[%s34863_s0 + $0x6c0] sm:$0xff]  ;;  %v31607_v43 = vpop.f32.mrb[99].mxu1 }
 0x640   :  { %v9964_v3 = vmax.f32 %v9916_v62, 0.0  ;;  %v25892_v17 = vadd.f32 %v22480_v29, %v31111_v49  ;;  %v8823_v47 = vpop.f32.mrb[75].mxu0  ;;  %22638 = vmatmul.mubr.msk.f32.gmra.mrb[180].mxu0 %vm421_vm1, %v18318_v9  ;;  %v18322_v9 = vld [vmem:[%s34863_s0 + $0x6c8] sm:$0xff]  ;;  %v9684_v62 = vadd.f32 %v25890_v5, %v31058_v11  ;;  %v9683_v29 = vadd.f32 %v25891_v36, %v31058_v11  ;;  %v18324_v36 = vld [vmem:[%s34863_s0 + $0x6d8] sm:$0xff] }
 0x641   :  { %v9963_v15 = vmax.f32 %v9915_v12, 0.0  ;;  %v25893_v24 = vadd.f32 %v8823_v47, %v31113_v53  ;;  %22640 = vmatprep.mubr.msk.f32.mxu0 %vm421_vm1, %v18319_v6  ;;  %v18323_v12 = vld [vmem:[%s34863_s0 + $0x6d0] sm:$0xff] }
 0x642   :  { %10012 = vst [vmem:[#allocation2 + $0x88] sm:$0xf] %v9964_v3 }
 0x643   :  { %10011 = vst [vmem:[#allocation2 + $0x80] sm:$0xff] %v9963_v15  ;;  %v22483_v49 = vpop.f32.mrb[76].mxu0 }
 0x644   :  { %v25894_v30 = vadd.f32 %v22483_v49, %v31123_v61  ;;  %v8833_v53 = vpop.f32.mrb[77].mxu0  ;;  %22641 = vmatmul.mubr.msk.f32.gmra.mrb[182].mxu0 %vm421_vm1, %v18320_v57  ;;  %v31621_v61 = vpop.f32.mrb[100].mxu1 }
 0x645   :  { %v25895_v13 = vadd.f32 %v8833_v53, %v31125_v7  ;;  %22643 = vmatprep.mubr.msk.f32.mxu0 %vm421_vm1, %v18321_v48  ;;  %v31625_v47 = vpop.f32.mrb[101].mxu1 }
 0x646   :  { %v9688_v6 = vadd.f32 %v25894_v30, %v31058_v11  ;;  %v9686_v30 = vadd.f32 %v25892_v17, %v31058_v11 }
 0x647   :  { %v9687_v7 = vadd.f32 %v25895_v13, %v31058_v11  ;;  %v22486_v3 = vpop.f32.mrb[78].mxu0  ;;  %v31639_v13 = vpop.f32.mrb[102].mxu1 }
 0x648   :  { %v9840_v15 = vmax.f32 %v9684_v62, %v9688_v6  ;;  %v25896_v57 = vadd.f32 %v22486_v3, %v31139_v37  ;;  %v8843_v48 = vpop.f32.mrb[79].mxu0  ;;  %22644 = vmatmul.mubr.msk.f32.gmra.mrb[184].mxu0 %vm421_vm1, %v18322_v9  ;;  %v18325_v37 = vld [vmem:[%s34863_s0 + $0x6e0] sm:$0xff]  ;;  %v9685_v9 = vadd.f32 %v25893_v24, %v31058_v11  ;;  %v31643_v6 = vpop.f32.mrb[103].mxu1  ;;  %v18326_v24 = vld [vmem:[%s34863_s0 + $0x6e8] sm:$0xff] }
 0x649   :  { %v9839_v5 = vmax.f32 %v9683_v29, %v9687_v7  ;;  %v25897_v49 = vadd.f32 %v8843_v48, %v31141_v63  ;;  %22646 = vmatprep.mubr.msk.f32.mxu0 %vm421_vm1, %v18323_v12  ;;  %v31655_v48 = vpop.f32.mrb[104].mxu1 }
 0x64a   :  { %v9690_v53 = vadd.f32 %v25896_v57, %v31058_v11 }
 0x64b   :  { %v9689_v63 = vadd.f32 %v25897_v49, %v31058_v11  ;;  %v22489_v62 = vpop.f32.mrb[80].mxu0  ;;  %v18327_v11 = vld [vmem:[%s34863_s0 + $0x6f0] sm:$0xff] }
 0x64c   :  { %v9842_v12 = vmax.f32 %v9686_v30, %v9690_v53  ;;  %v25898_v29 = vadd.f32 %v22489_v62, %v31155_v50  ;;  %v8853_v7 = vpop.f32.mrb[81].mxu0  ;;  %22647 = vmatmul.mubr.msk.f32.gmra.mrb[186].mxu0 %vm421_vm1, %v18324_v36  ;;  %v31657_v30 = vpop.f32.mrb[105].mxu1 }
 0x64d   :  { %v9841_v17 = vmax.f32 %v9685_v9, %v9689_v63  ;;  %v25899_v3 = vadd.f32 %v8853_v7, %v31157_v59  ;;  %22649 = vmatprep.mubr.msk.f32.mxu0 %vm421_vm1, %v18325_v37  ;;  %v31676_v7 = vld [vmem:[%s34865_s2] ss:$0 sm:$0xff] }
 0x64e   :  { %v9918_v57 = vmax.f32 %v9840_v15, %v9842_v12  ;;  %v18328_v15 = vld [vmem:[%s34863_s0 + $0x6f8] sm:$0xff] }
 0x64f   :  { %v9917_v50 = vmax.f32 %v9839_v5, %v9841_v17  ;;  %v22492_v49 = vpop.f32.mrb[82].mxu0  ;;  %v31666_v5 = vpop.f32.mrb[106].mxu1  ;;  %v9692_v17 = vadd.f32 %v31676_v7, %v25898_v29 }
 0x650   :  { %v9966_v36 = vmax.f32 %v9918_v57, 0.0  ;;  %v25900_v59 = vadd.f32 %v22492_v49, %v31167_v2  ;;  %v8863_v53 = vpop.f32.mrb[83].mxu0  ;;  %22650 = vmatmul.mubr.msk.f32.gmra.mrb[188].mxu0 %vm421_vm1, %v18326_v24  ;;  %v31668_v62 = vpop.f32.mrb[107].mxu1 }
 0x651   :  { %v9965_v37 = vmax.f32 %v9917_v50, 0.0  ;;  %v25901_v9 = vadd.f32 %v8863_v53, %v31169_v38  ;;  %22652 = vmatprep.mubr.msk.f32.mxu0 %vm421_vm1, %v18327_v11  ;;  %35385 = vst [vmem:[#allocation75_spill] sm:$0xff] %v31668_v62  ;;  %v31680_v57 = vpop.f32.mrb[108].mxu1  ;;  %v9691_v11 = vadd.f32 %v31676_v7, %v25899_v3 }
 0x652   :  { %10014 = vst [vmem:[#allocation2 + $0x98] sm:$0xf] %v9966_v36  ;;  %35386 = vst [vmem:[#allocation76_spill] sm:$0xff] %v31680_v57  ;;  %v31684_v49 = vpop.f32.mrb[109].mxu1  ;;  %v9694_v29 = vadd.f32 %v31676_v7, %v25900_v59  ;;  %v10060_v59 = vld [vmem:[%s34866_s3 + $0x8] sm:$0xff] }
 0x653   :  { %10013 = vst [vmem:[#allocation2 + $0x90] sm:$0xff] %v9965_v37  ;;  %v22495_v63 = vpop.f32.mrb[84].mxu0  ;;  %35387 = vst [vmem:[#allocation77_spill] sm:$0xff] %v31684_v49  ;;  %v9693_v3 = vadd.f32 %v31676_v7, %v25901_v9 }
 0x654   :  { %v25902_v2 = vadd.f32 %v22495_v63, %v31179_v8  ;;  %v8873_v12 = vpop.f32.mrb[85].mxu0  ;;  %22653 = vmatmul.mubr.msk.f32.gmra.mrb[190].mxu0 %vm421_vm1, %v18328_v15 }
 0x655   :  { %v25903_v38 = vadd.f32 %v8873_v12, %v31181_v45 }
 0x656   :  { %v9696_v24 = vadd.f32 %v31676_v7, %v25902_v2  ;;  %v31690_v2 = vpop.f32.mrb[110].mxu1 }
 0x657   :  { %v9695_v8 = vadd.f32 %v31676_v7, %v25903_v38  ;;  %v22498_v50 = vpop.f32.mrb[86].mxu0  ;;  %35388 = vst [vmem:[#allocation78_spill] sm:$0xff] %v31690_v2  ;;  %v31694_v57 = vpop.f32.mrb[111].mxu1 }
 0x658   :  { %v9844_v36 = vmax.f32 %v9692_v17, %v9696_v24  ;;  %v25904_v45 = vadd.f32 %v22498_v50, %v31195_v14  ;;  %v8883_v53 = vpop.f32.mrb[87].mxu0  ;;  %35389 = vst [vmem:[#allocation79_spill] sm:$0xff] %v31694_v57  ;;  %v35390_v24 = vld [vmem:[#allocation54_spill] sm:$0xff] }
 0x659   :  { %v9843_v37 = vmax.f32 %v9691_v11, %v9695_v8  ;;  %v25905_v15 = vadd.f32 %v8883_v53, %v31197_v31  ;;  %v10059_v31 = vld [vmem:[%s34866_s3] sm:$0xff] }
 0x65a   :  { %v9698_v63 = vadd.f32 %v31676_v7, %v25904_v45  ;;  %v35391_v8 = vld [vmem:[#allocation55_spill] sm:$0xff]  ;;  %v24682_v45 = vpack.c.bf16 %v10060_v59, %v10059_v31 }
 0x65b   :  { %v9697_v12 = vadd.f32 %v31676_v7, %v25905_v15  ;;  %v22501_v38 = vpop.f32.mrb[88].mxu0  ;;  %v31704_v15 = vpop.f32.mrb[112].mxu1 }
 0x65c   :  { %v9846_v17 = vmax.f32 %v9694_v29, %v9698_v63  ;;  %v25906_v14 = vadd.f32 %v22501_v38, %v35390_v24  ;;  %v8893_v50 = vpop.f32.mrb[89].mxu0  ;;  %35392 = vst [vmem:[#allocation80_spill] sm:$0xff] %v31704_v15  ;;  %24683 = vmatprep.subr.bf16.mxu1 %v24682_v45  ;;  %v31706_v63 = vpop.f32.mrb[113].mxu1  ;;  %v35394_v24 = vld [vmem:[#allocation56_spill] sm:$0xff] }
 0x65d   :  { %v9845_v11 = vmax.f32 %v9693_v3, %v9697_v12  ;;  %v25907_v9 = vadd.f32 %v8893_v50, %v35391_v8  ;;  %35393 = vst [vmem:[#allocation81_spill] sm:$0xff] %v31706_v63  ;;  %24685 = vmatpush3.bf16.msra.mxu1 %v24682_v45  ;;  %v10061_v3 = vld [vmem:[%s34866_s3 + $0x10] sm:$0xff]  ;;  %v31716_v31 = vpop.f32.mrb[114].mxu1  ;;  %v35398_v8 = vld [vmem:[#allocation58_spill] sm:$0xff] }
 0x65e   :  { %v9920_v53 = vmax.f32 %v9844_v36, %v9846_v17  ;;  %v10062_v36 = vld [vmem:[%s34866_s3 + $0x18] sm:$0xff]  ;;  %35396 = vst [vmem:[#allocation82_spill] sm:$0xff] %v31716_v31  ;;  %v35402_v31 = vld [vmem:[#allocation60_spill] sm:$0xff] }
 0x65f   :  { %v9919_v57 = vmax.f32 %v9843_v37, %v9845_v11  ;;  %v22504_v29 = vpop.f32.mrb[90].mxu0  ;;  %v35395_v17 = vld [vmem:[#allocation57_spill] sm:$0xff]  ;;  %v24686_v50 = vpack.c.bf16 %v10062_v36, %v10061_v3  ;;  %v31718_v11 = vpop.f32.mrb[115].mxu1  ;;  %v9700_v3 = vadd.f32 %v31676_v7, %v25906_v14 }
 0x660   :  { %v9968_v38 = vmax.f32 %v9920_v53, 0.0  ;;  %v25908_v2 = vadd.f32 %v22504_v29, %v35394_v24  ;;  %v8903_v49 = vpop.f32.mrb[91].mxu0  ;;  %35397 = vst [vmem:[#allocation83_spill] sm:$0xff] %v31718_v11  ;;  %v10063_v29 = vld [vmem:[%s34866_s3 + $0x20] sm:$0xff]  ;;  %v10065_v14 = vld [vmem:[%s34866_s3 + $0x30] sm:$0xff] }
 0x661   :  { %v9967_v12 = vmax.f32 %v9919_v57, 0.0  ;;  %v25909_v37 = vadd.f32 %v8903_v49, %v35395_v17  ;;  %24687 = vmatprep.subr.bf16.mxu1 %v24686_v50  ;;  %v10064_v57 = vld [vmem:[%s34866_s3 + $0x28] sm:$0xff]  ;;  %v9699_v17 = vadd.f32 %v31676_v7, %v25907_v9 }
 0x662   :  { %10016 = vst [vmem:[#allocation2 + $0xa8] sm:$0xf] %v9968_v38  ;;  %24689 = vmatpush3.bf16.msra.mxu1 %v24686_v50  ;;  %v35399_v49 = vld [vmem:[#allocation59_spill] sm:$0xff]  ;;  %v24690_v24 = vpack.c.bf16 %v10064_v57, %v10063_v29 }
 0x663   :  { %10015 = vst [vmem:[#allocation2 + $0xa0] sm:$0xff] %v9967_v12  ;;  %v22507_v59 = vpop.f32.mrb[92].mxu0  ;;  %v31730_v12 = vpop.f32.mrb[116].mxu1 }
 0x664   :  { %v25910_v45 = vadd.f32 %v22507_v59, %v35398_v8  ;;  %v8913_v53 = vpop.f32.mrb[93].mxu0  ;;  %35400 = vst [vmem:[#allocation84_spill] sm:$0xff] %v31730_v12  ;;  %24691 = vmatprep.subr.bf16.mxu1 %v24690_v24  ;;  %v31734_v8 = vpop.f32.mrb[117].mxu1 }
 0x665   :  { %v25911_v38 = vadd.f32 %v8913_v53, %v35399_v49  ;;  %35401 = vst [vmem:[#allocation85_spill] sm:$0xff] %v31734_v8  ;;  %v35403_v53 = vld [vmem:[#allocation61_spill] sm:$0xff]  ;;  %v9702_v49 = vadd.f32 %v31676_v7, %v25908_v2  ;;  %v35404_v8 = vld [vmem:[#allocation62_spill] sm:$0xff] }
 0x666   :  { %v9704_v36 = vadd.f32 %v31676_v7, %v25910_v45  ;;  %24693 = vmatpush3.bf16.msra.mxu1 %v24690_v24  ;;  %v10066_v45 = vld [vmem:[%s34866_s3 + $0x38] sm:$0xff]  ;;  %v10067_v2 = vld [vmem:[%s34866_s3 + $0x40] sm:$0xff] }
 0x667   :  { %v9703_v50 = vadd.f32 %v31676_v7, %v25911_v38  ;;  %v22510_v59 = vpop.f32.mrb[94].mxu0  ;;  %v24694_v57 = vpack.c.bf16 %v10066_v45, %v10065_v14 }
 0x668   :  { %v9848_v11 = vmax.f32 %v9700_v3, %v9704_v36  ;;  %v25912_v63 = vadd.f32 %v22510_v59, %v35402_v31  ;;  %v8923_v15 = vpop.f32.mrb[95].mxu0  ;;  %v9701_v31 = vadd.f32 %v31676_v7, %v25909_v37  ;;  %v31748_v36 = vpop.f32.mrb[118].mxu1  ;;  %v35406_v37 = vld [vmem:[#allocation63_spill] sm:$0xff] }
 0x669   :  { %v9847_v9 = vmax.f32 %v9699_v17, %v9703_v50  ;;  %v25913_v29 = vadd.f32 %v8923_v15, %v35403_v53  ;;  %24695 = vmatprep.subr.bf16.mxu1 %v24694_v57  ;;  %v31751_v17 = vpop.f32.mrb[119].mxu1  ;;  %v10068_v15 = vld [vmem:[%s34866_s3 + $0x48] sm:$0xff] }
 0x66a   :  { %v9706_v38 = vadd.f32 %v31676_v7, %v25912_v63  ;;  %35405 = vst [vmem:[#allocation86_spill] sm:$0xff] %v31751_v17  ;;  %24697 = vmatpush3.bf16.msra.mxu1 %v24694_v57  ;;  %v24698_v14 = vpack.c.bf16 %v10068_v15, %v10067_v2  ;;  %v35408_v57 = vld [vmem:[#allocation64_spill] sm:$0xff] }
 0x66b   :  { %v9705_v24 = vadd.f32 %v31676_v7, %v25913_v29  ;;  %v22513_v3 = vpop.f32.mrb[96].mxu0 }
 0x66c   :  { %v9850_v59 = vmax.f32 %v9702_v49, %v9706_v38  ;;  %v25914_v12 = vadd.f32 %v22513_v3, %v35404_v8  ;;  %v8933_v62 = vpop.f32.mrb[97].mxu0  ;;  %v31760_v8 = vpop.f32.mrb[120].mxu1  ;;  %24699 = vmatprep.subr.bf16.mxu1 %v24698_v14 }
 0x66d   :  { %v9849_v63 = vmax.f32 %v9701_v31, %v9705_v24  ;;  %v25915_v50 = vadd.f32 %v8933_v62, %v35406_v37  ;;  %35407 = vst [vmem:[#allocation87_spill] sm:$0xff] %v31760_v8  ;;  %v31763_v17 = vpop.f32.mrb[121].mxu1  ;;  %v10069_v31 = vld [vmem:[%s34866_s3 + $0x50] sm:$0xff]  ;;  %v10070_v62 = vld [vmem:[%s34866_s3 + $0x58] sm:$0xff] }
 0x66e   :  { %v9922_v45 = vmax.f32 %v9848_v11, %v9850_v59  ;;  %35409 = vst [vmem:[#allocation88_spill] sm:$0xff] %v31763_v17  ;;  %24701 = vmatpush3.bf16.msra.mxu1 %v24698_v14  ;;  %v24702_v59 = vpack.c.bf16 %v10070_v62, %v10069_v31  ;;  %v31772_v15 = vpop.f32.mrb[122].mxu1  ;;  %v9708_v31 = vadd.f32 %v31676_v7, %v25914_v12  ;;  %v10073_v12 = vld [vmem:[%s34866_s3 + $0x70] sm:$0xff] }
 0x66f   :  { %v9921_v53 = vmax.f32 %v9847_v9, %v9849_v63  ;;  %v22516_v29 = vpop.f32.mrb[98].mxu0  ;;  %v35410_v9 = vld [vmem:[#allocation65_spill] sm:$0xff]  ;;  %35411 = vst [vmem:[#allocation89_spill] sm:$0xff] %v31772_v15  ;;  %v35412_v63 = vld [vmem:[#allocation66_spill] sm:$0xff] }
 0x670   :  { %v9970_v49 = vmax.f32 %v9922_v45, 0.0  ;;  %v25916_v38 = vadd.f32 %v22516_v29, %v35408_v57  ;;  %v8943_v3 = vpop.f32.mrb[99].mxu0  ;;  %24703 = vmatprep.subr.bf16.mxu1 %v24702_v59  ;;  %v31775_v45 = vpop.f32.mrb[123].mxu1  ;;  %v10071_v29 = vld [vmem:[%s34866_s3 + $0x60] sm:$0xff] }
 0x671   :  { %v9969_v11 = vmax.f32 %v9921_v53, 0.0  ;;  %v25917_v24 = vadd.f32 %v8943_v3, %v35410_v9  ;;  %35413 = vst [vmem:[#allocation90_spill] sm:$0xff] %v31775_v45  ;;  %v10072_v53 = vld [vmem:[%s34866_s3 + $0x68] sm:$0xff] }
 0x672   :  { %10018 = vst [vmem:[#allocation2 + $0xb8] sm:$0xf] %v9970_v49  ;;  %24705 = vmatpush3.bf16.msra.mxu1 %v24702_v59  ;;  %v35414_v49 = vld [vmem:[#allocation67_spill] sm:$0xff]  ;;  %v24706_v3 = vpack.c.bf16 %v10072_v53, %v10071_v29  ;;  %v35416_v45 = vld [vmem:[#allocation68_spill] sm:$0xff] }
 0x673   :  { %10017 = vst [vmem:[#allocation2 + $0xb0] sm:$0xff] %v9969_v11  ;;  %v22519_v2 = vpop.f32.mrb[100].mxu0  ;;  %v9707_v11 = vadd.f32 %v31676_v7, %v25915_v50  ;;  %v10074_v50 = vld [vmem:[%s34866_s3 + $0x78] sm:$0xff] }
 0x674   :  { %v25918_v37 = vadd.f32 %v22519_v2, %v35412_v63  ;;  %v8953_v14 = vpop.f32.mrb[101].mxu0  ;;  %v31788_v2 = vpop.f32.mrb[124].mxu1  ;;  %24707 = vmatprep.subr.bf16.mxu1 %v24706_v3  ;;  %v24710_v53 = vpack.c.bf16 %v10074_v50, %v10073_v12 }
 0x675   :  { %v25919_v57 = vadd.f32 %v8953_v14, %v35414_v49  ;;  %35415 = vst [vmem:[#allocation91_spill] sm:$0xff] %v31788_v2  ;;  %v31791_v8 = vpop.f32.mrb[125].mxu1  ;;  %v35418_v14 = vld [vmem:[#allocation69_spill] sm:$0xff]  ;;  %v9710_v49 = vadd.f32 %v31676_v7, %v25916_v38  ;;  %v18541_v38 = vld [vmem:[%s34866_s3 + $0x108] sm:$0xff] }
 0x676   :  { %v9712_v62 = vadd.f32 %v31676_v7, %v25918_v37  ;;  %35417 = vst [vmem:[#allocation92_spill] sm:$0xff] %v31791_v8  ;;  %24709 = vmatpush3.bf16.msra.mxu1 %v24706_v3 }
 0x677   :  { %v9711_v9 = vadd.f32 %v31676_v7, %v25919_v57  ;;  %v22522_v59 = vpop.f32.mrb[102].mxu0  ;;  %v9709_v57 = vadd.f32 %v31676_v7, %v25917_v24  ;;  %24711 = vmatprep.subr.bf16.mxu1 %v24710_v53 }
 0x678   :  { %v9852_v63 = vmax.f32 %v9708_v31, %v9712_v62  ;;  %v25920_v15 = vadd.f32 %v22522_v59, %v35416_v45  ;;  %v8963_v17 = vpop.f32.mrb[103].mxu0  ;;  %v31804_v62 = vpop.f32.mrb[126].mxu1 }
 0x679   :  { %v9851_v37 = vmax.f32 %v9707_v11, %v9711_v9  ;;  %v25921_v29 = vadd.f32 %v8963_v17, %v35418_v14  ;;  %v31807_v11 = vpop.f32.mrb[127].mxu1  ;;  %v18540_v17 = vld [vmem:[%s34866_s3 + $0x100] sm:$0xff] }
 0x67a   :  { %v9714_v45 = vadd.f32 %v31676_v7, %v25920_v15  ;;  %24713 = vmatpush3.bf16.msra.mxu1 %v24710_v53  ;;  %v35419_v15 = vld [vmem:[#allocation70_spill] sm:$0xff]  ;;  %v31816_v12 = vpack.c.bf16 %v18541_v38, %v18540_v17 }
 0x67b   :  { %v9713_v3 = vadd.f32 %v31676_v7, %v25921_v29  ;;  %v22525_v31 = vpop.f32.mrb[104].mxu0  ;;  %v31820_v29 = vpop.f32.mrb[128].mxu1 }
 0x67c   :  { %v9854_v59 = vmax.f32 %v9710_v49, %v9714_v45  ;;  %v25922_v8 = vadd.f32 %v22525_v31, %v31323_v58  ;;  %v8973_v2 = vpop.f32.mrb[105].mxu0  ;;  %24715 = vmatprep.subr.bf16.mxu1 %v31816_v12  ;;  %v31824_v31 = vpop.f32.mrb[129].mxu1 }
 0x67d   :  { %v9853_v24 = vmax.f32 %v9709_v57, %v9713_v3  ;;  %v25923_v9 = vadd.f32 %v8973_v2, %v35419_v15  ;;  %35421 = vst [vmem:[#allocation94_spill] sm:$0xff] %v31824_v31  ;;  %v35422_v3 = vld [vmem:[#allocation71_spill] sm:$0xff] }
 0x67e   :  { %v9924_v50 = vmax.f32 %v9852_v63, %v9854_v59  ;;  %v35424_v59 = vld [vmem:[#allocation72_spill] sm:$0xff] }
 0x67f   :  { %v31818_v14 = vmax.f32 %v9851_v37, %v9853_v24  ;;  %v22528_v58 = vpop.f32.mrb[106].mxu0  ;;  %v31830_v37 = vpop.f32.mrb[130].mxu1 }
 0x680   :  { %v9972_v53 = vmax.f32 %v9924_v50, 0.0  ;;  %v25924_v49 = vadd.f32 %v22528_v58, %v31335_v32  ;;  %v8983_v45 = vpop.f32.mrb[107].mxu0  ;;  %35423 = vst [vmem:[#allocation95_spill] sm:$0xff] %v31830_v37  ;;  %v31833_v24 = vpop.f32.mrb[131].mxu1  ;;  %v35426_v32 = vld [vmem:[#allocation73_spill] sm:$0xff]  ;;  %v9716_v50 = vadd.f32 %v31676_v7, %v25922_v8 }
 0x681   :  { %35420 = vst [vmem:[#allocation93_spill] sm:$0xff] %v31818_v14  ;;  %v35033_v57 = vmax.f32 %v31818_v14, 0.0  ;;  %v25925_v2 = vadd.f32 %v8983_v45, %v35422_v3  ;;  %35425 = vst [vmem:[#allocation96_spill] sm:$0xff] %v31833_v24  ;;  %v9715_v45 = vadd.f32 %v31676_v7, %v25923_v9 }
 0x682   :  { %10020 = vst [vmem:[#allocation2 + $0xc8] sm:$0xf] %v9972_v53  ;;  %v9718_v8 = vadd.f32 %v31676_v7, %v25924_v49 }
 0x683   :  { %10019 = vst [vmem:[#allocation2 + $0xc0] sm:$0xff] %v35033_v57  ;;  %v22531_v63 = vpop.f32.mrb[108].mxu0  ;;  %v31840_v57 = vpop.f32.mrb[132].mxu1  ;;  %v9717_v9 = vadd.f32 %v31676_v7, %v25925_v2 }
 0x684   :  { %v25926_v17 = vadd.f32 %v22531_v63, %v35424_v59  ;;  %v8993_v38 = vpop.f32.mrb[109].mxu0  ;;  %35427 = vst [vmem:[#allocation97_spill] sm:$0xff] %v31840_v57  ;;  %v31843_v59 = vpop.f32.mrb[133].mxu1 }
 0x685   :  { %v25927_v15 = vadd.f32 %v8993_v38, %v35426_v32  ;;  %35428 = vst [vmem:[#allocation98_spill] sm:$0xff] %v31843_v59 }
 0x686   :  { %v9720_v58 = vadd.f32 %v31676_v7, %v25926_v17 }
 0x687   :  { %v9719_v53 = vadd.f32 %v31676_v7, %v25927_v15  ;;  %v22534_v3 = vpop.f32.mrb[110].mxu0 }
 0x688   :  { %v9856_v14 = vmax.f32 %v9716_v50, %v9720_v58  ;;  %v25928_v37 = vadd.f32 %v22534_v3, %v31365_v18  ;;  %v9003_v63 = vpop.f32.mrb[111].mxu0  ;;  %v31850_v50 = vpop.f32.mrb[134].mxu1 }
 0x689   :  { %v9855_v24 = vmax.f32 %v9715_v45, %v9719_v53  ;;  %v25929_v38 = vadd.f32 %v9003_v63, %v31369_v23  ;;  %35429 = vst [vmem:[#allocation99_spill] sm:$0xff] %v31850_v50  ;;  %v31853_v45 = vpop.f32.mrb[135].mxu1  ;;  %v35430_v53 = vld [vmem:[#allocation74_spill] sm:$0xff] }
 0x68a   :  { %v9722_v17 = vadd.f32 %v31676_v7, %v25928_v37  ;;  %v10083_v32 = vld [vmem:[#allocation2 + $0xc1] sm:$0xff]  ;;  %v31858_v2 = vpop.f32.mrb[136].mxu1 }
 0x68b   :  { %v9721_v15 = vadd.f32 %v31676_v7, %v25929_v38  ;;  %v22537_v31 = vpop.f32.mrb[112].mxu0  ;;  %22699 = vmatprep.mubr.f32.mxu1 %v10083_v32  ;;  %v31861_v50 = vpop.f32.mrb[137].mxu1 }
 0x68c   :  { %v9858_v18 = vmax.f32 %v9718_v8, %v9722_v17  ;;  %v25930_v58 = vadd.f32 %v22537_v31, %v31380_v52  ;;  %v9013_v3 = vpop.f32.mrb[113].mxu0 }
 0x68d   :  { %v9857_v23 = vmax.f32 %v9717_v9, %v9721_v15  ;;  %v25931_v49 = vadd.f32 %v9013_v3, %v35430_v53 }
 0x68e   :  { %v9926_v63 = vmax.f32 %v9856_v14, %v9858_v18 }
 0x68f   :  { %v31856_v37 = vmax.f32 %v9855_v24, %v9857_v23  ;;  %v22540_v59 = vpop.f32.mrb[114].mxu0  ;;  %v31867_v24 = vpop.f32.mrb[138].mxu1 }
 0x690   :  { %v9974_v38 = vmax.f32 %v9926_v63, 0.0  ;;  %v25932_v32 = vadd.f32 %v22540_v59, %v31393_v55  ;;  %v9023_v57 = vpop.f32.mrb[115].mxu0  ;;  %v31870_v9 = vpop.f32.mrb[139].mxu1  ;;  %v9724_v59 = vadd.f32 %v31676_v7, %v25930_v58 }
 0x691   :  { %v35035_v52 = vmax.f32 %v31856_v37, 0.0  ;;  %v25933_v31 = vadd.f32 %v9023_v57, %v31395_v4  ;;  %v9723_v4 = vadd.f32 %v31676_v7, %v25931_v49  ;;  %v31877_v3 = vpop.f32.mrb[140].mxu1 }
 0x692   :  { %10022 = vst [vmem:[#allocation2 + $0xd8] sm:$0xf] %v9974_v38  ;;  %v31880_v63 = vpop.f32.mrb[141].mxu1  ;;  %v9726_v58 = vadd.f32 %v31676_v7, %v25932_v32 }
 0x693   :  { %10021 = vst [vmem:[#allocation2 + $0xd0] sm:$0xff] %v35035_v52  ;;  %v22543_v14 = vpop.f32.mrb[116].mxu0  ;;  %v9725_v49 = vadd.f32 %v31676_v7, %v25933_v31 }
 0x694   :  { %v25934_v8 = vadd.f32 %v22543_v14, %v31407_v26  ;;  %v9033_v17 = vpop.f32.mrb[117].mxu0 }
 0x695   :  { %v25935_v55 = vadd.f32 %v9033_v17, %v31409_v42 }
 0x696   :  { %v9728_v15 = vadd.f32 %v31676_v7, %v25934_v8 }
 0x697   :  { %v9727_v57 = vadd.f32 %v31676_v7, %v25935_v55  ;;  %v22546_v18 = vpop.f32.mrb[118].mxu0 }
 0x698   :  { %v9860_v23 = vmax.f32 %v9724_v59, %v9728_v15  ;;  %v25936_v53 = vadd.f32 %v22546_v18, %v31423_v56  ;;  %v9043_v26 = vpop.f32.mrb[119].mxu0  ;;  %v31887_v59 = vpop.f32.mrb[142].mxu1 }
 0x699   :  { %v9859_v38 = vmax.f32 %v9723_v4, %v9727_v57  ;;  %v25937_v42 = vadd.f32 %v9043_v26, %v31427_v44  ;;  %35431 = vst [vmem:[#allocation100_spill] sm:$0xff] %v31887_v59  ;;  %v31890_v4 = vpop.f32.mrb[143].mxu1 }
 0x69a   :  { %v9730_v14 = vadd.f32 %v31676_v7, %v25936_v53  ;;  %v10084_v8 = vld [vmem:[#allocation2 + $0xd1] sm:$0xff]  ;;  %v31895_v31 = vpop.f32.mrb[144].mxu1 }
 0x69b   :  { %v9729_v17 = vadd.f32 %v31676_v7, %v25937_v42  ;;  %v22549_v55 = vpop.f32.mrb[120].mxu0  ;;  %22700 = vmatmul.mubr.f32.gmra.mrb[158].mxu1 %v10084_v8  ;;  %v31898_v59 = vpop.f32.mrb[145].mxu1 }
 0x69c   :  { %v9862_v56 = vmax.f32 %v9726_v58, %v9730_v14  ;;  %v25938_v15 = vadd.f32 %v22549_v55, %v31441_v35  ;;  %v9053_v18 = vpop.f32.mrb[121].mxu0 }
 0x69d   :  { %v9861_v44 = vmax.f32 %v9725_v49, %v9729_v17  ;;  %v25939_v32 = vadd.f32 %v9053_v18, %v31445_v40 }
 0x69e   :  { %v9928_v57 = vmax.f32 %v9860_v23, %v9862_v56  ;;  %v31904_v23 = vpop.f32.mrb[146].mxu1  ;;  %v9732_v17 = vadd.f32 %v31676_v7, %v25938_v15 }
 0x69f   :  { %v31893_v53 = vmax.f32 %v9859_v38, %v9861_v44  ;;  %v22552_v26 = vpop.f32.mrb[122].mxu0  ;;  %v31907_v49 = vpop.f32.mrb[147].mxu1 }
 0x6a0   :  { %v9976_v42 = vmax.f32 %v9928_v57, 0.0  ;;  %v25940_v8 = vadd.f32 %v22552_v26, %v31457_v19  ;;  %v9063_v52 = vpop.f32.mrb[123].mxu0  ;;  %v31914_v18 = vpop.f32.mrb[148].mxu1 }
 0x6a1   :  { %v35036_v35 = vmax.f32 %v31893_v53, 0.0  ;;  %v25941_v58 = vadd.f32 %v9063_v52, %v31459_v27  ;;  %v9731_v27 = vadd.f32 %v31676_v7, %v25939_v32  ;;  %v31917_v26 = vpop.f32.mrb[149].mxu1 }
 0x6a2   :  { %10024 = vst [vmem:[#allocation2 + $0xe8] sm:$0xf] %v9976_v42  ;;  %v9734_v15 = vadd.f32 %v31676_v7, %v25940_v8 }
 0x6a3   :  { %10023 = vst [vmem:[#allocation2 + $0xe0] sm:$0xff] %v35036_v35  ;;  %v22555_v40 = vpop.f32.mrb[124].mxu0  ;;  %v9733_v32 = vadd.f32 %v31676_v7, %v25941_v58 }
 0x6a4   :  { %v25942_v38 = vadd.f32 %v22555_v40, %v31471_v1  ;;  %v9073_v14 = vpop.f32.mrb[125].mxu0 }
 0x6a5   :  { %v25943_v19 = vadd.f32 %v9073_v14, %v31473_v34 }
 0x6a6   :  { %v9736_v55 = vadd.f32 %v31676_v7, %v25942_v38 }
 0x6a7   :  { %v9735_v52 = vadd.f32 %v31676_v7, %v25943_v19  ;;  %v22558_v56 = vpop.f32.mrb[126].mxu0 }
 0x6a8   :  { %v9864_v44 = vmax.f32 %v9732_v17, %v9736_v55  ;;  %v25944_v57 = vadd.f32 %v22558_v56, %v31487_v10  ;;  %v9083_v1 = vpop.f32.mrb[127].mxu0 }
 0x6a9   :  { %v9863_v42 = vmax.f32 %v9731_v27, %v9735_v52  ;;  %v25945_v34 = vadd.f32 %v9083_v1, %v31491_v60 }
 0x6aa   :  { %v9738_v40 = vadd.f32 %v31676_v7, %v25944_v57  ;;  %v10085_v38 = vld [vmem:[#allocation2 + $0xe1] sm:$0xff] }
 0x6ab   :  { %v9737_v14 = vadd.f32 %v31676_v7, %v25945_v34  ;;  %v22561_v19 = vpop.f32.mrb[128].mxu0  ;;  %22702 = vmatprep.mubr.f32.mxu1 %v10085_v38 }
 0x6ac   :  { %v9866_v17 = vmax.f32 %v9734_v15, %v9738_v40  ;;  %v25946_v10 = vadd.f32 %v22561_v19, %v31505_v25  ;;  %v9093_v55 = vpop.f32.mrb[129].mxu0 }
 0x6ad   :  { %v9865_v56 = vmax.f32 %v9733_v32, %v9737_v14  ;;  %v25947_v27 = vadd.f32 %v9093_v55, %v31509_v22 }
 0x6ae   :  { %v9930_v52 = vmax.f32 %v9864_v44, %v9866_v17 }
 0x6af   :  { %v31926_v60 = vmax.f32 %v9863_v42, %v9865_v56  ;;  %v22564_v8 = vpop.f32.mrb[130].mxu0  ;;  %v9740_v42 = vadd.f32 %v31676_v7, %v25946_v10 }
 0x6b0   :  { %v9978_v1 = vmax.f32 %v9930_v52, 0.0  ;;  %v25948_v57 = vadd.f32 %v22564_v8, %v31521_v51  ;;  %v9103_v35 = vpop.f32.mrb[131].mxu0  ;;  %v9739_v51 = vadd.f32 %v31676_v7, %v25947_v27 }
 0x6b1   :  { %v9977_v58 = vmax.f32 %v31926_v60, 0.0  ;;  %v25949_v34 = vadd.f32 %v9103_v35, %v31523_v41  ;;  %v18556_v60 = vld [vmem:[%s34866_s3 + $0x180] sm:$0xff] }
 0x6b2   :  { %10026 = vst [vmem:[#allocation2 + $0xf8] sm:$0xf] %v9978_v1 }
 0x6b3   :  { %10025 = vst [vmem:[#allocation2 + $0xf0] sm:$0xff] %v9977_v58  ;;  %v22567_v25 = vpop.f32.mrb[132].mxu0  ;;  %v9741_v10 = vadd.f32 %v31676_v7, %v25949_v34 }
 0x6b4   :  { %v25950_v15 = vadd.f32 %v22567_v25, %v31535_v33  ;;  %v9113_v22 = vpop.f32.mrb[133].mxu0  ;;  %v9742_v33 = vadd.f32 %v31676_v7, %v25948_v57 }
 0x6b5   :  { %v25951_v44 = vadd.f32 %v9113_v22, %v31537_v16 }
 0x6b6   :  { %v9744_v40 = vadd.f32 %v31676_v7, %v25950_v15 }
 0x6b7   :  { %v9743_v38 = vadd.f32 %v31676_v7, %v25951_v44  ;;  %v22570_v32 = vpop.f32.mrb[134].mxu0 }
 0x6b8   :  { %v9868_v41 = vmax.f32 %v9740_v42, %v9744_v40  ;;  %v25952_v35 = vadd.f32 %v22570_v32, %v31551_v54  ;;  %v9123_v14 = vpop.f32.mrb[135].mxu0 }
 0x6b9   :  { %v9867_v19 = vmax.f32 %v9739_v51, %v9743_v38  ;;  %v25953_v17 = vadd.f32 %v9123_v14, %v31555_v28 }
 0x6ba   :  { %v9746_v16 = vadd.f32 %v31676_v7, %v25952_v35  ;;  %v10086_v55 = vld [vmem:[#allocation2 + $0xf1] sm:$0xff] }
 0x6bb   :  { %v9745_v56 = vadd.f32 %v31676_v7, %v25953_v17  ;;  %v22573_v27 = vpop.f32.mrb[136].mxu0  ;;  %22703 = vmatmul.mubr.f32.gmra.mrb[160].mxu1 %v10086_v55 }
 0x6bc   :  { %v9870_v52 = vmax.f32 %v9742_v33, %v9746_v16  ;;  %v25954_v8 = vadd.f32 %v22573_v27, %v31572_v0  ;;  %v9133_v1 = vpop.f32.mrb[137].mxu0 }
 0x6bd   :  { %v9869_v54 = vmax.f32 %v9741_v10, %v9745_v56  ;;  %v25955_v25 = vadd.f32 %v9133_v1, %v31576_v21 }
 0x6be   :  { %v9932_v15 = vmax.f32 %v9868_v41, %v9870_v52  ;;  %v9748_v32 = vadd.f32 %v31676_v7, %v25954_v8 }
 0x6bf   :  { %v31947_v28 = vmax.f32 %v9867_v19, %v9869_v54  ;;  %v22576_v57 = vpop.f32.mrb[138].mxu0 }
 0x6c0   :  { %v9980_v22 = vmax.f32 %v9932_v15, 0.0  ;;  %v25956_v44 = vadd.f32 %v22576_v57, %v31591_v39  ;;  %v9143_v42 = vpop.f32.mrb[139].mxu0  ;;  %v9747_v39 = vadd.f32 %v31676_v7, %v25955_v25 }
 0x6c1   :  { %v9979_v34 = vmax.f32 %v31947_v28, 0.0  ;;  %v25957_v40 = vadd.f32 %v9143_v42, %v31593_v46 }
 0x6c2   :  { %10028 = vst [vmem:[#allocation2 + $0x108] sm:$0xf] %v9980_v22 }
 0x6c3   :  { %10027 = vst [vmem:[#allocation2 + $0x100] sm:$0xff] %v9979_v34  ;;  %v22579_v0 = vpop.f32.mrb[140].mxu0  ;;  %v9749_v10 = vadd.f32 %v31676_v7, %v25957_v40 }
 0x6c4   :  { %v25958_v51 = vadd.f32 %v22579_v0, %v31605_v20  ;;  %v9153_v21 = vpop.f32.mrb[141].mxu0  ;;  %v9750_v20 = vadd.f32 %v31676_v7, %v25956_v44 }
 0x6c5   :  { %v25959_v38 = vadd.f32 %v9153_v21, %v31607_v43 }
 0x6c6   :  { %v9752_v41 = vadd.f32 %v31676_v7, %v25958_v51  ;;  %v35432_v51 = vld [vmem:[#allocation75_spill] sm:$0xff] }
 0x6c7   :  { %v9751_v35 = vadd.f32 %v31676_v7, %v25959_v38  ;;  %v22582_v14 = vpop.f32.mrb[142].mxu0 }
 0x6c8   :  { %v9872_v46 = vmax.f32 %v9748_v32, %v9752_v41  ;;  %v25960_v19 = vadd.f32 %v22582_v14, %v31621_v61  ;;  %v9163_v17 = vpop.f32.mrb[143].mxu0 }
 0x6c9   :  { %v9871_v33 = vmax.f32 %v9747_v39, %v9751_v35  ;;  %v25961_v16 = vadd.f32 %v9163_v17, %v31625_v47  ;;  %v35433_v35 = vld [vmem:[#allocation76_spill] sm:$0xff]  ;;  %v35434_v17 = vld [vmem:[#allocation77_spill] sm:$0xff] }
 0x6ca   :  { %v9754_v43 = vadd.f32 %v31676_v7, %v25960_v19  ;;  %v10087_v55 = vld [vmem:[#allocation2 + $0x101] sm:$0xff] }
 0x6cb   :  { %v9753_v56 = vadd.f32 %v31676_v7, %v25961_v16  ;;  %v22585_v27 = vpop.f32.mrb[144].mxu0  ;;  %22705 = vmatprep.mubr.f32.mxu1 %v10087_v55 }
 0x6cc   :  { %v9874_v52 = vmax.f32 %v9750_v20, %v9754_v43  ;;  %v25962_v8 = vadd.f32 %v22585_v27, %v31639_v13  ;;  %v9173_v1 = vpop.f32.mrb[145].mxu0  ;;  %v35435_v27 = vld [vmem:[#allocation78_spill] sm:$0xff] }
 0x6cd   :  { %v9873_v61 = vmax.f32 %v9749_v10, %v9753_v56  ;;  %v25963_v54 = vadd.f32 %v9173_v1, %v31643_v6 }
 0x6ce   :  { %v9934_v25 = vmax.f32 %v9872_v46, %v9874_v52  ;;  %v9756_v38 = vadd.f32 %v31676_v7, %v25962_v8 }
 0x6cf   :  { %v31968_v47 = vmax.f32 %v9871_v33, %v9873_v61  ;;  %v22588_v15 = vpop.f32.mrb[146].mxu0  ;;  %v35436_v61 = vld [vmem:[#allocation79_spill] sm:$0xff] }
 0x6d0   :  { %v9982_v57 = vmax.f32 %v9934_v25, 0.0  ;;  %v25964_v22 = vadd.f32 %v22588_v15, %v31655_v48  ;;  %v9183_v44 = vpop.f32.mrb[147].mxu0  ;;  %v9755_v48 = vadd.f32 %v31676_v7, %v25963_v54 }
 0x6d1   :  { %v9981_v42 = vmax.f32 %v31968_v47, 0.0  ;;  %v25965_v40 = vadd.f32 %v9183_v44, %v31657_v30  ;;  %v35437_v44 = vld [vmem:[#allocation80_spill] sm:$0xff] }
 0x6d2   :  { %10030 = vst [vmem:[#allocation2 + $0x118] sm:$0xf] %v9982_v57  ;;  %v18558_v47 = vld [vmem:[%s34866_s3 + $0x190] sm:$0xff] }
 0x6d3   :  { %10029 = vst [vmem:[#allocation2 + $0x110] sm:$0xff] %v9981_v42  ;;  %v22591_v13 = vpop.f32.mrb[148].mxu0  ;;  %v9757_v43 = vadd.f32 %v31676_v7, %v25965_v40 }
 0x6d4   :  { %v25966_v0 = vadd.f32 %v22591_v13, %v31666_v5  ;;  %v9193_v6 = vpop.f32.mrb[149].mxu0  ;;  %v9758_v5 = vadd.f32 %v31676_v7, %v25964_v22 }
 0x6d5   :  { %v25967_v21 = vadd.f32 %v9193_v6, %v35432_v51  ;;  %v35438_v6 = vld [vmem:[#allocation81_spill] sm:$0xff] }
 0x6d6   :  { %v9760_v32 = vadd.f32 %v31676_v7, %v25966_v0 }
 0x6d7   :  { %v9759_v41 = vadd.f32 %v31676_v7, %v25967_v21  ;;  %v22594_v39 = vpop.f32.mrb[150].mxu0 }
 0x6d8   :  { %v9876_v30 = vmax.f32 %v9756_v38, %v9760_v32  ;;  %v25968_v14 = vadd.f32 %v22594_v39, %v35433_v35  ;;  %v9203_v46 = vpop.f32.mrb[151].mxu0  ;;  %v35439_v38 = vld [vmem:[#allocation82_spill] sm:$0xff] }
 0x6d9   :  { %v9875_v19 = vmax.f32 %v9755_v48, %v9759_v41  ;;  %v25969_v33 = vadd.f32 %v9203_v46, %v35434_v17  ;;  %v35440_v41 = vld [vmem:[#allocation83_spill] sm:$0xff] }
 0x6da   :  { %v9762_v16 = vadd.f32 %v31676_v7, %v25968_v14  ;;  %v10088_v20 = vld [vmem:[#allocation2 + $0x111] sm:$0xff] }
 0x6db   :  { %v9761_v55 = vadd.f32 %v31676_v7, %v25969_v33  ;;  %v22597_v10 = vpop.f32.mrb[152].mxu0  ;;  %22706 = vmatmul.mubr.f32.gmra.mrb[162].mxu1 %v10088_v20  ;;  %v35441_v33 = vld [vmem:[#allocation84_spill] sm:$0xff] }
 0x6dc   :  { %v9878_v56 = vmax.f32 %v9758_v5, %v9762_v16  ;;  %v25970_v52 = vadd.f32 %v22597_v10, %v35435_v27  ;;  %v9213_v8 = vpop.f32.mrb[153].mxu0 }
 0x6dd   :  { %v9877_v1 = vmax.f32 %v9757_v43, %v9761_v55  ;;  %v25971_v54 = vadd.f32 %v9213_v8, %v35436_v61  ;;  %v35442_v43 = vld [vmem:[#allocation85_spill] sm:$0xff] }
 0x6de   :  { %v9936_v25 = vmax.f32 %v9876_v30, %v9878_v56  ;;  %v9764_v30 = vadd.f32 %v31676_v7, %v25970_v52 }
 0x6df   :  { %v31989_v15 = vmax.f32 %v9875_v19, %v9877_v1  ;;  %v22600_v57 = vpop.f32.mrb[154].mxu0  ;;  %v9763_v14 = vadd.f32 %v31676_v7, %v25971_v54 }
 0x6e0   :  { %v9984_v22 = vmax.f32 %v9936_v25, 0.0  ;;  %v25972_v13 = vadd.f32 %v22600_v57, %v35437_v44  ;;  %v9223_v0 = vpop.f32.mrb[155].mxu0 }
 0x6e1   :  { %v9983_v40 = vmax.f32 %v31989_v15, 0.0  ;;  %v25973_v51 = vadd.f32 %v9223_v0, %v35438_v6 }
 0x6e2   :  { %10032 = vst [vmem:[#allocation2 + $0x128] sm:$0xf] %v9984_v22  ;;  %v9766_v10 = vadd.f32 %v31676_v7, %v25972_v13  ;;  %v35443_v22 = vld [vmem:[#allocation86_spill] sm:$0xff] }
 0x6e3   :  { %10031 = vst [vmem:[#allocation2 + $0x120] sm:$0xff] %v9983_v40  ;;  %v22603_v21 = vpop.f32.mrb[156].mxu0  ;;  %v9765_v52 = vadd.f32 %v31676_v7, %v25973_v51 }
 0x6e4   :  { %v25974_v32 = vadd.f32 %v22603_v21, %v35439_v38  ;;  %v9233_v48 = vpop.f32.mrb[157].mxu0  ;;  %v35444_v38 = vld [vmem:[#allocation87_spill] sm:$0xff] }
 0x6e5   :  { %v25975_v39 = vadd.f32 %v9233_v48, %v35440_v41  ;;  %v35445_v41 = vld [vmem:[#allocation88_spill] sm:$0xff] }
 0x6e6   :  { %v9768_v35 = vadd.f32 %v31676_v7, %v25974_v32 }
 0x6e7   :  { %v9767_v46 = vadd.f32 %v31676_v7, %v25975_v39  ;;  %v22606_v19 = vpop.f32.mrb[158].mxu0 }
 0x6e8   :  { %v9880_v17 = vmax.f32 %v9764_v30, %v9768_v35  ;;  %v25976_v5 = vadd.f32 %v22606_v19, %v35441_v33  ;;  %v9243_v16 = vpop.f32.mrb[159].mxu0  ;;  %v35446_v30 = vld [vmem:[#allocation89_spill] sm:$0xff] }
 0x6e9   :  { %v9879_v20 = vmax.f32 %v9763_v14, %v9767_v46  ;;  %v25977_v55 = vadd.f32 %v9243_v16, %v35442_v43  ;;  %v35447_v46 = vld [vmem:[#allocation90_spill] sm:$0xff] }
 0x6ea   :  { %v9770_v56 = vadd.f32 %v31676_v7, %v25976_v5  ;;  %v10089_v27 = vld [vmem:[#allocation2 + $0x121] sm:$0xff] }
 0x6eb   :  { %v9769_v8 = vadd.f32 %v31676_v7, %v25977_v55  ;;  %v22609_v1 = vpop.f32.mrb[160].mxu0  ;;  %22708 = vmatprep.mubr.f32.mxu1 %v10089_v27  ;;  %v35448_v55 = vld [vmem:[#allocation91_spill] sm:$0xff] }
 0x6ec   :  { %v9882_v61 = vmax.f32 %v9766_v10, %v9770_v56  ;;  %v25978_v54 = vadd.f32 %v22609_v1, %v31748_v36  ;;  %v9253_v25 = vpop.f32.mrb[161].mxu0 }
 0x6ed   :  { %v9881_v57 = vmax.f32 %v9765_v52, %v9769_v8  ;;  %v25979_v44 = vadd.f32 %v9253_v25, %v35443_v22  ;;  %v35449_v52 = vld [vmem:[#allocation92_spill] sm:$0xff] }
 0x6ee   :  { %v9938_v0 = vmax.f32 %v9880_v17, %v9882_v61  ;;  %v9772_v17 = vadd.f32 %v31676_v7, %v25978_v54  ;;  %v18542_v54 = vld [vmem:[%s34866_s3 + $0x110] sm:$0xff] }
 0x6ef   :  { %v32010_v6 = vmax.f32 %v9879_v20, %v9881_v57  ;;  %v22612_v13 = vpop.f32.mrb[162].mxu0  ;;  %v9771_v5 = vadd.f32 %v31676_v7, %v25979_v44  ;;  %v18543_v57 = vld [vmem:[%s34866_s3 + $0x118] sm:$0xff] }
 0x6f0   :  { %v9986_v21 = vmax.f32 %v9938_v0, 0.0  ;;  %v25980_v32 = vadd.f32 %v22612_v13, %v35444_v38  ;;  %v9263_v48 = vpop.f32.mrb[163].mxu0  ;;  %v10043_v13 = vld [vmem:[#allocation2] sm:$0xff] }
 0x6f1   :  { %v9985_v51 = vmax.f32 %v32010_v6, 0.0  ;;  %v25981_v39 = vadd.f32 %v9263_v48, %v35445_v41  ;;  %v18560_v6 = vld [vmem:[%s34866_s3 + $0x1a0] sm:$0xff] }
 0x6f2   :  { %10034 = vst [vmem:[#allocation2 + $0x138] sm:$0xf] %v9986_v21  ;;  %v9774_v1 = vadd.f32 %v31676_v7, %v25980_v32 }
 0x6f3   :  { %10033 = vst [vmem:[#allocation2 + $0x130] sm:$0xff] %v9985_v51  ;;  %v22615_v36 = vpop.f32.mrb[164].mxu0  ;;  %v9773_v22 = vadd.f32 %v31676_v7, %v25981_v39  ;;  %v18544_v39 = vld [vmem:[%s34866_s3 + $0x120] sm:$0xff] }
 0x6f4   :  { %v25982_v35 = vadd.f32 %v22615_v36, %v35446_v30  ;;  %v9273_v14 = vpop.f32.mrb[165].mxu0  ;;  %v24718_v36 = vpack.c.bf16 %v18543_v57, %v18542_v54 }
 0x6f5   :  { %v25983_v19 = vadd.f32 %v9273_v14, %v35447_v46  ;;  %v18545_v14 = vld [vmem:[%s34866_s3 + $0x128] sm:$0xff] }
 0x6f6   :  { %v9776_v33 = vadd.f32 %v31676_v7, %v25982_v35  ;;  %v32037_v35 = vld [vmem:[#allocation2 + $0x10] sm:$0xff] }
 0x6f7   :  { %v9775_v16 = vadd.f32 %v31676_v7, %v25983_v19  ;;  %v22618_v20 = vpop.f32.mrb[166].mxu0  ;;  %v32048_v19 = vld [vmem:[#allocation2 + $0x20] sm:$0xff] }
 0x6f8   :  { %v9884_v43 = vmax.f32 %v9772_v17, %v9776_v33  ;;  %v25984_v10 = vadd.f32 %v22618_v20, %v35448_v55  ;;  %v9283_v56 = vpop.f32.mrb[167].mxu0  ;;  %v32055_v55 = vld [vmem:[#allocation2 + $0x30] sm:$0xff] }
 0x6f9   :  { %v9883_v27 = vmax.f32 %v9771_v5, %v9775_v16  ;;  %v25985_v8 = vadd.f32 %v9283_v56, %v35449_v52  ;;  %v35450_v16 = vld [vmem:[#allocation94_spill] sm:$0xff] }
 0x6fa   :  { %v9778_v61 = vadd.f32 %v31676_v7, %v25984_v10  ;;  %v10090_v25 = vld [vmem:[#allocation2 + $0x131] sm:$0xff]  ;;  %v32066_v56 = vld [vmem:[#allocation2 + $0x40] sm:$0xff] }
 0x6fb   :  { %v9777_v44 = vadd.f32 %v31676_v7, %v25985_v8  ;;  %v22621_v0 = vpop.f32.mrb[168].mxu0  ;;  %22709 = vmatmul.mubr.f32.gmra.mrb[164].mxu1 %v10090_v25  ;;  %v18546_v10 = vld [vmem:[%s34866_s3 + $0x130] sm:$0xff] }
 0x6fc   :  { %v9886_v21 = vmax.f32 %v9774_v1, %v9778_v61  ;;  %v25986_v38 = vadd.f32 %v22621_v0, %v31804_v62  ;;  %v9293_v32 = vpop.f32.mrb[169].mxu0  ;;  %22743 = vmatprep.mubr.f32.mxu1 %v10043_v13  ;;  %v35452_v1 = vld [vmem:[#allocation96_spill] sm:$0xff] }
 0x6fd   :  { %v9885_v48 = vmax.f32 %v9773_v22, %v9777_v44  ;;  %v25987_v41 = vadd.f32 %v9293_v32, %v31807_v11  ;;  %v32073_v22 = vld [vmem:[#allocation2 + $0x50] sm:$0xff]  ;;  %v18548_v44 = vld [vmem:[%s34866_s3 + $0x140] sm:$0xff]  ;;  %v18549_v0 = vld [vmem:[%s34866_s3 + $0x148] sm:$0xff] }
 0x6fe   :  { %v9940_v30 = vmax.f32 %v9884_v43, %v9886_v21  ;;  %v24722_v43 = vpack.c.bf16 %v18545_v14, %v18544_v39  ;;  %v9780_v54 = vadd.f32 %v31676_v7, %v25986_v38  ;;  %v32084_v38 = vld [vmem:[#allocation2 + $0x60] sm:$0xff] }
 0x6ff   :  { %v32045_v46 = vmax.f32 %v9883_v27, %v9885_v48  ;;  %v22624_v62 = vpop.f32.mrb[170].mxu0  ;;  %22744 = vmatmul.mubr.f32.vlgmr.msra.gmra.mrb[150].mxu1 %v32037_v35  ;;  %v35451_v27 = vld [vmem:[#allocation95_spill] sm:$0xff]  ;;  %v9779_v13 = vadd.f32 %v31676_v7, %v25987_v41 }
 0x700   :  { %v9988_v11 = vmax.f32 %v9940_v30, 0.0  ;;  %v25988_v17 = vadd.f32 %v22624_v62, %v31820_v29  ;;  %v9303_v33 = vpop.f32.mrb[171].mxu0  ;;  %22746 = vmatprep.mubr.f32.mxu1 %v32048_v19  ;;  %24717 = vmatpush3.bf16.msra.mxu1 %v31816_v12  ;;  %v18547_v29 = vld [vmem:[%s34866_s3 + $0x138] sm:$0xff] }
 0x701   :  { %v9987_v5 = vmax.f32 %v32045_v46, 0.0  ;;  %v25989_v20 = vadd.f32 %v9303_v33, %v35450_v16  ;;  %24719 = vmatprep.subr.bf16.mxu1 %v24718_v36  ;;  %v24726_v25 = vpack.c.bf16 %v18547_v29, %v18546_v10  ;;  %v35454_v62 = vld [vmem:[#allocation98_spill] sm:$0xff]  ;;  %v24730_v33 = vpack.c.bf16 %v18549_v0, %v18548_v44  ;;  %v32096_v10 = vld [vmem:[#allocation2 + $0x70] sm:$0xff] }
 0x702   :  { %10036 = vst [vmem:[#allocation2 + $0x148] sm:$0xf] %v9988_v11  ;;  %v18551_v29 = vld [vmem:[%s34866_s3 + $0x158] sm:$0xff] }
 0x703   :  { %10035 = vst [vmem:[#allocation2 + $0x140] sm:$0xff] %v9987_v5  ;;  %v22627_v12 = vpop.f32.mrb[172].mxu0  ;;  %22747 = vmatmul.mubr.f32.gmra.mrb[152].mxu1 %v32055_v55 }
 0x704   :  { %v25990_v52 = vadd.f32 %v22627_v12, %v35451_v27  ;;  %v9313_v8 = vpop.f32.mrb[173].mxu0  ;;  %22749 = vmatprep.mubr.f32.mxu1 %v32066_v56  ;;  %24721 = vmatpush3.bf16.msra.mxu1 %v24718_v36  ;;  %v35453_v36 = vld [vmem:[#allocation97_spill] sm:$0xff] }
 0x705   :  { %v25991_v61 = vadd.f32 %v9313_v8, %v35452_v1  ;;  %24723 = vmatprep.subr.bf16.mxu1 %v24722_v43  ;;  %v35455_v8 = vld [vmem:[#allocation99_spill] sm:$0xff] }
 0x706   :  { %v9784_v57 = vadd.f32 %v31676_v7, %v25990_v52 }
 0x707   :  { %v9783_v21 = vadd.f32 %v31676_v7, %v25991_v61  ;;  %v22630_v32 = vpop.f32.mrb[174].mxu0  ;;  %22750 = vmatmul.mubr.f32.gmra.mrb[154].mxu1 %v32073_v22  ;;  %v32092_v7 = vld [vmem:[%s34865_s2] ss:$0 sm:$0xff] }
 0x708   :  { %v9888_v48 = vmax.f32 %v9780_v54, %v9784_v57  ;;  %v25992_v30 = vadd.f32 %v22630_v32, %v35453_v36  ;;  %v9323_v39 = vpop.f32.mrb[175].mxu0  ;;  %22752 = vmatprep.mubr.f32.mxu1 %v32084_v38  ;;  %24725 = vmatpush3.bf16.msra.mxu1 %v24722_v43  ;;  %v9782_v41 = vadd.f32 %v32092_v7, %v25988_v17  ;;  %v18550_v43 = vld [vmem:[%s34866_s3 + $0x150] sm:$0xff]  ;;  %v18553_v32 = vld [vmem:[%s34866_s3 + $0x168] sm:$0xff] }
 0x709   :  { %v9887_v14 = vmax.f32 %v9779_v13, %v9783_v21  ;;  %v25993_v11 = vadd.f32 %v9323_v39, %v35454_v62  ;;  %24727 = vmatprep.subr.bf16.mxu1 %v24726_v25  ;;  %v9781_v12 = vadd.f32 %v32092_v7, %v25989_v20  ;;  %v35456_v54 = vld [vmem:[#allocation93_spill] sm:$0xff]  ;;  %v24734_v13 = vpack.c.bf16 %v18551_v29, %v18550_v43  ;;  %v18552_v20 = vld [vmem:[%s34866_s3 + $0x160] sm:$0xff] }
 0x70a   :  { %v9786_v16 = vadd.f32 %v32092_v7, %v25992_v30  ;;  %v35457_v57 = vmax.f32 %v35456_v54, 0.0  ;;  %v35458_v39 = vmax.f32 %v31856_v37, 0.0  ;;  %v18555_v37 = vld [vmem:[%s34866_s3 + $0x178] sm:$0xff] }
 0x70b   :  { %v9785_v27 = vadd.f32 %v32092_v7, %v25993_v11  ;;  %v22633_v52 = vpop.f32.mrb[176].mxu0  ;;  %22753 = vmatmul.mubr.f32.gmra.mrb[156].mxu1 %v32096_v10  ;;  %v35459_v11 = vmax.f32 %v31893_v53, 0.0 }
 0x70c   :  { %v9890_v17 = vmax.f32 %v9782_v41, %v9786_v16  ;;  %v25994_v1 = vadd.f32 %v22633_v52, %v35455_v8  ;;  %v9333_v61 = vpop.f32.mrb[177].mxu0  ;;  %22755 = vmatprep.mubr.f32.mxu1 %v35457_v57  ;;  %24729 = vmatpush3.bf16.msra.mxu1 %v24726_v25  ;;  %v24738_v16 = vpack.c.bf16 %v18553_v32, %v18552_v20 }
 0x70d   :  { %v9889_v44 = vmax.f32 %v9781_v12, %v9785_v27  ;;  %v25995_v0 = vadd.f32 %v9333_v61, %v31853_v45  ;;  %24731 = vmatprep.subr.bf16.mxu1 %v24730_v33 }
 0x70e   :  { %v9942_v21 = vmax.f32 %v9888_v48, %v9890_v17  ;;  %v9788_v29 = vadd.f32 %v32092_v7, %v25994_v1 }
 0x70f   :  { %v9941_v36 = vmax.f32 %v9887_v14, %v9889_v44  ;;  %v22636_v30 = vpop.f32.mrb[178].mxu0  ;;  %22756 = vmatmul.mubr.f32.gmra.mrb[158].mxu1 %v35458_v39  ;;  %v18554_v14 = vld [vmem:[%s34866_s3 + $0x170] sm:$0xff] }
 0x710   :  { %v9990_v25 = vmax.f32 %v9942_v21, 0.0  ;;  %v25996_v62 = vadd.f32 %v22636_v30, %v31858_v2  ;;  %v9343_v45 = vpop.f32.mrb[179].mxu0  ;;  %22758 = vmatprep.mubr.f32.mxu1 %v35459_v11  ;;  %24733 = vmatpush3.bf16.msra.mxu1 %v24730_v33  ;;  %v24742_v43 = vpack.c.bf16 %v18555_v37, %v18554_v14  ;;  %v35460_v44 = vld [vmem:[#allocation100_spill] sm:$0xff]  ;;  %v32165_v30 = vld [vmem:[#allocation2 + $0x12] sm:$0xff] }
 0x711   :  { %v9989_v48 = vmax.f32 %v9941_v36, 0.0  ;;  %v25997_v41 = vadd.f32 %v9343_v45, %v31861_v50  ;;  %24735 = vmatprep.subr.bf16.mxu1 %v24734_v13  ;;  %v32179_v14 = vld [vmem:[#allocation2 + $0x32] sm:$0xff] }
 0x712   :  { %10038 = vst [vmem:[#allocation2 + $0x158] sm:$0xf] %v9990_v25  ;;  %v9790_v61 = vadd.f32 %v32092_v7, %v25996_v62  ;;  %v32174_v62 = vld [vmem:[#allocation2 + $0x22] sm:$0xff]  ;;  %v18562_v37 = vld [vmem:[%s34866_s3 + $0x1b0] sm:$0xff] }
 0x713   :  { %10037 = vst [vmem:[#allocation2 + $0x150] sm:$0xff] %v9989_v48  ;;  %v22639_v2 = vpop.f32.mrb[180].mxu0  ;;  %22759 = vmatmul.mubr.f32.gmra.mrb[160].mxu1 %v9977_v58  ;;  %v9787_v58 = vadd.f32 %v32092_v7, %v25995_v0 }
 0x714   :  { %v25998_v53 = vadd.f32 %v22639_v2, %v31867_v24  ;;  %v9353_v33 = vpop.f32.mrb[181].mxu0  ;;  %22761 = vmatprep.mubr.f32.mxu1 %v9979_v34  ;;  %24737 = vmatpush3.bf16.msra.mxu1 %v24734_v13  ;;  %v18557_v24 = vld [vmem:[%s34866_s3 + $0x188] sm:$0xff] }
 0x715   :  { %v25999_v50 = vadd.f32 %v9353_v33, %v31870_v9  ;;  %24739 = vmatprep.subr.bf16.mxu1 %v24738_v16  ;;  %v24746_v1 = vpack.c.bf16 %v18557_v24, %v18556_v60  ;;  %v32195_v60 = vld [vmem:[#allocation2 + $0x52] sm:$0xff]  ;;  %v18564_v24 = vld [vmem:[%s34866_s3 + $0x1c0] sm:$0xff] }
 0x716   :  { %v9792_v12 = vadd.f32 %v32092_v7, %v25998_v53  ;;  %v32188_v53 = vld [vmem:[#allocation2 + $0x42] sm:$0xff] }
 0x717   :  { %v9791_v28 = vadd.f32 %v32092_v7, %v25999_v50  ;;  %v22642_v34 = vpop.f32.mrb[182].mxu0  ;;  %22762 = vmatmul.mubr.f32.gmra.mrb[162].mxu1 %v9981_v42  ;;  %v9789_v42 = vadd.f32 %v32092_v7, %v25997_v41 }
 0x718   :  { %v9892_v9 = vmax.f32 %v9788_v29, %v9792_v12  ;;  %v26000_v27 = vadd.f32 %v22642_v34, %v31877_v3  ;;  %v9363_v52 = vpop.f32.mrb[183].mxu0  ;;  %22764 = vmatprep.mubr.f32.mxu1 %v9983_v40  ;;  %24741 = vmatpush3.bf16.msra.mxu1 %v24738_v16  ;;  %v18559_v3 = vld [vmem:[%s34866_s3 + $0x198] sm:$0xff]  ;;  %v32206_v34 = vld [vmem:[#allocation2 + $0x62] sm:$0xff] }
 0x719   :  { %v9891_v17 = vmax.f32 %v9787_v58, %v9791_v28  ;;  %v26001_v8 = vadd.f32 %v9363_v52, %v31880_v63  ;;  %24743 = vmatprep.subr.bf16.mxu1 %v24742_v43  ;;  %v10398_v63 = vld [vmem:[#allocation2 + $0x2] sm:$0xff]  ;;  %v24750_v32 = vpack.c.bf16 %v18559_v3, %v18558_v47  ;;  %v32213_v47 = vld [vmem:[#allocation2 + $0x72] sm:$0xff] }
 0x71a   :  { %v9794_v54 = vadd.f32 %v32092_v7, %v26000_v27  ;;  %v18566_v3 = vld [vmem:[%s34866_s3 + $0x1d0] sm:$0xff] }
 0x71b   :  { %v9793_v15 = vadd.f32 %v32092_v7, %v26001_v8  ;;  %v22645_v40 = vpop.f32.mrb[184].mxu0  ;;  %22765 = vmatmul.mubr.f32.gmra.mrb[164].mxu1 %v9985_v51  ;;  %v18561_v51 = vld [vmem:[%s34866_s3 + $0x1a8] sm:$0xff] }
 0x71c   :  { %v9894_v57 = vmax.f32 %v9790_v61, %v9794_v54  ;;  %v26002_v0 = vadd.f32 %v22645_v40, %v35460_v44  ;;  %v9373_v13 = vpop.f32.mrb[185].mxu0  ;;  %24745 = vmatpush3.bf16.msra.mxu1 %v24742_v43  ;;  %22799 = vmatprep.mubr.f32.mxu1 %v10398_v63  ;;  %v24754_v16 = vpack.c.bf16 %v18561_v51, %v18560_v6  ;;  %v32236_v51 = vld [vmem:[#allocation2 + $0xf2] sm:$0xff] }
 0x71d   :  { %v9893_v21 = vmax.f32 %v9789_v42, %v9793_v15  ;;  %v26003_v20 = vadd.f32 %v9373_v13, %v31890_v4  ;;  %24747 = vmatprep.subr.bf16.mxu1 %v24746_v1  ;;  %v10406_v15 = vld [vmem:[#allocation2 + $0xc2] sm:$0xff] }
 0x71e   :  { %v9944_v36 = vmax.f32 %v9892_v9, %v9894_v57  ;;  %v9796_v29 = vadd.f32 %v32092_v7, %v26002_v0  ;;  %v32224_v0 = vld [vmem:[#allocation2 + $0xd2] sm:$0xff]  ;;  %v18568_v13 = vld [vmem:[%s34866_s3 + $0x1e0] sm:$0xff] }
 0x71f   :  { %v9943_v39 = vmax.f32 %v9891_v17, %v9893_v21  ;;  %v22648_v25 = vpop.f32.mrb[186].mxu0  ;;  %22800 = vmatmul.mubr.f32.vlgmr.msra.gmra.mrb[150].mxu1 %v32165_v30  ;;  %v9795_v58 = vadd.f32 %v32092_v7, %v26003_v20  ;;  %v32233_v20 = vld [vmem:[#allocation2 + $0xe2] sm:$0xff] }
 0x720   :  { %v9992_v4 = vmax.f32 %v9944_v36, 0.0  ;;  %v26004_v45 = vadd.f32 %v22648_v25, %v31895_v31  ;;  %v9383_v11 = vpop.f32.mrb[187].mxu0  ;;  %22802 = vmatprep.mubr.f32.mxu1 %v32174_v62  ;;  %24749 = vmatpush3.bf16.msra.mxu1 %v24746_v1  ;;  %v18563_v31 = vld [vmem:[%s34866_s3 + $0x1b8] sm:$0xff] }
 0x721   :  { %v9991_v48 = vmax.f32 %v9943_v39, 0.0  ;;  %v26005_v41 = vadd.f32 %v9383_v11, %v31898_v59  ;;  %24751 = vmatprep.subr.bf16.mxu1 %v24750_v32  ;;  %v24758_v43 = vpack.c.bf16 %v18563_v31, %v18562_v37  ;;  %v18570_v39 = vld [vmem:[%s34866_s3 + $0x1f0] sm:$0xff]  ;;  %v18571_v25 = vld [vmem:[%s34866_s3 + $0x1f8] sm:$0xff] }
 0x722   :  { %10040 = vst [vmem:[#allocation2 + $0x168] sm:$0xf] %v9992_v4  ;;  %v9798_v61 = vadd.f32 %v32092_v7, %v26004_v45  ;;  %v32245_v4 = vld [vmem:[#allocation2 + $0x102] sm:$0xff]  ;;  %v24774_v45 = vpack.c.bf16 %v18571_v25, %v18570_v39  ;;  %v32248_v11 = vld [vmem:[#allocation2 + $0x112] sm:$0xff] }
 0x723   :  { %10039 = vst [vmem:[#allocation2 + $0x160] sm:$0xff] %v9991_v48  ;;  %v22651_v2 = vpop.f32.mrb[188].mxu0  ;;  %22803 = vmatmul.mubr.f32.gmra.mrb[152].mxu1 %v32179_v14  ;;  %v9797_v42 = vadd.f32 %v32092_v7, %v26005_v41  ;;  %v18572_v48 = vld [vmem:[%s34866_s3 + $0x200] sm:$0xff]  ;;  %v18573_v41 = vld [vmem:[%s34866_s3 + $0x208] sm:$0xff]  ;;  %v32260_v31 = vld [vmem:[#allocation2 + $0x132] sm:$0xff] }
 0x724   :  { %v26006_v59 = vadd.f32 %v22651_v2, %v31904_v23  ;;  %v9393_v33 = vpop.f32.mrb[189].mxu0  ;;  %22805 = vmatprep.mubr.f32.mxu1 %v32188_v53  ;;  %24753 = vmatpush3.bf16.msra.mxu1 %v24750_v32  ;;  %v18565_v23 = vld [vmem:[%s34866_s3 + $0x1c8] sm:$0xff]  ;;  %v24778_v37 = vpack.c.bf16 %v18573_v41, %v18572_v48  ;;  %v18574_v2 = vld [vmem:[%s34866_s3 + $0x210] sm:$0xff]  ;;  %v18588_v39 = vld [vmem:[%s34866_s3 + $0x280] sm:$0xff] }
 0x725   :  { %v26007_v50 = vadd.f32 %v9393_v33, %v31907_v49  ;;  %24755 = vmatprep.subr.bf16.mxu1 %v24754_v16  ;;  %v24762_v1 = vpack.c.bf16 %v18565_v23, %v18564_v24  ;;  %v10592_v33 = vld [vmem:[#allocation2 + $0x3] sm:$0xff]  ;;  %v32350_v41 = vld [vmem:[#allocation2 + $0x133] sm:$0xff] }
 0x726   :  { %v9800_v12 = vadd.f32 %v32092_v7, %v26006_v59  ;;  %v18575_v59 = vld [vmem:[%s34866_s3 + $0x218] sm:$0xff]  ;;  %v32278_v24 = vld [vmem:[#allocation2 + $0x23] sm:$0xff] }
 0x727   :  { %v9799_v49 = vadd.f32 %v32092_v7, %v26007_v50  ;;  %v22654_v28 = vpop.f32.mrb[190].mxu0  ;;  %22806 = vmatmul.mubr.f32.gmra.mrb[154].mxu1 %v32195_v60  ;;  %v24782_v50 = vpack.c.bf16 %v18575_v59, %v18574_v2  ;;  %v18589_v25 = vld [vmem:[%s34866_s3 + $0x288] sm:$0xff]  ;;  %v18591_v2 = vld [vmem:[%s34866_s3 + $0x298] sm:$0xff] }
 0x728   :  { %v9896_v9 = vmax.f32 %v9796_v29, %v9800_v12  ;;  %v26008_v27 = vadd.f32 %v22654_v28, %v31914_v18  ;;  %v9403_v52 = vpop.f32.mrb[191].mxu0  ;;  %22808 = vmatprep.mubr.f32.mxu1 %v32206_v34  ;;  %24757 = vmatpush3.bf16.msra.mxu1 %v24754_v16  ;;  %v18567_v18 = vld [vmem:[%s34866_s3 + $0x1d8] sm:$0xff]  ;;  %v32257_v16 = vld [vmem:[#allocation2 + $0x122] sm:$0xff]  ;;  %v24810_v48 = vpack.c.bf16 %v18589_v25, %v18588_v39 }
 0x729   :  { %v9895_v17 = vmax.f32 %v9795_v58, %v9799_v49  ;;  %v26009_v8 = vadd.f32 %v9403_v52, %v31917_v26  ;;  %24759 = vmatprep.subr.bf16.mxu1 %v24758_v43  ;;  %v24766_v57 = vpack.c.bf16 %v18567_v18, %v18566_v3  ;;  %v18576_v29 = vld [vmem:[%s34866_s3 + $0x220] sm:$0xff]  ;;  %v18577_v12 = vld [vmem:[%s34866_s3 + $0x228] sm:$0xff]  ;;  %v32281_v58 = vld [vmem:[#allocation2 + $0x33] sm:$0xff] }
 0x72a   :  { %v9802_v54 = vadd.f32 %v32092_v7, %v26008_v27  ;;  %v24786_v23 = vpack.c.bf16 %v18577_v12, %v18576_v29  ;;  %v18578_v49 = vld [vmem:[%s34866_s3 + $0x230] sm:$0xff]  ;;  %v18579_v28 = vld [vmem:[%s34866_s3 + $0x238] sm:$0xff]  ;;  %v10786_v59 = vld [vmem:[#allocation2 + $0x4] sm:$0xff] }
 0x72b   :  { %v9801_v26 = vadd.f32 %v32092_v7, %v26009_v8  ;;  %22809 = vmatmul.mubr.f32.gmra.mrb[156].mxu1 %v32213_v47  ;;  %v18569_v7 = vld [vmem:[%s34866_s3 + $0x1e8] sm:$0xff]  ;;  %v24790_v27 = vpack.c.bf16 %v18579_v28, %v18578_v49  ;;  %v32293_v52 = vld [vmem:[#allocation2 + $0x53] sm:$0xff]  ;;  %v18592_v29 = vld [vmem:[%s34866_s3 + $0x2a0] sm:$0xff] }
 0x72c   :  { %v9898_v40 = vmax.f32 %v9798_v61, %v9802_v54  ;;  %22811 = vmatprep.mubr.f32.mxu1 %v10406_v15  ;;  %24761 = vmatpush3.bf16.msra.mxu1 %v24758_v43  ;;  %v24770_v6 = vpack.c.bf16 %v18569_v7, %v18568_v13  ;;  %v32269_v43 = vld [vmem:[#allocation2 + $0x13] sm:$0xff]  ;;  %v18581_v8 = vld [vmem:[%s34866_s3 + $0x248] sm:$0xff]  ;;  %v18600_v25 = vld [vmem:[%s34866_s3 + $0x2e0] sm:$0xff] }
 0x72d   :  { %v9897_v63 = vmax.f32 %v9797_v42, %v9801_v26  ;;  %24763 = vmatprep.subr.bf16.mxu1 %v24762_v1  ;;  %v32305_v54 = vld [vmem:[#allocation2 + $0x73] sm:$0xff]  ;;  %v10600_v42 = vld [vmem:[#allocation2 + $0xc3] sm:$0xff] }
 0x72e   :  { %v9946_v44 = vmax.f32 %v9896_v9, %v9898_v40  ;;  %v32290_v9 = vld [vmem:[#allocation2 + $0x43] sm:$0xff]  ;;  %v18582_v3 = vld [vmem:[%s34866_s3 + $0x250] sm:$0xff]  ;;  %v18583_v18 = vld [vmem:[%s34866_s3 + $0x258] sm:$0xff] }
 0x72f   :  { %v9945_v21 = vmax.f32 %v9895_v17, %v9897_v63  ;;  %22812 = vmatmul.mubr.f32.gmra.mrb[158].mxu1 %v32224_v0  ;;  %v18580_v17 = vld [vmem:[%s34866_s3 + $0x240] sm:$0xff]  ;;  %v24798_v26 = vpack.c.bf16 %v18583_v18, %v18582_v3  ;;  %v32314_v15 = vld [vmem:[#allocation2 + $0xd3] sm:$0xff]  ;;  %v18585_v63 = vld [vmem:[%s34866_s3 + $0x268] sm:$0xff] }
 0x730   :  { %v9994_v32 = vmax.f32 %v9946_v44, 0.0  ;;  %22814 = vmatprep.mubr.f32.mxu1 %v32233_v20  ;;  %24765 = vmatpush3.bf16.msra.mxu1 %v24762_v1  ;;  %v32302_v1 = vld [vmem:[#allocation2 + $0x63] sm:$0xff]  ;;  %v24794_v61 = vpack.c.bf16 %v18581_v8, %v18580_v17  ;;  %v32326_v13 = vld [vmem:[#allocation2 + $0xf3] sm:$0xff] }
 0x731   :  { %v9993_v36 = vmax.f32 %v9945_v21, 0.0  ;;  %24767 = vmatprep.subr.bf16.mxu1 %v24766_v57  ;;  %v18584_v40 = vld [vmem:[%s34866_s3 + $0x260] sm:$0xff]  ;;  %v18586_v7 = vld [vmem:[%s34866_s3 + $0x270] sm:$0xff]  ;;  %v18587_v21 = vld [vmem:[%s34866_s3 + $0x278] sm:$0xff] }
 0x732   :  { %10042 = vst [vmem:[#allocation2 + $0x178] sm:$0xf] %v9994_v32  ;;  %v24802_v44 = vpack.c.bf16 %v18585_v63, %v18584_v40  ;;  %v32335_v32 = vld [vmem:[#allocation2 + $0x103] sm:$0xff]  ;;  %v32371_v28 = vld [vmem:[#allocation2 + $0x34] sm:$0xff] }
 0x733   :  { %10041 = vst [vmem:[#allocation2 + $0x170] sm:$0xff] %v9993_v36  ;;  %22815 = vmatmul.mubr.f32.gmra.mrb[160].mxu1 %v32236_v51  ;;  %v24806_v36 = vpack.c.bf16 %v18587_v21, %v18586_v7  ;;  %v18593_v12 = vld [vmem:[%s34866_s3 + $0x2a8] sm:$0xff]  ;;  %v18595_v17 = vld [vmem:[%s34866_s3 + $0x2b8] sm:$0xff]  ;;  %v18596_v18 = vld [vmem:[%s34866_s3 + $0x2c0] sm:$0xff] }
 0x734   :  { %22817 = vmatprep.mubr.f32.mxu1 %v32245_v4  ;;  %24769 = vmatpush3.bf16.msra.mxu1 %v24766_v57  ;;  %v32323_v57 = vld [vmem:[#allocation2 + $0xe3] sm:$0xff]  ;;  %v24818_v49 = vpack.c.bf16 %v18593_v12, %v18592_v29  ;;  %v32383_v3 = vld [vmem:[#allocation2 + $0x54] sm:$0xff] }
 0x735   :  { %24771 = vmatprep.subr.bf16.mxu1 %v24770_v6  ;;  %v32380_v8 = vld [vmem:[#allocation2 + $0x44] sm:$0xff]  ;;  %v32395_v63 = vld [vmem:[#allocation2 + $0x74] sm:$0xff] }
 0x736   :  { %v18599_v7 = vld [vmem:[%s34866_s3 + $0x2d8] sm:$0xff]  ;;  %v10794_v21 = vld [vmem:[#allocation2 + $0xc4] sm:$0xff] }
 0x737   :  { %22818 = vmatmul.mubr.f32.gmra.mrb[162].mxu1 %v32248_v11  ;;  %v32404_v39 = vld [vmem:[#allocation2 + $0xd4] sm:$0xff]  ;;  %v32425_v12 = vld [vmem:[#allocation2 + $0x104] sm:$0xff] }
 0x738   :  { %22820 = vmatprep.mubr.f32.mxu1 %v32257_v16  ;;  %24773 = vmatpush3.bf16.msra.mxu1 %v24770_v6  ;;  %v32338_v6 = vld [vmem:[#allocation2 + $0x113] sm:$0xff] }
 0x739   :  { %24775 = vmatprep.subr.bf16.mxu1 %v24774_v45  ;;  %v18603_v29 = vld [vmem:[%s34866_s3 + $0x2f8] sm:$0xff] }
 0x73b   :  { %22821 = vmatmul.mubr.f32.gmra.mrb[164].mxu1 %v32260_v31 }
 0x73c   :  { %24777 = vmatpush3.bf16.msra.mxu1 %v24774_v45  ;;  %22855 = vmatprep.mubr.f32.mxu1 %v10592_v33  ;;  %v32347_v45 = vld [vmem:[#allocation2 + $0x123] sm:$0xff] }
 0x73d   :  { %24779 = vmatprep.subr.bf16.mxu1 %v24778_v37 }
 0x73f   :  { %22856 = vmatmul.mubr.f32.vlgmr.msra.gmra.mrb[150].mxu1 %v32269_v43 }
 0x740   :  { %22858 = vmatprep.mubr.f32.mxu1 %v32278_v24  ;;  %24781 = vmatpush3.bf16.msra.mxu1 %v24778_v37  ;;  %v18590_v37 = vld [vmem:[%s34866_s3 + $0x290] sm:$0xff] }
 0x741   :  { %24783 = vmatprep.subr.bf16.mxu1 %v24782_v50  ;;  %v24814_v33 = vpack.c.bf16 %v18591_v2, %v18590_v37  ;;  %v32413_v37 = vld [vmem:[#allocation2 + $0xe4] sm:$0xff] }
 0x743   :  { %22859 = vmatmul.mubr.f32.gmra.mrb[152].mxu1 %v32281_v58 }
 0x744   :  { %22861 = vmatprep.mubr.f32.mxu1 %v32290_v9  ;;  %24785 = vmatpush3.bf16.msra.mxu1 %v24782_v50  ;;  %v32359_v50 = vld [vmem:[#allocation2 + $0x14] sm:$0xff] }
 0x745   :  { %24787 = vmatprep.subr.bf16.mxu1 %v24786_v23 }
 0x747   :  { %22862 = vmatmul.mubr.f32.gmra.mrb[154].mxu1 %v32293_v52 }
 0x748   :  { %22864 = vmatprep.mubr.f32.mxu1 %v32302_v1  ;;  %24789 = vmatpush3.bf16.msra.mxu1 %v24786_v23  ;;  %v32368_v23 = vld [vmem:[#allocation2 + $0x24] sm:$0xff] }
 0x749   :  { %24791 = vmatprep.subr.bf16.mxu1 %v24790_v27 }
 0x74b   :  { %22865 = vmatmul.mubr.f32.gmra.mrb[156].mxu1 %v32305_v54 }
 0x74c   :  { %22867 = vmatprep.mubr.f32.mxu1 %v10600_v42  ;;  %24793 = vmatpush3.bf16.msra.mxu1 %v24790_v27  ;;  %v18594_v27 = vld [vmem:[%s34866_s3 + $0x2b0] sm:$0xff]  ;;  %v18597_v42 = vld [vmem:[%s34866_s3 + $0x2c8] sm:$0xff] }
 0x74d   :  { %24795 = vmatprep.subr.bf16.mxu1 %v24794_v61  ;;  %v24826_v40 = vpack.c.bf16 %v18597_v42, %v18596_v18  ;;  %v32437_v18 = vld [vmem:[#allocation2 + $0x124] sm:$0xff] }
 0x74f   :  { %22868 = vmatmul.mubr.f32.gmra.mrb[158].mxu1 %v32314_v15 }
 0x750   :  { %22870 = vmatprep.mubr.f32.mxu1 %v32323_v57  ;;  %24797 = vmatpush3.bf16.msra.mxu1 %v24794_v61  ;;  %v24822_v61 = vpack.c.bf16 %v18595_v17, %v18594_v27  ;;  %v32428_v27 = vld [vmem:[#allocation2 + $0x114] sm:$0xff]  ;;  %v18604_v17 = vld [vmem:[%s34866_s3 + $0x300] sm:$0xff] }
 0x751   :  { %24799 = vmatprep.subr.bf16.mxu1 %v24798_v26 }
 0x753   :  { %22871 = vmatmul.mubr.f32.gmra.mrb[160].mxu1 %v32326_v13 }
 0x754   :  { %22873 = vmatprep.mubr.f32.mxu1 %v32335_v32  ;;  %24801 = vmatpush3.bf16.msra.mxu1 %v24798_v26  ;;  %v32392_v26 = vld [vmem:[#allocation2 + $0x64] sm:$0xff] }
 0x755   :  { %24803 = vmatprep.subr.bf16.mxu1 %v24802_v44 }
 0x757   :  { %22874 = vmatmul.mubr.f32.gmra.mrb[162].mxu1 %v32338_v6 }
 0x758   :  { %22876 = vmatprep.mubr.f32.mxu1 %v32347_v45  ;;  %24805 = vmatpush3.bf16.msra.mxu1 %v24802_v44  ;;  %v18598_v44 = vld [vmem:[%s34866_s3 + $0x2d0] sm:$0xff] }
 0x759   :  { %24807 = vmatprep.subr.bf16.mxu1 %v24806_v36 }
 0x75b   :  { %22877 = vmatmul.mubr.f32.gmra.mrb[164].mxu1 %v32350_v41 }
 0x75c   :  { %24809 = vmatpush3.bf16.msra.mxu1 %v24806_v36  ;;  %22911 = vmatprep.mubr.f32.mxu1 %v10786_v59  ;;  %v24830_v36 = vpack.c.bf16 %v18599_v7, %v18598_v44  ;;  %v32416_v59 = vld [vmem:[#allocation2 + $0xf4] sm:$0xff] }
 0x75d   :  { %24811 = vmatprep.subr.bf16.mxu1 %v24810_v48  ;;  %v18606_v44 = vld [vmem:[%s34866_s3 + $0x310] sm:$0xff]  ;;  %v18607_v7 = vld [vmem:[%s34866_s3 + $0x318] sm:$0xff] }
 0x75f   :  { %22912 = vmatmul.mubr.f32.vlgmr.msra.gmra.mrb[150].mxu1 %v32359_v50 }
 0x760   :  { %22914 = vmatprep.mubr.f32.mxu1 %v32368_v23  ;;  %24813 = vmatpush3.bf16.msra.mxu1 %v24810_v48  ;;  %v18601_v48 = vld [vmem:[%s34866_s3 + $0x2e8] sm:$0xff] }
 0x761   :  { %24815 = vmatprep.subr.bf16.mxu1 %v24814_v33  ;;  %v24834_v2 = vpack.c.bf16 %v18601_v48, %v18600_v25  ;;  %v18609_v25 = vld [vmem:[%s34866_s3 + $0x328] sm:$0xff] }
 0x763   :  { %22915 = vmatmul.mubr.f32.gmra.mrb[152].mxu1 %v32371_v28 }
 0x764   :  { %22917 = vmatprep.mubr.f32.mxu1 %v32380_v8  ;;  %24817 = vmatpush3.bf16.msra.mxu1 %v24814_v33  ;;  %v18602_v33 = vld [vmem:[%s34866_s3 + $0x2f0] sm:$0xff] }
 0x765   :  { %24819 = vmatprep.subr.bf16.mxu1 %v24818_v49 }
 0x767   :  { %22918 = vmatmul.mubr.f32.gmra.mrb[154].mxu1 %v32383_v3 }
 0x768   :  { %22920 = vmatprep.mubr.f32.mxu1 %v32392_v26  ;;  %24821 = vmatpush3.bf16.msra.mxu1 %v24818_v49  ;;  %v24838_v49 = vpack.c.bf16 %v18603_v29, %v18602_v33  ;;  %v18613_v33 = vld [vmem:[%s34866_s3 + $0x348] sm:$0xff]  ;;  %v32474_v29 = vld [vmem:[#allocation2 + $0x80] sm:$0xff] }
 0x769   :  { %24823 = vmatprep.subr.bf16.mxu1 %v24822_v61 }
 0x76b   :  { %22921 = vmatmul.mubr.f32.gmra.mrb[156].mxu1 %v32395_v63 }
 0x76c   :  { %22923 = vmatprep.mubr.f32.mxu1 %v10794_v21  ;;  %24825 = vmatpush3.bf16.msra.mxu1 %v24822_v61  ;;  %v18605_v61 = vld [vmem:[%s34866_s3 + $0x308] sm:$0xff]  ;;  %v24846_v21 = vpack.c.bf16 %v18607_v7, %v18606_v44  ;;  %v32492_v44 = vld [vmem:[#allocation2 + $0xf0] sm:$0xff] }
 0x76d   :  { %24827 = vmatprep.subr.bf16.mxu1 %v24826_v40  ;;  %v24842_v42 = vpack.c.bf16 %v18605_v61, %v18604_v17  ;;  %v10989_v17 = vld [vmem:[#allocation2 + $0xd0] sm:$0xff]  ;;  %v18616_v61 = vld [vmem:[%s34866_s3 + $0x360] sm:$0xff] }
 0x76f   :  { %22924 = vmatmul.mubr.f32.gmra.mrb[158].mxu1 %v32404_v39 }
 0x770   :  { %22926 = vmatprep.mubr.f32.mxu1 %v32413_v37  ;;  %24829 = vmatpush3.bf16.msra.mxu1 %v24826_v40  ;;  %v32440_v40 = vld [vmem:[#allocation2 + $0x134] sm:$0xff] }
 0x771   :  { %24831 = vmatprep.subr.bf16.mxu1 %v24830_v36 }
 0x773   :  { %22927 = vmatmul.mubr.f32.gmra.mrb[160].mxu1 %v32416_v59 }
 0x774   :  { %22929 = vmatprep.mubr.f32.mxu1 %v32425_v12  ;;  %24833 = vmatpush3.bf16.msra.mxu1 %v24830_v36  ;;  %v18608_v36 = vld [vmem:[%s34866_s3 + $0x320] sm:$0xff] }
 0x775   :  { %24835 = vmatprep.subr.bf16.mxu1 %v24834_v2  ;;  %v24850_v48 = vpack.c.bf16 %v18609_v25, %v18608_v36  ;;  %v18618_v36 = vld [vmem:[%s34866_s3 + $0x370] sm:$0xff]  ;;  %v18619_v25 = vld [vmem:[%s34866_s3 + $0x378] sm:$0xff] }
 0x777   :  { %22930 = vmatmul.mubr.f32.gmra.mrb[162].mxu1 %v32428_v27 }
 0x778   :  { %22932 = vmatprep.mubr.f32.mxu1 %v32437_v18  ;;  %24837 = vmatpush3.bf16.msra.mxu1 %v24834_v2  ;;  %v18611_v2 = vld [vmem:[%s34866_s3 + $0x338] sm:$0xff] }
 0x779   :  { %24839 = vmatprep.subr.bf16.mxu1 %v24838_v49 }
 0x77b   :  { %22933 = vmatmul.mubr.f32.gmra.mrb[164].mxu1 %v32440_v40 }
 0x77c   :  { %24841 = vmatpush3.bf16.msra.mxu1 %v24838_v49  ;;  %22967 = vmatprep.mubr.f32.mxu1 %v32037_v35  ;;  %v18610_v35 = vld [vmem:[%s34866_s3 + $0x330] sm:$0xff]  ;;  %v18615_v49 = vld [vmem:[%s34866_s3 + $0x358] sm:$0xff] }
 0x77d   :  { %24843 = vmatprep.subr.bf16.mxu1 %v24842_v42 }
 0x77f   :  { %22968 = vmatmul.mubr.f32.vlgmr.msra.gmra.mrb[150].mxu1 %v32048_v19  ;;  %v24854_v19 = vpack.c.bf16 %v18611_v2, %v18610_v35  ;;  %v24870_v35 = vpack.c.bf16 %v18619_v25, %v18618_v36  ;;  %v32507_v2 = vld [vmem:[#allocation2 + $0x120] sm:$0xff]  ;;  %v32536_v36 = vld [vmem:[#allocation2 + $0x31] sm:$0xff] }
 0x780   :  { %22970 = vmatprep.mubr.f32.mxu1 %v32055_v55  ;;  %24845 = vmatpush3.bf16.msra.mxu1 %v24842_v42  ;;  %v18612_v55 = vld [vmem:[%s34866_s3 + $0x340] sm:$0xff]  ;;  %v18617_v42 = vld [vmem:[%s34866_s3 + $0x368] sm:$0xff]  ;;  %v18626_v25 = vld [vmem:[%s34866_s3 + $0x3b0] sm:$0xff] }
 0x781   :  { %24847 = vmatprep.subr.bf16.mxu1 %v24846_v21  ;;  %v24866_v7 = vpack.c.bf16 %v18617_v42, %v18616_v61  ;;  %v32527_v61 = vld [vmem:[#allocation2 + $0x21] sm:$0xff] }
 0x782   :  { %v18624_v42 = vld [vmem:[%s34866_s3 + $0x3a0] sm:$0xff] }
 0x783   :  { %22971 = vmatmul.mubr.f32.gmra.mrb[152].mxu1 %v32066_v56  ;;  %v24858_v56 = vpack.c.bf16 %v18613_v33, %v18612_v55  ;;  %v18621_v55 = vld [vmem:[%s34866_s3 + $0x388] sm:$0xff]  ;;  %v32516_v33 = vld [vmem:[#allocation2 + $0x130] sm:$0xff] }
 0x784   :  { %22973 = vmatprep.mubr.f32.mxu1 %v32073_v22  ;;  %24849 = vmatpush3.bf16.msra.mxu1 %v24846_v21  ;;  %v18614_v22 = vld [vmem:[%s34866_s3 + $0x350] sm:$0xff]  ;;  %v32495_v21 = vld [vmem:[#allocation2 + $0x100] sm:$0xff] }
 0x785   :  { %24851 = vmatprep.subr.bf16.mxu1 %v24850_v48 }
 0x787   :  { %22974 = vmatmul.mubr.f32.gmra.mrb[154].mxu1 %v32084_v38  ;;  %v24862_v38 = vpack.c.bf16 %v18615_v49, %v18614_v22  ;;  %v18622_v22 = vld [vmem:[%s34866_s3 + $0x390] sm:$0xff]  ;;  %v18623_v49 = vld [vmem:[%s34866_s3 + $0x398] sm:$0xff] }
 0x788   :  { %22976 = vmatprep.mubr.f32.mxu1 %v32096_v10  ;;  %24853 = vmatpush3.bf16.msra.mxu1 %v24850_v48  ;;  %v32483_v10 = vld [vmem:[#allocation2 + $0xe0] sm:$0xff]  ;;  %v32504_v48 = vld [vmem:[#allocation2 + $0x110] sm:$0xff] }
 0x789   :  { %24855 = vmatprep.subr.bf16.mxu1 %v24854_v19 }
 0x78b   :  { %22977 = vmatmul.mubr.f32.gmra.mrb[156].mxu1 %v32474_v29 }
 0x78c   :  { %22979 = vmatprep.mubr.f32.mxu1 %v10989_v17  ;;  %24857 = vmatpush3.bf16.msra.mxu1 %v24854_v19  ;;  %v18620_v19 = vld [vmem:[%s34866_s3 + $0x380] sm:$0xff]  ;;  %v11175_v17 = vld [vmem:[#allocation2 + $0x11] sm:$0xff] }
 0x78d   :  { %24859 = vmatprep.subr.bf16.mxu1 %v24858_v56 }
 0x78f   :  { %22980 = vmatmul.mubr.f32.gmra.mrb[158].mxu1 %v32483_v10 }
 0x790   :  { %22982 = vmatprep.mubr.f32.mxu1 %v32492_v44  ;;  %24861 = vmatpush3.bf16.msra.mxu1 %v24858_v56  ;;  %v24874_v56 = vpack.c.bf16 %v18621_v55, %v18620_v19  ;;  %v32548_v19 = vld [vmem:[#allocation2 + $0x51] sm:$0xff] }
 0x791   :  { %24863 = vmatprep.subr.bf16.mxu1 %v24862_v38 }
 0x793   :  { %22983 = vmatmul.mubr.f32.gmra.mrb[160].mxu1 %v32495_v21 }
 0x794   :  { %22985 = vmatprep.mubr.f32.mxu1 %v32504_v48  ;;  %24865 = vmatpush3.bf16.msra.mxu1 %v24862_v38  ;;  %v24878_v38 = vpack.c.bf16 %v18623_v49, %v18622_v22  ;;  %v18628_v22 = vld [vmem:[%s34866_s3 + $0x3c0] sm:$0xff]  ;;  %v18629_v49 = vld [vmem:[%s34866_s3 + $0x3c8] sm:$0xff] }
 0x795   :  { %24867 = vmatprep.subr.bf16.mxu1 %v24866_v7 }
 0x797   :  { %22986 = vmatmul.mubr.f32.gmra.mrb[162].mxu1 %v32507_v2 }
 0x798   :  { %22988 = vmatprep.mubr.f32.mxu1 %v32516_v33  ;;  %24869 = vmatpush3.bf16.msra.mxu1 %v24866_v7  ;;  %v18625_v7 = vld [vmem:[%s34866_s3 + $0x3a8] sm:$0xff] }
 0x799   :  { %24871 = vmatprep.subr.bf16.mxu1 %v24870_v35  ;;  %v24882_v46 = vpack.c.bf16 %v18625_v7, %v18624_v42  ;;  %v32563_v42 = vld [vmem:[#allocation2 + $0x81] sm:$0xff]  ;;  %v18630_v7 = vld [vmem:[%s34866_s3 + $0x3d0] sm:$0xff] }
 0x79b   :  { %22989 = vmatmul.mubr.f32.gmra.mrb[164].mxu1 %v9987_v5  ;;  %v32539_v5 = vld [vmem:[#allocation2 + $0x41] sm:$0xff] }
 0x79c   :  { %24873 = vmatpush3.bf16.msra.mxu1 %v24870_v35  ;;  %23023 = vmatprep.mubr.f32.mxu1 %v11175_v17  ;;  %v18627_v35 = vld [vmem:[%s34866_s3 + $0x3b8] sm:$0xff] }
 0x79d   :  { %24875 = vmatprep.subr.bf16.mxu1 %v24874_v56  ;;  %v24886_v55 = vpack.c.bf16 %v18627_v35, %v18626_v25  ;;  %v32560_v17 = vld [vmem:[#allocation2 + $0x71] sm:$0xff] }
 0x79e   :  { %35462 = vst [vmem:[#allocation102_spill] sm:$0xff] %v32560_v17  ;;  %v18631_v25 = vld [vmem:[%s34866_s3 + $0x3d8] sm:$0xff] }
 0x79f   :  { %23024 = vmatmul.mubr.f32.vlgmr.msra.gmra.mrb[150].mxu1 %v32527_v61  ;;  %v11183_v35 = vld [vmem:[#allocation2 + $0xd1] sm:$0xff] }
 0x7a0   :  { %23026 = vmatprep.mubr.f32.mxu1 %v32536_v36  ;;  %24877 = vmatpush3.bf16.msra.mxu1 %v24874_v56  ;;  %v32551_v56 = vld [vmem:[#allocation2 + $0x61] sm:$0xff] }
 0x7a1   :  { %24879 = vmatprep.subr.bf16.mxu1 %v24878_v38  ;;  %35461 = vst [vmem:[#allocation101_spill] sm:$0xff] %v32551_v56 }
 0x7a3   :  { %23027 = vmatmul.mubr.f32.gmra.mrb[152].mxu1 %v32539_v5 }
 0x7a4   :  { %23029 = vmatprep.mubr.f32.mxu1 %v32548_v19  ;;  %24881 = vmatpush3.bf16.msra.mxu1 %v24878_v38  ;;  %v24890_v38 = vpack.c.bf16 %v18629_v49, %v18628_v22  ;;  %v18632_v22 = vld [vmem:[%s34866_s3 + $0x3e0] sm:$0xff]  ;;  %v18633_v49 = vld [vmem:[%s34866_s3 + $0x3e8] sm:$0xff] }
 0x7a5   :  { %24883 = vmatprep.subr.bf16.mxu1 %v24882_v46 }
 0x7a7   :  { %23030 = vmatmul.mubr.f32.gmra.mrb[154].mxu1 %v32551_v56  ;;  %v32581_v56 = vld [vmem:[#allocation2 + $0xf1] sm:$0xff] }
 0x7a8   :  { %23032 = vmatprep.mubr.f32.mxu1 %v32560_v17  ;;  %24885 = vmatpush3.bf16.msra.mxu1 %v24882_v46  ;;  %v24894_v17 = vpack.c.bf16 %v18631_v25, %v18630_v7  ;;  %v32572_v46 = vld [vmem:[#allocation2 + $0xe1] sm:$0xff]  ;;  %35464 = vst [vmem:[#allocation104_spill] sm:$0xff] %v32581_v56  ;;  %v18634_v25 = vld [vmem:[%s34866_s3 + $0x3f0] sm:$0xff] }
 0x7a9   :  { %24887 = vmatprep.subr.bf16.mxu1 %v24886_v55  ;;  %35463 = vst [vmem:[#allocation103_spill] sm:$0xff] %v32572_v46  ;;  %v32584_v7 = vld [vmem:[#allocation2 + $0x101] sm:$0xff] }
 0x7aa   :  { %35465 = vst [vmem:[#allocation105_spill] sm:$0xff] %v32584_v7 }
 0x7ab   :  { %23033 = vmatmul.mubr.f32.gmra.mrb[156].mxu1 %v32563_v42 }
 0x7ac   :  { %23035 = vmatprep.mubr.f32.mxu1 %v11183_v35  ;;  %24889 = vmatpush3.bf16.msra.mxu1 %v24886_v55  ;;  %v24898_v55 = vpack.c.bf16 %v18633_v49, %v18632_v22  ;;  %v18635_v35 = vld [vmem:[%s34866_s3 + $0x3f8] sm:$0xff]  ;;  %v32596_v22 = vld [vmem:[#allocation2 + $0x121] sm:$0xff] }
 0x7ad   :  { %24891 = vmatprep.subr.bf16.mxu1 %v24890_v38  ;;  %v18636_v49 = vld [vmem:[%s34866_s3 + $0x400] sm:$0xff] }
 0x7af   :  { %23036 = vmatmul.mubr.f32.gmra.mrb[158].mxu1 %v32572_v46  ;;  %v32593_v46 = vld [vmem:[#allocation2 + $0x111] sm:$0xff] }
 0x7b0   :  { %23038 = vmatprep.mubr.f32.mxu1 %v32581_v56  ;;  %24893 = vmatpush3.bf16.msra.mxu1 %v24890_v38  ;;  %35466 = vst [vmem:[#allocation106_spill] sm:$0xff] %v32593_v46  ;;  %v24902_v38 = vpack.c.bf16 %v18635_v35, %v18634_v25  ;;  %v18637_v56 = vld [vmem:[%s34866_s3 + $0x408] sm:$0xff]  ;;  %v18638_v35 = vld [vmem:[%s34866_s3 + $0x410] sm:$0xff] }
 0x7b1   :  { %24895 = vmatprep.subr.bf16.mxu1 %v24894_v17  ;;  %v32608_v25 = vld [vmem:[#allocation2 + $0x141] sm:$0xff] }
 0x7b3   :  { %23039 = vmatmul.mubr.f32.gmra.mrb[160].mxu1 %v32584_v7  ;;  %v32605_v7 = vld [vmem:[#allocation2 + $0x131] sm:$0xff] }
 0x7b4   :  { %23041 = vmatprep.mubr.f32.mxu1 %v32593_v46  ;;  %24897 = vmatpush3.bf16.msra.mxu1 %v24894_v17  ;;  %35467 = vst [vmem:[#allocation107_spill] sm:$0xff] %v32605_v7  ;;  %v24906_v17 = vpack.c.bf16 %v18637_v56, %v18636_v49  ;;  %v18639_v46 = vld [vmem:[%s34866_s3 + $0x418] sm:$0xff]  ;;  %v18640_v56 = vld [vmem:[%s34866_s3 + $0x420] sm:$0xff] }
 0x7b5   :  { %24899 = vmatprep.subr.bf16.mxu1 %v24898_v55 }
 0x7b7   :  { %23042 = vmatmul.mubr.f32.gmra.mrb[162].mxu1 %v32596_v22 }
 0x7b8   :  { %23044 = vmatprep.mubr.f32.mxu1 %v32605_v7  ;;  %24901 = vmatpush3.bf16.msra.mxu1 %v24898_v55  ;;  %v24910_v7 = vpack.c.bf16 %v18639_v46, %v18638_v35  ;;  %v18641_v55 = vld [vmem:[%s34866_s3 + $0x428] sm:$0xff]  ;;  %v18643_v46 = vld [vmem:[%s34866_s3 + $0x438] sm:$0xff] }
 0x7b9   :  { %24903 = vmatprep.subr.bf16.mxu1 %v24902_v38  ;;  %v24914_v49 = vpack.c.bf16 %v18641_v55, %v18640_v56  ;;  %v18649_v35 = vld [vmem:[%s34866_s3 + $0x468] sm:$0xff]  ;;  %v18651_v55 = vld [vmem:[%s34866_s3 + $0x478] sm:$0xff] }
 0x7bb   :  { %23045 = vmatmul.mubr.f32.gmra.mrb[164].mxu1 %v32608_v25 }
 0x7bc   :  { %24905 = vmatpush3.bf16.msra.mxu1 %v24902_v38  ;;  %23079 = vmatprep.mubr.f32.mxu1 %v32165_v30  ;;  %v18642_v30 = vld [vmem:[%s34866_s3 + $0x430] sm:$0xff]  ;;  %v18645_v38 = vld [vmem:[%s34866_s3 + $0x448] sm:$0xff] }
 0x7bd   :  { %24907 = vmatprep.subr.bf16.mxu1 %v24906_v17 }
 0x7bf   :  { %23080 = vmatmul.mubr.f32.vlgmr.msra.gmra.mrb[150].mxu1 %v32174_v62  ;;  %v24918_v62 = vpack.c.bf16 %v18643_v46, %v18642_v30  ;;  %v32676_v30 = vld [vmem:[#allocation2 + $0x142] sm:$0xff]  ;;  %v18655_v46 = vld [vmem:[%s34866_s3 + $0x498] sm:$0xff] }
 0x7c0   :  { %23082 = vmatprep.mubr.f32.mxu1 %v32179_v14  ;;  %24909 = vmatpush3.bf16.msra.mxu1 %v24906_v17  ;;  %v18644_v14 = vld [vmem:[%s34866_s3 + $0x440] sm:$0xff] }
 0x7c1   :  { %24911 = vmatprep.subr.bf16.mxu1 %v24910_v7  ;;  %v32642_v17 = vld [vmem:[#allocation2 + $0x82] sm:$0xff] }
 0x7c3   :  { %23083 = vmatmul.mubr.f32.gmra.mrb[152].mxu1 %v32188_v53  ;;  %v24922_v53 = vpack.c.bf16 %v18645_v38, %v18644_v14  ;;  %v18659_v38 = vld [vmem:[%s34866_s3 + $0x4b8] sm:$0xff] }
 0x7c4   :  { %23085 = vmatprep.mubr.f32.mxu1 %v32195_v60  ;;  %24913 = vmatpush3.bf16.msra.mxu1 %v24910_v7  ;;  %v18646_v60 = vld [vmem:[%s34866_s3 + $0x450] sm:$0xff]  ;;  %v18647_v7 = vld [vmem:[%s34866_s3 + $0x458] sm:$0xff] }
 0x7c5   :  { %24915 = vmatprep.subr.bf16.mxu1 %v24914_v49 }
 0x7c7   :  { %23086 = vmatmul.mubr.f32.gmra.mrb[154].mxu1 %v32206_v34  ;;  %v24926_v34 = vpack.c.bf16 %v18647_v7, %v18646_v60  ;;  %v32710_v60 = vld [vmem:[#allocation2 + $0x83] sm:$0xff]  ;;  %v18663_v7 = vld [vmem:[%s34866_s3 + $0x4d8] sm:$0xff] }
 0x7c8   :  { %23088 = vmatprep.mubr.f32.mxu1 %v32213_v47  ;;  %24917 = vmatpush3.bf16.msra.mxu1 %v24914_v49  ;;  %v18648_v47 = vld [vmem:[%s34866_s3 + $0x460] sm:$0xff]  ;;  %v18653_v49 = vld [vmem:[%s34866_s3 + $0x488] sm:$0xff] }
 0x7c9   :  { %24919 = vmatprep.subr.bf16.mxu1 %v24918_v62  ;;  %v24930_v56 = vpack.c.bf16 %v18649_v35, %v18648_v47  ;;  %v18667_v35 = vld [vmem:[%s34866_s3 + $0x4f8] sm:$0xff] }
 0x7cb   :  { %23089 = vmatmul.mubr.f32.gmra.mrb[156].mxu1 %v32642_v17 }
 0x7cc   :  { %23091 = vmatprep.mubr.f32.mxu1 %v32224_v0  ;;  %24921 = vmatpush3.bf16.msra.mxu1 %v24918_v62  ;;  %v18650_v0 = vld [vmem:[%s34866_s3 + $0x470] sm:$0xff]  ;;  %v18657_v62 = vld [vmem:[%s34866_s3 + $0x4a8] sm:$0xff] }
 0x7cd   :  { %24923 = vmatprep.subr.bf16.mxu1 %v24922_v53 }
 0x7cf   :  { %23092 = vmatmul.mubr.f32.gmra.mrb[158].mxu1 %v32233_v20  ;;  %v24934_v20 = vpack.c.bf16 %v18651_v55, %v18650_v0  ;;  %v32744_v0 = vld [vmem:[#allocation2 + $0x143] sm:$0xff]  ;;  %v18671_v55 = vld [vmem:[%s34866_s3 + $0x518] sm:$0xff] }
 0x7d0   :  { %23094 = vmatprep.mubr.f32.mxu1 %v32236_v51  ;;  %24925 = vmatpush3.bf16.msra.mxu1 %v24922_v53  ;;  %v18652_v51 = vld [vmem:[%s34866_s3 + $0x480] sm:$0xff]  ;;  %v18661_v53 = vld [vmem:[%s34866_s3 + $0x4c8] sm:$0xff] }
 0x7d1   :  { %24927 = vmatprep.subr.bf16.mxu1 %v24926_v34 }
 0x7d3   :  { %23095 = vmatmul.mubr.f32.gmra.mrb[160].mxu1 %v32245_v4  ;;  %v24938_v4 = vpack.c.bf16 %v18653_v49, %v18652_v51  ;;  %v18675_v49 = vld [vmem:[%s34866_s3 + $0x538] sm:$0xff] }
 0x7d4   :  { %23097 = vmatprep.mubr.f32.mxu1 %v32248_v11  ;;  %24929 = vmatpush3.bf16.msra.mxu1 %v24926_v34  ;;  %v18654_v11 = vld [vmem:[%s34866_s3 + $0x490] sm:$0xff]  ;;  %v18665_v34 = vld [vmem:[%s34866_s3 + $0x4e8] sm:$0xff] }
 0x7d5   :  { %24931 = vmatprep.subr.bf16.mxu1 %v24930_v56 }
 0x7d7   :  { %23098 = vmatmul.mubr.f32.gmra.mrb[162].mxu1 %v32257_v16  ;;  %v24942_v16 = vpack.c.bf16 %v18655_v46, %v18654_v11  ;;  %v32778_v11 = vld [vmem:[#allocation2 + $0x84] sm:$0xff]  ;;  %v18679_v46 = vld [vmem:[%s34866_s3 + $0x558] sm:$0xff] }
 0x7d8   :  { %23100 = vmatprep.mubr.f32.mxu1 %v32260_v31  ;;  %24933 = vmatpush3.bf16.msra.mxu1 %v24930_v56  ;;  %v18656_v31 = vld [vmem:[%s34866_s3 + $0x4a0] sm:$0xff]  ;;  %v18669_v56 = vld [vmem:[%s34866_s3 + $0x508] sm:$0xff] }
 0x7d9   :  { %24935 = vmatprep.subr.bf16.mxu1 %v24934_v20  ;;  %v24946_v14 = vpack.c.bf16 %v18657_v62, %v18656_v31  ;;  %v18683_v62 = vld [vmem:[%s34866_s3 + $0x578] sm:$0xff] }
 0x7db   :  { %23101 = vmatmul.mubr.f32.gmra.mrb[164].mxu1 %v32676_v30 }
 0x7dc   :  { %24937 = vmatpush3.bf16.msra.mxu1 %v24934_v20  ;;  %23135 = vmatprep.mubr.f32.mxu1 %v32269_v43  ;;  %v18658_v43 = vld [vmem:[%s34866_s3 + $0x4b0] sm:$0xff]  ;;  %v18673_v20 = vld [vmem:[%s34866_s3 + $0x528] sm:$0xff] }
 0x7dd   :  { %24939 = vmatprep.subr.bf16.mxu1 %v24938_v4 }
 0x7df   :  { %23136 = vmatmul.mubr.f32.vlgmr.msra.gmra.mrb[150].mxu1 %v32278_v24  ;;  %v24950_v24 = vpack.c.bf16 %v18659_v38, %v18658_v43  ;;  %v32812_v43 = vld [vmem:[#allocation2 + $0x144] sm:$0xff]  ;;  %v18687_v38 = vld [vmem:[%s34866_s3 + $0x598] sm:$0xff] }
 0x7e0   :  { %23138 = vmatprep.mubr.f32.mxu1 %v32281_v58  ;;  %24941 = vmatpush3.bf16.msra.mxu1 %v24938_v4  ;;  %v18660_v58 = vld [vmem:[%s34866_s3 + $0x4c0] sm:$0xff]  ;;  %v18677_v4 = vld [vmem:[%s34866_s3 + $0x548] sm:$0xff] }
 0x7e1   :  { %24943 = vmatprep.subr.bf16.mxu1 %v24942_v16 }
 0x7e3   :  { %23139 = vmatmul.mubr.f32.gmra.mrb[152].mxu1 %v32290_v9  ;;  %v24954_v9 = vpack.c.bf16 %v18661_v53, %v18660_v58  ;;  %v18688_v58 = vld [vmem:[%s34866_s3 + $0x5a0] sm:$0xff]  ;;  %v18689_v53 = vld [vmem:[%s34866_s3 + $0x5a8] sm:$0xff] }
 0x7e4   :  { %23141 = vmatprep.mubr.f32.mxu1 %v32293_v52  ;;  %24945 = vmatpush3.bf16.msra.mxu1 %v24942_v16  ;;  %v18662_v52 = vld [vmem:[%s34866_s3 + $0x4d0] sm:$0xff]  ;;  %v18681_v16 = vld [vmem:[%s34866_s3 + $0x568] sm:$0xff] }
 0x7e5   :  { %24947 = vmatprep.subr.bf16.mxu1 %v24946_v14 }
 0x7e7   :  { %23142 = vmatmul.mubr.f32.gmra.mrb[154].mxu1 %v32302_v1  ;;  %v24958_v1 = vpack.c.bf16 %v18663_v7, %v18662_v52  ;;  %v25010_v52 = vpack.c.bf16 %v18689_v53, %v18688_v58  ;;  %v32833_v7 = vld [vmem:[#allocation2 + $0x50] sm:$0xff]  ;;  %v18716_v53 = vld [vmem:[%s34866_s3 + $0x680] sm:$0xff] }
 0x7e8   :  { %23144 = vmatprep.mubr.f32.mxu1 %v32305_v54  ;;  %24949 = vmatpush3.bf16.msra.mxu1 %v24946_v14  ;;  %v18664_v54 = vld [vmem:[%s34866_s3 + $0x4e0] sm:$0xff]  ;;  %v18685_v14 = vld [vmem:[%s34866_s3 + $0x588] sm:$0xff] }
 0x7e9   :  { %24951 = vmatprep.subr.bf16.mxu1 %v24950_v24  ;;  %v24962_v47 = vpack.c.bf16 %v18665_v34, %v18664_v54  ;;  %v18691_v54 = vld [vmem:[%s34866_s3 + $0x5b8] sm:$0xff]  ;;  %v32842_v34 = vld [vmem:[#allocation2 + $0x60] sm:$0xff] }
 0x7eb   :  { %23145 = vmatmul.mubr.f32.gmra.mrb[156].mxu1 %v32710_v60 }
 0x7ec   :  { %23147 = vmatprep.mubr.f32.mxu1 %v32314_v15  ;;  %24953 = vmatpush3.bf16.msra.mxu1 %v24950_v24  ;;  %v18666_v15 = vld [vmem:[%s34866_s3 + $0x4f0] sm:$0xff]  ;;  %v11952_v24 = vld [vmem:[#allocation2 + $0x20] sm:$0xff] }
 0x7ed   :  { %24955 = vmatprep.subr.bf16.mxu1 %v24954_v9 }
 0x7ef   :  { %23148 = vmatmul.mubr.f32.gmra.mrb[158].mxu1 %v32323_v57  ;;  %v24966_v57 = vpack.c.bf16 %v18667_v35, %v18666_v15  ;;  %v32845_v15 = vld [vmem:[#allocation2 + $0x70] sm:$0xff]  ;;  %v18692_v35 = vld [vmem:[%s34866_s3 + $0x5c0] sm:$0xff] }
 0x7f0   :  { %23150 = vmatprep.mubr.f32.mxu1 %v32326_v13  ;;  %24957 = vmatpush3.bf16.msra.mxu1 %v24954_v9  ;;  %v18668_v13 = vld [vmem:[%s34866_s3 + $0x500] sm:$0xff] }
 0x7f1   :  { %24959 = vmatprep.subr.bf16.mxu1 %v24958_v1  ;;  %v32830_v9 = vld [vmem:[#allocation2 + $0x40] sm:$0xff] }
 0x7f3   :  { %23151 = vmatmul.mubr.f32.gmra.mrb[160].mxu1 %v32335_v32  ;;  %v24970_v32 = vpack.c.bf16 %v18669_v56, %v18668_v13  ;;  %v32855_v56 = vld [vmem:[#allocation2 + $0x90] sm:$0xff] }
 0x7f4   :  { %23153 = vmatprep.mubr.f32.mxu1 %v32338_v6  ;;  %24961 = vmatpush3.bf16.msra.mxu1 %v24958_v1  ;;  %v18670_v6 = vld [vmem:[%s34866_s3 + $0x510] sm:$0xff] }
 0x7f5   :  { %24963 = vmatprep.subr.bf16.mxu1 %v24962_v47  ;;  %v18690_v1 = vld [vmem:[%s34866_s3 + $0x5b0] sm:$0xff] }
 0x7f7   :  { %23154 = vmatmul.mubr.f32.gmra.mrb[162].mxu1 %v32347_v45  ;;  %v24974_v45 = vpack.c.bf16 %v18671_v55, %v18670_v6  ;;  %v18695_v6 = vld [vmem:[%s34866_s3 + $0x5d8] sm:$0xff]  ;;  %v18696_v55 = vld [vmem:[%s34866_s3 + $0x5e0] sm:$0xff] }
 0x7f8   :  { %23156 = vmatprep.mubr.f32.mxu1 %v32350_v41  ;;  %24965 = vmatpush3.bf16.msra.mxu1 %v24962_v47  ;;  %v18672_v41 = vld [vmem:[%s34866_s3 + $0x520] sm:$0xff]  ;;  %v25014_v47 = vpack.c.bf16 %v18691_v54, %v18690_v1 }
 0x7f9   :  { %24967 = vmatprep.subr.bf16.mxu1 %v24966_v57  ;;  %v24978_v51 = vpack.c.bf16 %v18673_v20, %v18672_v41  ;;  %v18699_v20 = vld [vmem:[%s34866_s3 + $0x5f8] sm:$0xff]  ;;  %v35474_v1 = vld [vmem:[#allocation107_spill] sm:$0xff] }
 0x7fb   :  { %23157 = vmatmul.mubr.f32.gmra.mrb[164].mxu1 %v32744_v0 }
 0x7fc   :  { %24969 = vmatpush3.bf16.msra.mxu1 %v24966_v57  ;;  %23191 = vmatprep.mubr.f32.mxu1 %v32359_v50  ;;  %v18674_v50 = vld [vmem:[%s34866_s3 + $0x530] sm:$0xff]  ;;  %v18693_v57 = vld [vmem:[%s34866_s3 + $0x5c8] sm:$0xff] }
 0x7fd   :  { %24971 = vmatprep.subr.bf16.mxu1 %v24970_v32  ;;  %v25018_v13 = vpack.c.bf16 %v18693_v57, %v18692_v35  ;;  %v18719_v35 = vld [vmem:[%s34866_s3 + $0x698] sm:$0xff]  ;;  %v12340_v57 = vld [vmem:[#allocation2 + $0x22] sm:$0xff] }
 0x7ff   :  { %23192 = vmatmul.mubr.f32.vlgmr.msra.gmra.mrb[150].mxu1 %v32368_v23  ;;  %v24982_v23 = vpack.c.bf16 %v18675_v49, %v18674_v50  ;;  %v32888_v50 = vld [vmem:[#allocation2 + $0x140] sm:$0xff]  ;;  %v18702_v49 = vld [vmem:[%s34866_s3 + $0x610] sm:$0xff] }
 0x800   :  { %23194 = vmatprep.mubr.f32.mxu1 %v32371_v28  ;;  %24973 = vmatpush3.bf16.msra.mxu1 %v24970_v32  ;;  %v18676_v28 = vld [vmem:[%s34866_s3 + $0x540] sm:$0xff]  ;;  %v18694_v32 = vld [vmem:[%s34866_s3 + $0x5d0] sm:$0xff] }
 0x801   :  { %24975 = vmatprep.subr.bf16.mxu1 %v24974_v45 }
 0x803   :  { %23195 = vmatmul.mubr.f32.gmra.mrb[152].mxu1 %v32380_v8  ;;  %v24986_v8 = vpack.c.bf16 %v18677_v4, %v18676_v28  ;;  %v18704_v28 = vld [vmem:[%s34866_s3 + $0x620] sm:$0xff]  ;;  %v18705_v4 = vld [vmem:[%s34866_s3 + $0x628] sm:$0xff] }
 0x804   :  { %23197 = vmatprep.mubr.f32.mxu1 %v32383_v3  ;;  %24977 = vmatpush3.bf16.msra.mxu1 %v24974_v45  ;;  %v18678_v3 = vld [vmem:[%s34866_s3 + $0x550] sm:$0xff]  ;;  %v18697_v45 = vld [vmem:[%s34866_s3 + $0x5e8] sm:$0xff] }
 0x805   :  { %24979 = vmatprep.subr.bf16.mxu1 %v24978_v51  ;;  %v25026_v41 = vpack.c.bf16 %v18697_v45, %v18696_v55  ;;  %v32980_v45 = vld [vmem:[#allocation2 + $0x52] sm:$0xff] }
 0x807   :  { %23198 = vmatmul.mubr.f32.gmra.mrb[154].mxu1 %v32392_v26  ;;  %v24990_v26 = vpack.c.bf16 %v18679_v46, %v18678_v3  ;;  %v18707_v3 = vld [vmem:[%s34866_s3 + $0x638] sm:$0xff] }
 0x808   :  { %23200 = vmatprep.mubr.f32.mxu1 %v32395_v63  ;;  %24981 = vmatpush3.bf16.msra.mxu1 %v24978_v51  ;;  %v18680_v63 = vld [vmem:[%s34866_s3 + $0x560] sm:$0xff]  ;;  %v18701_v51 = vld [vmem:[%s34866_s3 + $0x608] sm:$0xff]  ;;  %v35468_v46 = vld [vmem:[#allocation101_spill] sm:$0xff] }
 0x809   :  { %24983 = vmatprep.subr.bf16.mxu1 %v24982_v23  ;;  %v24994_v31 = vpack.c.bf16 %v18681_v16, %v18680_v63  ;;  %v35469_v63 = vld [vmem:[#allocation102_spill] sm:$0xff]  ;;  %v32925_v16 = vld [vmem:[#allocation2 + $0x91] sm:$0xff] }
 0x80b   :  { %23201 = vmatmul.mubr.f32.gmra.mrb[156].mxu1 %v32778_v11 }
 0x80c   :  { %23203 = vmatprep.mubr.f32.mxu1 %v32404_v39  ;;  %24985 = vmatpush3.bf16.msra.mxu1 %v24982_v23  ;;  %v18682_v39 = vld [vmem:[%s34866_s3 + $0x570] sm:$0xff]  ;;  %v18703_v23 = vld [vmem:[%s34866_s3 + $0x618] sm:$0xff] }
 0x80d   :  { %24987 = vmatprep.subr.bf16.mxu1 %v24986_v8 }
 0x80f   :  { %23204 = vmatmul.mubr.f32.gmra.mrb[158].mxu1 %v32413_v37  ;;  %v24998_v37 = vpack.c.bf16 %v18683_v62, %v18682_v39  ;;  %v18711_v39 = vld [vmem:[%s34866_s3 + $0x658] sm:$0xff]  ;;  %v35470_v62 = vld [vmem:[#allocation103_spill] sm:$0xff] }
 0x810   :  { %23206 = vmatprep.mubr.f32.mxu1 %v32416_v59  ;;  %24989 = vmatpush3.bf16.msra.mxu1 %v24986_v8  ;;  %v18684_v59 = vld [vmem:[%s34866_s3 + $0x580] sm:$0xff]  ;;  %v25042_v8 = vpack.c.bf16 %v18705_v4, %v18704_v28  ;;  %v18727_v28 = vld [vmem:[%s34866_s3 + $0x6d8] sm:$0xff] }
 0x811   :  { %24991 = vmatprep.subr.bf16.mxu1 %v24990_v26  ;;  %v12348_v4 = vld [vmem:[#allocation2 + $0xe2] sm:$0xff] }
 0x813   :  { %23207 = vmatmul.mubr.f32.gmra.mrb[160].mxu1 %v32425_v12  ;;  %v25002_v12 = vpack.c.bf16 %v18685_v14, %v18684_v59  ;;  %v18713_v59 = vld [vmem:[%s34866_s3 + $0x668] sm:$0xff] }
 0x814   :  { %23209 = vmatprep.mubr.f32.mxu1 %v32428_v27  ;;  %24993 = vmatpush3.bf16.msra.mxu1 %v24990_v26  ;;  %v18686_v27 = vld [vmem:[%s34866_s3 + $0x590] sm:$0xff]  ;;  %v18709_v26 = vld [vmem:[%s34866_s3 + $0x648] sm:$0xff] }
 0x815   :  { %24995 = vmatprep.subr.bf16.mxu1 %v24994_v31  ;;  %v35471_v14 = vld [vmem:[#allocation104_spill] sm:$0xff] }
 0x817   :  { %23210 = vmatmul.mubr.f32.gmra.mrb[162].mxu1 %v32437_v18  ;;  %v25006_v18 = vpack.c.bf16 %v18687_v38, %v18686_v27  ;;  %v18714_v38 = vld [vmem:[%s34866_s3 + $0x670] sm:$0xff] }
 0x818   :  { %23212 = vmatprep.mubr.f32.mxu1 %v32440_v40  ;;  %24997 = vmatpush3.bf16.msra.mxu1 %v24994_v31  ;;  %v32821_v40 = vld [vmem:[#allocation2 + $0x30] sm:$0xff] }
 0x819   :  { %24999 = vmatprep.subr.bf16.mxu1 %v24998_v37  ;;  %v18710_v31 = vld [vmem:[%s34866_s3 + $0x650] sm:$0xff] }
 0x81b   :  { %23213 = vmatmul.mubr.f32.gmra.mrb[164].mxu1 %v32812_v43 }
 0x81c   :  { %25001 = vmatpush3.bf16.msra.mxu1 %v24998_v37  ;;  %23247 = vmatprep.mubr.f32.mxu1 %v11952_v24  ;;  %v18712_v37 = vld [vmem:[%s34866_s3 + $0x660] sm:$0xff]  ;;  %v18715_v24 = vld [vmem:[%s34866_s3 + $0x678] sm:$0xff] }
 0x81d   :  { %25003 = vmatprep.subr.bf16.mxu1 %v25002_v12  ;;  %v25058_v27 = vpack.c.bf16 %v18713_v59, %v18712_v37  ;;  %v25062_v58 = vpack.c.bf16 %v18715_v24, %v18714_v38  ;;  %v33045_v59 = vld [vmem:[#allocation2 + $0x152] sm:$0xff]  ;;  %v18736_v24 = vld [vmem:[%s34866_s3 + $0x720] sm:$0xff] }
 0x81e   :  { %v33054_v38 = vld [vmem:[#allocation2 + $0x33] sm:$0xff] }
 0x81f   :  { %23248 = vmatmul.mubr.f32.vlgmr.msra.gmra.mrb[150].mxu1 %v32821_v40 }
 0x820   :  { %23250 = vmatprep.mubr.f32.mxu1 %v32830_v9  ;;  %25005 = vmatpush3.bf16.msra.mxu1 %v25002_v12  ;;  %v35472_v12 = vld [vmem:[#allocation105_spill] sm:$0xff] }
 0x821   :  { %25007 = vmatprep.subr.bf16.mxu1 %v25006_v18 }
 0x823   :  { %23251 = vmatmul.mubr.f32.gmra.mrb[152].mxu1 %v32833_v7 }
 0x824   :  { %23253 = vmatprep.mubr.f32.mxu1 %v32842_v34  ;;  %25009 = vmatpush3.bf16.msra.mxu1 %v25006_v18  ;;  %v35473_v18 = vld [vmem:[#allocation106_spill] sm:$0xff] }
 0x825   :  { %25011 = vmatprep.subr.bf16.mxu1 %v25010_v52 }
 0x827   :  { %23254 = vmatmul.mubr.f32.gmra.mrb[154].mxu1 %v32845_v15 }
 0x828   :  { %23256 = vmatprep.mubr.f32.mxu1 %v32474_v29  ;;  %25013 = vmatpush3.bf16.msra.mxu1 %v25010_v52  ;;  %v25022_v29 = vpack.c.bf16 %v18695_v6, %v18694_v32  ;;  %v18717_v52 = vld [vmem:[%s34866_s3 + $0x688] sm:$0xff]  ;;  %v18720_v32 = vld [vmem:[%s34866_s3 + $0x6a0] sm:$0xff] }
 0x829   :  { %25015 = vmatprep.subr.bf16.mxu1 %v25014_v47  ;;  %v25066_v54 = vpack.c.bf16 %v18717_v52, %v18716_v53  ;;  %v18721_v6 = vld [vmem:[%s34866_s3 + $0x6a8] sm:$0xff]  ;;  %v33066_v52 = vld [vmem:[#allocation2 + $0x53] sm:$0xff] }
 0x82a   :  { %v25074_v55 = vpack.c.bf16 %v18721_v6, %v18720_v32  ;;  %v18741_v32 = vld [vmem:[%s34866_s3 + $0x748] sm:$0xff] }
 0x82b   :  { %23257 = vmatmul.mubr.f32.gmra.mrb[156].mxu1 %v32855_v56 }
 0x82c   :  { %23259 = vmatprep.mubr.f32.mxu1 %v32483_v10  ;;  %25017 = vmatpush3.bf16.msra.mxu1 %v25014_v47  ;;  %v18698_v10 = vld [vmem:[%s34866_s3 + $0x5f0] sm:$0xff] }
 0x82d   :  { %25019 = vmatprep.subr.bf16.mxu1 %v25018_v13  ;;  %v32959_v47 = vld [vmem:[#allocation2 + $0x151] sm:$0xff] }
 0x82f   :  { %23260 = vmatmul.mubr.f32.gmra.mrb[158].mxu1 %v32492_v44  ;;  %v25030_v44 = vpack.c.bf16 %v18699_v20, %v18698_v10  ;;  %v18723_v10 = vld [vmem:[%s34866_s3 + $0x6b8] sm:$0xff]  ;;  %v32989_v20 = vld [vmem:[#allocation2 + $0x62] sm:$0xff] }
 0x830   :  { %23262 = vmatprep.mubr.f32.mxu1 %v32495_v21  ;;  %25021 = vmatpush3.bf16.msra.mxu1 %v25018_v13  ;;  %v18700_v21 = vld [vmem:[%s34866_s3 + $0x600] sm:$0xff]  ;;  %v32968_v13 = vld [vmem:[#allocation2 + $0x32] sm:$0xff] }
 0x831   :  { %25023 = vmatprep.subr.bf16.mxu1 %v25022_v29 }
 0x833   :  { %23263 = vmatmul.mubr.f32.gmra.mrb[160].mxu1 %v32504_v48  ;;  %v25034_v48 = vpack.c.bf16 %v18701_v51, %v18700_v21  ;;  %v32992_v21 = vld [vmem:[#allocation2 + $0x72] sm:$0xff]  ;;  %v18724_v51 = vld [vmem:[%s34866_s3 + $0x6c0] sm:$0xff] }
 0x834   :  { %23265 = vmatprep.mubr.f32.mxu1 %v32507_v2  ;;  %25025 = vmatpush3.bf16.msra.mxu1 %v25022_v29  ;;  %v32891_v2 = vld [vmem:[#allocation2 + $0x150] sm:$0xff]  ;;  %v32977_v29 = vld [vmem:[#allocation2 + $0x42] sm:$0xff] }
 0x835   :  { %25027 = vmatprep.subr.bf16.mxu1 %v25026_v41 }
 0x837   :  { %23266 = vmatmul.mubr.f32.gmra.mrb[162].mxu1 %v32516_v33  ;;  %v25038_v33 = vpack.c.bf16 %v18703_v23, %v18702_v49  ;;  %v33002_v23 = vld [vmem:[#allocation2 + $0x92] sm:$0xff] }
 0x838   :  { %23268 = vmatprep.mubr.f32.mxu1 %v32888_v50  ;;  %25029 = vmatpush3.bf16.msra.mxu1 %v25026_v41  ;;  %v18722_v41 = vld [vmem:[%s34866_s3 + $0x6b0] sm:$0xff] }
 0x839   :  { %25031 = vmatprep.subr.bf16.mxu1 %v25030_v44 }
 0x83b   :  { %23269 = vmatmul.mubr.f32.gmra.mrb[164].mxu1 %v32891_v2 }
 0x83c   :  { %25033 = vmatpush3.bf16.msra.mxu1 %v25030_v44  ;;  %23303 = vmatprep.mubr.f32.mxu1 %v32527_v61  ;;  %v18706_v61 = vld [vmem:[%s34866_s3 + $0x630] sm:$0xff]  ;;  %v25078_v44 = vpack.c.bf16 %v18723_v10, %v18722_v41  ;;  %v18743_v10 = vld [vmem:[%s34866_s3 + $0x758] sm:$0xff] }
 0x83d   :  { %25035 = vmatprep.subr.bf16.mxu1 %v25034_v48  ;;  %v18742_v41 = vld [vmem:[%s34866_s3 + $0x750] sm:$0xff] }
 0x83f   :  { %23304 = vmatmul.mubr.f32.vlgmr.msra.gmra.mrb[150].mxu1 %v32536_v36  ;;  %v25046_v36 = vpack.c.bf16 %v18707_v3, %v18706_v61  ;;  %v18728_v61 = vld [vmem:[%s34866_s3 + $0x6e0] sm:$0xff]  ;;  %v18729_v3 = vld [vmem:[%s34866_s3 + $0x6e8] sm:$0xff] }
 0x840   :  { %23306 = vmatprep.mubr.f32.mxu1 %v32539_v5  ;;  %25037 = vmatpush3.bf16.msra.mxu1 %v25034_v48  ;;  %v18708_v5 = vld [vmem:[%s34866_s3 + $0x640] sm:$0xff]  ;;  %v18725_v48 = vld [vmem:[%s34866_s3 + $0x6c8] sm:$0xff] }
 0x841   :  { %25039 = vmatprep.subr.bf16.mxu1 %v25038_v33  ;;  %v25082_v49 = vpack.c.bf16 %v18725_v48, %v18724_v51  ;;  %v33097_v51 = vld [vmem:[#allocation2 + $0xf3] sm:$0xff]  ;;  %v18744_v48 = vld [vmem:[%s34866_s3 + $0x760] sm:$0xff] }
 0x843   :  { %23307 = vmatmul.mubr.f32.gmra.mrb[152].mxu1 %v32548_v19  ;;  %v25050_v19 = vpack.c.bf16 %v18709_v26, %v18708_v5  ;;  %v33023_v5 = vld [vmem:[#allocation2 + $0x112] sm:$0xff] }
 0x844   :  { %23309 = vmatprep.mubr.f32.mxu1 %v35468_v46  ;;  %25041 = vmatpush3.bf16.msra.mxu1 %v25038_v33  ;;  %v18726_v33 = vld [vmem:[%s34866_s3 + $0x6d0] sm:$0xff]  ;;  %v33020_v46 = vld [vmem:[#allocation2 + $0x102] sm:$0xff] }
 0x845   :  { %25043 = vmatprep.subr.bf16.mxu1 %v25042_v8  ;;  %v18730_v26 = vld [vmem:[%s34866_s3 + $0x6f0] sm:$0xff] }
 0x847   :  { %23310 = vmatmul.mubr.f32.gmra.mrb[154].mxu1 %v35469_v63  ;;  %v18731_v63 = vld [vmem:[%s34866_s3 + $0x6f8] sm:$0xff] }
 0x848   :  { %23312 = vmatprep.mubr.f32.mxu1 %v32563_v42  ;;  %25045 = vmatpush3.bf16.msra.mxu1 %v25042_v8  ;;  %v25054_v42 = vpack.c.bf16 %v18711_v39, %v18710_v31  ;;  %v33011_v8 = vld [vmem:[#allocation2 + $0xf2] sm:$0xff]  ;;  %v25094_v31 = vpack.c.bf16 %v18731_v63, %v18730_v26  ;;  %v18748_v63 = vld [vmem:[%s34866_s3 + $0x780] sm:$0xff] }
 0x849   :  { %25047 = vmatprep.subr.bf16.mxu1 %v25046_v36  ;;  %v33035_v39 = vld [vmem:[#allocation2 + $0x132] sm:$0xff] }
 0x84a   :  { %v33121_v26 = vld [vmem:[#allocation2 + $0x133] sm:$0xff] }
 0x84b   :  { %23313 = vmatmul.mubr.f32.gmra.mrb[156].mxu1 %v32925_v16 }
 0x84c   :  { %23315 = vmatprep.mubr.f32.mxu1 %v35470_v62  ;;  %25049 = vmatpush3.bf16.msra.mxu1 %v25046_v36  ;;  %v25090_v36 = vpack.c.bf16 %v18729_v3, %v18728_v61  ;;  %v18732_v62 = vld [vmem:[%s34866_s3 + $0x700] sm:$0xff]  ;;  %v18747_v61 = vld [vmem:[%s34866_s3 + $0x778] sm:$0xff] }
 0x84d   :  { %25051 = vmatprep.subr.bf16.mxu1 %v25050_v19  ;;  %v33118_v3 = vld [vmem:[#allocation2 + $0x123] sm:$0xff] }
 0x84f   :  { %23316 = vmatmul.mubr.f32.gmra.mrb[158].mxu1 %v35471_v14  ;;  %v18734_v14 = vld [vmem:[%s34866_s3 + $0x710] sm:$0xff] }
 0x850   :  { %23318 = vmatprep.mubr.f32.mxu1 %v35472_v12  ;;  %25053 = vmatpush3.bf16.msra.mxu1 %v25050_v19  ;;  %v33032_v19 = vld [vmem:[#allocation2 + $0x122] sm:$0xff]  ;;  %v18735_v12 = vld [vmem:[%s34866_s3 + $0x718] sm:$0xff] }
 0x851   :  { %25055 = vmatprep.subr.bf16.mxu1 %v25054_v42 }
 0x853   :  { %23319 = vmatmul.mubr.f32.gmra.mrb[160].mxu1 %v35473_v18  ;;  %v18737_v18 = vld [vmem:[%s34866_s3 + $0x728] sm:$0xff] }
 0x854   :  { %23321 = vmatprep.mubr.f32.mxu1 %v32596_v22  ;;  %25057 = vmatpush3.bf16.msra.mxu1 %v25054_v42  ;;  %v18718_v22 = vld [vmem:[%s34866_s3 + $0x690] sm:$0xff]  ;;  %v18733_v42 = vld [vmem:[%s34866_s3 + $0x708] sm:$0xff]  ;;  %v25106_v53 = vpack.c.bf16 %v18737_v18, %v18736_v24 }
 0x855   :  { %25059 = vmatprep.subr.bf16.mxu1 %v25058_v27  ;;  %v25098_v37 = vpack.c.bf16 %v18733_v42, %v18732_v62  ;;  %v33131_v42 = vld [vmem:[#allocation2 + $0x153] sm:$0xff]  ;;  %v18753_v24 = vld [vmem:[%s34866_s3 + $0x7a8] sm:$0xff] }
 0x856   :  { %v33149_v18 = vld [vmem:[#allocation2 + $0x44] sm:$0xff] }
 0x857   :  { %23322 = vmatmul.mubr.f32.gmra.mrb[162].mxu1 %v35474_v1  ;;  %v18738_v1 = vld [vmem:[%s34866_s3 + $0x730] sm:$0xff] }
 0x858   :  { %23324 = vmatprep.mubr.f32.mxu1 %v32608_v25  ;;  %25061 = vmatpush3.bf16.msra.mxu1 %v25058_v27  ;;  %v25070_v25 = vpack.c.bf16 %v18719_v35, %v18718_v22  ;;  %v12534_v27 = vld [vmem:[#allocation2 + $0x23] sm:$0xff] }
 0x859   :  { %25063 = vmatprep.subr.bf16.mxu1 %v25062_v58  ;;  %v33075_v22 = vld [vmem:[#allocation2 + $0x63] sm:$0xff] }
 0x85b   :  { %23325 = vmatmul.mubr.f32.gmra.mrb[164].mxu1 %v32959_v47 }
 0x85c   :  { %25065 = vmatpush3.bf16.msra.mxu1 %v25062_v58  ;;  %23359 = vmatprep.mubr.f32.mxu1 %v12340_v57  ;;  %v33063_v58 = vld [vmem:[#allocation2 + $0x43] sm:$0xff]  ;;  %v33078_v57 = vld [vmem:[#allocation2 + $0x73] sm:$0xff] }
 0x85d   :  { %25067 = vmatprep.subr.bf16.mxu1 %v25066_v54 }
 0x85f   :  { %23360 = vmatmul.mubr.f32.vlgmr.msra.gmra.mrb[150].mxu1 %v32968_v13 }
 0x860   :  { %23362 = vmatprep.mubr.f32.mxu1 %v32977_v29  ;;  %25069 = vmatpush3.bf16.msra.mxu1 %v25066_v54  ;;  %v18739_v54 = vld [vmem:[%s34866_s3 + $0x738] sm:$0xff] }
 0x861   :  { %25071 = vmatprep.subr.bf16.mxu1 %v25070_v25  ;;  %v25110_v35 = vpack.c.bf16 %v18739_v54, %v18738_v1  ;;  %v33152_v1 = vld [vmem:[#allocation2 + $0x54] sm:$0xff] }
 0x862   :  { %v18754_v54 = vld [vmem:[%s34866_s3 + $0x7b0] sm:$0xff] }
 0x863   :  { %23363 = vmatmul.mubr.f32.gmra.mrb[152].mxu1 %v32980_v45 }
 0x864   :  { %23365 = vmatprep.mubr.f32.mxu1 %v32989_v20  ;;  %25073 = vmatpush3.bf16.msra.mxu1 %v25070_v25  ;;  %v18740_v25 = vld [vmem:[%s34866_s3 + $0x740] sm:$0xff] }
 0x865   :  { %25075 = vmatprep.subr.bf16.mxu1 %v25074_v55  ;;  %v25114_v6 = vpack.c.bf16 %v18741_v32, %v18740_v25  ;;  %v33161_v25 = vld [vmem:[#allocation2 + $0x64] sm:$0xff] }
 0x867   :  { %23366 = vmatmul.mubr.f32.gmra.mrb[154].mxu1 %v32992_v21 }
 0x868   :  { %23368 = vmatprep.mubr.f32.mxu1 %v32642_v17  ;;  %25077 = vmatpush3.bf16.msra.mxu1 %v25074_v55  ;;  %v25086_v17 = vpack.c.bf16 %v18727_v28, %v18726_v33  ;;  %v33088_v55 = vld [vmem:[#allocation2 + $0x93] sm:$0xff]  ;;  %v33106_v33 = vld [vmem:[#allocation2 + $0x103] sm:$0xff] }
 0x869   :  { %25079 = vmatprep.subr.bf16.mxu1 %v25078_v44 }
 0x86b   :  { %23369 = vmatmul.mubr.f32.gmra.mrb[156].mxu1 %v33002_v23 }
 0x86c   :  { %23371 = vmatprep.mubr.f32.mxu1 %v12348_v4  ;;  %25081 = vmatpush3.bf16.msra.mxu1 %v25078_v44  ;;  %v12542_v44 = vld [vmem:[#allocation2 + $0xe3] sm:$0xff]  ;;  %v33109_v4 = vld [vmem:[#allocation2 + $0x113] sm:$0xff] }
 0x86d   :  { %25083 = vmatprep.subr.bf16.mxu1 %v25082_v49 }
 0x86f   :  { %23372 = vmatmul.mubr.f32.gmra.mrb[158].mxu1 %v33011_v8 }
 0x870   :  { %23374 = vmatprep.mubr.f32.mxu1 %v33020_v46  ;;  %25085 = vmatpush3.bf16.msra.mxu1 %v25082_v49  ;;  %v18745_v49 = vld [vmem:[%s34866_s3 + $0x768] sm:$0xff] }
 0x871   :  { %25087 = vmatprep.subr.bf16.mxu1 %v25086_v17  ;;  %v25122_v28 = vpack.c.bf16 %v18745_v49, %v18744_v48  ;;  %v18758_v48 = vld [vmem:[%s34866_s3 + $0x7d0] sm:$0xff]  ;;  %v18759_v49 = vld [vmem:[%s34866_s3 + $0x7d8] sm:$0xff] }
 0x873   :  { %23375 = vmatmul.mubr.f32.gmra.mrb[160].mxu1 %v33023_v5 }
 0x874   :  { %23377 = vmatprep.mubr.f32.mxu1 %v33032_v19  ;;  %25089 = vmatpush3.bf16.msra.mxu1 %v25086_v17  ;;  %v18746_v17 = vld [vmem:[%s34866_s3 + $0x770] sm:$0xff] }
 0x875   :  { %25091 = vmatprep.subr.bf16.mxu1 %v25090_v36 }
 0x877   :  { %23378 = vmatmul.mubr.f32.gmra.mrb[162].mxu1 %v33035_v39 }
 0x878   :  { %23380 = vmatprep.mubr.f32.mxu1 %v32676_v30  ;;  %25093 = vmatpush3.bf16.msra.mxu1 %v25090_v36  ;;  %v25102_v30 = vpack.c.bf16 %v18735_v12, %v18734_v14  ;;  %v25126_v36 = vpack.c.bf16 %v18747_v61, %v18746_v17  ;;  %v18751_v14 = vld [vmem:[%s34866_s3 + $0x798] sm:$0xff]  ;;  %v12728_v12 = vld [vmem:[#allocation2 + $0x24] sm:$0xff] }
 0x879   :  { %25095 = vmatprep.subr.bf16.mxu1 %v25094_v31  ;;  %v33183_v17 = vld [vmem:[#allocation2 + $0xf4] sm:$0xff]  ;;  %v18760_v61 = vld [vmem:[%s34866_s3 + $0x7e0] sm:$0xff] }
 0x87b   :  { %23381 = vmatmul.mubr.f32.gmra.mrb[164].mxu1 %v33045_v59 }
 0x87c   :  { %25097 = vmatpush3.bf16.msra.mxu1 %v25094_v31  ;;  %23415 = vmatprep.mubr.f32.mxu1 %v12534_v27  ;;  %v18749_v31 = vld [vmem:[%s34866_s3 + $0x788] sm:$0xff]  ;;  %v33140_v27 = vld [vmem:[#allocation2 + $0x34] sm:$0xff] }
 0x87d   :  { %25099 = vmatprep.subr.bf16.mxu1 %v25098_v37  ;;  %v25130_v62 = vpack.c.bf16 %v18749_v31, %v18748_v63  ;;  %v33192_v63 = vld [vmem:[#allocation2 + $0x104] sm:$0xff] }
 0x87f   :  { %23416 = vmatmul.mubr.f32.vlgmr.msra.gmra.mrb[150].mxu1 %v33054_v38 }
 0x880   :  { %23418 = vmatprep.mubr.f32.mxu1 %v33063_v58  ;;  %25101 = vmatpush3.bf16.msra.mxu1 %v25098_v37  ;;  %v18750_v37 = vld [vmem:[%s34866_s3 + $0x790] sm:$0xff] }
 0x881   :  { %25103 = vmatprep.subr.bf16.mxu1 %v25102_v30 }
 0x883   :  { %23419 = vmatmul.mubr.f32.gmra.mrb[152].mxu1 %v33066_v52 }
 0x884   :  { %23421 = vmatprep.mubr.f32.mxu1 %v33075_v22  ;;  %25105 = vmatpush3.bf16.msra.mxu1 %v25102_v30  ;;  %v18752_v30 = vld [vmem:[%s34866_s3 + $0x7a0] sm:$0xff] }
 0x885   :  { %25107 = vmatprep.subr.bf16.mxu1 %v25106_v53 }
 0x887   :  { %23422 = vmatmul.mubr.f32.gmra.mrb[154].mxu1 %v33078_v57 }
 0x888   :  { %23424 = vmatprep.mubr.f32.mxu1 %v32710_v60  ;;  %25109 = vmatpush3.bf16.msra.mxu1 %v25106_v53  ;;  %v25118_v60 = vpack.c.bf16 %v18743_v10, %v18742_v41  ;;  %v25138_v53 = vpack.c.bf16 %v18753_v24, %v18752_v30  ;;  %v18756_v41 = vld [vmem:[%s34866_s3 + $0x7c0] sm:$0xff]  ;;  %v18757_v10 = vld [vmem:[%s34866_s3 + $0x7c8] sm:$0xff]  ;;  %v33207_v30 = vld [vmem:[#allocation2 + $0x134] sm:$0xff] }
 0x889   :  { %25111 = vmatprep.subr.bf16.mxu1 %v25110_v35  ;;  %v18764_v24 = vld [vmem:[%s34866_s3 + $0x800] sm:$0xff] }
 0x88b   :  { %23425 = vmatmul.mubr.f32.gmra.mrb[156].mxu1 %v33088_v55 }
 0x88c   :  { %23427 = vmatprep.mubr.f32.mxu1 %v12542_v44  ;;  %25113 = vmatpush3.bf16.msra.mxu1 %v25110_v35  ;;  %v18755_v35 = vld [vmem:[%s34866_s3 + $0x7b8] sm:$0xff]  ;;  %v25146_v44 = vpack.c.bf16 %v18757_v10, %v18756_v41  ;;  %v18768_v10 = vld [vmem:[%s34866_s3 + $0x820] sm:$0xff] }
 0x88d   :  { %25115 = vmatprep.subr.bf16.mxu1 %v25114_v6  ;;  %v25142_v32 = vpack.c.bf16 %v18755_v35, %v18754_v54  ;;  %v33217_v35 = vld [vmem:[#allocation2 + $0x154] sm:$0xff] }
 0x88e   :  { %v18767_v41 = vld [vmem:[%s34866_s3 + $0x818] sm:$0xff] }
 0x88f   :  { %23428 = vmatmul.mubr.f32.gmra.mrb[158].mxu1 %v33097_v51 }
 0x890   :  { %23430 = vmatprep.mubr.f32.mxu1 %v33106_v33  ;;  %25117 = vmatpush3.bf16.msra.mxu1 %v25114_v6  ;;  %v33164_v6 = vld [vmem:[#allocation2 + $0x74] sm:$0xff] }
 0x891   :  { %25119 = vmatprep.subr.bf16.mxu1 %v25118_v60 }
 0x893   :  { %23431 = vmatmul.mubr.f32.gmra.mrb[160].mxu1 %v33109_v4 }
 0x894   :  { %23433 = vmatprep.mubr.f32.mxu1 %v33118_v3  ;;  %25121 = vmatpush3.bf16.msra.mxu1 %v25118_v60  ;;  %v33174_v60 = vld [vmem:[#allocation2 + $0x94] sm:$0xff] }
 0x895   :  { %25123 = vmatprep.subr.bf16.mxu1 %v25122_v28 }
 0x897   :  { %23434 = vmatmul.mubr.f32.gmra.mrb[162].mxu1 %v33121_v26 }
 0x898   :  { %23436 = vmatprep.mubr.f32.mxu1 %v32744_v0  ;;  %25125 = vmatpush3.bf16.msra.mxu1 %v25122_v28  ;;  %v25134_v0 = vpack.c.bf16 %v18751_v14, %v18750_v37  ;;  %v12736_v28 = vld [vmem:[#allocation2 + $0xe4] sm:$0xff]  ;;  %v18762_v37 = vld [vmem:[%s34866_s3 + $0x7f0] sm:$0xff]  ;;  %v18763_v14 = vld [vmem:[%s34866_s3 + $0x7f8] sm:$0xff] }
 0x899   :  { %25127 = vmatprep.subr.bf16.mxu1 %v25126_v36 }
 0x89b   :  { %23437 = vmatmul.mubr.f32.gmra.mrb[164].mxu1 %v33131_v42 }
 0x89c   :  { %25129 = vmatpush3.bf16.msra.mxu1 %v25126_v36  ;;  %23471 = vmatprep.mubr.f32.mxu1 %v12728_v12  ;;  %v18761_v36 = vld [vmem:[%s34866_s3 + $0x7e8] sm:$0xff] }
 0x89d   :  { %25131 = vmatprep.subr.bf16.mxu1 %v25130_v62  ;;  %v25154_v31 = vpack.c.bf16 %v18761_v36, %v18760_v61  ;;  %v33204_v12 = vld [vmem:[#allocation2 + $0x124] sm:$0xff]  ;;  %v18774_v61 = vld [vmem:[%s34866_s3 + $0x850] sm:$0xff]  ;;  %v18775_v36 = vld [vmem:[%s34866_s3 + $0x858] sm:$0xff] }
 0x89f   :  { %23472 = vmatmul.mubr.f32.vlgmr.msra.gmra.mrb[150].mxu1 %v33140_v27 }
 0x8a0   :  { %23474 = vmatprep.mubr.f32.mxu1 %v33149_v18  ;;  %25133 = vmatpush3.bf16.msra.mxu1 %v25130_v62  ;;  %v33195_v62 = vld [vmem:[#allocation2 + $0x114] sm:$0xff] }
 0x8a1   :  { %25135 = vmatprep.subr.bf16.mxu1 %v25134_v0 }
 0x8a3   :  { %23475 = vmatmul.mubr.f32.gmra.mrb[152].mxu1 %v33152_v1 }
 0x8a4   :  { %23477 = vmatprep.mubr.f32.mxu1 %v33161_v25  ;;  %25137 = vmatpush3.bf16.msra.mxu1 %v25134_v0  ;;  %v25158_v0 = vpack.c.bf16 %v18763_v14, %v18762_v37  ;;  %v33262_v37 = vld [vmem:[#allocation2 + $0x100] sm:$0xff] }
 0x8a5   :  { %25139 = vmatprep.subr.bf16.mxu1 %v25138_v53  ;;  %v18776_v14 = vld [vmem:[%s34866_s3 + $0x860] sm:$0xff] }
 0x8a7   :  { %23478 = vmatmul.mubr.f32.gmra.mrb[154].mxu1 %v33164_v6 }
 0x8a8   :  { %23480 = vmatprep.mubr.f32.mxu1 %v32778_v11  ;;  %25141 = vmatpush3.bf16.msra.mxu1 %v25138_v53  ;;  %v25150_v11 = vpack.c.bf16 %v18759_v49, %v18758_v48  ;;  %v18765_v53 = vld [vmem:[%s34866_s3 + $0x808] sm:$0xff]  ;;  %v18771_v49 = vld [vmem:[%s34866_s3 + $0x838] sm:$0xff] }
 0x8a9   :  { %25143 = vmatprep.subr.bf16.mxu1 %v25142_v32  ;;  %v25162_v54 = vpack.c.bf16 %v18765_v53, %v18764_v24  ;;  %v33271_v24 = vld [vmem:[#allocation2 + $0x110] sm:$0xff] }
 0x8ab   :  { %23481 = vmatmul.mubr.f32.gmra.mrb[156].mxu1 %v33174_v60 }
 0x8ac   :  { %23483 = vmatprep.mubr.f32.mxu1 %v12736_v28  ;;  %25145 = vmatpush3.bf16.msra.mxu1 %v25142_v32  ;;  %v18766_v32 = vld [vmem:[%s34866_s3 + $0x810] sm:$0xff]  ;;  %v33243_v28 = vld [vmem:[#allocation2 + $0x80] sm:$0xff] }
 0x8ad   :  { %25147 = vmatprep.subr.bf16.mxu1 %v25146_v44 }
 0x8af   :  { %23484 = vmatmul.mubr.f32.gmra.mrb[158].mxu1 %v33183_v17 }
 0x8b0   :  { %23486 = vmatprep.mubr.f32.mxu1 %v33192_v63  ;;  %25149 = vmatpush3.bf16.msra.mxu1 %v25146_v44  ;;  %v18769_v44 = vld [vmem:[%s34866_s3 + $0x828] sm:$0xff] }
 0x8b1   :  { %25151 = vmatprep.subr.bf16.mxu1 %v25150_v11  ;;  %v25170_v48 = vpack.c.bf16 %v18769_v44, %v18768_v10  ;;  %v18780_v44 = vld [vmem:[%s34866_s3 + $0x880] sm:$0xff] }
 0x8b3   :  { %23487 = vmatmul.mubr.f32.gmra.mrb[160].mxu1 %v33195_v62 }
 0x8b4   :  { %23489 = vmatprep.mubr.f32.mxu1 %v33204_v12  ;;  %25153 = vmatpush3.bf16.msra.mxu1 %v25150_v11  ;;  %v18773_v11 = vld [vmem:[%s34866_s3 + $0x848] sm:$0xff] }
 0x8b5   :  { %25155 = vmatprep.subr.bf16.mxu1 %v25154_v31 }
 0x8b7   :  { %23490 = vmatmul.mubr.f32.gmra.mrb[162].mxu1 %v33207_v30 }
 0x8b8   :  { %23492 = vmatprep.mubr.f32.mxu1 %v32812_v43  ;;  %25157 = vmatpush3.bf16.msra.mxu1 %v25154_v31  ;;  %v25166_v43 = vpack.c.bf16 %v18767_v41, %v18766_v32  ;;  %v12931_v31 = vld [vmem:[#allocation2 + $0xf0] sm:$0xff]  ;;  %v18779_v41 = vld [vmem:[%s34866_s3 + $0x878] sm:$0xff] }
 0x8b9   :  { %25159 = vmatprep.subr.bf16.mxu1 %v25158_v0  ;;  %v18778_v32 = vld [vmem:[%s34866_s3 + $0x870] sm:$0xff] }
 0x8ba   :  { %v25190_v10 = vpack.c.bf16 %v18779_v41, %v18778_v32  ;;  %v33327_v41 = vld [vmem:[#allocation2 + $0x81] sm:$0xff] }
 0x8bb   :  { %23493 = vmatmul.mubr.f32.gmra.mrb[164].mxu1 %v33217_v35 }
 0x8bc   :  { %25161 = vmatpush3.bf16.msra.mxu1 %v25158_v0  ;;  %23527 = vmatprep.mubr.f32.mxu1 %v32821_v40  ;;  %v18770_v40 = vld [vmem:[%s34866_s3 + $0x830] sm:$0xff]  ;;  %v18777_v0 = vld [vmem:[%s34866_s3 + $0x868] sm:$0xff] }
 0x8bd   :  { %25163 = vmatprep.subr.bf16.mxu1 %v25162_v54  ;;  %v25186_v53 = vpack.c.bf16 %v18777_v0, %v18776_v14  ;;  %v18786_v14 = vld [vmem:[%s34866_s3 + $0x8b0] sm:$0xff]  ;;  %v18787_v0 = vld [vmem:[%s34866_s3 + $0x8b8] sm:$0xff] }
 0x8be   :  { %v25206_v32 = vpack.c.bf16 %v18787_v0, %v18786_v14  ;;  %v33358_v0 = vld [vmem:[#allocation2 + $0x121] sm:$0xff] }
 0x8bf   :  { %23528 = vmatmul.mubr.f32.vlgmr.msra.gmra.mrb[150].mxu1 %v32830_v9  ;;  %v25174_v9 = vpack.c.bf16 %v18771_v49, %v18770_v40  ;;  %v33294_v49 = vld [vmem:[#allocation2 + $0x160] sm:$0xff] }
 0x8c0   :  { %23530 = vmatprep.mubr.f32.mxu1 %v32833_v7  ;;  %25165 = vmatpush3.bf16.msra.mxu1 %v25162_v54  ;;  %v18772_v7 = vld [vmem:[%s34866_s3 + $0x840] sm:$0xff] }
 0x8c1   :  { %25167 = vmatprep.subr.bf16.mxu1 %v25166_v43  ;;  %v33274_v54 = vld [vmem:[#allocation2 + $0x120] sm:$0xff] }
 0x8c3   :  { %23531 = vmatmul.mubr.f32.gmra.mrb[152].mxu1 %v32842_v34  ;;  %v25178_v34 = vpack.c.bf16 %v18773_v11, %v18772_v7  ;;  %v18783_v7 = vld [vmem:[%s34866_s3 + $0x898] sm:$0xff] }
 0x8c4   :  { %23533 = vmatprep.mubr.f32.mxu1 %v32845_v15  ;;  %25169 = vmatpush3.bf16.msra.mxu1 %v25166_v43  ;;  %v33253_v15 = vld [vmem:[#allocation2 + $0xa0] sm:$0xff]  ;;  %v33283_v43 = vld [vmem:[#allocation2 + $0x130] sm:$0xff] }
 0x8c5   :  { %25171 = vmatprep.subr.bf16.mxu1 %v25170_v48  ;;  %v13117_v11 = vld [vmem:[#allocation2 + $0x31] sm:$0xff] }
 0x8c7   :  { %23534 = vmatmul.mubr.f32.gmra.mrb[154].mxu1 %v33243_v28 }
 0x8c8   :  { %23536 = vmatprep.mubr.f32.mxu1 %v32855_v56  ;;  %25173 = vmatpush3.bf16.msra.mxu1 %v25170_v48  ;;  %v25182_v56 = vpack.c.bf16 %v18775_v36, %v18774_v61  ;;  %v18781_v48 = vld [vmem:[%s34866_s3 + $0x888] sm:$0xff]  ;;  %v33312_v36 = vld [vmem:[#allocation2 + $0x51] sm:$0xff] }
 0x8c9   :  { %25175 = vmatprep.subr.bf16.mxu1 %v25174_v9  ;;  %v25194_v40 = vpack.c.bf16 %v18781_v48, %v18780_v44  ;;  %v18785_v61 = vld [vmem:[%s34866_s3 + $0x8a8] sm:$0xff] }
 0x8ca   :  { %v18789_v44 = vld [vmem:[%s34866_s3 + $0x8c8] sm:$0xff] }
 0x8cb   :  { %23537 = vmatmul.mubr.f32.gmra.mrb[156].mxu1 %v33253_v15 }
 0x8cc   :  { %23539 = vmatprep.mubr.f32.mxu1 %v12931_v31  ;;  %25177 = vmatpush3.bf16.msra.mxu1 %v25174_v9  ;;  %v18782_v9 = vld [vmem:[%s34866_s3 + $0x890] sm:$0xff] }
 0x8cd   :  { %25179 = vmatprep.subr.bf16.mxu1 %v25178_v34 }
 0x8cf   :  { %23540 = vmatmul.mubr.f32.gmra.mrb[158].mxu1 %v33262_v37 }
 0x8d0   :  { %23542 = vmatprep.mubr.f32.mxu1 %v33271_v24  ;;  %25181 = vmatpush3.bf16.msra.mxu1 %v25178_v34  ;;  %v18784_v34 = vld [vmem:[%s34866_s3 + $0x8a0] sm:$0xff] }
 0x8d1   :  { %25183 = vmatprep.subr.bf16.mxu1 %v25182_v56  ;;  %v25202_v31 = vpack.c.bf16 %v18785_v61, %v18784_v34  ;;  %v18792_v34 = vld [vmem:[%s34866_s3 + $0x8e0] sm:$0xff]  ;;  %v18793_v61 = vld [vmem:[%s34866_s3 + $0x8e8] sm:$0xff] }
 0x8d2   :  { %v25218_v14 = vpack.c.bf16 %v18793_v61, %v18792_v34  ;;  %v18798_v61 = vld [vmem:[%s34866_s3 + $0x910] sm:$0xff] }
 0x8d3   :  { %23543 = vmatmul.mubr.f32.gmra.mrb[160].mxu1 %v33274_v54 }
 0x8d4   :  { %23545 = vmatprep.mubr.f32.mxu1 %v33283_v43  ;;  %25185 = vmatpush3.bf16.msra.mxu1 %v25182_v56  ;;  %v33315_v56 = vld [vmem:[#allocation2 + $0x61] sm:$0xff] }
 0x8d5   :  { %25187 = vmatprep.subr.bf16.mxu1 %v25186_v53 }
 0x8d7   :  { %23546 = vmatmul.mubr.f32.gmra.mrb[162].mxu1 %v32888_v50  ;;  %v25198_v50 = vpack.c.bf16 %v18783_v7, %v18782_v9  ;;  %v18790_v9 = vld [vmem:[%s34866_s3 + $0x8d0] sm:$0xff]  ;;  %v18791_v7 = vld [vmem:[%s34866_s3 + $0x8d8] sm:$0xff] }
 0x8d8   :  { %23548 = vmatprep.mubr.f32.mxu1 %v32891_v2  ;;  %25189 = vmatpush3.bf16.msra.mxu1 %v25186_v53  ;;  %v33303_v2 = vld [vmem:[#allocation2 + $0x41] sm:$0xff]  ;;  %v33324_v53 = vld [vmem:[#allocation2 + $0x71] sm:$0xff] }
 0x8d9   :  { %25191 = vmatprep.subr.bf16.mxu1 %v25190_v10 }
 0x8db   :  { %23549 = vmatmul.mubr.f32.gmra.mrb[164].mxu1 %v33294_v49 }
 0x8dc   :  { %25193 = vmatpush3.bf16.msra.mxu1 %v25190_v10  ;;  %23583 = vmatprep.mubr.f32.mxu1 %v13117_v11  ;;  %v18788_v10 = vld [vmem:[%s34866_s3 + $0x8c0] sm:$0xff]  ;;  %v13125_v11 = vld [vmem:[#allocation2 + $0xf1] sm:$0xff] }
 0x8dd   :  { %25195 = vmatprep.subr.bf16.mxu1 %v25194_v40  ;;  %v25210_v48 = vpack.c.bf16 %v18789_v44, %v18788_v10  ;;  %v18795_v10 = vld [vmem:[%s34866_s3 + $0x8f8] sm:$0xff] }
 0x8de   :  { %v33367_v44 = vld [vmem:[#allocation2 + $0x131] sm:$0xff] }
 0x8df   :  { %23584 = vmatmul.mubr.f32.vlgmr.msra.gmra.mrb[150].mxu1 %v33303_v2 }
 0x8e0   :  { %23586 = vmatprep.mubr.f32.mxu1 %v33312_v36  ;;  %25197 = vmatpush3.bf16.msra.mxu1 %v25194_v40  ;;  %v33337_v40 = vld [vmem:[#allocation2 + $0xa1] sm:$0xff] }
 0x8e1   :  { %25199 = vmatprep.subr.bf16.mxu1 %v25198_v50 }
 0x8e3   :  { %23587 = vmatmul.mubr.f32.gmra.mrb[152].mxu1 %v33315_v56 }
 0x8e4   :  { %23589 = vmatprep.mubr.f32.mxu1 %v33324_v53  ;;  %25201 = vmatpush3.bf16.msra.mxu1 %v25198_v50  ;;  %v33346_v50 = vld [vmem:[#allocation2 + $0x101] sm:$0xff] }
 0x8e5   :  { %25203 = vmatprep.subr.bf16.mxu1 %v25202_v31 }
 0x8e7   :  { %23590 = vmatmul.mubr.f32.gmra.mrb[154].mxu1 %v33327_v41 }
 0x8e8   :  { %23592 = vmatprep.mubr.f32.mxu1 %v32925_v16  ;;  %25205 = vmatpush3.bf16.msra.mxu1 %v25202_v31  ;;  %v25214_v16 = vpack.c.bf16 %v18791_v7, %v18790_v9  ;;  %v33355_v31 = vld [vmem:[#allocation2 + $0x111] sm:$0xff]  ;;  %v33370_v9 = vld [vmem:[#allocation2 + $0x141] sm:$0xff] }
 0x8e9   :  { %25207 = vmatprep.subr.bf16.mxu1 %v25206_v32  ;;  %v18796_v7 = vld [vmem:[%s34866_s3 + $0x900] sm:$0xff] }
 0x8eb   :  { %23593 = vmatmul.mubr.f32.gmra.mrb[156].mxu1 %v33337_v40 }
 0x8ec   :  { %23595 = vmatprep.mubr.f32.mxu1 %v13125_v11  ;;  %25209 = vmatpush3.bf16.msra.mxu1 %v25206_v32  ;;  %v18794_v32 = vld [vmem:[%s34866_s3 + $0x8f0] sm:$0xff]  ;;  %v18797_v11 = vld [vmem:[%s34866_s3 + $0x908] sm:$0xff] }
 0x8ed   :  { %25211 = vmatprep.subr.bf16.mxu1 %v25210_v48  ;;  %v25226_v34 = vpack.c.bf16 %v18797_v11, %v18796_v7  ;;  %v33406_v11 = vld [vmem:[#allocation2 + $0x82] sm:$0xff] }
 0x8ef   :  { %23596 = vmatmul.mubr.f32.gmra.mrb[158].mxu1 %v33346_v50 }
 0x8f0   :  { %23598 = vmatprep.mubr.f32.mxu1 %v33355_v31  ;;  %25213 = vmatpush3.bf16.msra.mxu1 %v25210_v48  ;;  %v25222_v48 = vpack.c.bf16 %v18795_v10, %v18794_v32  ;;  %v18799_v32 = vld [vmem:[%s34866_s3 + $0x918] sm:$0xff]  ;;  %v18801_v10 = vld [vmem:[%s34866_s3 + $0x928] sm:$0xff] }
 0x8f1   :  { %25215 = vmatprep.subr.bf16.mxu1 %v25214_v16 }
 0x8f3   :  { %23599 = vmatmul.mubr.f32.gmra.mrb[160].mxu1 %v33358_v0 }
 0x8f4   :  { %23601 = vmatprep.mubr.f32.mxu1 %v33367_v44  ;;  %25217 = vmatpush3.bf16.msra.mxu1 %v25214_v16  ;;  %v33380_v16 = vld [vmem:[#allocation2 + $0x161] sm:$0xff] }
 0x8f5   :  { %25219 = vmatprep.subr.bf16.mxu1 %v25218_v14 }
 0x8f7   :  { %23602 = vmatmul.mubr.f32.gmra.mrb[162].mxu1 %v33370_v9 }
 0x8f8   :  { %23604 = vmatprep.mubr.f32.mxu1 %v32959_v47  ;;  %25221 = vmatpush3.bf16.msra.mxu1 %v25218_v14  ;;  %v25230_v47 = vpack.c.bf16 %v18799_v32, %v18798_v61  ;;  %v18800_v14 = vld [vmem:[%s34866_s3 + $0x920] sm:$0xff]  ;;  %v18806_v61 = vld [vmem:[%s34866_s3 + $0x950] sm:$0xff]  ;;  %v18807_v32 = vld [vmem:[%s34866_s3 + $0x958] sm:$0xff] }
 0x8f9   :  { %25223 = vmatprep.subr.bf16.mxu1 %v25222_v48  ;;  %v25234_v7 = vpack.c.bf16 %v18801_v10, %v18800_v14  ;;  %v18809_v14 = vld [vmem:[%s34866_s3 + $0x968] sm:$0xff] }
 0x8fb   :  { %23605 = vmatmul.mubr.f32.gmra.mrb[164].mxu1 %v33380_v16 }
 0x8fc   :  { %25225 = vmatpush3.bf16.msra.mxu1 %v25222_v48  ;;  %23639 = vmatprep.mubr.f32.mxu1 %v32968_v13  ;;  %v18802_v13 = vld [vmem:[%s34866_s3 + $0x930] sm:$0xff]  ;;  %v18803_v48 = vld [vmem:[%s34866_s3 + $0x938] sm:$0xff] }
 0x8fd   :  { %25227 = vmatprep.subr.bf16.mxu1 %v25226_v34 }
 0x8ff   :  { %23640 = vmatmul.mubr.f32.vlgmr.msra.gmra.mrb[150].mxu1 %v32977_v29  ;;  %v25238_v29 = vpack.c.bf16 %v18803_v48, %v18802_v13  ;;  %v33442_v13 = vld [vmem:[#allocation2 + $0x142] sm:$0xff] }
 0x900   :  { %23642 = vmatprep.mubr.f32.mxu1 %v32980_v45  ;;  %25229 = vmatpush3.bf16.msra.mxu1 %v25226_v34  ;;  %v18804_v45 = vld [vmem:[%s34866_s3 + $0x940] sm:$0xff]  ;;  %v18805_v34 = vld [vmem:[%s34866_s3 + $0x948] sm:$0xff] }
 0x901   :  { %25231 = vmatprep.subr.bf16.mxu1 %v25230_v47  ;;  %v18813_v48 = vld [vmem:[%s34866_s3 + $0x988] sm:$0xff] }
 0x903   :  { %23643 = vmatmul.mubr.f32.gmra.mrb[152].mxu1 %v32989_v20  ;;  %v25242_v20 = vpack.c.bf16 %v18805_v34, %v18804_v45  ;;  %v18815_v45 = vld [vmem:[%s34866_s3 + $0x998] sm:$0xff]  ;;  %v18816_v34 = vld [vmem:[%s34866_s3 + $0x9a0] sm:$0xff] }
 0x904   :  { %23645 = vmatprep.mubr.f32.mxu1 %v32992_v21  ;;  %25233 = vmatpush3.bf16.msra.mxu1 %v25230_v47  ;;  %v33416_v21 = vld [vmem:[#allocation2 + $0xa2] sm:$0xff] }
 0x905   :  { %25235 = vmatprep.subr.bf16.mxu1 %v25234_v7  ;;  %v18808_v47 = vld [vmem:[%s34866_s3 + $0x960] sm:$0xff] }
 0x906   :  { %v25250_v10 = vpack.c.bf16 %v18809_v14, %v18808_v47  ;;  %v18821_v47 = vld [vmem:[%s34866_s3 + $0x9c8] sm:$0xff]  ;;  %v18822_v14 = vld [vmem:[%s34866_s3 + $0x9d0] sm:$0xff] }
 0x907   :  { %23646 = vmatmul.mubr.f32.gmra.mrb[154].mxu1 %v33406_v11 }
 0x908   :  { %23648 = vmatprep.mubr.f32.mxu1 %v33002_v23  ;;  %25237 = vmatpush3.bf16.msra.mxu1 %v25234_v7  ;;  %v25246_v23 = vpack.c.bf16 %v18807_v32, %v18806_v61  ;;  %v18811_v7 = vld [vmem:[%s34866_s3 + $0x978] sm:$0xff] }
 0x909   :  { %25239 = vmatprep.subr.bf16.mxu1 %v25238_v29  ;;  %v18819_v32 = vld [vmem:[%s34866_s3 + $0x9b8] sm:$0xff] }
 0x90b   :  { %23649 = vmatmul.mubr.f32.gmra.mrb[156].mxu1 %v33416_v21 }
 0x90c   :  { %23651 = vmatprep.mubr.f32.mxu1 %v33011_v8  ;;  %25241 = vmatpush3.bf16.msra.mxu1 %v25238_v29  ;;  %v18810_v8 = vld [vmem:[%s34866_s3 + $0x970] sm:$0xff] }
 0x90d   :  { %25243 = vmatprep.subr.bf16.mxu1 %v25242_v20  ;;  %v18814_v29 = vld [vmem:[%s34866_s3 + $0x990] sm:$0xff] }
 0x90f   :  { %23652 = vmatmul.mubr.f32.gmra.mrb[158].mxu1 %v33020_v46  ;;  %v25254_v46 = vpack.c.bf16 %v18811_v7, %v18810_v8  ;;  %v18824_v8 = vld [vmem:[%s34866_s3 + $0x9e0] sm:$0xff]  ;;  %v18825_v7 = vld [vmem:[%s34866_s3 + $0x9e8] sm:$0xff] }
 0x910   :  { %23654 = vmatprep.mubr.f32.mxu1 %v33023_v5  ;;  %25245 = vmatpush3.bf16.msra.mxu1 %v25242_v20  ;;  %v18812_v5 = vld [vmem:[%s34866_s3 + $0x980] sm:$0xff]  ;;  %v18817_v20 = vld [vmem:[%s34866_s3 + $0x9a8] sm:$0xff] }
 0x911   :  { %25247 = vmatprep.subr.bf16.mxu1 %v25246_v23  ;;  %v25266_v61 = vpack.c.bf16 %v18817_v20, %v18816_v34  ;;  %v18833_v34 = vld [vmem:[%s34866_s3 + $0xa28] sm:$0xff] }
 0x913   :  { %23655 = vmatmul.mubr.f32.gmra.mrb[160].mxu1 %v33032_v19  ;;  %v25258_v19 = vpack.c.bf16 %v18813_v48, %v18812_v5  ;;  %v18827_v5 = vld [vmem:[%s34866_s3 + $0x9f8] sm:$0xff]  ;;  %v33514_v48 = vld [vmem:[#allocation2 + $0x143] sm:$0xff] }
 0x914   :  { %23657 = vmatprep.mubr.f32.mxu1 %v33035_v39  ;;  %25249 = vmatpush3.bf16.msra.mxu1 %v25246_v23  ;;  %v33452_v39 = vld [vmem:[#allocation2 + $0x162] sm:$0xff] }
 0x915   :  { %25251 = vmatprep.subr.bf16.mxu1 %v25250_v10  ;;  %v33478_v23 = vld [vmem:[#allocation2 + $0x83] sm:$0xff] }
 0x917   :  { %23658 = vmatmul.mubr.f32.gmra.mrb[162].mxu1 %v33442_v13 }
 0x918   :  { %23660 = vmatprep.mubr.f32.mxu1 %v33045_v59  ;;  %25253 = vmatpush3.bf16.msra.mxu1 %v25250_v10  ;;  %v25262_v59 = vpack.c.bf16 %v18815_v45, %v18814_v29  ;;  %v18823_v10 = vld [vmem:[%s34866_s3 + $0x9d8] sm:$0xff]  ;;  %v18830_v29 = vld [vmem:[%s34866_s3 + $0xa10] sm:$0xff] }
 0x919   :  { %25255 = vmatprep.subr.bf16.mxu1 %v25254_v46  ;;  %v18831_v45 = vld [vmem:[%s34866_s3 + $0xa18] sm:$0xff] }
 0x91b   :  { %23661 = vmatmul.mubr.f32.gmra.mrb[164].mxu1 %v33452_v39 }
 0x91c   :  { %25257 = vmatpush3.bf16.msra.mxu1 %v25254_v46  ;;  %23695 = vmatprep.mubr.f32.mxu1 %v33054_v38  ;;  %v18818_v38 = vld [vmem:[%s34866_s3 + $0x9b0] sm:$0xff]  ;;  %v25282_v46 = vpack.c.bf16 %v18825_v7, %v18824_v8  ;;  %v18845_v8 = vld [vmem:[%s34866_s3 + $0xa88] sm:$0xff] }
 0x91d   :  { %25259 = vmatprep.subr.bf16.mxu1 %v25258_v19  ;;  %v18846_v7 = vld [vmem:[%s34866_s3 + $0xa90] sm:$0xff] }
 0x91f   :  { %23696 = vmatmul.mubr.f32.vlgmr.msra.gmra.mrb[150].mxu1 %v33063_v58  ;;  %v25270_v58 = vpack.c.bf16 %v18819_v32, %v18818_v38  ;;  %v33550_v38 = vld [vmem:[#allocation2 + $0x84] sm:$0xff] }
 0x920   :  { %23698 = vmatprep.mubr.f32.mxu1 %v33066_v52  ;;  %25261 = vmatpush3.bf16.msra.mxu1 %v25258_v19  ;;  %v18820_v52 = vld [vmem:[%s34866_s3 + $0x9c0] sm:$0xff]  ;;  %v18829_v19 = vld [vmem:[%s34866_s3 + $0xa08] sm:$0xff] }
 0x921   :  { %25263 = vmatprep.subr.bf16.mxu1 %v25262_v59  ;;  %v18837_v32 = vld [vmem:[%s34866_s3 + $0xa48] sm:$0xff] }
 0x923   :  { %23699 = vmatmul.mubr.f32.gmra.mrb[152].mxu1 %v33075_v22  ;;  %v25274_v22 = vpack.c.bf16 %v18821_v47, %v18820_v52  ;;  %v18839_v52 = vld [vmem:[%s34866_s3 + $0xa58] sm:$0xff]  ;;  %v18840_v47 = vld [vmem:[%s34866_s3 + $0xa60] sm:$0xff] }
 0x924   :  { %23701 = vmatprep.mubr.f32.mxu1 %v33078_v57  ;;  %25265 = vmatpush3.bf16.msra.mxu1 %v25262_v59  ;;  %v33488_v57 = vld [vmem:[#allocation2 + $0xa3] sm:$0xff] }
 0x925   :  { %25267 = vmatprep.subr.bf16.mxu1 %v25266_v61  ;;  %v18832_v59 = vld [vmem:[%s34866_s3 + $0xa20] sm:$0xff] }
 0x926   :  { %v25298_v20 = vpack.c.bf16 %v18833_v34, %v18832_v59  ;;  %v13899_v34 = vld [vmem:[#allocation2 + $0x90] sm:$0xff] }
 0x927   :  { %23702 = vmatmul.mubr.f32.gmra.mrb[154].mxu1 %v33478_v23 }
 0x928   :  { %23704 = vmatprep.mubr.f32.mxu1 %v33088_v55  ;;  %25269 = vmatpush3.bf16.msra.mxu1 %v25266_v61  ;;  %v25278_v55 = vpack.c.bf16 %v18823_v10, %v18822_v14  ;;  %v18835_v61 = vld [vmem:[%s34866_s3 + $0xa38] sm:$0xff] }
 0x929   :  { %25271 = vmatprep.subr.bf16.mxu1 %v25270_v58  ;;  %v18843_v10 = vld [vmem:[%s34866_s3 + $0xa78] sm:$0xff] }
 0x92b   :  { %23705 = vmatmul.mubr.f32.gmra.mrb[156].mxu1 %v33488_v57 }
 0x92c   :  { %23707 = vmatprep.mubr.f32.mxu1 %v33097_v51  ;;  %25273 = vmatpush3.bf16.msra.mxu1 %v25270_v58  ;;  %v18826_v51 = vld [vmem:[%s34866_s3 + $0x9f0] sm:$0xff] }
 0x92d   :  { %25275 = vmatprep.subr.bf16.mxu1 %v25274_v22  ;;  %v18838_v58 = vld [vmem:[%s34866_s3 + $0xa50] sm:$0xff] }
 0x92f   :  { %23708 = vmatmul.mubr.f32.gmra.mrb[158].mxu1 %v33106_v33  ;;  %v25286_v33 = vpack.c.bf16 %v18827_v5, %v18826_v51  ;;  %v13894_v51 = vld [vmem:[#allocation2 + $0x40] sm:$0xff]  ;;  %v13895_v5 = vld [vmem:[#allocation2 + $0x50] sm:$0xff] }
 0x930   :  { %23710 = vmatprep.mubr.f32.mxu1 %v33109_v4  ;;  %25277 = vmatpush3.bf16.msra.mxu1 %v25274_v22  ;;  %v18828_v4 = vld [vmem:[%s34866_s3 + $0xa00] sm:$0xff]  ;;  %v18841_v22 = vld [vmem:[%s34866_s3 + $0xa68] sm:$0xff] }
 0x931   :  { %25279 = vmatprep.subr.bf16.mxu1 %v25278_v55  ;;  %v25314_v14 = vpack.c.bf16 %v18841_v22, %v18840_v47  ;;  %v13907_v47 = vld [vmem:[#allocation2 + $0x150] sm:$0xff]  ;;  %v18861_v22 = vld [vmem:[%s34866_s3 + $0xb08] sm:$0xff] }
 0x933   :  { %23711 = vmatmul.mubr.f32.gmra.mrb[160].mxu1 %v33118_v3  ;;  %v25290_v3 = vpack.c.bf16 %v18829_v19, %v18828_v4  ;;  %v18849_v4 = vld [vmem:[%s34866_s3 + $0xaa8] sm:$0xff]  ;;  %v13896_v19 = vld [vmem:[#allocation2 + $0x60] sm:$0xff] }
 0x934   :  { %23713 = vmatprep.mubr.f32.mxu1 %v33121_v26  ;;  %25281 = vmatpush3.bf16.msra.mxu1 %v25278_v55  ;;  %v33524_v26 = vld [vmem:[#allocation2 + $0x163] sm:$0xff] }
 0x935   :  { %25283 = vmatprep.subr.bf16.mxu1 %v25282_v46  ;;  %v33586_v55 = vld [vmem:[#allocation2 + $0x144] sm:$0xff] }
 0x937   :  { %23714 = vmatmul.mubr.f32.gmra.mrb[162].mxu1 %v33514_v48 }
 0x938   :  { %23716 = vmatprep.mubr.f32.mxu1 %v33131_v42  ;;  %25285 = vmatpush3.bf16.msra.mxu1 %v25282_v46  ;;  %v25294_v42 = vpack.c.bf16 %v18831_v45, %v18830_v29  ;;  %v18847_v46 = vld [vmem:[%s34866_s3 + $0xa98] sm:$0xff]  ;;  %v13897_v29 = vld [vmem:[#allocation2 + $0x70] sm:$0xff] }
 0x939   :  { %25287 = vmatprep.subr.bf16.mxu1 %v25286_v33  ;;  %v18850_v45 = vld [vmem:[%s34866_s3 + $0xab0] sm:$0xff] }
 0x93b   :  { %23717 = vmatmul.mubr.f32.gmra.mrb[164].mxu1 %v33524_v26 }
 0x93c   :  { %25289 = vmatpush3.bf16.msra.mxu1 %v25286_v33  ;;  %23751 = vmatprep.mubr.f32.mxu1 %v33140_v27  ;;  %v18834_v27 = vld [vmem:[%s34866_s3 + $0xa30] sm:$0xff]  ;;  %v18848_v33 = vld [vmem:[%s34866_s3 + $0xaa0] sm:$0xff] }
 0x93d   :  { %25291 = vmatprep.subr.bf16.mxu1 %v25290_v3 }
 0x93f   :  { %23752 = vmatmul.mubr.f32.vlgmr.msra.gmra.mrb[150].mxu1 %v33149_v18  ;;  %v25302_v18 = vpack.c.bf16 %v18835_v61, %v18834_v27  ;;  %v18853_v27 = vld [vmem:[%s34866_s3 + $0xac8] sm:$0xff] }
 0x940   :  { %23754 = vmatprep.mubr.f32.mxu1 %v33152_v1  ;;  %25293 = vmatpush3.bf16.msra.mxu1 %v25290_v3  ;;  %v18836_v1 = vld [vmem:[%s34866_s3 + $0xa40] sm:$0xff]  ;;  %v25330_v3 = vpack.c.bf16 %v18849_v4, %v18848_v33  ;;  %v18873_v33 = vld [vmem:[%s34866_s3 + $0xb68] sm:$0xff] }
 0x941   :  { %25295 = vmatprep.subr.bf16.mxu1 %v25294_v42 }
 0x943   :  { %23755 = vmatmul.mubr.f32.gmra.mrb[152].mxu1 %v33161_v25  ;;  %v25306_v25 = vpack.c.bf16 %v18837_v32, %v18836_v1  ;;  %v18855_v1 = vld [vmem:[%s34866_s3 + $0xad8] sm:$0xff] }
 0x944   :  { %23757 = vmatprep.mubr.f32.mxu1 %v33164_v6  ;;  %25297 = vmatpush3.bf16.msra.mxu1 %v25294_v42  ;;  %v33560_v6 = vld [vmem:[#allocation2 + $0xa4] sm:$0xff]  ;;  %v18851_v42 = vld [vmem:[%s34866_s3 + $0xab8] sm:$0xff] }
 0x945   :  { %25299 = vmatprep.subr.bf16.mxu1 %v25298_v20  ;;  %v25334_v59 = vpack.c.bf16 %v18851_v42, %v18850_v45  ;;  %v14103_v45 = vld [vmem:[#allocation2 + $0x171] sm:$0xff] }
 0x946   :  { %v18879_v42 = vld [vmem:[%s34866_s3 + $0xb98] sm:$0xff] }
 0x947   :  { %23758 = vmatmul.mubr.f32.gmra.mrb[154].mxu1 %v33550_v38 }
 0x948   :  { %23760 = vmatprep.mubr.f32.mxu1 %v33174_v60  ;;  %25301 = vmatpush3.bf16.msra.mxu1 %v25298_v20  ;;  %v25310_v60 = vpack.c.bf16 %v18839_v52, %v18838_v58  ;;  %v18852_v20 = vld [vmem:[%s34866_s3 + $0xac0] sm:$0xff]  ;;  %v18859_v52 = vld [vmem:[%s34866_s3 + $0xaf8] sm:$0xff] }
 0x949   :  { %25303 = vmatprep.subr.bf16.mxu1 %v25302_v18  ;;  %v25338_v61 = vpack.c.bf16 %v18853_v27, %v18852_v20  ;;  %v14283_v20 = vld [vmem:[#allocation2 + $0x52] sm:$0xff]  ;;  %v18881_v27 = vld [vmem:[%s34866_s3 + $0xba8] sm:$0xff] }
 0x94b   :  { %23761 = vmatmul.mubr.f32.gmra.mrb[156].mxu1 %v33560_v6 }
 0x94c   :  { %23763 = vmatprep.mubr.f32.mxu1 %v33183_v17  ;;  %25305 = vmatpush3.bf16.msra.mxu1 %v25302_v18  ;;  %v18842_v17 = vld [vmem:[%s34866_s3 + $0xa70] sm:$0xff] }
 0x94d   :  { %25307 = vmatprep.subr.bf16.mxu1 %v25306_v25  ;;  %v13901_v18 = vld [vmem:[#allocation2 + $0xb0] sm:$0xff] }
 0x94f   :  { %23764 = vmatmul.mubr.f32.gmra.mrb[158].mxu1 %v33192_v63  ;;  %v25318_v63 = vpack.c.bf16 %v18843_v10, %v18842_v17  ;;  %v18862_v17 = vld [vmem:[%s34866_s3 + $0xb10] sm:$0xff]  ;;  %v18863_v10 = vld [vmem:[%s34866_s3 + $0xb18] sm:$0xff] }
 0x950   :  { %23766 = vmatprep.mubr.f32.mxu1 %v33195_v62  ;;  %25309 = vmatpush3.bf16.msra.mxu1 %v25306_v25  ;;  %v18844_v62 = vld [vmem:[%s34866_s3 + $0xa80] sm:$0xff]  ;;  %v18857_v25 = vld [vmem:[%s34866_s3 + $0xae8] sm:$0xff] }
 0x951   :  { %25311 = vmatprep.subr.bf16.mxu1 %v25310_v60 }
 0x953   :  { %23767 = vmatmul.mubr.f32.gmra.mrb[160].mxu1 %v33204_v12  ;;  %v25322_v12 = vpack.c.bf16 %v18845_v8, %v18844_v62  ;;  %v18865_v62 = vld [vmem:[%s34866_s3 + $0xb28] sm:$0xff] }
 0x954   :  { %23769 = vmatprep.mubr.f32.mxu1 %v33207_v30  ;;  %25313 = vmatpush3.bf16.msra.mxu1 %v25310_v60  ;;  %v33596_v30 = vld [vmem:[#allocation2 + $0x164] sm:$0xff] }
 0x955   :  { %25315 = vmatprep.subr.bf16.mxu1 %v25314_v14  ;;  %v13906_v60 = vld [vmem:[#allocation2 + $0x140] sm:$0xff] }
 0x957   :  { %23770 = vmatmul.mubr.f32.gmra.mrb[162].mxu1 %v33586_v55 }
 0x958   :  { %23772 = vmatprep.mubr.f32.mxu1 %v33217_v35  ;;  %25317 = vmatpush3.bf16.msra.mxu1 %v25314_v14  ;;  %v25326_v35 = vpack.c.bf16 %v18847_v46, %v18846_v7  ;;  %v13909_v14 = vld [vmem:[#allocation2 + $0x170] sm:$0xff]  ;;  %v18869_v46 = vld [vmem:[%s34866_s3 + $0xb48] sm:$0xff] }
 0x959   :  { %25319 = vmatprep.subr.bf16.mxu1 %v25318_v63  ;;  %v14093_v7 = vld [vmem:[#allocation2 + $0x91] sm:$0xff] }
 0x95b   :  { %23773 = vmatmul.mubr.f32.gmra.mrb[164].mxu1 %v33596_v30 }
 0x95c   :  { %25321 = vmatpush3.bf16.msra.mxu1 %v25318_v63  ;;  %23807 = vmatprep.mubr.f32.mxu1 %v13894_v51  ;;  %v25358_v63 = vpack.c.bf16 %v18863_v10, %v18862_v17  ;;  %v14095_v51 = vld [vmem:[#allocation2 + $0xb1] sm:$0xff] }
 0x95d   :  { %25323 = vmatprep.subr.bf16.mxu1 %v25322_v12  ;;  %v14293_v10 = vld [vmem:[#allocation2 + $0x132] sm:$0xff] }
 0x95f   :  { %23808 = vmatmul.mubr.f32.vlgmr.msra.gmra.mrb[150].mxu1 %v13895_v5 }
 0x960   :  { %23810 = vmatprep.mubr.f32.mxu1 %v13896_v19  ;;  %25325 = vmatpush3.bf16.msra.mxu1 %v25322_v12  ;;  %v18867_v12 = vld [vmem:[%s34866_s3 + $0xb38] sm:$0xff] }
 0x961   :  { %25327 = vmatprep.subr.bf16.mxu1 %v25326_v35  ;;  %v18875_v19 = vld [vmem:[%s34866_s3 + $0xb78] sm:$0xff] }
 0x963   :  { %23811 = vmatmul.mubr.f32.gmra.mrb[152].mxu1 %v13897_v29  ;;  %v18877_v29 = vld [vmem:[%s34866_s3 + $0xb88] sm:$0xff] }
 0x964   :  { %23813 = vmatprep.mubr.f32.mxu1 %v33243_v28  ;;  %25329 = vmatpush3.bf16.msra.mxu1 %v25326_v35  ;;  %v18854_v28 = vld [vmem:[%s34866_s3 + $0xad0] sm:$0xff]  ;;  %v18871_v35 = vld [vmem:[%s34866_s3 + $0xb58] sm:$0xff] }
 0x965   :  { %25331 = vmatprep.subr.bf16.mxu1 %v25330_v3  ;;  %v25342_v32 = vpack.c.bf16 %v18855_v1, %v18854_v28  ;;  %v14285_v28 = vld [vmem:[#allocation2 + $0x72] sm:$0xff] }
 0x966   :  { %v18882_v1 = vld [vmem:[%s34866_s3 + $0xbb0] sm:$0xff] }
 0x967   :  { %23814 = vmatmul.mubr.f32.gmra.mrb[154].mxu1 %v13899_v34 }
 0x968   :  { %23816 = vmatprep.mubr.f32.mxu1 %v33253_v15  ;;  %25333 = vmatpush3.bf16.msra.mxu1 %v25330_v3  ;;  %v18856_v15 = vld [vmem:[%s34866_s3 + $0xae0] sm:$0xff]  ;;  %v14101_v3 = vld [vmem:[#allocation2 + $0x151] sm:$0xff] }
 0x969   :  { %25335 = vmatprep.subr.bf16.mxu1 %v25334_v59  ;;  %v25346_v58 = vpack.c.bf16 %v18857_v25, %v18856_v15  ;;  %v14287_v25 = vld [vmem:[#allocation2 + $0x92] sm:$0xff] }
 0x96b   :  { %23817 = vmatmul.mubr.f32.gmra.mrb[156].mxu1 %v13901_v18 }
 0x96c   :  { %23819 = vmatprep.mubr.f32.mxu1 %v33262_v37  ;;  %25337 = vmatpush3.bf16.msra.mxu1 %v25334_v59  ;;  %v18858_v37 = vld [vmem:[%s34866_s3 + $0xaf0] sm:$0xff]  ;;  %v14282_v59 = vld [vmem:[#allocation2 + $0x42] sm:$0xff] }
 0x96d   :  { %25339 = vmatprep.subr.bf16.mxu1 %v25338_v61 }
 0x96f   :  { %23820 = vmatmul.mubr.f32.gmra.mrb[158].mxu1 %v33271_v24  ;;  %v25350_v24 = vpack.c.bf16 %v18859_v52, %v18858_v37  ;;  %v18885_v37 = vld [vmem:[%s34866_s3 + $0xbc8] sm:$0xff] }
 0x970   :  { %23822 = vmatprep.mubr.f32.mxu1 %v33274_v54  ;;  %25341 = vmatpush3.bf16.msra.mxu1 %v25338_v61  ;;  %v18860_v54 = vld [vmem:[%s34866_s3 + $0xb00] sm:$0xff] }
 0x971   :  { %25343 = vmatprep.subr.bf16.mxu1 %v25342_v32  ;;  %v14284_v61 = vld [vmem:[#allocation2 + $0x62] sm:$0xff] }
 0x973   :  { %23823 = vmatmul.mubr.f32.gmra.mrb[160].mxu1 %v33283_v43  ;;  %v25354_v43 = vpack.c.bf16 %v18861_v22, %v18860_v54  ;;  %v14291_v22 = vld [vmem:[#allocation2 + $0x112] sm:$0xff] }
 0x974   :  { %23825 = vmatprep.mubr.f32.mxu1 %v13906_v60  ;;  %25345 = vmatpush3.bf16.msra.mxu1 %v25342_v32  ;;  %v18883_v32 = vld [vmem:[%s34866_s3 + $0xbb8] sm:$0xff] }
 0x975   :  { %25347 = vmatprep.subr.bf16.mxu1 %v25346_v58  ;;  %v25398_v15 = vpack.c.bf16 %v18883_v32, %v18882_v1  ;;  %v14289_v60 = vld [vmem:[#allocation2 + $0xb2] sm:$0xff]  ;;  %v14670_v32 = vld [vmem:[#allocation2 + $0x44] sm:$0xff] }
 0x976   :  { %v14491_v1 = vld [vmem:[#allocation2 + $0x173] sm:$0xff] }
 0x977   :  { %23826 = vmatmul.mubr.f32.gmra.mrb[162].mxu1 %v13907_v47  ;;  %v14290_v47 = vld [vmem:[#allocation2 + $0x102] sm:$0xff] }
 0x978   :  { %23828 = vmatprep.mubr.f32.mxu1 %v33294_v49  ;;  %25349 = vmatpush3.bf16.msra.mxu1 %v25346_v58  ;;  %v18864_v49 = vld [vmem:[%s34866_s3 + $0xb20] sm:$0xff] }
 0x979   :  { %25351 = vmatprep.subr.bf16.mxu1 %v25350_v24  ;;  %v25362_v8 = vpack.c.bf16 %v18865_v62, %v18864_v49  ;;  %v18884_v58 = vld [vmem:[%s34866_s3 + $0xbc0] sm:$0xff]  ;;  %v18891_v49 = vld [vmem:[%s34866_s3 + $0xbf8] sm:$0xff] }
 0x97a   :  { %v25402_v52 = vpack.c.bf16 %v18885_v37, %v18884_v58  ;;  %v14673_v58 = vld [vmem:[#allocation2 + $0x74] sm:$0xff]  ;;  %v14678_v37 = vld [vmem:[#allocation2 + $0x104] sm:$0xff] }
 0x97b   :  { %23829 = vmatmul.mubr.f32.gmra.mrb[164].mxu1 %v13909_v14  ;;  %v14292_v14 = vld [vmem:[#allocation2 + $0x122] sm:$0xff] }
 0x97c   :  { %25353 = vmatpush3.bf16.msra.mxu1 %v25350_v24  ;;  %23863 = vmatprep.mubr.f32.mxu1 %v33303_v2  ;;  %v18866_v2 = vld [vmem:[%s34866_s3 + $0xb30] sm:$0xff]  ;;  %v18887_v24 = vld [vmem:[%s34866_s3 + $0xbd8] sm:$0xff] }
 0x97d   :  { %25355 = vmatprep.subr.bf16.mxu1 %v25354_v43 }
 0x97f   :  { %23864 = vmatmul.mubr.f32.vlgmr.msra.gmra.mrb[150].mxu1 %v33312_v36  ;;  %v25366_v36 = vpack.c.bf16 %v18867_v12, %v18866_v2  ;;  %v18892_v2 = vld [vmem:[%s34866_s3 + $0xc00] sm:$0xff]  ;;  %v18893_v12 = vld [vmem:[%s34866_s3 + $0xc08] sm:$0xff] }
 0x980   :  { %23866 = vmatprep.mubr.f32.mxu1 %v33315_v56  ;;  %25357 = vmatpush3.bf16.msra.mxu1 %v25354_v43  ;;  %v18868_v56 = vld [vmem:[%s34866_s3 + $0xb40] sm:$0xff]  ;;  %v18889_v43 = vld [vmem:[%s34866_s3 + $0xbe8] sm:$0xff] }
 0x981   :  { %25359 = vmatprep.subr.bf16.mxu1 %v25358_v63 }
 0x983   :  { %23867 = vmatmul.mubr.f32.gmra.mrb[152].mxu1 %v33324_v53  ;;  %v25370_v53 = vpack.c.bf16 %v18869_v46, %v18868_v56  ;;  %v18895_v56 = vld [vmem:[%s34866_s3 + $0xc18] sm:$0xff]  ;;  %v14476_v46 = vld [vmem:[#allocation2 + $0x43] sm:$0xff] }
 0x984   :  { %23869 = vmatprep.mubr.f32.mxu1 %v33327_v41  ;;  %25361 = vmatpush3.bf16.msra.mxu1 %v25358_v63  ;;  %v18870_v41 = vld [vmem:[%s34866_s3 + $0xb50] sm:$0xff] }
 0x985   :  { %25363 = vmatprep.subr.bf16.mxu1 %v25362_v8  ;;  %v25374_v5 = vpack.c.bf16 %v18871_v35, %v18870_v41  ;;  %v18890_v63 = vld [vmem:[%s34866_s3 + $0xbf0] sm:$0xff]  ;;  %v18897_v41 = vld [vmem:[%s34866_s3 + $0xc28] sm:$0xff] }
 0x986   :  { %v25414_v62 = vpack.c.bf16 %v18891_v49, %v18890_v63  ;;  %v14478_v35 = vld [vmem:[#allocation2 + $0x63] sm:$0xff]  ;;  %v18916_v63 = vld [vmem:[%s34868_s5 + $0xb8] sm:$0xff] }
 0x987   :  { %23870 = vmatmul.mubr.f32.gmra.mrb[154].mxu1 %v14093_v7  ;;  %v14297_v7 = vld [vmem:[#allocation2 + $0x172] sm:$0xff] }
 0x988   :  { %23872 = vmatprep.mubr.f32.mxu1 %v33337_v40  ;;  %25365 = vmatpush3.bf16.msra.mxu1 %v25362_v8  ;;  %v18872_v40 = vld [vmem:[%s34866_s3 + $0xb60] sm:$0xff]  ;;  %v14295_v8 = vld [vmem:[#allocation2 + $0x152] sm:$0xff] }
 0x989   :  { %25367 = vmatprep.subr.bf16.mxu1 %v25366_v36  ;;  %v25378_v4 = vpack.c.bf16 %v18873_v33, %v18872_v40  ;;  %v14479_v40 = vld [vmem:[#allocation2 + $0x73] sm:$0xff] }
 0x98a   :  { %v18898_v33 = vld [vmem:[%s34866_s3 + $0xc30] sm:$0xff] }
 0x98b   :  { %23873 = vmatmul.mubr.f32.gmra.mrb[156].mxu1 %v14095_v51  ;;  %v14477_v51 = vld [vmem:[#allocation2 + $0x53] sm:$0xff] }
 0x98c   :  { %23875 = vmatprep.mubr.f32.mxu1 %v33346_v50  ;;  %25369 = vmatpush3.bf16.msra.mxu1 %v25366_v36  ;;  %v18874_v50 = vld [vmem:[%s34866_s3 + $0xb70] sm:$0xff]  ;;  %v25418_v36 = vpack.c.bf16 %v18893_v12, %v18892_v2 }
 0x98d   :  { %25371 = vmatprep.subr.bf16.mxu1 %v25370_v53  ;;  %v18919_v12 = vld [vmem:[%s34868_s5 + $0xd0] sm:$0xff] }
 0x98f   :  { %23876 = vmatmul.mubr.f32.gmra.mrb[158].mxu1 %v33355_v31  ;;  %v25382_v31 = vpack.c.bf16 %v18875_v19, %v18874_v50  ;;  %v14481_v19 = vld [vmem:[#allocation2 + $0x93] sm:$0xff] }
 0x990   :  { %23878 = vmatprep.mubr.f32.mxu1 %v33358_v0  ;;  %25373 = vmatpush3.bf16.msra.mxu1 %v25370_v53  ;;  %v18876_v0 = vld [vmem:[%s34866_s3 + $0xb80] sm:$0xff] }
 0x991   :  { %25375 = vmatprep.subr.bf16.mxu1 %v25374_v5 }
 0x993   :  { %23879 = vmatmul.mubr.f32.gmra.mrb[160].mxu1 %v33367_v44  ;;  %v25386_v44 = vpack.c.bf16 %v18877_v29, %v18876_v0  ;;  %v14483_v29 = vld [vmem:[#allocation2 + $0xb3] sm:$0xff] }
 0x994   :  { %23881 = vmatprep.mubr.f32.mxu1 %v33370_v9  ;;  %25377 = vmatpush3.bf16.msra.mxu1 %v25374_v5  ;;  %v18878_v9 = vld [vmem:[%s34866_s3 + $0xb90] sm:$0xff] }
 0x995   :  { %25379 = vmatprep.subr.bf16.mxu1 %v25378_v4  ;;  %v25390_v34 = vpack.c.bf16 %v18879_v42, %v18878_v9  ;;  %v14485_v42 = vld [vmem:[#allocation2 + $0x113] sm:$0xff] }
 0x997   :  { %23882 = vmatmul.mubr.f32.gmra.mrb[162].mxu1 %v14101_v3  ;;  %v18901_v3 = vld [vmem:[%s34866_s3 + $0xc48] sm:$0xff] }
 0x998   :  { %23884 = vmatprep.mubr.f32.mxu1 %v33380_v16  ;;  %25381 = vmatpush3.bf16.msra.mxu1 %v25378_v4  ;;  %v18880_v16 = vld [vmem:[%s34866_s3 + $0xba0] sm:$0xff]  ;;  %v18899_v4 = vld [vmem:[%s34866_s3 + $0xc38] sm:$0xff] }
 0x999   :  { %25383 = vmatprep.subr.bf16.mxu1 %v25382_v31  ;;  %v25394_v18 = vpack.c.bf16 %v18881_v27, %v18880_v16  ;;  %v25430_v50 = vpack.c.bf16 %v18899_v4, %v18898_v33  ;;  %v14487_v16 = vld [vmem:[#allocation2 + $0x133] sm:$0xff] }
 0x99a   :  { %v18906_v27 = vld [vmem:[%s34866_s3 + $0xc70] sm:$0xff] }
 0x99b   :  { %23885 = vmatmul.mubr.f32.gmra.mrb[164].mxu1 %v14103_v45  ;;  %v14484_v45 = vld [vmem:[#allocation2 + $0x103] sm:$0xff] }
 0x99c   :  { %25385 = vmatpush3.bf16.msra.mxu1 %v25382_v31  ;;  %23919 = vmatprep.mubr.f32.mxu1 %v14282_v59  ;;  %v18900_v31 = vld [vmem:[%s34866_s3 + $0xc40] sm:$0xff]  ;;  %v18905_v59 = vld [vmem:[%s34866_s3 + $0xc68] sm:$0xff] }
 0x99d   :  { %25387 = vmatprep.subr.bf16.mxu1 %v25386_v44  ;;  %v25434_v0 = vpack.c.bf16 %v18901_v3, %v18900_v31 }
 0x99f   :  { %23920 = vmatmul.mubr.f32.vlgmr.msra.gmra.mrb[150].mxu1 %v14283_v20 }
 0x9a0   :  { %23922 = vmatprep.mubr.f32.mxu1 %v14284_v61  ;;  %25389 = vmatpush3.bf16.msra.mxu1 %v25386_v44  ;;  %v18903_v44 = vld [vmem:[%s34866_s3 + $0xc58] sm:$0xff] }
 0x9a1   :  { %25391 = vmatprep.subr.bf16.mxu1 %v25390_v34  ;;  %v18907_v61 = vld [vmem:[%s34866_s3 + $0xc78] sm:$0xff] }
 0x9a3   :  { %23923 = vmatmul.mubr.f32.gmra.mrb[152].mxu1 %v14285_v28  ;;  %v14489_v28 = vld [vmem:[#allocation2 + $0x153] sm:$0xff] }
 0x9a4   :  { %23925 = vmatprep.mubr.f32.mxu1 %v33406_v11  ;;  %25393 = vmatpush3.bf16.msra.mxu1 %v25390_v34  ;;  %v18886_v11 = vld [vmem:[%s34866_s3 + $0xbd0] sm:$0xff]  ;;  %v14486_v34 = vld [vmem:[#allocation2 + $0x123] sm:$0xff] }
 0x9a5   :  { %25395 = vmatprep.subr.bf16.mxu1 %v25394_v18  ;;  %v25406_v54 = vpack.c.bf16 %v18887_v24, %v18886_v11  ;;  %v14681_v11 = vld [vmem:[#allocation2 + $0x134] sm:$0xff] }
 0x9a6   :  { %v14683_v24 = vld [vmem:[#allocation2 + $0x154] sm:$0xff] }
 0x9a7   :  { %23926 = vmatmul.mubr.f32.gmra.mrb[154].mxu1 %v14287_v25  ;;  %v14672_v25 = vld [vmem:[#allocation2 + $0x64] sm:$0xff] }
 0x9a8   :  { %23928 = vmatprep.mubr.f32.mxu1 %v33416_v21  ;;  %25397 = vmatpush3.bf16.msra.mxu1 %v25394_v18  ;;  %v18888_v21 = vld [vmem:[%s34866_s3 + $0xbe0] sm:$0xff]  ;;  %v25446_v18 = vpack.c.bf16 %v18907_v61, %v18906_v27 }
 0x9a9   :  { %25399 = vmatprep.subr.bf16.mxu1 %v25398_v15  ;;  %v25410_v17 = vpack.c.bf16 %v18889_v43, %v18888_v21  ;;  %v18913_v43 = vld [vmem:[%s34868_s5 + $0xa0] sm:$0xff] }
 0x9ab   :  { %23929 = vmatmul.mubr.f32.gmra.mrb[156].mxu1 %v14289_v60  ;;  %v14680_v60 = vld [vmem:[#allocation2 + $0x124] sm:$0xff] }
 0x9ac   :  { %23931 = vmatprep.mubr.f32.mxu1 %v14290_v47  ;;  %25401 = vmatpush3.bf16.msra.mxu1 %v25398_v15  ;;  %v14671_v15 = vld [vmem:[#allocation2 + $0x54] sm:$0xff]  ;;  %v18910_v47 = vld [vmem:[%s34868_s5 + $0x88] sm:$0xff] }
 0x9ad   :  { %25403 = vmatprep.subr.bf16.mxu1 %v25402_v52 }
 0x9af   :  { %23932 = vmatmul.mubr.f32.gmra.mrb[158].mxu1 %v14291_v22 }
 0x9b0   :  { %23934 = vmatprep.mubr.f32.mxu1 %v14292_v14  ;;  %25405 = vmatpush3.bf16.msra.mxu1 %v25402_v52  ;;  %v14679_v52 = vld [vmem:[#allocation2 + $0x114] sm:$0xff]  ;;  %v18914_v14 = vld [vmem:[%s34868_s5 + $0xa8] sm:$0xff] }
 0x9b1   :  { %25407 = vmatprep.subr.bf16.mxu1 %v25406_v54 }
 0x9b3   :  { %23935 = vmatmul.mubr.f32.gmra.mrb[160].mxu1 %v14293_v10  ;;  %v18915_v10 = vld [vmem:[%s34868_s5 + $0xb0] sm:$0xff] }
 0x9b4   :  { %23937 = vmatprep.mubr.f32.mxu1 %v33442_v13  ;;  %25409 = vmatpush3.bf16.msra.mxu1 %v25406_v54  ;;  %v18894_v13 = vld [vmem:[%s34866_s3 + $0xc10] sm:$0xff]  ;;  %v27079_v54 = vmov 0.0|0.0   ;;  %v25460_v49 = vpack.c.bf16 %v18916_v63, %v18915_v10  ;;  %v14920_v10 = vld [vmem:[%s34868_s5] sm:$0xff]  ;;  %v14921_v63 = vld [vmem:[%s34868_s5 + $0x8] sm:$0xff] }
 0x9b5   :  { %25411 = vmatprep.subr.bf16.mxu1 %v25410_v17  ;;  %v25422_v53 = vpack.c.bf16 %v18895_v56, %v18894_v13  ;;  %v18921_v13 = vld [vmem:[%s34868_s5 + $0xe0] sm:$0xff]  ;;  %v18922_v56 = vld [vmem:[%s34868_s5 + $0xe8] sm:$0xff] }
 0x9b7   :  { %23938 = vmatmul.mubr.f32.gmra.mrb[162].mxu1 %v14295_v8  ;;  %v18918_v8 = vld [vmem:[%s34868_s5 + $0xc8] sm:$0xff] }
 0x9b8   :  { %23940 = vmatprep.mubr.f32.mxu1 %v33452_v39  ;;  %25413 = vmatpush3.bf16.msra.mxu1 %v25410_v17  ;;  %v18896_v39 = vld [vmem:[%s34866_s3 + $0xc20] sm:$0xff]  ;;  %v25457_v17 = vpack.c.bf16 %v18914_v14, %v18913_v43 }
 0x9b9   :  { %25415 = vmatprep.subr.bf16.mxu1 %v25414_v62  ;;  %v25426_v5 = vpack.c.bf16 %v18897_v41, %v18896_v39  ;;  %v27081_v39 = vmov 0.0  }
 0x9bb   :  { %23941 = vmatmul.mubr.f32.gmra.mrb[164].mxu1 %v14297_v7 }
 0x9bc   :  { %25417 = vmatpush3.bf16.msra.mxu1 %v25414_v62  ;;  %23975 = vmatprep.mubr.f32.mxu1 %v14476_v46  ;;  %v18917_v62 = vld [vmem:[%s34868_s5 + $0xc0] sm:$0xff]  ;;  %v25469_v46 = vpack.c.bf16 %v18922_v56, %v18921_v13 }
 0x9bd   :  { %25419 = vmatprep.subr.bf16.mxu1 %v25418_v36  ;;  %v25463_v2 = vpack.c.bf16 %v18918_v8, %v18917_v62  ;;  %v14924_v56 = vld [vmem:[%s34868_s5 + $0x20] sm:$0xff] }
 0x9bf   :  { %23976 = vmatmul.mubr.f32.vlgmr.msra.gmra.mrb[150].mxu1 %v14477_v51  ;;  %v18924_v51 = vld [vmem:[%s34868_s5 + $0xf8] sm:$0xff] }
 0x9c0   :  { %23978 = vmatprep.mubr.f32.mxu1 %v14478_v35  ;;  %25421 = vmatpush3.bf16.msra.mxu1 %v25418_v36  ;;  %v18920_v36 = vld [vmem:[%s34868_s5 + $0xd8] sm:$0xff]  ;;  %v18908_v35 = vld [vmem:[%s34867_s4] ss:$0 sm:$0xff] }
 0x9c1   :  { %25423 = vmatprep.subr.bf16.mxu1 %v25422_v53  ;;  %v25466_v7 = vpack.c.bf16 %v18920_v36, %v18919_v12  ;;  %v14922_v12 = vld [vmem:[%s34868_s5 + $0x10] sm:$0xff]  ;;  %v14923_v36 = vld [vmem:[%s34868_s5 + $0x18] sm:$0xff] }
 0x9c2   :  { %v25478_v13 = vpack.c.bf16 %v14923_v36, %v14922_v12 }
 0x9c3   :  { %23979 = vmatmul.mubr.f32.gmra.mrb[152].mxu1 %v14479_v40 }
 0x9c4   :  { %23981 = vmatprep.mubr.f32.mxu1 %v33478_v23  ;;  %25425 = vmatpush3.bf16.msra.mxu1 %v25422_v53  ;;  %v18902_v23 = vld [vmem:[%s34866_s3 + $0xc50] sm:$0xff] }
 0x9c5   :  { %25427 = vmatprep.subr.bf16.mxu1 %v25426_v5  ;;  %v25438_v9 = vpack.c.bf16 %v18903_v44, %v18902_v23  ;;  %v18923_v53 = vld [vmem:[%s34868_s5 + $0xf0] sm:$0xff] }
 0x9c6   :  { %v25472_v41 = vpack.c.bf16 %v18924_v51, %v18923_v53  ;;  %v14926_v51 = vld [vmem:[%s34868_s5 + $0x30] sm:$0xff] }
 0x9c7   :  { %23982 = vmatmul.mubr.f32.gmra.mrb[154].mxu1 %v14481_v19 }
 0x9c8   :  { %23984 = vmatprep.mubr.f32.mxu1 %v33488_v57  ;;  %25429 = vmatpush3.bf16.msra.mxu1 %v25426_v5  ;;  %v18904_v57 = vld [vmem:[%s34866_s3 + $0xc60] sm:$0xff] }
 0x9c9   :  { %25431 = vmatprep.subr.bf16.mxu1 %v25430_v50  ;;  %v25442_v20 = vpack.c.bf16 %v18905_v59, %v18904_v57 }
 0x9cb   :  { %23985 = vmatmul.mubr.f32.gmra.mrb[156].mxu1 %v14483_v29 }
 0x9cc   :  { %23987 = vmatprep.mubr.f32.mxu1 %v14484_v45  ;;  %25433 = vmatpush3.bf16.msra.mxu1 %v25430_v50 }
 0x9cd   :  { %25435 = vmatprep.subr.bf16.mxu1 %v25434_v0 }
 0x9cf   :  { %23988 = vmatmul.mubr.f32.gmra.mrb[158].mxu1 %v14485_v42 }
 0x9d0   :  { %23990 = vmatprep.mubr.f32.mxu1 %v14486_v34  ;;  %25437 = vmatpush3.bf16.msra.mxu1 %v25434_v0 }
 0x9d1   :  { %25439 = vmatprep.subr.bf16.mxu1 %v25438_v9 }
 0x9d3   :  { %23991 = vmatmul.mubr.f32.gmra.mrb[160].mxu1 %v14487_v16 }
 0x9d4   :  { %23993 = vmatprep.mubr.f32.mxu1 %v33514_v48  ;;  %25441 = vmatpush3.bf16.msra.mxu1 %v25438_v9  ;;  %v14675_v48 = vld [vmem:[#allocation2 + $0x94] sm:$0xff] }
 0x9d5   :  { %25443 = vmatprep.subr.bf16.mxu1 %v25442_v20 }
 0x9d7   :  { %23994 = vmatmul.mubr.f32.gmra.mrb[162].mxu1 %v14489_v28 }
 0x9d8   :  { %23996 = vmatprep.mubr.f32.mxu1 %v33524_v26  ;;  %25445 = vmatpush3.bf16.msra.mxu1 %v25442_v20  ;;  %v14677_v26 = vld [vmem:[#allocation2 + $0xb4] sm:$0xff] }
 0x9d9   :  { %25447 = vmatprep.subr.bf16.mxu1 %v25446_v18 }
 0x9db   :  { %23997 = vmatmul.mubr.f32.gmra.mrb[164].mxu1 %v14491_v1 }
 0x9dc   :  { %25449 = vmatpush3.bf16.msra.mxu1 %v25446_v18  ;;  %24031 = vmatprep.mubr.f32.mxu1 %v14670_v32 }
 0x9dd   :  { %25450 = vmatprep.subr.bf16.mxu1 %v27079_v54 }
 0x9df   :  { %24032 = vmatmul.mubr.f32.vlgmr.msra.gmra.mrb[150].mxu1 %v14671_v15 }
 0x9e0   :  { %24034 = vmatprep.mubr.f32.mxu1 %v14672_v25 }
 0x9e3   :  { %24035 = vmatmul.mubr.f32.gmra.mrb[152].mxu1 %v14673_v58 }
 0x9e4   :  { %24037 = vmatprep.mubr.f32.mxu1 %v33550_v38  ;;  %v14685_v38 = vld [vmem:[#allocation2 + $0x174] sm:$0xff] }
 0x9e7   :  { %24038 = vmatmul.mubr.f32.gmra.mrb[154].mxu1 %v14675_v48 }
 0x9e8   :  { %24040 = vmatprep.mubr.f32.mxu1 %v33560_v6  ;;  %v18909_v6 = vld [vmem:[%s34868_s5 + $0x80] sm:$0xff] }
 0x9e9   :  { %v25451_v22 = vpack.c.bf16 %v18910_v47, %v18909_v6 }
 0x9eb   :  { %24041 = vmatmul.mubr.f32.gmra.mrb[156].mxu1 %v14677_v26 }
 0x9ec   :  { %24043 = vmatprep.mubr.f32.mxu1 %v14678_v37  ;;  %25452 = vmatpush3.bf16.msra.mxu1 %v25451_v22 }
 0x9ed   :  { %25453 = vmatprep.subr.bf16.mxu1 %v27079_v54 }
 0x9ef   :  { %24044 = vmatmul.mubr.f32.gmra.mrb[158].mxu1 %v14679_v52 }
 0x9f0   :  { %24046 = vmatprep.mubr.f32.mxu1 %v14680_v60 }
 0x9f3   :  { %24047 = vmatmul.mubr.f32.gmra.mrb[160].mxu1 %v14681_v11 }
 0x9f4   :  { %24049 = vmatprep.mubr.f32.mxu1 %v33586_v55  ;;  %v18911_v55 = vld [vmem:[%s34868_s5 + $0x90] sm:$0xff] }
 0x9f7   :  { %24050 = vmatmul.mubr.f32.gmra.mrb[162].mxu1 %v14683_v24 }
 0x9f8   :  { %24052 = vmatprep.mubr.f32.mxu1 %v33596_v30  ;;  %v18912_v30 = vld [vmem:[%s34868_s5 + $0x98] sm:$0xff] }
 0x9f9   :  { %v25454_v21 = vpack.c.bf16 %v18912_v30, %v18911_v55 }
 0x9fb   :  { %24053 = vmatmul.mubr.f32.gmra.mrb[164].mxu1 %v14685_v38 }
 0x9fc   :  { %25455 = vmatpush3.bf16.msra.mxu1 %v25454_v21  ;;  %24087 = vmatprep.mubr.msk.f32.mxu1 %vm27080_vm2, %v27081_v39 }
 0x9fd   :  { %25456 = vmatprep.subr.bf16.mxu1 %v27079_v54 }
 0xa00   :  { %25458 = vmatpush3.bf16.msra.mxu1 %v25457_v17 }
 0xa01   :  { %25459 = vmatprep.subr.bf16.mxu1 %v27079_v54 }
 0xa04   :  { %25461 = vmatpush3.bf16.msra.mxu1 %v25460_v49 }
 0xa05   :  { %25462 = vmatprep.subr.bf16.mxu1 %v27079_v54 }
 0xa08   :  { %25464 = vmatpush3.bf16.msra.mxu1 %v25463_v2  ;;  %v25475_v2 = vpack.c.bf16 %v14921_v63, %v14920_v10 }
 0xa09   :  { %25465 = vmatprep.subr.bf16.mxu1 %v27079_v54 }
 0xa0c   :  { %25467 = vmatpush3.bf16.msra.mxu1 %v25466_v7 }
 0xa0d   :  { %25468 = vmatprep.subr.bf16.mxu1 %v27079_v54 }
 0xa10   :  { %25470 = vmatpush3.bf16.msra.mxu1 %v25469_v46  ;;  %v14925_v46 = vld [vmem:[%s34868_s5 + $0x28] sm:$0xff] }
 0xa11   :  { %25471 = vmatprep.subr.bf16.mxu1 %v27079_v54  ;;  %v25481_v53 = vpack.c.bf16 %v14925_v46, %v14924_v56 }
 0xa14   :  { %25473 = vmatpush3.bf16.msra.mxu1 %v25472_v41  ;;  %v14927_v41 = vld [vmem:[%s34868_s5 + $0x38] sm:$0xff] }
 0xa15   :  { %25474 = vmatprep.subr.bf16.mxu1 %v27079_v54 }
 0xab2   :  { %v24033_v5 = vpop.f32.mrb[150].mxu1 }
 0xab3   :  { %v14872_v40 = vadd.f32 %v24033_v5, %v18908_v35  ;;  %v14769_v33 = vpop.f32.mrb[151].mxu1  ;;  %v14928_v5 = vld [vmem:[%s34868_s5 + $0x40] sm:$0xff] }
 0xab4   :  { %v14871_v4 = vadd.f32 %v18908_v35, %v14769_v33 }
 0xab5   :  { %14888 = vst [vmem:[#allocation3 + $0x8] sm:$0xff] %v14872_v40  ;;  %v14929_v40 = vld [vmem:[%s34868_s5 + $0x48] sm:$0xff] }
 0xab6   :  { %14887 = vst [vmem:[#allocation3] sm:$0xff] %v14871_v4  ;;  %v24036_v50 = vpop.f32.mrb[152].mxu1 }
 0xab7   :  { %v14874_v19 = vadd.f32 %v24036_v50, %v18908_v35  ;;  %v14779_v31 = vpop.f32.mrb[153].mxu1 }
 0xab8   :  { %v14873_v3 = vadd.f32 %v18908_v35, %v14779_v31  ;;  %v25487_v31 = vpack.c.bf16 %v14929_v40, %v14928_v5 }
 0xab9   :  { %14890 = vst [vmem:[#allocation3 + $0x18] sm:$0xff] %v14874_v19 }
 0xaba   :  { %14889 = vst [vmem:[#allocation3 + $0x10] sm:$0xff] %v14873_v3  ;;  %v24039_v0 = vpop.f32.mrb[154].mxu1  ;;  %v14930_v3 = vld [vmem:[%s34868_s5 + $0x50] sm:$0xff] }
 0xabb   :  { %v14876_v29 = vadd.f32 %v24039_v0, %v18908_v35  ;;  %v14789_v23 = vpop.f32.mrb[155].mxu1  ;;  %v14931_v0 = vld [vmem:[%s34868_s5 + $0x58] sm:$0xff] }
 0xabc   :  { %v14875_v44 = vadd.f32 %v18908_v35, %v14789_v23  ;;  %v14942_v1 = vld [vmem:[#allocation3 + $0xa] sm:$0x1]  ;;  %v14944_v25 = vld [vmem:[#allocation3 + $0xb] sm:$0x1] }
 0xabd   :  { %14892 = vst [vmem:[#allocation3 + $0x28] sm:$0xff] %v14876_v29  ;;  %v14936_v32 = vld [vmem:[#allocation3 + $0x2] sm:$0x1]  ;;  %v14938_v15 = vld [vmem:[#allocation3 + $0x3] sm:$0x1]  ;;  %v14946_v24 = vmax.f32 %v14942_v1, %v14944_v25 }
 0xabe   :  { %14891 = vst [vmem:[#allocation3 + $0x20] sm:$0xff] %v14875_v44  ;;  %v24042_v45 = vpop.f32.mrb[156].mxu1  ;;  %v14940_v52 = vmax.f32 %v14936_v32, %v14938_v15  ;;  %v25490_v44 = vpack.c.bf16 %v14931_v0, %v14930_v3  ;;  %v18925_v25 = vld [vmem:[%s34868_s5 + $0x100] sm:$0xff]  ;;  %v18942_v0 = vld [vmem:[%s34868_s5 + $0x188] sm:$0xff] }
 0xabf   :  { %v14878_v9 = vadd.f32 %v24042_v45, %v18908_v35  ;;  %v14799_v42 = vpop.f32.mrb[157].mxu1  ;;  %v14932_v45 = vld [vmem:[%s34868_s5 + $0x60] sm:$0xff] }
 0xac0   :  { %v14877_v57 = vadd.f32 %v18908_v35, %v14799_v42  ;;  %v14948_v14 = vmax.f32 %v14940_v52, %v14946_v24  ;;  %v14910_v42 = vld [vmem:[#allocation3 + $0x8] sm:$0x1]  ;;  %v18927_v52 = vld [vmem:[%s34868_s5 + $0x110] sm:$0xff]  ;;  %v15120_v56 = vld [vmem:[#allocation3 + $0x4] sm:$0x1] }
 0xac1   :  { %14894 = vst [vmem:[#allocation3 + $0x38] sm:$0xff] %v14878_v9  ;;  %v14933_v9 = vld [vmem:[%s34868_s5 + $0x68] sm:$0xff]  ;;  %v15122_v46 = vld [vmem:[#allocation3 + $0x5] sm:$0x1] }
 0xac2   :  { %14893 = vst [vmem:[#allocation3 + $0x30] sm:$0xff] %v14877_v57  ;;  %v24045_v59 = vpop.f32.mrb[158].mxu1  ;;  %v14950_v62 = vmax.f32 %v14948_v14, 0.0  ;;  %v14903_v57 = vld [vmem:[#allocation3] sm:$0x1]  ;;  %v15124_v5 = vmax.f32 %v15120_v56, %v15122_v46 }
 0xac3   :  { %v14880_v34 = vadd.f32 %v24045_v59, %v18908_v35  ;;  %v14809_v20 = vpop.f32.mrb[159].mxu1  ;;  %v14905_v59 = vld [vmem:[#allocation3 + $0x1] sm:$0x1] }
 0xac4   :  { %v14879_v16 = vadd.f32 %v18908_v35, %v14809_v20  ;;  %v18941_v3 = vld [vmem:[%s34868_s5 + $0x180] sm:$0xff] }
 0xac5   :  { %14896 = vst [vmem:[#allocation3 + $0x48] sm:$0xff] %v14880_v34  ;;  %v14912_v34 = vld [vmem:[#allocation3 + $0x9] sm:$0x1] }
 0xac6   :  { %14895 = vst [vmem:[#allocation3 + $0x40] sm:$0xff] %v14879_v16  ;;  %v24048_v27 = vpop.f32.mrb[160].mxu1  ;;  %v25493_v16 = vpack.c.bf16 %v14933_v9, %v14932_v45  ;;  %v18943_v45 = vld [vmem:[%s34868_s5 + $0x190] sm:$0xff]  ;;  %v18944_v9 = vld [vmem:[%s34868_s5 + $0x198] sm:$0xff] }
 0xac7   :  { %v14882_v61 = vadd.f32 %v24048_v27, %v18908_v35  ;;  %v14819_v18 = vpop.f32.mrb[161].mxu1  ;;  %v14907_v27 = vmax.f32 %v14903_v57, %v14905_v59  ;;  %v25526_v57 = vpack.c.bf16 %v18944_v9, %v18943_v45  ;;  %v18945_v59 = vld [vmem:[%s34868_s5 + $0x1a0] sm:$0xff] }
 0xac8   :  { %v14881_v28 = vadd.f32 %v18908_v35, %v14819_v18  ;;  %v14934_v18 = vld [vmem:[%s34868_s5 + $0x70] sm:$0xff] }
 0xac9   :  { %14898 = vst [vmem:[#allocation3 + $0x58] sm:$0xff] %v14882_v61  ;;  %v14914_v61 = vmax.f32 %v14910_v42, %v14912_v34  ;;  %v18946_v34 = vld [vmem:[%s34868_s5 + $0x1a8] sm:$0xff] }
 0xaca   :  { %14897 = vst [vmem:[#allocation3 + $0x50] sm:$0xff] %v14881_v28  ;;  %v24051_v58 = vpop.f32.mrb[162].mxu1  ;;  %v14935_v28 = vld [vmem:[%s34868_s5 + $0x78] sm:$0xff] }
 0xacb   :  { %v14884_v48 = vadd.f32 %v24051_v58, %v18908_v35  ;;  %v14829_v26 = vpop.f32.mrb[163].mxu1  ;;  %v25496_v32 = vpack.c.bf16 %v14935_v28, %v14934_v18  ;;  %v14916_v15 = vmax.f32 %v14907_v27, %v14914_v61  ;;  %v18926_v58 = vld [vmem:[%s34868_s5 + $0x108] sm:$0xff]  ;;  %v18948_v27 = vld [vmem:[%s34868_s5 + $0x1b8] sm:$0xff]  ;;  %v18949_v18 = vld [vmem:[%s34868_s5 + $0x1c0] sm:$0xff] }
 0xacc   :  { %v14883_v37 = vadd.f32 %v18908_v35, %v14829_v26  ;;  %v14943_v60 = vld [vmem:[#allocation3 + $0x4a] sm:$0x1]  ;;  %v14945_v11 = vld [vmem:[#allocation3 + $0x4b] sm:$0x1]  ;;  %v14911_v33 = vld [vmem:[#allocation3 + $0x48] sm:$0x1] }
 0xacd   :  { %14900 = vst [vmem:[#allocation3 + $0x68] sm:$0xff] %v14884_v48  ;;  %v14937_v38 = vld [vmem:[#allocation3 + $0x42] sm:$0x1]  ;;  %v14939_v6 = vld [vmem:[#allocation3 + $0x43] sm:$0x1]  ;;  %v14947_v47 = vmax.f32 %v14943_v60, %v14945_v11  ;;  %v14918_v26 = vmax.f32 %v14916_v15, 0.0 }
 0xace   :  { %14899 = vst [vmem:[#allocation3 + $0x60] sm:$0xff] %v14883_v37  ;;  %v24054_v22 = vpop.f32.mrb[164].mxu1  ;;  %v14941_v55 = vmax.f32 %v14937_v38, %v14939_v6  ;;  %v14904_v4 = vld [vmem:[#allocation3 + $0x40] sm:$0x1]  ;;  %v14906_v50 = vld [vmem:[#allocation3 + $0x41] sm:$0x1]  ;;  %v25499_v37 = vpack.c.bf16 %v18926_v58, %v18925_v25 }
 0xacf   :  { %v14886_v30 = vadd.f32 %v24054_v22, %v18908_v35  ;;  %v14839_v21 = vpop.f32.mrb[165].mxu1  ;;  %v14913_v19 = vld [vmem:[#allocation3 + $0x49] sm:$0x1]  ;;  %v14908_v29 = vmax.f32 %v14904_v4, %v14906_v50  ;;  %v18928_v60 = vld [vmem:[%s34868_s5 + $0x118] sm:$0xff]  ;;  %v18929_v38 = vld [vmem:[%s34868_s5 + $0x120] sm:$0xff] }
 0xad0   :  { %v14885_v43 = vadd.f32 %v18908_v35, %v14839_v21  ;;  %v14949_v17 = vmax.f32 %v14941_v55, %v14947_v47  ;;  %v25484_v35 = vpack.c.bf16 %v14927_v41, %v14926_v51  ;;  %v14915_v23 = vmax.f32 %v14911_v33, %v14913_v19  ;;  %v18930_v6 = vld [vmem:[%s34868_s5 + $0x128] sm:$0xff]  ;;  %v18931_v22 = vld [vmem:[%s34868_s5 + $0x130] sm:$0xff]  ;;  %v18932_v55 = vld [vmem:[%s34868_s5 + $0x138] sm:$0xff] }
 0xad1   :  { %14902 = vst [vmem:[#allocation3 + $0x78] sm:$0xff] %v14886_v30  ;;  %v25502_v24 = vpack.c.bf16 %v18928_v60, %v18927_v52  ;;  %v25505_v47 = vpack.c.bf16 %v18930_v6, %v18929_v38  ;;  %v25508_v30 = vpack.c.bf16 %v18932_v55, %v18931_v22  ;;  %v18933_v21 = vld [vmem:[%s34868_s5 + $0x140] sm:$0xff]  ;;  %v15127_v10 = vld [vmem:[#allocation3 + $0x4c] sm:$0x1]  ;;  %v15129_v63 = vld [vmem:[#allocation3 + $0x4d] sm:$0x1] }
 0xad2   :  { %14901 = vst [vmem:[#allocation3 + $0x70] sm:$0xff] %v14885_v43  ;;  %v14951_v49 = vmax.f32 %v14949_v17, 0.0  ;;  %v14917_v20 = vmax.f32 %v14908_v29, %v14915_v23  ;;  %v18934_v43 = vld [vmem:[%s34868_s5 + $0x148] sm:$0xff]  ;;  %v15121_v14 = vld [vmem:[#allocation3 + $0x44] sm:$0x1]  ;;  %v15131_v12 = vmax.f32 %v15127_v10, %v15129_v63  ;;  %v18939_v33 = vld [vmem:[%s34868_s5 + $0x170] sm:$0xff] }
 0xad3   :  { %v15123_v17 = vld [vmem:[#allocation3 + $0x45] sm:$0x1]  ;;  %v15128_v51 = vld [vmem:[#allocation3 + $0xd] sm:$0x1]  ;;  %v18940_v4 = vld [vmem:[%s34868_s5 + $0x178] sm:$0xff] }
 0xad4   :  { %v14971_v8 = vrot.slane %v14951_v49, 7  ;;  %v14919_v1 = vmax.f32 %v14917_v20, 0.0  ;;  %v25511_v49 = vpack.c.bf16 %v18934_v43, %v18933_v21  ;;  %v25520_v19 = vpack.c.bf16 %v18940_v4, %v18939_v33  ;;  %v18950_v28 = vld [vmem:[%s34868_s5 + $0x1c8] sm:$0xff]  ;;  %v15229_v38 = vld [vmem:[#allocation3 + $0x6] sm:$0x1] }
 0xad5   :  { %v25529_v20 = vpack.c.bf16 %v18946_v34, %v18945_v59  ;;  %v15236_v15 = vld [vmem:[#allocation3 + $0x4e] sm:$0x1]  ;;  %v15238_v25 = vld [vmem:[#allocation3 + $0x4f] sm:$0x1]  ;;  %v25535_v58 = vpack.c.bf16 %v18950_v28, %v18949_v18  ;;  %v15231_v6 = vld [vmem:[#allocation3 + $0x7] sm:$0x1] }
 0xad6   :  { %v14973_v7 = vsel %vm14972_vm3, %v14971_v8, %v14950_v62  ;;  %v15047_v48 = vrot.slane %v14919_v1, 7  ;;  %v18935_v62 = vld [vmem:[%s34868_s5 + $0x150] sm:$0xff]  ;;  %v18936_v8 = vld [vmem:[%s34868_s5 + $0x158] sm:$0xff]  ;;  %v15230_v1 = vld [vmem:[#allocation3 + $0x46] sm:$0x1]  ;;  %v15240_v52 = vmax.f32 %v15236_v15, %v15238_v25  ;;  %v15233_v21 = vmax.f32 %v15229_v38, %v15231_v6 }
 0xad7   :  { %24088 = vmatmul.mubr.f32.vlgmr.msra.gmra.mrb[166].mxu1 %v14973_v7  ;;  %v25514_v36 = vpack.c.bf16 %v18936_v8, %v18935_v62  ;;  %v18937_v7 = vld [vmem:[%s34868_s5 + $0x160] sm:$0xff]  ;;  %v15237_v22 = vld [vmem:[#allocation3 + $0xf] sm:$0x1]  ;;  %v15346_v59 = vld [vmem:[#allocation3 + $0x18] sm:$0x1] }
 0xad8   :  { %25476 = vmatpush3.bf16.msra.mxu1 %v25475_v2  ;;  %24122 = vmatprep.mubr.msk.f32.mxu1 %vm27080_vm2, %v27081_v39  ;;  %v15048_v11 = vsel %vm14972_vm3, %v15047_v48, %v14918_v26  ;;  %v15125_v2 = vmax.f32 %v15121_v14, %v15123_v17  ;;  %v18951_v48 = vld [vmem:[%s34868_s5 + $0x1d0] sm:$0xff]  ;;  %v18952_v26 = vld [vmem:[%s34868_s5 + $0x1d8] sm:$0xff]  ;;  %v18957_v62 = vld [vmem:[%s34868_s5 + $0x200] sm:$0xff] }
 0xad9   :  { %25477 = vmatprep.subr.bf16.mxu1 %v27079_v54  ;;  %v25538_v60 = vpack.c.bf16 %v18952_v26, %v18951_v48  ;;  %v18955_v14 = vld [vmem:[%s34868_s5 + $0x1f0] sm:$0xff]  ;;  %v18956_v17 = vld [vmem:[%s34868_s5 + $0x1f8] sm:$0xff]  ;;  %v18958_v8 = vld [vmem:[%s34868_s5 + $0x208] sm:$0xff] }
 0xada   :  { %v15133_v41 = vmax.f32 %v15125_v2, %v15131_v12  ;;  %v25544_v63 = vpack.c.bf16 %v18956_v17, %v18955_v14  ;;  %v18965_v33 = vld [vmem:[%s34868_s5 + $0x240] sm:$0xff]  ;;  %v18966_v4 = vld [vmem:[%s34868_s5 + $0x248] sm:$0xff] }
 0xadb   :  { %v18969_v34 = vld [vmem:[%s34868_s5 + $0x260] sm:$0xff]  ;;  %v18974_v26 = vld [vmem:[%s34868_s5 + $0x288] sm:$0xff] }
 0xadc   :  { %25479 = vmatpush3.bf16.msra.mxu1 %v25478_v13  ;;  %v18938_v13 = vld [vmem:[%s34868_s5 + $0x168] sm:$0xff]  ;;  %v15135_v50 = vmax.f32 %v15133_v41, 0.0  ;;  %v18973_v48 = vld [vmem:[%s34868_s5 + $0x280] sm:$0xff] }
 0xadd   :  { %25480 = vmatprep.subr.bf16.mxu1 %v27079_v54  ;;  %v18981_v14 = vld [vmem:[%s34868_s5 + $0x2c0] sm:$0xff]  ;;  %v18982_v17 = vld [vmem:[%s34868_s5 + $0x2c8] sm:$0xff] }
 0xade   :  { %v15155_v29 = vrot.slane %v15135_v50, 7  ;;  %v15340_v50 = vld [vmem:[#allocation3 + $0x50] sm:$0x1] }
 0xae0   :  { %25482 = vmatpush3.bf16.msra.mxu1 %v25481_v53  ;;  %v15126_v53 = vld [vmem:[#allocation3 + $0xc] sm:$0x1] }
 0xae1   :  { %25483 = vmatprep.subr.bf16.mxu1 %v27079_v54  ;;  %v15130_v40 = vmax.f32 %v15126_v53, %v15128_v51  ;;  %v18961_v53 = vld [vmem:[%s34868_s5 + $0x220] sm:$0xff]  ;;  %v18962_v51 = vld [vmem:[%s34868_s5 + $0x228] sm:$0xff] }
 0xae2   :  { %v25553_v41 = vpack.c.bf16 %v18962_v51, %v18961_v53  ;;  %v15455_v53 = vld [vmem:[#allocation3 + $0x1a] sm:$0x1]  ;;  %v18985_v51 = vld [vmem:[%s34868_s5 + $0x2e0] sm:$0xff] }
 0xae4   :  { %25485 = vmatpush3.bf16.msra.mxu1 %v25484_v35  ;;  %v25517_v35 = vpack.c.bf16 %v18938_v13, %v18937_v7  ;;  %v18959_v7 = vld [vmem:[%s34868_s5 + $0x210] sm:$0xff]  ;;  %v18960_v13 = vld [vmem:[%s34868_s5 + $0x218] sm:$0xff] }
 0xae5   :  { %25486 = vmatprep.subr.bf16.mxu1 %v27079_v54  ;;  %v25550_v46 = vpack.c.bf16 %v18960_v13, %v18959_v7 }
 0xae8   :  { %25488 = vmatpush3.bf16.msra.mxu1 %v25487_v31  ;;  %v15132_v31 = vmax.f32 %v15124_v5, %v15130_v40  ;;  %v18964_v5 = vld [vmem:[%s34868_s5 + $0x238] sm:$0xff] }
 0xae9   :  { %25489 = vmatprep.subr.bf16.mxu1 %v27079_v54 }
 0xaea   :  { %v15134_v23 = vmax.f32 %v15132_v31, 0.0  ;;  %v15347_v31 = vld [vmem:[#allocation3 + $0x58] sm:$0x1] }
 0xaec   :  { %25491 = vmatpush3.bf16.msra.mxu1 %v25490_v44  ;;  %v25523_v44 = vpack.c.bf16 %v18942_v0, %v18941_v3  ;;  %v15156_v42 = vsel %vm14972_vm3, %v15155_v29, %v15134_v23  ;;  %v15349_v3 = vld [vmem:[#allocation3 + $0x59] sm:$0x1]  ;;  %v25559_v0 = vpack.c.bf16 %v18966_v4, %v18965_v33  ;;  %v18967_v29 = vld [vmem:[%s34868_s5 + $0x250] sm:$0xff] }
 0xaed   :  { %25492 = vmatprep.subr.bf16.mxu1 %v27079_v54  ;;  %v18968_v23 = vld [vmem:[%s34868_s5 + $0x258] sm:$0xff]  ;;  %v15351_v45 = vmax.f32 %v15347_v31, %v15349_v3 }
 0xaee   :  { %v25562_v9 = vpack.c.bf16 %v18968_v23, %v18967_v29  ;;  %v18989_v29 = vld [vmem:[%s34868_s5 + $0x300] sm:$0xff]  ;;  %v18990_v23 = vld [vmem:[%s34868_s5 + $0x308] sm:$0xff] }
 0xaf0   :  { %25494 = vmatpush3.bf16.msra.mxu1 %v25493_v16  ;;  %v18947_v16 = vld [vmem:[%s34868_s5 + $0x1b0] sm:$0xff] }
 0xaf1   :  { %25495 = vmatprep.subr.bf16.mxu1 %v27079_v54  ;;  %v25532_v61 = vpack.c.bf16 %v18948_v27, %v18947_v16  ;;  %v15348_v16 = vld [vmem:[#allocation3 + $0x19] sm:$0x1] }
 0xaf2   :  { %v15350_v28 = vmax.f32 %v15346_v59, %v15348_v16  ;;  %v18994_v16 = vld [vmem:[%s34868_s5 + $0x328] sm:$0xff] }
 0xaf4   :  { %25497 = vmatpush3.bf16.msra.mxu1 %v25496_v32  ;;  %v15232_v32 = vld [vmem:[#allocation3 + $0x47] sm:$0x1] }
 0xaf5   :  { %25498 = vmatprep.subr.bf16.mxu1 %v27079_v54 }
 0xaf7   :  { %24123 = vmatmul.mubr.f32.vlgmr.msra.gmra.mrb[168].mxu1 %v15048_v11  ;;  %v18953_v11 = vld [vmem:[%s34868_s5 + $0x1e0] sm:$0xff] }
 0xaf8   :  { %25500 = vmatpush3.bf16.msra.mxu1 %v25499_v37  ;;  %24157 = vmatprep.mubr.msk.f32.mxu1 %vm27080_vm2, %v27081_v39  ;;  %v15234_v37 = vmax.f32 %v15230_v1, %v15232_v32  ;;  %v18971_v1 = vld [vmem:[%s34868_s5 + $0x270] sm:$0xff]  ;;  %v18972_v32 = vld [vmem:[%s34868_s5 + $0x278] sm:$0xff] }
 0xaf9   :  { %25501 = vmatprep.subr.bf16.mxu1 %v27079_v54  ;;  %v25568_v25 = vpack.c.bf16 %v18972_v32, %v18971_v1  ;;  %v18997_v1 = vld [vmem:[%s34868_s5 + $0x340] sm:$0xff]  ;;  %v18998_v32 = vld [vmem:[%s34868_s5 + $0x348] sm:$0xff] }
 0xafa   :  { %v15242_v55 = vmax.f32 %v15234_v37, %v15240_v52 }
 0xafc   :  { %25503 = vmatpush3.bf16.msra.mxu1 %v25502_v24  ;;  %v18954_v24 = vld [vmem:[%s34868_s5 + $0x1e8] sm:$0xff]  ;;  %v15244_v10 = vmax.f32 %v15242_v55, 0.0 }
 0xafd   :  { %25504 = vmatprep.subr.bf16.mxu1 %v27079_v54 }
 0xafe   :  { %v15264_v2 = vrot.slane %v15244_v10, 7  ;;  %v15450_v10 = vld [vmem:[#allocation3 + $0x52] sm:$0x1] }
 0xb00   :  { %25506 = vmatpush3.bf16.msra.mxu1 %v25505_v47  ;;  %v15235_v47 = vld [vmem:[#allocation3 + $0xe] sm:$0x1] }
 0xb01   :  { %25507 = vmatprep.subr.bf16.mxu1 %v27079_v54  ;;  %v15239_v43 = vmax.f32 %v15235_v47, %v15237_v22  ;;  %v18977_v47 = vld [vmem:[%s34868_s5 + $0x2a0] sm:$0xff]  ;;  %v18978_v22 = vld [vmem:[%s34868_s5 + $0x2a8] sm:$0xff] }
 0xb02   :  { %v25577_v55 = vpack.c.bf16 %v18978_v22, %v18977_v47  ;;  %v15564_v47 = vld [vmem:[#allocation3 + $0x1c] sm:$0x1]  ;;  %v19001_v22 = vld [vmem:[%s34868_s5 + $0x360] sm:$0xff] }
 0xb04   :  { %25509 = vmatpush3.bf16.msra.mxu1 %v25508_v30  ;;  %v25541_v30 = vpack.c.bf16 %v18954_v24, %v18953_v11  ;;  %v18975_v11 = vld [vmem:[%s34868_s5 + $0x290] sm:$0xff]  ;;  %v18976_v24 = vld [vmem:[%s34868_s5 + $0x298] sm:$0xff] }
 0xb05   :  { %25510 = vmatprep.subr.bf16.mxu1 %v27079_v54  ;;  %v25574_v6 = vpack.c.bf16 %v18976_v24, %v18975_v11 }
 0xb08   :  { %25512 = vmatpush3.bf16.msra.mxu1 %v25511_v49  ;;  %v15241_v49 = vmax.f32 %v15233_v21, %v15239_v43  ;;  %v18980_v21 = vld [vmem:[%s34868_s5 + $0x2b8] sm:$0xff] }
 0xb09   :  { %25513 = vmatprep.subr.bf16.mxu1 %v27079_v54 }
 0xb0a   :  { %v15243_v12 = vmax.f32 %v15241_v49, 0.0  ;;  %v15456_v49 = vld [vmem:[#allocation3 + $0x5a] sm:$0x1] }
 0xb0c   :  { %25515 = vmatpush3.bf16.msra.mxu1 %v25514_v36  ;;  %v25547_v36 = vpack.c.bf16 %v18958_v8, %v18957_v62  ;;  %v15265_v56 = vsel %vm14972_vm3, %v15264_v2, %v15243_v12  ;;  %v15458_v62 = vld [vmem:[#allocation3 + $0x5b] sm:$0x1]  ;;  %v25583_v8 = vpack.c.bf16 %v18982_v17, %v18981_v14  ;;  %v18983_v2 = vld [vmem:[%s34868_s5 + $0x2d0] sm:$0xff] }
 0xb0d   :  { %25516 = vmatprep.subr.bf16.mxu1 %v27079_v54  ;;  %v18984_v12 = vld [vmem:[%s34868_s5 + $0x2d8] sm:$0xff]  ;;  %v15460_v7 = vmax.f32 %v15456_v49, %v15458_v62 }
 0xb0e   :  { %v25586_v13 = vpack.c.bf16 %v18984_v12, %v18983_v2  ;;  %v19005_v2 = vld [vmem:[%s34868_s5 + $0x380] sm:$0xff]  ;;  %v19006_v12 = vld [vmem:[%s34868_s5 + $0x388] sm:$0xff] }
 0xb10   :  { %25518 = vmatpush3.bf16.msra.mxu1 %v25517_v35  ;;  %v18963_v35 = vld [vmem:[%s34868_s5 + $0x230] sm:$0xff] }
 0xb11   :  { %25519 = vmatprep.subr.bf16.mxu1 %v27079_v54  ;;  %v25556_v40 = vpack.c.bf16 %v18964_v5, %v18963_v35  ;;  %v15457_v35 = vld [vmem:[#allocation3 + $0x1b] sm:$0x1] }
 0xb12   :  { %v15459_v4 = vmax.f32 %v15455_v53, %v15457_v35  ;;  %v19010_v35 = vld [vmem:[%s34868_s5 + $0x3a8] sm:$0xff] }
 0xb14   :  { %25521 = vmatpush3.bf16.msra.mxu1 %v25520_v19  ;;  %v15342_v19 = vld [vmem:[#allocation3 + $0x51] sm:$0x1] }
 0xb15   :  { %25522 = vmatprep.subr.bf16.mxu1 %v27079_v54 }
 0xb17   :  { %24158 = vmatmul.mubr.f32.vlgmr.msra.gmra.mrb[170].mxu1 %v15156_v42  ;;  %v15339_v42 = vld [vmem:[#allocation3 + $0x10] sm:$0x1] }
 0xb18   :  { %25524 = vmatpush3.bf16.msra.mxu1 %v25523_v44  ;;  %24192 = vmatprep.mubr.msk.f32.mxu1 %vm27080_vm2, %v27081_v39  ;;  %v15344_v44 = vmax.f32 %v15340_v50, %v15342_v19  ;;  %v18987_v50 = vld [vmem:[%s34868_s5 + $0x2f0] sm:$0xff]  ;;  %v18988_v19 = vld [vmem:[%s34868_s5 + $0x2f8] sm:$0xff] }
 0xb19   :  { %25525 = vmatprep.subr.bf16.mxu1 %v27079_v54  ;;  %v25592_v3 = vpack.c.bf16 %v18988_v19, %v18987_v50  ;;  %v19013_v50 = vld [vmem:[%s34868_s5 + $0x3c0] sm:$0xff]  ;;  %v19014_v19 = vld [vmem:[%s34868_s5 + $0x3c8] sm:$0xff] }
 0xb1a   :  { %v15353_v27 = vmax.f32 %v15344_v44, %v15351_v45 }
 0xb1c   :  { %25527 = vmatpush3.bf16.msra.mxu1 %v25526_v57  ;;  %v15341_v57 = vld [vmem:[#allocation3 + $0x11] sm:$0x1]  ;;  %v15355_v15 = vmax.f32 %v15353_v27, 0.0 }
 0xb1d   :  { %25528 = vmatprep.subr.bf16.mxu1 %v27079_v54  ;;  %v15343_v18 = vmax.f32 %v15339_v42, %v15341_v57  ;;  %v18991_v42 = vld [vmem:[%s34868_s5 + $0x310] sm:$0xff]  ;;  %v18992_v57 = vld [vmem:[%s34868_s5 + $0x318] sm:$0xff] }
 0xb1e   :  { %v15375_v37 = vrot.slane %v15355_v15, 7  ;;  %v15559_v15 = vld [vmem:[#allocation3 + $0x54] sm:$0x1] }
 0xb20   :  { %25530 = vmatpush3.bf16.msra.mxu1 %v25529_v20  ;;  %v18970_v20 = vld [vmem:[%s34868_s5 + $0x268] sm:$0xff] }
 0xb21   :  { %25531 = vmatprep.subr.bf16.mxu1 %v27079_v54 }
 0xb24   :  { %25533 = vmatpush3.bf16.msra.mxu1 %v25532_v61  ;;  %v25565_v61 = vpack.c.bf16 %v18970_v20, %v18969_v34  ;;  %v25598_v34 = vpack.c.bf16 %v18992_v57, %v18991_v42  ;;  %v18993_v20 = vld [vmem:[%s34868_s5 + $0x320] sm:$0xff] }
 0xb25   :  { %25534 = vmatprep.subr.bf16.mxu1 %v27079_v54  ;;  %v25601_v27 = vpack.c.bf16 %v18994_v16, %v18993_v20  ;;  %v15673_v20 = vld [vmem:[#allocation3 + $0x1e] sm:$0x1]  ;;  %v19017_v16 = vld [vmem:[%s34868_s5 + $0x3e0] sm:$0xff] }
 0xb28   :  { %25536 = vmatpush3.bf16.msra.mxu1 %v25535_v58  ;;  %v15352_v58 = vmax.f32 %v15343_v18, %v15350_v28  ;;  %v18996_v18 = vld [vmem:[%s34868_s5 + $0x338] sm:$0xff] }
 0xb29   :  { %25537 = vmatprep.subr.bf16.mxu1 %v27079_v54 }
 0xb2a   :  { %v15354_v52 = vmax.f32 %v15352_v58, 0.0  ;;  %v15565_v58 = vld [vmem:[#allocation3 + $0x5c] sm:$0x1] }
 0xb2c   :  { %25539 = vmatpush3.bf16.msra.mxu1 %v25538_v60  ;;  %v25571_v60 = vpack.c.bf16 %v18974_v26, %v18973_v48  ;;  %v15376_v38 = vsel %vm14972_vm3, %v15375_v37, %v15354_v52  ;;  %v15567_v48 = vld [vmem:[#allocation3 + $0x5d] sm:$0x1]  ;;  %v25607_v26 = vpack.c.bf16 %v18998_v32, %v18997_v1  ;;  %v18999_v37 = vld [vmem:[%s34868_s5 + $0x350] sm:$0xff] }
 0xb2d   :  { %25540 = vmatprep.subr.bf16.mxu1 %v27079_v54  ;;  %v19000_v52 = vld [vmem:[%s34868_s5 + $0x358] sm:$0xff]  ;;  %v15569_v11 = vmax.f32 %v15565_v58, %v15567_v48  ;;  %v19019_v58 = vld [vmem:[%s34868_s5 + $0x3f0] sm:$0xff] }
 0xb2e   :  { %v25610_v24 = vpack.c.bf16 %v19000_v52, %v18999_v37  ;;  %v19020_v48 = vld [vmem:[%s34868_s5 + $0x3f8] sm:$0xff] }
 0xb2f   :  { %v25640_v37 = vpack.c.bf16 %v19020_v48, %v19019_v58  ;;  %v19043_v58 = vld [vmem:[%s34868_s5 + $0x4b0] sm:$0xff]  ;;  %v19044_v48 = vld [vmem:[%s34868_s5 + $0x4b8] sm:$0xff] }
 0xb30   :  { %25542 = vmatpush3.bf16.msra.mxu1 %v25541_v30  ;;  %v18979_v30 = vld [vmem:[%s34868_s5 + $0x2b0] sm:$0xff] }
 0xb31   :  { %25543 = vmatprep.subr.bf16.mxu1 %v27079_v54  ;;  %v25580_v43 = vpack.c.bf16 %v18980_v21, %v18979_v30  ;;  %v15566_v30 = vld [vmem:[#allocation3 + $0x1d] sm:$0x1] }
 0xb32   :  { %v15568_v17 = vmax.f32 %v15564_v47, %v15566_v30  ;;  %v19023_v47 = vld [vmem:[%s34868_s5 + $0x410] sm:$0xff] }
 0xb34   :  { %25545 = vmatpush3.bf16.msra.mxu1 %v25544_v63  ;;  %v15452_v63 = vld [vmem:[#allocation3 + $0x53] sm:$0x1] }
 0xb35   :  { %25546 = vmatprep.subr.bf16.mxu1 %v27079_v54 }
 0xb37   :  { %24193 = vmatmul.mubr.f32.vlgmr.msra.gmra.mrb[172].mxu1 %v15265_v56  ;;  %v15449_v56 = vld [vmem:[#allocation3 + $0x12] sm:$0x1] }
 0xb38   :  { %25548 = vmatpush3.bf16.msra.mxu1 %v25547_v36  ;;  %24227 = vmatprep.mubr.msk.f32.mxu1 %vm27080_vm2, %v27081_v39  ;;  %v15454_v36 = vmax.f32 %v15450_v10, %v15452_v63  ;;  %v19003_v10 = vld [vmem:[%s34868_s5 + $0x370] sm:$0xff]  ;;  %v19004_v63 = vld [vmem:[%s34868_s5 + $0x378] sm:$0xff] }
 0xb39   :  { %25549 = vmatprep.subr.bf16.mxu1 %v27079_v54  ;;  %v25616_v62 = vpack.c.bf16 %v19004_v63, %v19003_v10  ;;  %v19028_v10 = vld [vmem:[%s34868_s5 + $0x438] sm:$0xff] }
 0xb3a   :  { %v15462_v5 = vmax.f32 %v15454_v36, %v15460_v7 }
 0xb3c   :  { %25551 = vmatpush3.bf16.msra.mxu1 %v25550_v46  ;;  %v15451_v46 = vld [vmem:[#allocation3 + $0x13] sm:$0x1]  ;;  %v15464_v31 = vmax.f32 %v15462_v5, 0.0 }
 0xb3d   :  { %25552 = vmatprep.subr.bf16.mxu1 %v27079_v54  ;;  %v15453_v33 = vmax.f32 %v15449_v56, %v15451_v46  ;;  %v19007_v56 = vld [vmem:[%s34868_s5 + $0x390] sm:$0xff]  ;;  %v19008_v46 = vld [vmem:[%s34868_s5 + $0x398] sm:$0xff] }
 0xb3e   :  { %v15484_v44 = vrot.slane %v15464_v31, 7  ;;  %v15668_v31 = vld [vmem:[#allocation3 + $0x56] sm:$0x1] }
 0xb40   :  { %25554 = vmatpush3.bf16.msra.mxu1 %v25553_v41  ;;  %v18986_v41 = vld [vmem:[%s34868_s5 + $0x2e8] sm:$0xff] }
 0xb41   :  { %25555 = vmatprep.subr.bf16.mxu1 %v27079_v54 }
 0xb44   :  { %25557 = vmatpush3.bf16.msra.mxu1 %v25556_v40  ;;  %v25589_v40 = vpack.c.bf16 %v18986_v41, %v18985_v51  ;;  %v25622_v51 = vpack.c.bf16 %v19008_v46, %v19007_v56  ;;  %v19009_v41 = vld [vmem:[%s34868_s5 + $0x3a0] sm:$0xff]  ;;  %v19032_v56 = vld [vmem:[%s34868_s5 + $0x458] sm:$0xff] }
 0xb45   :  { %25558 = vmatprep.subr.bf16.mxu1 %v27079_v54  ;;  %v25625_v5 = vpack.c.bf16 %v19010_v35, %v19009_v41  ;;  %v15777_v41 = vld [vmem:[#allocation3 + $0x20] sm:$0x1]  ;;  %v15779_v35 = vld [vmem:[#allocation3 + $0x21] sm:$0x1] }
 0xb48   :  { %25560 = vmatpush3.bf16.msra.mxu1 %v25559_v0  ;;  %v15461_v0 = vmax.f32 %v15453_v33, %v15459_v4  ;;  %v19012_v33 = vld [vmem:[%s34868_s5 + $0x3b8] sm:$0xff] }
 0xb49   :  { %25561 = vmatprep.subr.bf16.mxu1 %v27079_v54 }
 0xb4a   :  { %v15463_v45 = vmax.f32 %v15461_v0, 0.0  ;;  %v15674_v0 = vld [vmem:[#allocation3 + $0x5e] sm:$0x1] }
 0xb4c   :  { %25563 = vmatpush3.bf16.msra.mxu1 %v25562_v9  ;;  %v25595_v9 = vpack.c.bf16 %v18990_v23, %v18989_v29  ;;  %v15485_v59 = vsel %vm14972_vm3, %v15484_v44, %v15463_v45  ;;  %v15676_v29 = vld [vmem:[#allocation3 + $0x5f] sm:$0x1]  ;;  %v25631_v23 = vpack.c.bf16 %v19014_v19, %v19013_v50  ;;  %v19015_v44 = vld [vmem:[%s34868_s5 + $0x3d0] sm:$0xff] }
 0xb4d   :  { %25564 = vmatprep.subr.bf16.mxu1 %v27079_v54  ;;  %v19016_v45 = vld [vmem:[%s34868_s5 + $0x3d8] sm:$0xff]  ;;  %v15678_v42 = vmax.f32 %v15674_v0, %v15676_v29  ;;  %v15781_v29 = vmax.f32 %v15777_v41, %v15779_v35  ;;  %v19053_v35 = vld [vmem:[%s34868_s5 + $0x500] sm:$0xff] }
 0xb4e   :  { %v25634_v57 = vpack.c.bf16 %v19016_v45, %v19015_v44  ;;  %v19035_v44 = vld [vmem:[%s34868_s5 + $0x470] sm:$0xff]  ;;  %v19036_v45 = vld [vmem:[%s34868_s5 + $0x478] sm:$0xff] }
 0xb50   :  { %25566 = vmatpush3.bf16.msra.mxu1 %v25565_v61  ;;  %v18995_v61 = vld [vmem:[%s34868_s5 + $0x330] sm:$0xff] }
 0xb51   :  { %25567 = vmatprep.subr.bf16.mxu1 %v27079_v54  ;;  %v25604_v28 = vpack.c.bf16 %v18996_v18, %v18995_v61  ;;  %v15675_v61 = vld [vmem:[#allocation3 + $0x1f] sm:$0x1] }
 0xb54   :  { %25569 = vmatpush3.bf16.msra.mxu1 %v25568_v25  ;;  %v15561_v25 = vld [vmem:[#allocation3 + $0x55] sm:$0x1] }
 0xb55   :  { %25570 = vmatprep.subr.bf16.mxu1 %v27079_v54 }
 0xb57   :  { %24228 = vmatmul.mubr.f32.vlgmr.msra.gmra.mrb[174].mxu1 %v15376_v38  ;;  %v15558_v38 = vld [vmem:[#allocation3 + $0x14] sm:$0x1] }
 0xb58   :  { %25572 = vmatpush3.bf16.msra.mxu1 %v25571_v60  ;;  %24262 = vmatprep.mubr.msk.f32.mxu1 %vm27080_vm2, %v27081_v39  ;;  %v15563_v60 = vmax.f32 %v15559_v15, %v15561_v25  ;;  %v15677_v25 = vmax.f32 %v15673_v20, %v15675_v61  ;;  %v19039_v61 = vld [vmem:[%s34868_s5 + $0x490] sm:$0xff] }
 0xb59   :  { %25573 = vmatprep.subr.bf16.mxu1 %v27079_v54 }
 0xb5a   :  { %v15571_v21 = vmax.f32 %v15563_v60, %v15569_v11  ;;  %v19021_v60 = vld [vmem:[%s34868_s5 + $0x400] sm:$0xff]  ;;  %v19022_v11 = vld [vmem:[%s34868_s5 + $0x408] sm:$0xff] }
 0xb5c   :  { %25575 = vmatpush3.bf16.msra.mxu1 %v25574_v6  ;;  %v15560_v6 = vld [vmem:[#allocation3 + $0x15] sm:$0x1]  ;;  %v15573_v49 = vmax.f32 %v15571_v21, 0.0  ;;  %v19025_v21 = vld [vmem:[%s34868_s5 + $0x420] sm:$0xff] }
 0xb5d   :  { %25576 = vmatprep.subr.bf16.mxu1 %v27079_v54  ;;  %v15562_v14 = vmax.f32 %v15558_v38, %v15560_v6  ;;  %v25643_v6 = vpack.c.bf16 %v19022_v11, %v19021_v60  ;;  %v15888_v60 = vld [vmem:[#allocation3 + $0x62] sm:$0x1]  ;;  %v15890_v11 = vld [vmem:[#allocation3 + $0x63] sm:$0x1] }
 0xb5e   :  { %v15593_v36 = vrot.slane %v15573_v49, 7  ;;  %v19029_v49 = vld [vmem:[%s34868_s5 + $0x440] sm:$0xff] }
 0xb60   :  { %25578 = vmatpush3.bf16.msra.mxu1 %v25577_v55  ;;  %v19002_v55 = vld [vmem:[%s34868_s5 + $0x368] sm:$0xff] }
 0xb61   :  { %25579 = vmatprep.subr.bf16.mxu1 %v27079_v54 }
 0xb64   :  { %25581 = vmatpush3.bf16.msra.mxu1 %v25580_v43  ;;  %v25613_v43 = vpack.c.bf16 %v19002_v55, %v19001_v22  ;;  %v19024_v22 = vld [vmem:[%s34868_s5 + $0x418] sm:$0xff] }
 0xb65   :  { %25582 = vmatprep.subr.bf16.mxu1 %v27079_v54  ;;  %v25646_v30 = vpack.c.bf16 %v19024_v22, %v19023_v47  ;;  %v19047_v47 = vld [vmem:[%s34868_s5 + $0x4d0] sm:$0xff]  ;;  %v19048_v22 = vld [vmem:[%s34868_s5 + $0x4d8] sm:$0xff] }
 0xb68   :  { %25584 = vmatpush3.bf16.msra.mxu1 %v25583_v8  ;;  %v15570_v8 = vmax.f32 %v15562_v14, %v15568_v17  ;;  %v19027_v17 = vld [vmem:[%s34868_s5 + $0x430] sm:$0xff] }
 0xb69   :  { %25585 = vmatprep.subr.bf16.mxu1 %v27079_v54  ;;  %v25652_v63 = vpack.c.bf16 %v19028_v10, %v19027_v17  ;;  %v15893_v17 = vld [vmem:[#allocation3 + $0x2a] sm:$0x1]  ;;  %v19049_v10 = vld [vmem:[%s34868_s5 + $0x4e0] sm:$0xff] }
 0xb6a   :  { %v15572_v7 = vmax.f32 %v15570_v8, 0.0  ;;  %v15778_v8 = vld [vmem:[#allocation3 + $0x60] sm:$0x1] }
 0xb6c   :  { %25587 = vmatpush3.bf16.msra.mxu1 %v25586_v13  ;;  %v25619_v13 = vpack.c.bf16 %v19006_v12, %v19005_v2  ;;  %v15594_v53 = vsel %vm14972_vm3, %v15593_v36, %v15572_v7  ;;  %v15780_v2 = vld [vmem:[#allocation3 + $0x61] sm:$0x1]  ;;  %v15785_v12 = vld [vmem:[#allocation3 + $0x68] sm:$0x1]  ;;  %v15787_v36 = vld [vmem:[#allocation3 + $0x69] sm:$0x1] }
 0xb6d   :  { %25588 = vmatprep.subr.bf16.mxu1 %v27079_v54  ;;  %v15782_v46 = vmax.f32 %v15778_v8, %v15780_v2 }
 0xb70   :  { %25590 = vmatpush3.bf16.msra.mxu1 %v25589_v40  ;;  %v19011_v40 = vld [vmem:[%s34868_s5 + $0x3b0] sm:$0xff] }
 0xb71   :  { %25591 = vmatprep.subr.bf16.mxu1 %v27079_v54  ;;  %v25628_v4 = vpack.c.bf16 %v19012_v33, %v19011_v40  ;;  %v19033_v40 = vld [vmem:[%s34868_s5 + $0x460] sm:$0xff]  ;;  %v19034_v33 = vld [vmem:[%s34868_s5 + $0x468] sm:$0xff] }
 0xb72   :  { %v25661_v0 = vpack.c.bf16 %v19034_v33, %v19033_v40 }
 0xb74   :  { %25593 = vmatpush3.bf16.msra.mxu1 %v25592_v3  ;;  %v15670_v3 = vld [vmem:[#allocation3 + $0x57] sm:$0x1] }
 0xb75   :  { %25594 = vmatprep.subr.bf16.mxu1 %v27079_v54 }
 0xb77   :  { %24263 = vmatmul.mubr.f32.vlgmr.msra.gmra.mrb[176].mxu1 %v15485_v59  ;;  %v15667_v59 = vld [vmem:[#allocation3 + $0x16] sm:$0x1] }
 0xb78   :  { %25596 = vmatpush3.bf16.msra.mxu1 %v25595_v9  ;;  %24297 = vmatprep.mubr.msk.f32.mxu1 %vm27080_vm2, %v27081_v39  ;;  %v15672_v9 = vmax.f32 %v15668_v31, %v15670_v3 }
 0xb79   :  { %25597 = vmatprep.subr.bf16.mxu1 %v27079_v54 }
 0xb7c   :  { %25599 = vmatpush3.bf16.msra.mxu1 %v25598_v34  ;;  %v15669_v34 = vld [vmem:[#allocation3 + $0x17] sm:$0x1] }
 0xb7d   :  { %25600 = vmatprep.subr.bf16.mxu1 %v27079_v54  ;;  %v15671_v15 = vmax.f32 %v15667_v59, %v15669_v34  ;;  %v19037_v59 = vld [vmem:[%s34868_s5 + $0x480] sm:$0xff]  ;;  %v19038_v34 = vld [vmem:[%s34868_s5 + $0x488] sm:$0xff] }
 0xb7f   :  { %v15679_v52 = vmax.f32 %v15671_v15, %v15677_v25  ;;  %v19042_v15 = vld [vmem:[%s34868_s5 + $0x4a8] sm:$0xff] }
 0xb80   :  { %25602 = vmatpush3.bf16.msra.mxu1 %v25601_v27  ;;  %v19018_v27 = vld [vmem:[%s34868_s5 + $0x3e8] sm:$0xff] }
 0xb81   :  { %25603 = vmatprep.subr.bf16.mxu1 %v27079_v54  ;;  %v25637_v32 = vpack.c.bf16 %v19018_v27, %v19017_v16  ;;  %v15681_v38 = vmax.f32 %v15679_v52, 0.0  ;;  %v25667_v27 = vpack.c.bf16 %v19038_v34, %v19037_v59  ;;  %v19046_v52 = vld [vmem:[%s34868_s5 + $0x4c8] sm:$0xff]  ;;  %v15997_v59 = vld [vmem:[#allocation3 + $0x64] sm:$0x1]  ;;  %v15999_v34 = vld [vmem:[#allocation3 + $0x65] sm:$0x1] }
 0xb84   :  { %25605 = vmatpush3.bf16.msra.mxu1 %v25604_v28  ;;  %v15680_v28 = vmax.f32 %v15672_v9, %v15678_v42  ;;  %v25664_v42 = vpack.c.bf16 %v19036_v45, %v19035_v44  ;;  %v19059_v44 = vld [vmem:[%s34868_s5 + $0x530] sm:$0xff]  ;;  %v19060_v45 = vld [vmem:[%s34868_s5 + $0x538] sm:$0xff] }
 0xb85   :  { %25606 = vmatprep.subr.bf16.mxu1 %v27079_v54 }
 0xb88   :  { %25608 = vmatpush3.bf16.msra.mxu1 %v25607_v26  ;;  %v15682_v26 = vmax.f32 %v15680_v28, 0.0 }
 0xb89   :  { %25609 = vmatprep.subr.bf16.mxu1 %v27079_v54 }
 0xb8c   :  { %25611 = vmatpush3.bf16.msra.mxu1 %v25610_v24  ;;  %v15702_v24 = vrot.slane %v15682_v26, 7  ;;  %v25676_v26 = vpack.c.bf16 %v19044_v48, %v19043_v58  ;;  %v16002_v58 = vld [vmem:[#allocation3 + $0x2c] sm:$0x1]  ;;  %v19065_v48 = vld [vmem:[%s34868_s5 + $0x560] sm:$0xff] }
 0xb8d   :  { %25612 = vmatprep.subr.bf16.mxu1 %v27079_v54 }
 0xb8e   :  { %v15703_v55 = vsel %vm14972_vm3, %v15702_v24, %v15681_v38  ;;  %v15894_v24 = vld [vmem:[#allocation3 + $0x6a] sm:$0x1]  ;;  %v15896_v38 = vld [vmem:[#allocation3 + $0x6b] sm:$0x1] }
 0xb90   :  { %25614 = vmatpush3.bf16.msra.mxu1 %v25613_v43  ;;  %v19026_v43 = vld [vmem:[%s34868_s5 + $0x428] sm:$0xff] }
 0xb91   :  { %25615 = vmatprep.subr.bf16.mxu1 %v27079_v54  ;;  %v25649_v14 = vpack.c.bf16 %v19026_v43, %v19025_v21  ;;  %v25682_v21 = vpack.c.bf16 %v19048_v22, %v19047_v47  ;;  %v15887_v43 = vld [vmem:[#allocation3 + $0x22] sm:$0x1]  ;;  %v19067_v22 = vld [vmem:[%s34868_s5 + $0x570] sm:$0xff] }
 0xb94   :  { %25617 = vmatpush3.bf16.msra.mxu1 %v25616_v62  ;;  %v19030_v62 = vld [vmem:[%s34868_s5 + $0x448] sm:$0xff] }
 0xb95   :  { %25618 = vmatprep.subr.bf16.mxu1 %v27079_v54  ;;  %v25655_v7 = vpack.c.bf16 %v19030_v62, %v19029_v49  ;;  %v15895_v49 = vld [vmem:[#allocation3 + $0x2b] sm:$0x1] }
 0xb97   :  { %24298 = vmatmul.mubr.f32.vlgmr.msra.gmra.mrb[178].mxu1 %v15594_v53  ;;  %v15789_v53 = vmax.f32 %v15785_v12, %v15787_v36 }
 0xb98   :  { %25620 = vmatpush3.bf16.msra.mxu1 %v25619_v13  ;;  %24332 = vmatprep.mubr.msk.f32.mxu1 %vm27080_vm2, %v27081_v39  ;;  %v19031_v13 = vld [vmem:[%s34868_s5 + $0x450] sm:$0xff] }
 0xb99   :  { %25621 = vmatprep.subr.bf16.mxu1 %v27079_v54  ;;  %v15791_v19 = vmax.f32 %v15782_v46, %v15789_v53  ;;  %v19052_v46 = vld [vmem:[%s34868_s5 + $0x4f8] sm:$0xff] }
 0xb9b   :  { %v15793_v9 = vmax.f32 %v15791_v19, 0.0  ;;  %v19056_v19 = vld [vmem:[%s34868_s5 + $0x518] sm:$0xff] }
 0xb9c   :  { %25623 = vmatpush3.bf16.msra.mxu1 %v25622_v51  ;;  %v25658_v51 = vpack.c.bf16 %v19032_v56, %v19031_v13  ;;  %v15897_v13 = vmax.f32 %v15893_v17, %v15895_v49  ;;  %v19051_v56 = vld [vmem:[%s34868_s5 + $0x4f0] sm:$0xff]  ;;  %v19070_v17 = vld [vmem:[%s34868_s5 + $0x588] sm:$0xff] }
 0xb9d   :  { %25624 = vmatprep.subr.bf16.mxu1 %v27079_v54  ;;  %v15813_v20 = vrot.slane %v15793_v9, 7  ;;  %v25700_v9 = vpack.c.bf16 %v19060_v45, %v19059_v44  ;;  %v16111_v44 = vld [vmem:[#allocation3 + $0x2e] sm:$0x1]  ;;  %v19081_v45 = vld [vmem:[%s34868_s5 + $0x5e0] sm:$0xff] }
 0xba0   :  { %25626 = vmatpush3.bf16.msra.mxu1 %v25625_v5  ;;  %v15784_v5 = vld [vmem:[#allocation3 + $0x28] sm:$0x1] }
 0xba1   :  { %25627 = vmatprep.subr.bf16.mxu1 %v27079_v54 }
 0xba4   :  { %25629 = vmatpush3.bf16.msra.mxu1 %v25628_v4  ;;  %v15786_v4 = vld [vmem:[#allocation3 + $0x29] sm:$0x1] }
 0xba5   :  { %25630 = vmatprep.subr.bf16.mxu1 %v27079_v54 }
 0xba8   :  { %25632 = vmatpush3.bf16.msra.mxu1 %v25631_v23  ;;  %v15788_v23 = vmax.f32 %v15784_v5, %v15786_v4  ;;  %v19054_v5 = vld [vmem:[%s34868_s5 + $0x508] sm:$0xff] }
 0xba9   :  { %25633 = vmatprep.subr.bf16.mxu1 %v27079_v54  ;;  %v25691_v4 = vpack.c.bf16 %v19054_v5, %v19053_v35  ;;  %v16106_v35 = vld [vmem:[#allocation3 + $0x66] sm:$0x1]  ;;  %v16108_v5 = vld [vmem:[#allocation3 + $0x67] sm:$0x1] }
 0xbaa   :  { %v34282_v18 = vpop.f32.mrb[166].mxu1 }
 0xbab   :  { %v24089_v1 = vpop.f32.mrb[167].mxu1 }
 0xbac   :  { %25635 = vmatpush3.bf16.msra.mxu1 %v25634_v57  ;;  %v15790_v57 = vmax.f32 %v15781_v29, %v15788_v23  ;;  %v19058_v29 = vld [vmem:[%s34868_s5 + $0x528] sm:$0xff] }
 0xbad   :  { %25636 = vmatprep.subr.bf16.mxu1 %v27079_v54 }
 0xbae   :  { %v15792_v16 = vmax.f32 %v15790_v57, 0.0  ;;  %v19062_v57 = vld [vmem:[%s34868_s5 + $0x548] sm:$0xff] }
 0xbb0   :  { %25638 = vmatpush3.bf16.msra.mxu1 %v25637_v32  ;;  %v15814_v28 = vsel %vm14972_vm3, %v15813_v20, %v15792_v16  ;;  %v19041_v32 = vld [vmem:[%s34868_s5 + $0x4a0] sm:$0xff]  ;;  %v16003_v20 = vld [vmem:[#allocation3 + $0x6c] sm:$0x1]  ;;  %v16005_v16 = vld [vmem:[#allocation3 + $0x6d] sm:$0x1] }
 0xbb1   :  { %25639 = vmatprep.subr.bf16.mxu1 %v27079_v54  ;;  %v25673_v25 = vpack.c.bf16 %v19042_v15, %v19041_v32  ;;  %v15996_v15 = vld [vmem:[#allocation3 + $0x24] sm:$0x1] }
 0xbb4   :  { %25641 = vmatpush3.bf16.msra.mxu1 %v25640_v37  ;;  %v19045_v37 = vld [vmem:[%s34868_s5 + $0x4c0] sm:$0xff] }
 0xbb5   :  { %25642 = vmatprep.subr.bf16.mxu1 %v27079_v54 }
 0xbb7   :  { %24333 = vmatmul.mubr.f32.vlgmr.msra.gmra.mrb[180].mxu1 %v15703_v55  ;;  %v15892_v55 = vmax.f32 %v15888_v60, %v15890_v11 }
 0xbb8   :  { %25644 = vmatpush3.bf16.msra.mxu1 %v25643_v6  ;;  %24367 = vmatprep.mubr.msk.f32.mxu1 %vm27080_vm2, %v27081_v39  ;;  %v25679_v6 = vpack.c.bf16 %v19046_v52, %v19045_v37  ;;  %v16004_v37 = vld [vmem:[#allocation3 + $0x2d] sm:$0x1] }
 0xbb9   :  { %25645 = vmatprep.subr.bf16.mxu1 %v27079_v54  ;;  %v16006_v47 = vmax.f32 %v16002_v58, %v16004_v37  ;;  %v19086_v58 = vld [vmem:[%s34868_s5 + $0x608] sm:$0xff] }
 0xbbc   :  { %25647 = vmatpush3.bf16.msra.mxu1 %v25646_v30  ;;  %v15898_v30 = vmax.f32 %v15894_v24, %v15896_v38 }
 0xbbd   :  { %25648 = vmatprep.subr.bf16.mxu1 %v27079_v54 }
 0xbbe   :  { %v15900_v8 = vmax.f32 %v15892_v55, %v15898_v30  ;;  %v19068_v55 = vld [vmem:[%s34868_s5 + $0x578] sm:$0xff] }
 0xbc0   :  { %25650 = vmatpush3.bf16.msra.mxu1 %v25649_v14  ;;  %v15889_v14 = vld [vmem:[#allocation3 + $0x23] sm:$0x1]  ;;  %v15902_v53 = vmax.f32 %v15900_v8, 0.0  ;;  %v19072_v8 = vld [vmem:[%s34868_s5 + $0x598] sm:$0xff] }
 0xbc1   :  { %25651 = vmatprep.subr.bf16.mxu1 %v27079_v54 }
 0xbc2   :  { %v15922_v40 = vrot.slane %v15902_v53, 7 }
 0xbc4   :  { %25653 = vmatpush3.bf16.msra.mxu1 %v25652_v63  ;;  %v19050_v63 = vld [vmem:[%s34868_s5 + $0x4e8] sm:$0xff] }
 0xbc5   :  { %25654 = vmatprep.subr.bf16.mxu1 %v27079_v54  ;;  %v25685_v36 = vpack.c.bf16 %v19050_v63, %v19049_v10 }
 0xbc8   :  { %25656 = vmatpush3.bf16.msra.mxu1 %v25655_v7  ;;  %v15891_v7 = vmax.f32 %v15887_v43, %v15889_v14  ;;  %v19069_v14 = vld [vmem:[%s34868_s5 + $0x580] sm:$0xff] }
 0xbc9   :  { %25657 = vmatprep.subr.bf16.mxu1 %v27079_v54  ;;  %v25715_v49 = vpack.c.bf16 %v19070_v17, %v19069_v14  ;;  %v16216_v14 = vld [vmem:[#allocation3 + $0x70] sm:$0x1]  ;;  %v16218_v17 = vld [vmem:[#allocation3 + $0x71] sm:$0x1] }
 0xbca   :  { %v15116_v50 = vpop.f32.mrb[168].mxu1  ;;  %v15899_v41 = vmax.f32 %v15891_v7, %v15897_v13  ;;  %v19074_v7 = vld [vmem:[%s34868_s5 + $0x5a8] sm:$0xff] }
 0xbcb   :  { %v34344_v31 = vadd.f32 %v15116_v50, %v34282_v18  ;;  %v24124_v3 = vpop.f32.mrb[169].mxu1  ;;  %v19040_v18 = vld [vmem:[%s34868_s5 + $0x498] sm:$0xff]  ;;  %v19055_v50 = vld [vmem:[%s34868_s5 + $0x510] sm:$0xff] }
 0xbcc   :  { %25659 = vmatpush3.bf16.msra.mxu1 %v25658_v51  ;;  %v25670_v1 = vpack.c.bf16 %v19040_v18, %v19039_v61  ;;  %v25688_v51 = vpack.c.bf16 %v19052_v46, %v19051_v56  ;;  %v15901_v33 = vmax.f32 %v15899_v41, 0.0  ;;  %v25694_v3 = vpack.c.bf16 %v19056_v19, %v19055_v50  ;;  %v19063_v61 = vld [vmem:[%s34868_s5 + $0x550] sm:$0xff]  ;;  %v19064_v18 = vld [vmem:[%s34868_s5 + $0x558] sm:$0xff]  ;;  %v19078_v41 = vld [vmem:[%s34868_s5 + $0x5c8] sm:$0xff] }
 0xbcd   :  { %25660 = vmatprep.subr.bf16.mxu1 %v27079_v54  ;;  %v25706_v32 = vpack.c.bf16 %v19064_v18, %v19063_v61  ;;  %v19075_v56 = vld [vmem:[%s34868_s5 + $0x5b0] sm:$0xff]  ;;  %v19076_v46 = vld [vmem:[%s34868_s5 + $0x5b8] sm:$0xff] }
 0xbce   :  { %v25724_v53 = vpack.c.bf16 %v19076_v46, %v19075_v56  ;;  %v19079_v50 = vld [vmem:[%s34868_s5 + $0x5d0] sm:$0xff]  ;;  %v19080_v19 = vld [vmem:[%s34868_s5 + $0x5d8] sm:$0xff]  ;;  %v19097_v46 = vld [vmem:[%s34868_s5 + $0x660] sm:$0xff] }
 0xbcf   :  { %v19083_v18 = vld [vmem:[%s34868_s5 + $0x5f0] sm:$0xff]  ;;  %v16222_v56 = vld [vmem:[#allocation3 + $0x38] sm:$0x1] }
 0xbd0   :  { %25662 = vmatpush3.bf16.msra.mxu1 %v25661_v0  ;;  %v19057_v0 = vld [vmem:[%s34868_s5 + $0x520] sm:$0xff] }
 0xbd1   :  { %25663 = vmatprep.subr.bf16.mxu1 %v27079_v54  ;;  %v25697_v23 = vpack.c.bf16 %v19058_v29, %v19057_v0  ;;  %v25730_v0 = vpack.c.bf16 %v19080_v19, %v19079_v50  ;;  %v16105_v29 = vld [vmem:[#allocation3 + $0x26] sm:$0x1]  ;;  %v19099_v19 = vld [vmem:[%s34868_s5 + $0x670] sm:$0xff] }
 0xbd4   :  { %25665 = vmatpush3.bf16.msra.mxu1 %v25664_v42  ;;  %v19061_v42 = vld [vmem:[%s34868_s5 + $0x540] sm:$0xff] }
 0xbd5   :  { %25666 = vmatprep.subr.bf16.mxu1 %v27079_v54 }
 0xbd7   :  { %24368 = vmatmul.mubr.f32.vlgmr.msra.gmra.mrb[182].mxu1 %v15814_v28  ;;  %v16001_v28 = vmax.f32 %v15997_v59, %v15999_v34 }
 0xbd8   :  { %25668 = vmatpush3.bf16.msra.mxu1 %v25667_v27  ;;  %24402 = vmatprep.mubr.msk.f32.mxu1 %vm27080_vm2, %v27081_v39  ;;  %v25703_v27 = vpack.c.bf16 %v19062_v57, %v19061_v42  ;;  %v16113_v42 = vld [vmem:[#allocation3 + $0x2f] sm:$0x1] }
 0xbd9   :  { %25669 = vmatprep.subr.bf16.mxu1 %v27079_v54  ;;  %v16115_v61 = vmax.f32 %v16111_v44, %v16113_v42  ;;  %v19102_v44 = vld [vmem:[%s34868_s5 + $0x688] sm:$0xff] }
 0xbdc   :  { %25671 = vmatpush3.bf16.msra.mxu1 %v25670_v1  ;;  %v16007_v1 = vmax.f32 %v16003_v20, %v16005_v16 }
 0xbdd   :  { %25672 = vmatprep.subr.bf16.mxu1 %v27079_v54 }
 0xbde   :  { %v16009_v60 = vmax.f32 %v16001_v28, %v16007_v1  ;;  %v19084_v28 = vld [vmem:[%s34868_s5 + $0x5f8] sm:$0xff] }
 0xbe0   :  { %25674 = vmatpush3.bf16.msra.mxu1 %v25673_v25  ;;  %v15998_v25 = vld [vmem:[#allocation3 + $0x25] sm:$0x1]  ;;  %v16011_v30 = vmax.f32 %v16009_v60, 0.0  ;;  %v19088_v60 = vld [vmem:[%s34868_s5 + $0x618] sm:$0xff] }
 0xbe1   :  { %25675 = vmatprep.subr.bf16.mxu1 %v27079_v54 }
 0xbe2   :  { %v16031_v10 = vrot.slane %v16011_v30, 7 }
 0xbe4   :  { %25677 = vmatpush3.bf16.msra.mxu1 %v25676_v26  ;;  %v19066_v26 = vld [vmem:[%s34868_s5 + $0x568] sm:$0xff] }
 0xbe5   :  { %25678 = vmatprep.subr.bf16.mxu1 %v27079_v54  ;;  %v25709_v38 = vpack.c.bf16 %v19066_v26, %v19065_v48 }
 0xbe8   :  { %25680 = vmatpush3.bf16.msra.mxu1 %v25679_v6  ;;  %v16000_v6 = vmax.f32 %v15996_v15, %v15998_v25  ;;  %v19085_v25 = vld [vmem:[%s34868_s5 + $0x600] sm:$0xff] }
 0xbe9   :  { %25681 = vmatprep.subr.bf16.mxu1 %v27079_v54  ;;  %v25739_v37 = vpack.c.bf16 %v19086_v58, %v19085_v25  ;;  %v16326_v25 = vld [vmem:[#allocation3 + $0x72] sm:$0x1]  ;;  %v16328_v58 = vld [vmem:[#allocation3 + $0x73] sm:$0x1] }
 0xbea   :  { %v15224_v62 = vpop.f32.mrb[170].mxu1  ;;  %v16008_v43 = vmax.f32 %v16000_v6, %v16006_v47  ;;  %v19090_v6 = vld [vmem:[%s34868_s5 + $0x628] sm:$0xff] }
 0xbeb   :  { %v34406_v2 = vadd.f32 %v15224_v62, %v34344_v31  ;;  %v24159_v12 = vpop.f32.mrb[171].mxu1  ;;  %v15923_v31 = vsel %vm14972_vm3, %v15922_v40, %v15901_v33  ;;  %v19071_v62 = vld [vmem:[%s34868_s5 + $0x590] sm:$0xff]  ;;  %v16112_v40 = vld [vmem:[#allocation3 + $0x6e] sm:$0x1]  ;;  %v16114_v33 = vld [vmem:[#allocation3 + $0x6f] sm:$0x1] }
 0xbec   :  { %25683 = vmatpush3.bf16.msra.mxu1 %v25682_v21  ;;  %v25712_v21 = vpack.c.bf16 %v19068_v55, %v19067_v22  ;;  %v16010_v63 = vmax.f32 %v16008_v43, 0.0  ;;  %v25718_v12 = vpack.c.bf16 %v19072_v8, %v19071_v62  ;;  %v19091_v22 = vld [vmem:[%s34868_s5 + $0x630] sm:$0xff]  ;;  %v19092_v55 = vld [vmem:[%s34868_s5 + $0x638] sm:$0xff]  ;;  %v19094_v43 = vld [vmem:[%s34868_s5 + $0x648] sm:$0xff] }
 0xbed   :  { %25684 = vmatprep.subr.bf16.mxu1 %v27079_v54  ;;  %v25748_v30 = vpack.c.bf16 %v19092_v55, %v19091_v22  ;;  %v19095_v62 = vld [vmem:[%s34868_s5 + $0x650] sm:$0xff]  ;;  %v19096_v8 = vld [vmem:[%s34868_s5 + $0x658] sm:$0xff]  ;;  %v19113_v55 = vld [vmem:[%s34868_s5 + $0x6e0] sm:$0xff] }
 0xbee   :  { %v16331_v22 = vld [vmem:[#allocation3 + $0x3a] sm:$0x1] }
 0xbf0   :  { %25686 = vmatpush3.bf16.msra.mxu1 %v25685_v36  ;;  %v19073_v36 = vld [vmem:[%s34868_s5 + $0x5a0] sm:$0xff] }
 0xbf1   :  { %25687 = vmatprep.subr.bf16.mxu1 %v27079_v54  ;;  %v25721_v13 = vpack.c.bf16 %v19074_v7, %v19073_v36  ;;  %v25754_v36 = vpack.c.bf16 %v19096_v8, %v19095_v62  ;;  %v16215_v7 = vld [vmem:[#allocation3 + $0x30] sm:$0x1] }
 0xbf2   :  { %v19115_v8 = vld [vmem:[%s34868_s5 + $0x6f0] sm:$0xff] }
 0xbf4   :  { %25689 = vmatpush3.bf16.msra.mxu1 %v25688_v51  ;;  %v19077_v51 = vld [vmem:[%s34868_s5 + $0x5c0] sm:$0xff] }
 0xbf5   :  { %25690 = vmatprep.subr.bf16.mxu1 %v27079_v54 }
 0xbf7   :  { %24403 = vmatmul.mubr.f32.vlgmr.msra.gmra.mrb[184].mxu1 %v15923_v31  ;;  %v16110_v31 = vmax.f32 %v16106_v35, %v16108_v5 }
 0xbf8   :  { %25692 = vmatpush3.bf16.msra.mxu1 %v25691_v4  ;;  %24437 = vmatprep.mubr.msk.f32.mxu1 %vm27080_vm2, %v27081_v39  ;;  %v25727_v4 = vpack.c.bf16 %v19078_v41, %v19077_v51  ;;  %v16224_v51 = vld [vmem:[#allocation3 + $0x39] sm:$0x1] }
 0xbf9   :  { %25693 = vmatprep.subr.bf16.mxu1 %v27079_v54  ;;  %v16226_v50 = vmax.f32 %v16222_v56, %v16224_v51  ;;  %v19118_v56 = vld [vmem:[%s34868_s5 + $0x708] sm:$0xff] }
 0xbfc   :  { %25695 = vmatpush3.bf16.msra.mxu1 %v25694_v3  ;;  %v16116_v3 = vmax.f32 %v16112_v40, %v16114_v33 }
 0xbfd   :  { %25696 = vmatprep.subr.bf16.mxu1 %v27079_v54 }
 0xbfe   :  { %v16118_v59 = vmax.f32 %v16110_v31, %v16116_v3  ;;  %v19100_v31 = vld [vmem:[%s34868_s5 + $0x678] sm:$0xff] }
 0xc00   :  { %25698 = vmatpush3.bf16.msra.mxu1 %v25697_v23  ;;  %v16107_v23 = vld [vmem:[#allocation3 + $0x27] sm:$0x1]  ;;  %v16120_v1 = vmax.f32 %v16118_v59, 0.0  ;;  %v19104_v59 = vld [vmem:[%s34868_s5 + $0x698] sm:$0xff] }
 0xc01   :  { %25699 = vmatprep.subr.bf16.mxu1 %v27079_v54 }
 0xc02   :  { %v16140_v48 = vrot.slane %v16120_v1, 7 }
 0xc04   :  { %25701 = vmatpush3.bf16.msra.mxu1 %v25700_v9  ;;  %v19082_v9 = vld [vmem:[%s34868_s5 + $0x5e8] sm:$0xff] }
 0xc05   :  { %25702 = vmatprep.subr.bf16.mxu1 %v27079_v54  ;;  %v25733_v16 = vpack.c.bf16 %v19082_v9, %v19081_v45 }
 0xc08   :  { %25704 = vmatpush3.bf16.msra.mxu1 %v25703_v27  ;;  %v16109_v27 = vmax.f32 %v16105_v29, %v16107_v23  ;;  %v19101_v23 = vld [vmem:[%s34868_s5 + $0x680] sm:$0xff] }
 0xc09   :  { %25705 = vmatprep.subr.bf16.mxu1 %v27079_v54  ;;  %v25763_v42 = vpack.c.bf16 %v19102_v44, %v19101_v23  ;;  %v16435_v23 = vld [vmem:[#allocation3 + $0x74] sm:$0x1]  ;;  %v16437_v44 = vld [vmem:[#allocation3 + $0x75] sm:$0x1] }
 0xc0a   :  { %v15333_v52 = vpop.f32.mrb[172].mxu1  ;;  %v16117_v15 = vmax.f32 %v16109_v27, %v16115_v61  ;;  %v19106_v27 = vld [vmem:[%s34868_s5 + $0x6a8] sm:$0xff] }
 0xc0b   :  { %v34468_v11 = vadd.f32 %v15333_v52, %v34406_v2  ;;  %v24194_v24 = vpop.f32.mrb[173].mxu1  ;;  %v16032_v2 = vsel %vm14972_vm3, %v16031_v10, %v16010_v63  ;;  %v19087_v52 = vld [vmem:[%s34868_s5 + $0x610] sm:$0xff]  ;;  %v16223_v10 = vld [vmem:[#allocation3 + $0x78] sm:$0x1]  ;;  %v16225_v63 = vld [vmem:[#allocation3 + $0x79] sm:$0x1] }
 0xc0c   :  { %25707 = vmatpush3.bf16.msra.mxu1 %v25706_v32  ;;  %v25736_v32 = vpack.c.bf16 %v19084_v28, %v19083_v18  ;;  %v16119_v26 = vmax.f32 %v16117_v15, 0.0  ;;  %v25742_v24 = vpack.c.bf16 %v19088_v60, %v19087_v52  ;;  %v19107_v18 = vld [vmem:[%s34868_s5 + $0x6b0] sm:$0xff]  ;;  %v19108_v28 = vld [vmem:[%s34868_s5 + $0x6b8] sm:$0xff]  ;;  %v19110_v15 = vld [vmem:[%s34868_s5 + $0x6c8] sm:$0xff] }
 0xc0d   :  { %25708 = vmatprep.subr.bf16.mxu1 %v27079_v54  ;;  %v25772_v1 = vpack.c.bf16 %v19108_v28, %v19107_v18  ;;  %v19111_v52 = vld [vmem:[%s34868_s5 + $0x6d0] sm:$0xff]  ;;  %v19112_v60 = vld [vmem:[%s34868_s5 + $0x6d8] sm:$0xff]  ;;  %v19129_v28 = vld [vmem:[%s34868_s5 + $0x760] sm:$0xff] }
 0xc0e   :  { %v16440_v18 = vld [vmem:[#allocation3 + $0x3c] sm:$0x1] }
 0xc10   :  { %25710 = vmatpush3.bf16.msra.mxu1 %v25709_v38  ;;  %v19089_v38 = vld [vmem:[%s34868_s5 + $0x620] sm:$0xff] }
 0xc11   :  { %25711 = vmatprep.subr.bf16.mxu1 %v27079_v54  ;;  %v25745_v47 = vpack.c.bf16 %v19090_v6, %v19089_v38  ;;  %v25778_v38 = vpack.c.bf16 %v19112_v60, %v19111_v52  ;;  %v16325_v6 = vld [vmem:[#allocation3 + $0x32] sm:$0x1] }
 0xc12   :  { %v19131_v60 = vld [vmem:[%s34868_s5 + $0x770] sm:$0xff] }
 0xc14   :  { %25713 = vmatpush3.bf16.msra.mxu1 %v25712_v21  ;;  %v19093_v21 = vld [vmem:[%s34868_s5 + $0x640] sm:$0xff] }
 0xc15   :  { %25714 = vmatprep.subr.bf16.mxu1 %v27079_v54 }
 0xc17   :  { %24438 = vmatmul.mubr.f32.vlgmr.msra.gmra.mrb[186].mxu1 %v16032_v2  ;;  %v16220_v2 = vmax.f32 %v16216_v14, %v16218_v17 }
 0xc18   :  { %25716 = vmatpush3.bf16.msra.mxu1 %v25715_v49  ;;  %24472 = vmatprep.mubr.msk.f32.mxu1 %vm27080_vm2, %v27081_v39  ;;  %v25751_v49 = vpack.c.bf16 %v19094_v43, %v19093_v21  ;;  %v16333_v21 = vld [vmem:[#allocation3 + $0x3b] sm:$0x1] }
 0xc19   :  { %25717 = vmatprep.subr.bf16.mxu1 %v27079_v54  ;;  %v16335_v62 = vmax.f32 %v16331_v22, %v16333_v21  ;;  %v19134_v22 = vld [vmem:[%s34868_s5 + $0x788] sm:$0xff] }
 0xc1c   :  { %25719 = vmatpush3.bf16.msra.mxu1 %v25718_v12  ;;  %v16227_v12 = vmax.f32 %v16223_v10, %v16225_v63 }
 0xc1d   :  { %25720 = vmatprep.subr.bf16.mxu1 %v27079_v54 }
 0xc1e   :  { %v16229_v35 = vmax.f32 %v16220_v2, %v16227_v12  ;;  %v19116_v2 = vld [vmem:[%s34868_s5 + $0x6f8] sm:$0xff] }
 0xc20   :  { %25722 = vmatpush3.bf16.msra.mxu1 %v25721_v13  ;;  %v16217_v13 = vld [vmem:[#allocation3 + $0x31] sm:$0x1]  ;;  %v16231_v3 = vmax.f32 %v16229_v35, 0.0  ;;  %v19120_v35 = vld [vmem:[%s34868_s5 + $0x718] sm:$0xff] }
 0xc21   :  { %25723 = vmatprep.subr.bf16.mxu1 %v27079_v54 }
 0xc22   :  { %v16251_v45 = vrot.slane %v16231_v3, 7 }
 0xc24   :  { %25725 = vmatpush3.bf16.msra.mxu1 %v25724_v53  ;;  %v19098_v53 = vld [vmem:[%s34868_s5 + $0x668] sm:$0xff] }
 0xc25   :  { %25726 = vmatprep.subr.bf16.mxu1 %v27079_v54  ;;  %v25757_v33 = vpack.c.bf16 %v19098_v53, %v19097_v46 }
 0xc28   :  { %25728 = vmatpush3.bf16.msra.mxu1 %v25727_v4  ;;  %v16219_v4 = vmax.f32 %v16215_v7, %v16217_v13  ;;  %v19117_v13 = vld [vmem:[%s34868_s5 + $0x700] sm:$0xff] }
 0xc29   :  { %25729 = vmatprep.subr.bf16.mxu1 %v27079_v54  ;;  %v25787_v51 = vpack.c.bf16 %v19118_v56, %v19117_v13  ;;  %v16544_v13 = vld [vmem:[#allocation3 + $0x76] sm:$0x1]  ;;  %v16546_v56 = vld [vmem:[#allocation3 + $0x77] sm:$0x1] }
 0xc2a   :  { %v15444_v57 = vpop.f32.mrb[174].mxu1  ;;  %v16228_v29 = vmax.f32 %v16219_v4, %v16226_v50  ;;  %v19122_v4 = vld [vmem:[%s34868_s5 + $0x728] sm:$0xff] }
 0xc2b   :  { %v34530_v34 = vadd.f32 %v15444_v57, %v34468_v11  ;;  %v24229_v20 = vpop.f32.mrb[175].mxu1  ;;  %v16141_v11 = vsel %vm14972_vm3, %v16140_v48, %v16119_v26  ;;  %v19103_v57 = vld [vmem:[%s34868_s5 + $0x690] sm:$0xff]  ;;  %v16332_v48 = vld [vmem:[#allocation3 + $0x7a] sm:$0x1]  ;;  %v16334_v26 = vld [vmem:[#allocation3 + $0x7b] sm:$0x1] }
 0xc2c   :  { %25731 = vmatpush3.bf16.msra.mxu1 %v25730_v0  ;;  %v25760_v0 = vpack.c.bf16 %v19100_v31, %v19099_v19  ;;  %v16230_v9 = vmax.f32 %v16228_v29, 0.0  ;;  %v25766_v20 = vpack.c.bf16 %v19104_v59, %v19103_v57  ;;  %v19123_v19 = vld [vmem:[%s34868_s5 + $0x730] sm:$0xff]  ;;  %v19124_v31 = vld [vmem:[%s34868_s5 + $0x738] sm:$0xff]  ;;  %v19126_v29 = vld [vmem:[%s34868_s5 + $0x748] sm:$0xff] }
 0xc2d   :  { %25732 = vmatprep.subr.bf16.mxu1 %v27079_v54  ;;  %v25796_v3 = vpack.c.bf16 %v19124_v31, %v19123_v19  ;;  %v19127_v57 = vld [vmem:[%s34868_s5 + $0x750] sm:$0xff]  ;;  %v19128_v59 = vld [vmem:[%s34868_s5 + $0x758] sm:$0xff]  ;;  %v19145_v31 = vld [vmem:[%s34868_s5 + $0x7e0] sm:$0xff] }
 0xc2e   :  { %v16549_v19 = vld [vmem:[#allocation3 + $0x3e] sm:$0x1] }
 0xc30   :  { %25734 = vmatpush3.bf16.msra.mxu1 %v25733_v16  ;;  %v19105_v16 = vld [vmem:[%s34868_s5 + $0x6a0] sm:$0xff] }
 0xc31   :  { %25735 = vmatprep.subr.bf16.mxu1 %v27079_v54  ;;  %v25769_v61 = vpack.c.bf16 %v19106_v27, %v19105_v16  ;;  %v25802_v16 = vpack.c.bf16 %v19128_v59, %v19127_v57  ;;  %v16434_v27 = vld [vmem:[#allocation3 + $0x34] sm:$0x1] }
 0xc32   :  { %v19147_v59 = vld [vmem:[%s34868_s5 + $0x7f0] sm:$0xff] }
 0xc34   :  { %25737 = vmatpush3.bf16.msra.mxu1 %v25736_v32  ;;  %v19109_v32 = vld [vmem:[%s34868_s5 + $0x6c0] sm:$0xff] }
 0xc35   :  { %25738 = vmatprep.subr.bf16.mxu1 %v27079_v54 }
 0xc37   :  { %24473 = vmatmul.mubr.f32.vlgmr.msra.gmra.mrb[188].mxu1 %v16141_v11  ;;  %v16330_v11 = vmax.f32 %v16326_v25, %v16328_v58 }
 0xc38   :  { %25740 = vmatpush3.bf16.msra.mxu1 %v25739_v37  ;;  %24507 = vmatprep.mubr.msk.f32.mxu1 %vm27080_vm2, %v27081_v39  ;;  %v25775_v37 = vpack.c.bf16 %v19110_v15, %v19109_v32  ;;  %v16442_v32 = vld [vmem:[#allocation3 + $0x3d] sm:$0x1] }
 0xc39   :  { %25741 = vmatprep.subr.bf16.mxu1 %v27079_v54  ;;  %v16444_v52 = vmax.f32 %v16440_v18, %v16442_v32 }
 0xc3c   :  { %25743 = vmatpush3.bf16.msra.mxu1 %v25742_v24  ;;  %v16336_v24 = vmax.f32 %v16332_v48, %v16334_v26 }
 0xc3d   :  { %25744 = vmatprep.subr.bf16.mxu1 %v27079_v54 }
 0xc3e   :  { %v16338_v14 = vmax.f32 %v16330_v11, %v16336_v24  ;;  %v19132_v11 = vld [vmem:[%s34868_s5 + $0x778] sm:$0xff] }
 0xc40   :  { %25746 = vmatpush3.bf16.msra.mxu1 %v25745_v47  ;;  %v16327_v47 = vld [vmem:[#allocation3 + $0x33] sm:$0x1]  ;;  %v16340_v12 = vmax.f32 %v16338_v14, 0.0  ;;  %v19136_v14 = vld [vmem:[%s34868_s5 + $0x798] sm:$0xff] }
 0xc41   :  { %25747 = vmatprep.subr.bf16.mxu1 %v27079_v54 }
 0xc42   :  { %v16360_v46 = vrot.slane %v16340_v12, 7 }
 0xc44   :  { %25749 = vmatpush3.bf16.msra.mxu1 %v25748_v30  ;;  %v19114_v30 = vld [vmem:[%s34868_s5 + $0x6e8] sm:$0xff] }
 0xc45   :  { %25750 = vmatprep.subr.bf16.mxu1 %v27079_v54  ;;  %v25781_v63 = vpack.c.bf16 %v19114_v30, %v19113_v55 }
 0xc48   :  { %25752 = vmatpush3.bf16.msra.mxu1 %v25751_v49  ;;  %v16329_v49 = vmax.f32 %v16325_v6, %v16327_v47  ;;  %v19133_v47 = vld [vmem:[%s34868_s5 + $0x780] sm:$0xff] }
 0xc49   :  { %25753 = vmatprep.subr.bf16.mxu1 %v27079_v54  ;;  %v25811_v21 = vpack.c.bf16 %v19134_v22, %v19133_v47  ;;  %v16667_v47 = vld [vmem:[%s34870_s7 + $0x30] sm:$0xff]  ;;  %v16668_v22 = vld [vmem:[%s34870_s7 + $0x38] sm:$0xff] }
 0xc4a   :  { %v15553_v41 = vpop.f32.mrb[176].mxu1  ;;  %v16337_v7 = vmax.f32 %v16329_v49, %v16335_v62  ;;  %v19138_v49 = vld [vmem:[%s34868_s5 + $0x7a8] sm:$0xff] }
 0xc4b   :  { %v34592_v5 = vadd.f32 %v15553_v41, %v34530_v34  ;;  %v24264_v40 = vpop.f32.mrb[177].mxu1  ;;  %v16252_v34 = vsel %vm14972_vm3, %v16251_v45, %v16230_v9  ;;  %v19119_v41 = vld [vmem:[%s34868_s5 + $0x710] sm:$0xff]  ;;  %v16441_v45 = vld [vmem:[#allocation3 + $0x7c] sm:$0x1]  ;;  %v16443_v9 = vld [vmem:[#allocation3 + $0x7d] sm:$0x1] }
 0xc4c   :  { %25755 = vmatpush3.bf16.msra.mxu1 %v25754_v36  ;;  %v25784_v36 = vpack.c.bf16 %v19116_v2, %v19115_v8  ;;  %v16339_v53 = vmax.f32 %v16337_v7, 0.0  ;;  %v25790_v40 = vpack.c.bf16 %v19120_v35, %v19119_v41  ;;  %v19139_v8 = vld [vmem:[%s34868_s5 + $0x7b0] sm:$0xff]  ;;  %v19140_v2 = vld [vmem:[%s34868_s5 + $0x7b8] sm:$0xff]  ;;  %v19142_v7 = vld [vmem:[%s34868_s5 + $0x7c8] sm:$0xff] }
 0xc4d   :  { %25756 = vmatprep.subr.bf16.mxu1 %v27079_v54  ;;  %v25820_v12 = vpack.c.bf16 %v19140_v2, %v19139_v8  ;;  %v19143_v41 = vld [vmem:[%s34868_s5 + $0x7d0] sm:$0xff]  ;;  %v19144_v35 = vld [vmem:[%s34868_s5 + $0x7d8] sm:$0xff]  ;;  %v16673_v8 = vld [vmem:[%s34870_s7 + $0x60] sm:$0xff] }
 0xc4e   :  { %v16674_v2 = vld [vmem:[%s34870_s7 + $0x68] sm:$0xff] }
 0xc50   :  { %25758 = vmatpush3.bf16.msra.mxu1 %v25757_v33  ;;  %v19121_v33 = vld [vmem:[%s34868_s5 + $0x720] sm:$0xff] }
 0xc51   :  { %25759 = vmatprep.subr.bf16.mxu1 %v27079_v54  ;;  %v25793_v50 = vpack.c.bf16 %v19122_v4, %v19121_v33  ;;  %v25826_v33 = vpack.c.bf16 %v19144_v35, %v19143_v41  ;;  %v16543_v4 = vld [vmem:[#allocation3 + $0x36] sm:$0x1] }
 0xc54   :  { %25761 = vmatpush3.bf16.msra.mxu1 %v25760_v0  ;;  %v19125_v0 = vld [vmem:[%s34868_s5 + $0x740] sm:$0xff] }
 0xc55   :  { %25762 = vmatprep.subr.bf16.mxu1 %v27079_v54 }
 0xc57   :  { %24508 = vmatmul.mubr.f32.vlgmr.msra.gmra.mrb[190].mxu1 %v16252_v34  ;;  %v16439_v34 = vmax.f32 %v16435_v23, %v16437_v44 }
 0xc58   :  { %25764 = vmatpush3.bf16.msra.mxu1 %v25763_v42  ;;  %24542 = vmatprep.mubr.msk.f32.mxu1 %vm27080_vm2, %v27081_v39  ;;  %v25799_v42 = vpack.c.bf16 %v19126_v29, %v19125_v0  ;;  %v16551_v0 = vld [vmem:[#allocation3 + $0x3f] sm:$0x1] }
 0xc59   :  { %25765 = vmatprep.subr.bf16.mxu1 %v27079_v54  ;;  %v16553_v57 = vmax.f32 %v16549_v19, %v16551_v0 }
 0xc5c   :  { %25767 = vmatpush3.bf16.msra.mxu1 %v25766_v20  ;;  %v16445_v20 = vmax.f32 %v16441_v45, %v16443_v9 }
 0xc5d   :  { %25768 = vmatprep.subr.bf16.mxu1 %v27079_v54 }
 0xc5e   :  { %v16447_v25 = vmax.f32 %v16439_v34, %v16445_v20  ;;  %v19148_v34 = vld [vmem:[%s34868_s5 + $0x7f8] sm:$0xff] }
 0xc60   :  { %25770 = vmatpush3.bf16.msra.mxu1 %v25769_v61  ;;  %v16436_v61 = vld [vmem:[#allocation3 + $0x35] sm:$0x1]  ;;  %v16449_v24 = vmax.f32 %v16447_v25, 0.0 }
 0xc61   :  { %25771 = vmatprep.subr.bf16.mxu1 %v27079_v54 }
 0xc62   :  { %v16469_v55 = vrot.slane %v16449_v24, 7  ;;  %v16665_v24 = vld [vmem:[%s34870_s7 + $0x20] sm:$0xff] }
 0xc64   :  { %25773 = vmatpush3.bf16.msra.mxu1 %v25772_v1  ;;  %v19130_v1 = vld [vmem:[%s34868_s5 + $0x768] sm:$0xff] }
 0xc65   :  { %25774 = vmatprep.subr.bf16.mxu1 %v27079_v54  ;;  %v25805_v26 = vpack.c.bf16 %v19130_v1, %v19129_v28 }
 0xc68   :  { %25776 = vmatpush3.bf16.msra.mxu1 %v25775_v37  ;;  %v16438_v37 = vmax.f32 %v16434_v27, %v16436_v61 }
 0xc69   :  { %25777 = vmatprep.subr.bf16.mxu1 %v27079_v54 }
 0xc6a   :  { %v15662_v43 = vpop.f32.mrb[178].mxu1  ;;  %v16446_v6 = vmax.f32 %v16438_v37, %v16444_v52  ;;  %v16662_v37 = vld [vmem:[%s34870_s7 + $0x8] sm:$0xff]  ;;  %v16663_v52 = vld [vmem:[%s34870_s7 + $0x10] sm:$0xff] }
 0xc6b   :  { %v34654_v17 = vadd.f32 %v15662_v43, %v34592_v5  ;;  %v24299_v10 = vpop.f32.mrb[179].mxu1  ;;  %v16361_v5 = vsel %vm14972_vm3, %v16360_v46, %v16339_v53  ;;  %v19135_v43 = vld [vmem:[%s34868_s5 + $0x790] sm:$0xff]  ;;  %v16550_v46 = vld [vmem:[#allocation3 + $0x7e] sm:$0x1]  ;;  %v16552_v53 = vld [vmem:[#allocation3 + $0x7f] sm:$0x1] }
 0xc6c   :  { %25779 = vmatpush3.bf16.msra.mxu1 %v25778_v38  ;;  %v25808_v38 = vpack.c.bf16 %v19132_v11, %v19131_v60  ;;  %v16448_v30 = vmax.f32 %v16446_v6, 0.0  ;;  %v25814_v10 = vpack.c.bf16 %v19136_v14, %v19135_v43  ;;  %v16671_v14 = vld [vmem:[%s34870_s7 + $0x50] sm:$0xff] }
 0xc6d   :  { %25780 = vmatprep.subr.bf16.mxu1 %v27079_v54 }
 0xc70   :  { %25782 = vmatpush3.bf16.msra.mxu1 %v25781_v63  ;;  %v19137_v63 = vld [vmem:[%s34868_s5 + $0x7a0] sm:$0xff] }
 0xc71   :  { %25783 = vmatprep.subr.bf16.mxu1 %v27079_v54  ;;  %v25817_v62 = vpack.c.bf16 %v19138_v49, %v19137_v63 }
 0xc74   :  { %25785 = vmatpush3.bf16.msra.mxu1 %v25784_v36  ;;  %v19141_v36 = vld [vmem:[%s34868_s5 + $0x7c0] sm:$0xff] }
 0xc75   :  { %25786 = vmatprep.subr.bf16.mxu1 %v27079_v54 }
 0xc77   :  { %24543 = vmatmul.mubr.f32.vlgmr.msra.gmra.mrb[192].mxu1 %v16361_v5  ;;  %v16548_v5 = vmax.f32 %v16544_v13, %v16546_v56 }
 0xc78   :  { %25788 = vmatpush3.bf16.msra.mxu1 %v25787_v51  ;;  %24577 = vmatprep.mubr.msk.f32.mxu1 %vm27080_vm2, %v27081_v39  ;;  %v25823_v51 = vpack.c.bf16 %v19142_v7, %v19141_v36  ;;  %v25853_v36 = vpack.c.bf16 %v16674_v2, %v16673_v8  ;;  %v16676_v7 = vld [vmem:[%s34870_s7 + $0x78] sm:$0xff] }
 0xc79   :  { %25789 = vmatprep.subr.bf16.mxu1 %v27079_v54 }
 0xc7c   :  { %25791 = vmatpush3.bf16.msra.mxu1 %v25790_v40  ;;  %v16554_v40 = vmax.f32 %v16550_v46, %v16552_v53 }
 0xc7d   :  { %25792 = vmatprep.subr.bf16.mxu1 %v27079_v54 }
 0xc7e   :  { %v16556_v23 = vmax.f32 %v16548_v5, %v16554_v40 }
 0xc80   :  { %25794 = vmatpush3.bf16.msra.mxu1 %v25793_v50  ;;  %v16545_v50 = vld [vmem:[#allocation3 + $0x37] sm:$0x1]  ;;  %v16558_v20 = vmax.f32 %v16556_v23, 0.0  ;;  %v19150_v23 = vld [vmem:[%s34871_s8] ss:$0 sm:$0xff] }
 0xc81   :  { %25795 = vmatprep.subr.bf16.mxu1 %v27079_v54 }
 0xc82   :  { %v16578_v61 = vrot.slane %v16558_v20, 7 }
 0xc84   :  { %25797 = vmatpush3.bf16.msra.mxu1 %v25796_v3  ;;  %v19146_v3 = vld [vmem:[%s34868_s5 + $0x7e8] sm:$0xff] }
 0xc85   :  { %25798 = vmatprep.subr.bf16.mxu1 %v27079_v54  ;;  %v25829_v9 = vpack.c.bf16 %v19146_v3, %v19145_v31 }
 0xc88   :  { %25800 = vmatpush3.bf16.msra.mxu1 %v25799_v42  ;;  %v16547_v42 = vmax.f32 %v16543_v4, %v16545_v50  ;;  %v19149_v50 = vld [vmem:[%s34869_s6] ss:$0 sm:$0xff]  ;;  %s27082_s6 = smov [#allocation4]  }
 0xc89   :  { %25801 = vmatprep.subr.bf16.mxu1 %v27079_v54  ;;  %s16778_s8 = sshll.u32 %s27082_s6, 4  ;;  %s16779_s8 = int_to_ptr.vmem [resolvable:$true] %s16778_s8 }
 0xc8a   :  { %v15771_v15 = vpop.f32.mrb[180].mxu1  ;;  %v16555_v27 = vmax.f32 %v16547_v42, %v16553_v57  ;;  %s27055_s23 = scalar_lea.vmem %s16779_s8, 32  ;;  %p27060_p1 = scmp.lt.s32.totalorder %s16779_s8, %s16779_s8 }
 0xc8b   :  { %v34716_v58 = vadd.f32 %v15771_v15, %v34654_v17  ;;  %v24334_v48 = vpop.f32.mrb[181].mxu1  ;;  %v16470_v17 = vsel %vm14972_vm3, %v16469_v55, %v16448_v30  ;;  %v25844_v55 = vpack.c.bf16 %v16668_v22, %v16667_v47  ;;  %v16669_v30 = vld [vmem:[%s34870_s7 + $0x40] sm:$0xff]  ;;  %p27056_p0 = scmp.ne.s32.totalorder %s16779_s8, %s27055_s23  ;;  %p27061_p2 = scmp.lt.s32.totalorder %s27055_s23, %s27055_s23 }
 0xc8c   :  { %25803 = vmatpush3.bf16.msra.mxu1 %v25802_v16  ;;  %v25832_v16 = vpack.c.bf16 %v19148_v34, %v19147_v59  ;;  %v16557_v18 = vmax.f32 %v16555_v27, 0.0 }
 0xc8d   :  { %25804 = vmatprep.subr.bf16.mxu1 %v27079_v54  ;;  %p27062_p3 = por %p27061_p2, %p27060_p1 }
 0xc8e   :  { %v16579_v28 = vsel %vm14972_vm3, %v16578_v61, %v16557_v18 }
 0xc8f   :  { %p27063_p4 = pnand %p27062_p3, %p27056_p0 }
 0xc90   :  { %25806 = vmatpush3.bf16.msra.mxu1 %v25805_v26  ;;  %v16661_v26 = vld [vmem:[%s34870_s7] sm:$0xff] }
 0xc91   :  { %25807 = vmatprep.subr.bf16.mxu1 %v27079_v54  ;;  %v25835_v60 = vpack.c.bf16 %v16662_v37, %v16661_v26 }
 0xc94   :  { %25809 = vmatpush3.bf16.msra.mxu1 %v25808_v38  ;;  %v16666_v38 = vld [vmem:[%s34870_s7 + $0x28] sm:$0xff] }
 0xc95   :  { %25810 = vmatprep.subr.bf16.mxu1 %v27079_v54  ;;  %v25841_v6 = vpack.c.bf16 %v16666_v38, %v16665_v24 }
 0xc97   :  { %24578 = vmatmul.mubr.f32.vlgmr.msra.gmra.mrb[194].mxu1 %v16470_v17  ;;  %v16672_v17 = vld [vmem:[%s34870_s7 + $0x58] sm:$0xff] }
 0xc98   :  { %25812 = vmatpush3.bf16.msra.mxu1 %v25811_v21  ;;  %24612 = vmatprep.mubr.msk.f32.mxu1 %vm27080_vm2, %v27081_v39  ;;  %v16670_v21 = vld [vmem:[%s34870_s7 + $0x48] sm:$0xff] }
 0xc99   :  { %25813 = vmatprep.subr.bf16.mxu1 %v27079_v54  ;;  %v25847_v43 = vpack.c.bf16 %v16670_v21, %v16669_v30 }
 0xc9c   :  { %25815 = vmatpush3.bf16.msra.mxu1 %v25814_v10  ;;  %v25850_v10 = vpack.c.bf16 %v16672_v17, %v16671_v14 }
 0xc9d   :  { %25816 = vmatprep.subr.bf16.mxu1 %v27079_v54 }
 0xca0   :  { %25818 = vmatpush3.bf16.msra.mxu1 %v25817_v62 }
 0xca1   :  { %25819 = vmatprep.subr.bf16.mxu1 %v27079_v54 }
 0xca4   :  { %25821 = vmatpush3.bf16.msra.mxu1 %v25820_v12  ;;  %v16675_v12 = vld [vmem:[%s34870_s7 + $0x70] sm:$0xff] }
 0xca5   :  { %25822 = vmatprep.subr.bf16.mxu1 %v27079_v54  ;;  %v25856_v13 = vpack.c.bf16 %v16676_v7, %v16675_v12 }
 0xca8   :  { %25824 = vmatpush3.bf16.msra.mxu1 %v25823_v51 }
 0xca9   :  { %25825 = vmatprep.subr.bf16.mxu1 %v27079_v54 }
 0xcaa   :  { %v15882_v29 = vpop.f32.mrb[182].mxu1 }
 0xcab   :  { %v15886_v44 = vadd.f32 %v15882_v29, %v34716_v58  ;;  %v24369_v45 = vpop.f32.mrb[183].mxu1 }
 0xcac   :  { %25827 = vmatpush3.bf16.msra.mxu1 %v25826_v33 }
 0xcad   :  { %25828 = vmatprep.subr.bf16.mxu1 %v27079_v54 }
 0xcb0   :  { %25830 = vmatpush3.bf16.msra.mxu1 %v25829_v9 }
 0xcb1   :  { %25831 = vmatprep.subr.bf16.mxu1 %v27079_v54 }
 0xcb4   :  { %25833 = vmatpush3.bf16.msra.mxu1 %v25832_v16 }
 0xcb5   :  { %25834 = vmatprep.subr.bf16.mxu1 %v27079_v54 }
 0xcb7   :  { %24613 = vmatmul.mubr.f32.vlgmr.msra.gmra.mrb[196].mxu1 %v16579_v28 }
 0xcb8   :  { %24647 = vmatprep.mubr.msk.f32.mxu1 %vm27080_vm2, %v27081_v39  ;;  %v16664_v39 = vld [vmem:[%s34870_s7 + $0x18] sm:$0xff]  ;;  %25836 = vmatpush3.bf16.msra.mxu1 %v25835_v60 }
 0xcb9   :  { %v25838_v11 = vpack.c.bf16 %v16664_v39, %v16663_v52  ;;  %25837 = vmatprep.subr.bf16.mxu1 %v27079_v54 }
 0xcbc   :  { %25839 = vmatpush3.bf16.msra.mxu1 %v25838_v11 }
 0xcbd   :  { %25840 = vmatprep.subr.bf16.mxu1 %v27079_v54 }
 0xcc0   :  { %25842 = vmatpush3.bf16.msra.mxu1 %v25841_v6 }
 0xcc1   :  { %25843 = vmatprep.subr.bf16.mxu1 %v27079_v54 }
 0xcc4   :  { %25845 = vmatpush3.bf16.msra.mxu1 %v25844_v55 }
 0xcc5   :  { %25846 = vmatprep.subr.bf16.mxu1 %v27079_v54 }
 0xcc8   :  { %25848 = vmatpush3.bf16.msra.mxu1 %v25847_v43 }
 0xcc9   :  { %25849 = vmatprep.subr.bf16.mxu1 %v27079_v54 }
 0xcca   :  { %v15991_v1 = vpop.f32.mrb[184].mxu1 }
 0xccb   :  { %v15995_v32 = vadd.f32 %v15991_v1, %v15886_v44  ;;  %v24404_v15 = vpop.f32.mrb[185].mxu1 }
 0xccc   :  { %25851 = vmatpush3.bf16.msra.mxu1 %v25850_v10 }
 0xccd   :  { %25852 = vmatprep.subr.bf16.mxu1 %v27079_v54 }
 0xcd0   :  { %25854 = vmatpush3.bf16.msra.mxu1 %v25853_v36 }
 0xcd1   :  { %25855 = vmatprep.subr.bf16.mxu1 %v27079_v54  ;;  %v16754_v54 = vlaneseq }
 0xcd3   :  { %v16755_v29 = vand.u32 127, %v16754_v54 }
 0xcd4   :  { %25857 = vmatpush3.bf16.msra.mxu1 %v25856_v13 }
 0xcd5   :  { %vm16756_vm4 = vcmp.lt.s32.totalorder %v16755_v29, 10 }
 0xcea   :  { %v16100_v25 = vpop.f32.mrb[186].mxu1 }
 0xceb   :  { %v16104_v58 = vadd.f32 %v16100_v25, %v15995_v32  ;;  %v24439_v48 = vpop.f32.mrb[187].mxu1 }
 0xd0a   :  { %v16209_v63 = vpop.f32.mrb[188].mxu1 }
 0xd0b   :  { %v16213_v49 = vadd.f32 %v16209_v63, %v16104_v58  ;;  %v24474_v62 = vpop.f32.mrb[189].mxu1 }
 0xd2a   :  { %v16320_v56 = vpop.f32.mrb[190].mxu1 }
 0xd2b   :  { %v16324_v46 = vadd.f32 %v16320_v56, %v16213_v49  ;;  %v24509_v53 = vpop.f32.mrb[191].mxu1 }
 0xd4a   :  { %v16429_v51 = vpop.f32.mrb[192].mxu1 }
 0xd4b   :  { %v16433_v41 = vadd.f32 %v16429_v51, %v16324_v46  ;;  %v24544_v35 = vpop.f32.mrb[193].mxu1 }
 0xd6a   :  { %v16538_v5 = vpop.f32.mrb[194].mxu1 }
 0xd6b   :  { %v16542_v40 = vadd.f32 %v16538_v5, %v16433_v41  ;;  %v24579_v33 = vpop.f32.mrb[195].mxu1 }
 0xd8a   :  { %v16647_v4 = vpop.f32.mrb[196].mxu1 }
 0xd8b   :  { %v16651_v19 = vadd.f32 %v16647_v4, %v16542_v40  ;;  %v24614_v31 = vpop.f32.mrb[197].mxu1 }
 0xd8d   :  { %v16659_v3 = vadd.f32 %v19149_v50, %v16651_v19 }
 0xd8f   :  { %v16660_v0 = vmax.f32 %v16659_v3, 0.0 }
 0xd91   :  { %24648 = vmatmul.mubr.f32.vlgmr.msra.gmra.mrb[198].mxu1 %v16660_v0 }
 0xe64   :  { %v16750_v44 = vpop.f32.mrb[198].mxu1 }
 0xe65   :  { %v16751_v45 = vadd.f32 %v19150_v23, %v16750_v44  ;;  %v24649_v9 = vpop.f32.mrb[199].mxu1 }
 0xe67   :  { %v16757_v42 = vsel %vm16756_vm4, %v16751_v45, -1e+30 }
 0xe68   :  { %v16759_v57 = vsel %vm16758_vm5, %v16757_v42, -inf }
 0xe69   :  { %16760 = vmax.xlane.f32.xlu0 %v16759_v57 }
 0xef6   :  { %v16761_v59 = vpop.xlane.xlu0 %16760 }
 0xef7   :  { %v16762_v34 = vsub.f32 %v16757_v42, %v16761_v59 }
 0xef9   :  { %v16763_v20 = vmul.f32 1.442695, %v16762_v34 }
 0xefb   :  { %27016 = vpow2.f32 %v16763_v20 }
 0xf05   :  { %v27017_v16 = vpop.eup %27016 }
 0xf06   :  { %v16765_v27 = vsel %vm16758_vm5, %v27017_v16, 0.0 }
 0xf07   :  { %16766 = vadd.xlane.f32.xlu0 %v16765_v27 }
 0xf94   :  { %v16767_v61 = vpop.xlane.xlu0 %16766 }
 0xf95   :  { %27018 = vlog2.f32 %v16767_v61 }
 0xf9f   :  { %v27019_v18 = vpop.eup %27018 }
 0xfa0   :  { %v16769_v28 = vmul.f32 0.6931472, %v27019_v18 }
 0xfa2   :  { %v16770_v1 = vsub.f32 %v16762_v34, %v16769_v28 }
 0xfa4   :  { %16771 = vst [vmem:[#allocation4] sm:$0x3] %v16770_v1 }
 0xfa5   :  { %27066 = shalt.err (!%p27063_p4)
}
 0xfa6   :  { %s27067_s26 = scalar_lea.hbm %s34872_s9, 32 }
 0xfa7   :  { %p27068_p5 = scmp.ne.s32.totalorder %s34872_s9, %s27067_s26  ;;  %p27071_p6 = scmp.lt.u32.totalorder %s27067_s26, %s34872_s9 }
 0xfa9   :  { %p27073_p7 = pnand %p27071_p6, %p27068_p5 }
 0xfab   :  { %27076 = shalt.err (!%p27073_p7)
}
 0xfac   :  { %16781 = dma.vmem_to_hbm [thread:$0]  %s16779_s8, 32, %s34872_s9, [#allocation5]  }
 0xfad   :  { %27077 = dma.done.wait [#allocation5], 32  }
 0xfae   :  { %27078 = vsyncadd [#allocation5], 4294967264 }
 0xfaf   :  { %16785 = vsyncpa [#allocation5], 1 }

</bundles_post_ra>
